<compile_context>
chip_gen: v5e
topology: v5e:2x2
jax: 0.10.0
libtpu: 0.0.40
codegen_flags: <defaults>
</compile_context>

<pallas_src>
import functools

import jax
import jax.numpy as jnp
from jax.experimental import pallas as pl
from jax.experimental.pallas import tpu as pltpu


CONV_LANES = 128  # channel width kept between conv stages (lane-dense)


# ----------------------------------------------------------------------------
# Helpers
# ----------------------------------------------------------------------------
def _round_up(v, m):
    return ((v + m - 1) // m) * m


def _pad2d(a, rows, cols):
    r, c = a.shape
    if (r, c) == (rows, cols):
        return a
    return jnp.pad(a, ((0, rows - r), (0, cols - c)))


# ----------------------------------------------------------------------------
# Kernel 1: fused im2col conv + bias + ReLU  (one grid step per sample).
#
# Input arrives reshaped (free, contiguous) to (N*(H/s), s, W/s, s*Cin): the
# window for kernel offset (i, j) is then the static slice
#   x[i//s : i//s+Ho, i%s, j//s : j//s+Wo, :]
# The weight block for (i, j) is (s*Cin, Oc) with nonzero rows only at the
# j%s phase, so the full-lane window can be contracted without lane slicing.
# ----------------------------------------------------------------------------
def _conv_relu_kernel(x_ref, w_ref, b_ref, o_ref, *, kh, kw, stride, ho, wo):
    sc = x_ref.shape[-1]              # stride * Cin  (window lane width)
    oc = o_ref.shape[-1]
    acc = jnp.zeros((ho * wo, oc), jnp.float32)
    for i in range(kh):
        hb, hr = i // stride, i % stride
        for j in range(kw):
            wb = j // stride
            win = x_ref[hb:hb + ho, hr, wb:wb + wo, :]          # (ho, wo, sc)
            acc = acc + jnp.dot(win.reshape(ho * wo, sc),
                                w_ref[i * kw + j],
                                preferred_element_type=jnp.float32)
    o_ref[0] = jnp.maximum(acc + b_ref[...], 0.0).astype(o_ref.dtype)


def conv2d_relu(x_nhwc, w_mat, b_row, kh, kw, stride):
    """x:(N,H,W,C) bf16, w_mat:(kh*kw, stride*C, Oc) bf16 -> (N,Ho,Wo,Oc) bf16."""
    n, h, w, c = x_nhwc.shape
    ho = (h - kh) // stride + 1
    wo = (w - kw) // stride + 1
    hp, wp = _round_up(h, stride), _round_up(w, stride)
    if (hp, wp) != (h, w):
        x_nhwc = jnp.pad(x_nhwc, ((0, 0), (0, hp - h), (0, wp - w), (0, 0)))
    # Free (contiguous) stride-factoring reshape; padded rows are never read.
    xr = x_nhwc.reshape(n * (hp // stride), stride, wp // stride, stride * c)
    p, sc, oc = w_mat.shape
    assert p == kh * kw and sc == stride * c

    kernel = functools.partial(_conv_relu_kernel, kh=kh, kw=kw, stride=stride,
                               ho=ho, wo=wo)
    out = pl.pallas_call(
        kernel,
        out_shape=jax.ShapeDtypeStruct((n, ho * wo, oc), jnp.bfloat16),
        grid=(n,),
        in_specs=[
            pl.BlockSpec((hp // stride, stride, wp // stride, sc),
                         lambda b: (b, 0, 0, 0)),
            pl.BlockSpec((p, sc, oc), lambda b: (0, 0, 0)),   # weights resident
            pl.BlockSpec((1, oc), lambda b: (0, 0)),
        ],
        out_specs=pl.BlockSpec((1, ho * wo, oc), lambda b: (b, 0, 0)),
        compiler_params=pltpu.CompilerParams(
            dimension_semantics=("parallel",),        # batch -> megacore split
            vmem_limit_bytes=32 * 1024 * 1024),
        cost_estimate=pl.CostEstimate(
            flops=2 * n * ho * wo * p * sc * oc,
            transcendentals=0,
            bytes_accessed=(n * hp * wp * c * 2 + p * sc * oc * 2
                            + n * ho * wo * oc * 2)),
    )(xr, w_mat, b_row)
    return out.reshape(n, ho, wo, oc)


# ----------------------------------------------------------------------------
# Kernel 2: fused policy head  logits = relu(x @ w1 + b1) @ w2 + b2
# ----------------------------------------------------------------------------
def _policy_head_kernel(x_ref, w1_ref, b1_ref, w2_ref, b2_ref, o_ref, acc_ref):
    @pl.when(pl.program_id(1) == 0)
    def _():
        acc_ref[...] = jnp.zeros_like(acc_ref)

    acc_ref[...] += jnp.dot(x_ref[...], w1_ref[...],
                            preferred_element_type=jnp.float32)

    @pl.when(pl.program_id(1) == pl.num_programs(1) - 1)
    def _():
        hidden = jnp.maximum(acc_ref[...] + b1_ref[...], 0.0)
        logits = jnp.dot(hidden.astype(w2_ref.dtype), w2_ref[...],
                         preferred_element_type=jnp.float32)
        o_ref[...] = (logits + b2_ref[...]).astype(o_ref.dtype)


def _pick_tm(m, tm_max=256):
    mp = _round_up(m, 16)
    tm = min(tm_max, mp)
    # v7x has 2 TensorCores: once M is big enough, keep >=2 parallel M blocks.
    if mp >= 256 and mp // tm < 2:
        tm = _round_up((mp + 1) // 2, 16)
    mp = _round_up(m, tm)
    return tm, mp


def _pick_tk(kp, tk_max=1024):
    # kp is a multiple of 128; pick the largest multiple-of-128 divisor of kp
    # that is <= tk_max, so K never over-pads and large K gets several
    # pipelined steps (hides x/w1 DMA on v5e/v6e).  On v7x (3.2 TB/s HBM)
    # tk_max can be raised since per-grid-step overhead dominates instead.
    assert kp % 128 == 0
    best = 128
    for t in range(128, min(tk_max, kp) + 1, 128):
        if kp % t == 0:
            best = t
    return best


def policy_head_pallas(h, w1p, b1p, w2p, b2p, *, n_out, tm_max=256, tk_max=1024):
    """Weights arrive pre-padded bf16 from prepare_params; only the activation
    gets a (cheap) row pad here."""
    m, k = h.shape
    kp, hd = w1p.shape
    hd2, np_ = w2p.shape
    assert k == kp and hd == hd2 and kp % 128 == 0 and np_ % 128 == 0

    tm, mp = _pick_tm(m, tm_max)
    tk = _pick_tk(kp, tk_max)
    hp = h.astype(jnp.bfloat16)
    if mp != m:
        hp = jnp.pad(hp, ((0, mp - m), (0, 0)))

    grid = (mp // tm, kp // tk)
    out = pl.pallas_call(
        _policy_head_kernel,
        out_shape=jax.ShapeDtypeStruct((mp, np_), jnp.float32),
        grid=grid,
        in_specs=[
            pl.BlockSpec((tm, tk), lambda i, kk: (i, kk)),
            pl.BlockSpec((tk, hd), lambda i, kk: (kk, 0)),
            pl.BlockSpec((1, hd), lambda i, kk: (0, 0)),
            pl.BlockSpec((hd, np_), lambda i, kk: (0, 0)),
            pl.BlockSpec((1, np_), lambda i, kk: (0, 0)),
        ],
        out_specs=pl.BlockSpec((tm, np_), lambda i, kk: (i, 0)),
        scratch_shapes=[pltpu.VMEM((tm, hd), jnp.float32)],
        compiler_params=pltpu.CompilerParams(
            dimension_semantics=("parallel", "arbitrary"),
            vmem_limit_bytes=32 * 1024 * 1024),
        cost_estimate=pl.CostEstimate(
            flops=2 * mp * hd * kp + 2 * mp * np_ * hd,
            transcendentals=0,
            bytes_accessed=(mp * kp * 2 + kp * hd * 2 + hd * np_ * 2
                            + mp * np_ * 4)),
    )(hp, w1p, b1p, w2p, b2p)
    # Keep the M slice: padded rows carry relu(bias) garbage by construction.
    return out[:m, :n_out]


# ----------------------------------------------------------------------------
# Parameters: PyTorch-equivalent init, then one-time prep into kernel layouts.
# ----------------------------------------------------------------------------
def _conv_out_hw(H, W):
    h1, w1 = (H - 8) // 4 + 1, (W - 8) // 4 + 1
    h2, w2 = (h1 - 4) // 2 + 1, (w1 - 4) // 2 + 1
    h3, w3 = (h2 - 3) // 1 + 1, (w2 - 3) // 1 + 1
    return h3, w3


def init_params(key, C, H, W, output_dim):
    h3, w3 = _conv_out_hw(H, W)
    conv_out_size = 64 * h3 * w3
    ks = jax.random.split(key, 10)
    s = 0.05
    return {
        # conv weights in PyTorch layout (O, Cin, kh, kw)
        "w1": s * jax.random.normal(ks[0], (32, C, 8, 8), jnp.float32),
        "b1": s * jax.random.normal(ks[1], (32,), jnp.float32),
        "w2": s * jax.random.normal(ks[2], (64, 32, 4, 4), jnp.float32),
        "b2": s * jax.random.normal(ks[3], (64,), jnp.float32),
        "w3": s * jax.random.normal(ks[4], (64, 64, 3, 3), jnp.float32),
        "b3": s * jax.random.normal(ks[5], (64,), jnp.float32),
        # linear weights stored as (in, out); wf1 rows in PyTorch CHW order
        "wf1": s * jax.random.normal(ks[6], (conv_out_size, 512), jnp.float32),
        "bf1": s * jax.random.normal(ks[7], (512,), jnp.float32),
        "wf2": s * jax.random.normal(ks[8], (512, output_dim), jnp.float32),
        "bf2": s * jax.random.normal(ks[9], (output_dim,), jnp.float32),
    }


def _prep_conv_weight(w, cin_store, stride, out_lanes=CONV_LANES):
    """(O, Cin, kh, kw) -> (kh*kw, stride*cin_store, out_lanes) bf16.

    Row (j % stride)*cin_store + c of block i*kw + j holds w[o, c, i, j]; all
    other rows (other stride phases / padded input channels) are zero so the
    kernel contracts the full stride*cin_store-wide window without slicing."""
    o, cin, kh, kw = w.shape
    assert cin <= cin_store and o <= out_lanes
    wt = jnp.transpose(w, (2, 3, 1, 0))                       # (kh, kw, cin, o)
    wt = jnp.pad(wt, ((0, 0), (0, 0), (0, cin_store - cin), (0, out_lanes - o)))
    phase = (jnp.arange(kw)[:, None] % stride
             == jnp.arange(stride)[None, :]).astype(wt.dtype)  # (kw, stride)
    full = jnp.einsum("jr,hjco->hjrco", phase, wt)
    return full.reshape(kh * kw, stride * cin_store, out_lanes).astype(jnp.bfloat16)


def _prep_bias(b, lanes):
    # zero-padded bias -> padded output channels stay exactly 0 after ReLU.
    return jnp.pad(b, (0, lanes - b.shape[0])).reshape(1, lanes).astype(jnp.float32)


def prepare_params(params, C, H, W):
    """One-time layout/dtype conversion for the kernels (numerically neutral)."""
    h3, w3 = _conv_out_hw(H, W)

    # fc1 rows: CHW(64) flatten order -> HWC flatten with 128 padded channels,
    # so the NHWC feature map flattens directly (no per-forward transpose) and
    # the zero channels hit zero weight rows.
    wf1 = params["wf1"].reshape(64, h3, w3, 512).transpose(1, 2, 0, 3)
    wf1 = jnp.pad(wf1, ((0, 0), (0, 0), (0, CONV_LANES - 64), (0, 0)))
    wf1 = wf1.reshape(h3 * w3 * CONV_LANES, 512).astype(jnp.bfloat16)

    n_out = params["wf2"].shape[1]
    np_ = _round_up(n_out, 128)
    return {
        "w1": _prep_conv_weight(params["w1"], cin_store=C, stride=4),
        "b1": _prep_bias(params["b1"], CONV_LANES),
        "w2": _prep_conv_weight(params["w2"], cin_store=CONV_LANES, stride=2),
        "b2": _prep_bias(params["b2"], CONV_LANES),
        "w3": _prep_conv_weight(params["w3"], cin_store=CONV_LANES, stride=1),
        "b3": _prep_bias(params["b3"], CONV_LANES),
        "wf1": wf1,
        "bf1": params["bf1"].reshape(1, 512).astype(jnp.float32),
        "wf2": _pad2d(params["wf2"], 512, np_).astype(jnp.bfloat16),
        "bf2": _pad2d(params["bf2"].reshape(1, n_out), 1, np_).astype(jnp.float32),
    }


# ----------------------------------------------------------------------------
# Forward pass: Conv(8,4)+ReLU -> Conv(4,2)+ReLU -> Conv(3,1)+ReLU
#               -> Flatten -> fused [Linear(512)+ReLU -> Linear(output_dim)]
# ----------------------------------------------------------------------------
@functools.partial(jax.jit, static_argnames="n_out")
def ppo_vision_forward(prepared, x_nchw, *, n_out):
    x = jnp.transpose(x_nchw, (0, 2, 3, 1)).astype(jnp.bfloat16)   # NCHW->NHWC
    h = conv2d_relu(x, prepared["w1"], prepared["b1"], 8, 8, 4)
    h = conv2d_relu(h, prepared["w2"], prepared["b2"], 4, 4, 2)
    h = conv2d_relu(h, prepared["w3"], prepared["b3"], 3, 3, 1)
    b = h.shape[0]
    h = h.reshape(b, -1)        # lane-dense HWC(128) flatten; wf1 pre-permuted
    return policy_head_pallas(h, prepared["wf1"], prepared["bf1"],
                              prepared["wf2"], prepared["bf2"], n_out=n_out)


# ----------------------------------------------------------------------------
# Pure-JAX f32 reference (matches the PyTorch module's semantics).
# ----------------------------------------------------------------------------
def reference_forward(params, x):
    hi = jax.lax.Precision.HIGHEST

    def conv(z, w, b, s):
        y = jax.lax.conv_general_dilated(
            z, w, window_strides=(s, s), padding="VALID",
            dimension_numbers=("NCHW", "OIHW", "NCHW"), precision=hi)
        return jax.nn.relu(y + b[None, :, None, None])

    h = conv(x, params["w1"], params["b1"], 4)
    h = conv(h, params["w2"], params["b2"], 2)
    h = conv(h, params["w3"], params["b3"], 1)
    h = h.reshape(h.shape[0], -1)                 # CHW flatten (PyTorch order)
    h = jax.nn.relu(jnp.dot(h, params["wf1"], precision=hi) + params["bf1"])
    return jnp.dot(h, params["wf2"], precision=hi) + params["bf2"]


if __name__ == "__main__":
    # Small but conv-valid shapes: 36x36 -> 8x8 -> 3x3 -> 1x1 spatial.
    batch, C, H, W = 2, 4, 36, 36
    output_dim = 6

    key = jax.random.PRNGKey(0)
    kx, kp = jax.random.split(key)
    x = jax.random.normal(kx, (batch, C, H, W), jnp.float32)
    params = init_params(kp, C, H, W, output_dim)
    prepared = prepare_params(params, C, H, W)

    logits = ppo_vision_forward(prepared, x, n_out=output_dim)
    logits = jax.block_until_ready(logits)
    assert logits.shape == (batch, output_dim), logits.shape
    assert bool(jnp.all(jnp.isfinite(logits)))

    # bf16 MXU path vs f32 reference: compare with bf16-level tolerance.
    ref = reference_forward(params, x)
    assert bool(jnp.allclose(logits, ref, atol=5e-2, rtol=5e-2)), (
        float(jnp.max(jnp.abs(logits - ref))))
    print("KERNEL_OK")
</pallas_src>

<mosaic_0001>
module attributes {stable_mosaic.version = 11 : i64} {
  func.func @_conv_relu_kernel(%arg0: i32, %arg1: memref<9x4x9x16xbf16, #tpu.memory_space<vmem>>, %arg2: memref<64x16x128xbf16, #tpu.memory_space<vmem>>, %arg3: memref<1x128xf32, #tpu.memory_space<vmem>>, %arg4: memref<1x64x128xbf16, #tpu.memory_space<vmem>>) attributes {dimension_semantics = [#tpu.dimension_semantics<parallel>], iteration_bounds = array<i64: 2>, scalar_prefetch = 0 : i64, scratch_operands = 0 : i64, tpu.core_type = #tpu.core_type<tc>, window_params = [{transform_indices = @transform_0, window_bounds = array<i64: 9, 4, 9, 16>}, {pipeline_mode = #tpu.pipeline_mode<synchronous>, transform_indices = @transform_1, window_bounds = array<i64: 64, 16, 128>}, {pipeline_mode = #tpu.pipeline_mode<synchronous>, transform_indices = @transform_2, window_bounds = array<i64: 1, 128>}, {transform_indices = @transform_3, window_bounds = array<i64: 1, 64, 128>}]} {
    %cst = arith.constant 0.000000e+00 : f32
    %0 = vector.broadcast %cst : f32 to vector<64x128xf32>
    %c0 = arith.constant 0 : index
    %c0_0 = arith.constant 0 : index
    %c0_1 = arith.constant 0 : index
    %c0_2 = arith.constant 0 : index
    %1 = vector.load %arg1[%c0, %c0_0, %c0_1, %c0_2] : memref<9x4x9x16xbf16, #tpu.memory_space<vmem>>, vector<8x1x8x16xbf16>
    %2 = vector.shape_cast %1 : vector<8x1x8x16xbf16> to vector<8x8x16xbf16>
    %3 = vector.shape_cast %2 : vector<8x8x16xbf16> to vector<64x16xbf16>
    %c0_3 = arith.constant 0 : index
    %c0_4 = arith.constant 0 : index
    %c0_5 = arith.constant 0 : index
    %4 = vector.load %arg2[%c0_3, %c0_4, %c0_5] : memref<64x16x128xbf16, #tpu.memory_space<vmem>>, vector<1x16x128xbf16>
    %5 = vector.shape_cast %4 : vector<1x16x128xbf16> to vector<16x128xbf16>
    %cst_6 = arith.constant dense<0.000000e+00> : vector<64x128xf32>
    %6 = tpu.matmul %3, %5, %cst_6 {dimension_numbers = #tpu.dot_dimension_numbers<[1], [0], [0], [1], [0, 0, 1, 1], [], []>} : vector<64x16xbf16>, vector<16x128xbf16>, vector<64x128xf32> -> vector<64x128xf32>
    %7 = arith.addf %0, %6 : vector<64x128xf32>
    %c0_7 = arith.constant 0 : index
    %c0_8 = arith.constant 0 : index
    %c0_9 = arith.constant 0 : index
    %c0_10 = arith.constant 0 : index
    %8 = vector.load %arg1[%c0_7, %c0_8, %c0_9, %c0_10] : memref<9x4x9x16xbf16, #tpu.memory_space<vmem>>, vector<8x1x8x16xbf16>
    %9 = vector.shape_cast %8 : vector<8x1x8x16xbf16> to vector<8x8x16xbf16>
    %10 = vector.shape_cast %9 : vector<8x8x16xbf16> to vector<64x16xbf16>
    %c1 = arith.constant 1 : index
    %c0_11 = arith.constant 0 : index
    %c0_12 = arith.constant 0 : index
    %11 = vector.load %arg2[%c1, %c0_11, %c0_12] : memref<64x16x128xbf16, #tpu.memory_space<vmem>>, vector<1x16x128xbf16>
    %12 = vector.shape_cast %11 : vector<1x16x128xbf16> to vector<16x128xbf16>
    %cst_13 = arith.constant dense<0.000000e+00> : vector<64x128xf32>
    %13 = tpu.matmul %10, %12, %cst_13 {dimension_numbers = #tpu.dot_dimension_numbers<[1], [0], [0], [1], [0, 0, 1, 1], [], []>} : vector<64x16xbf16>, vector<16x128xbf16>, vector<64x128xf32> -> vector<64x128xf32>
    %14 = arith.addf %7, %13 : vector<64x128xf32>
    %c0_14 = arith.constant 0 : index
    %c0_15 = arith.constant 0 : index
    %c0_16 = arith.constant 0 : index
    %c0_17 = arith.constant 0 : index
    %15 = vector.load %arg1[%c0_14, %c0_15, %c0_16, %c0_17] : memref<9x4x9x16xbf16, #tpu.memory_space<vmem>>, vector<8x1x8x16xbf16>
    %16 = vector.shape_cast %15 : vector<8x1x8x16xbf16> to vector<8x8x16xbf16>
    %17 = vector.shape_cast %16 : vector<8x8x16xbf16> to vector<64x16xbf16>
    %c2 = arith.constant 2 : index
    %c0_18 = arith.constant 0 : index
    %c0_19 = arith.constant 0 : index
    %18 = vector.load %arg2[%c2, %c0_18, %c0_19] : memref<64x16x128xbf16, #tpu.memory_space<vmem>>, vector<1x16x128xbf16>
    %19 = vector.shape_cast %18 : vector<1x16x128xbf16> to vector<16x128xbf16>
    %cst_20 = arith.constant dense<0.000000e+00> : vector<64x128xf32>
    %20 = tpu.matmul %17, %19, %cst_20 {dimension_numbers = #tpu.dot_dimension_numbers<[1], [0], [0], [1], [0, 0, 1, 1], [], []>} : vector<64x16xbf16>, vector<16x128xbf16>, vector<64x128xf32> -> vector<64x128xf32>
    %21 = arith.addf %14, %20 : vector<64x128xf32>
    %c0_21 = arith.constant 0 : index
    %c0_22 = arith.constant 0 : index
    %c0_23 = arith.constant 0 : index
    %c0_24 = arith.constant 0 : index
    %22 = vector.load %arg1[%c0_21, %c0_22, %c0_23, %c0_24] : memref<9x4x9x16xbf16, #tpu.memory_space<vmem>>, vector<8x1x8x16xbf16>
    %23 = vector.shape_cast %22 : vector<8x1x8x16xbf16> to vector<8x8x16xbf16>
    %24 = vector.shape_cast %23 : vector<8x8x16xbf16> to vector<64x16xbf16>
    %c3 = arith.constant 3 : index
    %c0_25 = arith.constant 0 : index
    %c0_26 = arith.constant 0 : index
    %25 = vector.load %arg2[%c3, %c0_25, %c0_26] : memref<64x16x128xbf16, #tpu.memory_space<vmem>>, vector<1x16x128xbf16>
    %26 = vector.shape_cast %25 : vector<1x16x128xbf16> to vector<16x128xbf16>
    %cst_27 = arith.constant dense<0.000000e+00> : vector<64x128xf32>
    %27 = tpu.matmul %24, %26, %cst_27 {dimension_numbers = #tpu.dot_dimension_numbers<[1], [0], [0], [1], [0, 0, 1, 1], [], []>} : vector<64x16xbf16>, vector<16x128xbf16>, vector<64x128xf32> -> vector<64x128xf32>
    %28 = arith.addf %21, %27 : vector<64x128xf32>
    %c0_28 = arith.constant 0 : index
    %c0_29 = arith.constant 0 : index
    %c1_30 = arith.constant 1 : index
    %c0_31 = arith.constant 0 : index
    %29 = vector.load %arg1[%c0_28, %c0_29, %c1_30, %c0_31] : memref<9x4x9x16xbf16, #tpu.memory_space<vmem>>, vector<8x1x8x16xbf16>
    %30 = vector.shape_cast %29 : vector<8x1x8x16xbf16> to vector<8x8x16xbf16>
    %31 = vector.shape_cast %30 : vector<8x8x16xbf16> to vector<64x16xbf16>
    %c4 = arith.constant 4 : index
    %c0_32 = arith.constant 0 : index
    %c0_33 = arith.constant 0 : index
    %32 = vector.load %arg2[%c4, %c0_32, %c0_33] : memref<64x16x128xbf16, #tpu.memory_space<vmem>>, vector<1x16x128xbf16>
    %33 = vector.shape_cast %32 : vector<1x16x128xbf16> to vector<16x128xbf16>
    %cst_34 = arith.constant dense<0.000000e+00> : vector<64x128xf32>
    %34 = tpu.matmul %31, %33, %cst_34 {dimension_numbers = #tpu.dot_dimension_numbers<[1], [0], [0], [1], [0, 0, 1, 1], [], []>} : vector<64x16xbf16>, vector<16x128xbf16>, vector<64x128xf32> -> vector<64x128xf32>
    %35 = arith.addf %28, %34 : vector<64x128xf32>
    %c0_35 = arith.constant 0 : index
    %c0_36 = arith.constant 0 : index
    %c1_37 = arith.constant 1 : index
    %c0_38 = arith.constant 0 : index
    %36 = vector.load %arg1[%c0_35, %c0_36, %c1_37, %c0_38] : memref<9x4x9x16xbf16, #tpu.memory_space<vmem>>, vector<8x1x8x16xbf16>
    %37 = vector.shape_cast %36 : vector<8x1x8x16xbf16> to vector<8x8x16xbf16>
    %38 = vector.shape_cast %37 : vector<8x8x16xbf16> to vector<64x16xbf16>
    %c5 = arith.constant 5 : index
    %c0_39 = arith.constant 0 : index
    %c0_40 = arith.constant 0 : index
    %39 = vector.load %arg2[%c5, %c0_39, %c0_40] : memref<64x16x128xbf16, #tpu.memory_space<vmem>>, vector<1x16x128xbf16>
    %40 = vector.shape_cast %39 : vector<1x16x128xbf16> to vector<16x128xbf16>
    %cst_41 = arith.constant dense<0.000000e+00> : vector<64x128xf32>
    %41 = tpu.matmul %38, %40, %cst_41 {dimension_numbers = #tpu.dot_dimension_numbers<[1], [0], [0], [1], [0, 0, 1, 1], [], []>} : vector<64x16xbf16>, vector<16x128xbf16>, vector<64x128xf32> -> vector<64x128xf32>
    %42 = arith.addf %35, %41 : vector<64x128xf32>
    %c0_42 = arith.constant 0 : index
    %c0_43 = arith.constant 0 : index
    %c1_44 = arith.constant 1 : index
    %c0_45 = arith.constant 0 : index
    %43 = vector.load %arg1[%c0_42, %c0_43, %c1_44, %c0_45] : memref<9x4x9x16xbf16, #tpu.memory_space<vmem>>, vector<8x1x8x16xbf16>
    %44 = vector.shape_cast %43 : vector<8x1x8x16xbf16> to vector<8x8x16xbf16>
    %45 = vector.shape_cast %44 : vector<8x8x16xbf16> to vector<64x16xbf16>
    %c6 = arith.constant 6 : index
    %c0_46 = arith.constant 0 : index
    %c0_47 = arith.constant 0 : index
    %46 = vector.load %arg2[%c6, %c0_46, %c0_47] : memref<64x16x128xbf16, #tpu.memory_space<vmem>>, vector<1x16x128xbf16>
    %47 = vector.shape_cast %46 : vector<1x16x128xbf16> to vector<16x128xbf16>
    %cst_48 = arith.constant dense<0.000000e+00> : vector<64x128xf32>
    %48 = tpu.matmul %45, %47, %cst_48 {dimension_numbers = #tpu.dot_dimension_numbers<[1], [0], [0], [1], [0, 0, 1, 1], [], []>} : vector<64x16xbf16>, vector<16x128xbf16>, vector<64x128xf32> -> vector<64x128xf32>
    %49 = arith.addf %42, %48 : vector<64x128xf32>
    %c0_49 = arith.constant 0 : index
    %c0_50 = arith.constant 0 : index
    %c1_51 = arith.constant 1 : index
    %c0_52 = arith.constant 0 : index
    %50 = vector.load %arg1[%c0_49, %c0_50, %c1_51, %c0_52] : memref<9x4x9x16xbf16, #tpu.memory_space<vmem>>, vector<8x1x8x16xbf16>
    %51 = vector.shape_cast %50 : vector<8x1x8x16xbf16> to vector<8x8x16xbf16>
    %52 = vector.shape_cast %51 : vector<8x8x16xbf16> to vector<64x16xbf16>
    %c7 = arith.constant 7 : index
    %c0_53 = arith.constant 0 : index
    %c0_54 = arith.constant 0 : index
    %53 = vector.load %arg2[%c7, %c0_53, %c0_54] : memref<64x16x128xbf16, #tpu.memory_space<vmem>>, vector<1x16x128xbf16>
    %54 = vector.shape_cast %53 : vector<1x16x128xbf16> to vector<16x128xbf16>
    %cst_55 = arith.constant dense<0.000000e+00> : vector<64x128xf32>
    %55 = tpu.matmul %52, %54, %cst_55 {dimension_numbers = #tpu.dot_dimension_numbers<[1], [0], [0], [1], [0, 0, 1, 1], [], []>} : vector<64x16xbf16>, vector<16x128xbf16>, vector<64x128xf32> -> vector<64x128xf32>
    %56 = arith.addf %49, %55 : vector<64x128xf32>
    %c0_56 = arith.constant 0 : index
    %c1_57 = arith.constant 1 : index
    %c0_58 = arith.constant 0 : index
    %c0_59 = arith.constant 0 : index
    %57 = vector.load %arg1[%c0_56, %c1_57, %c0_58, %c0_59] : memref<9x4x9x16xbf16, #tpu.memory_space<vmem>>, vector<8x1x8x16xbf16>
    %58 = vector.shape_cast %57 : vector<8x1x8x16xbf16> to vector<8x8x16xbf16>
    %59 = vector.shape_cast %58 : vector<8x8x16xbf16> to vector<64x16xbf16>
    %c8 = arith.constant 8 : index
    %c0_60 = arith.constant 0 : index
    %c0_61 = arith.constant 0 : index
    %60 = vector.load %arg2[%c8, %c0_60, %c0_61] : memref<64x16x128xbf16, #tpu.memory_space<vmem>>, vector<1x16x128xbf16>
    %61 = vector.shape_cast %60 : vector<1x16x128xbf16> to vector<16x128xbf16>
    %cst_62 = arith.constant dense<0.000000e+00> : vector<64x128xf32>
    %62 = tpu.matmul %59, %61, %cst_62 {dimension_numbers = #tpu.dot_dimension_numbers<[1], [0], [0], [1], [0, 0, 1, 1], [], []>} : vector<64x16xbf16>, vector<16x128xbf16>, vector<64x128xf32> -> vector<64x128xf32>
    %63 = arith.addf %56, %62 : vector<64x128xf32>
    %c0_63 = arith.constant 0 : index
    %c1_64 = arith.constant 1 : index
    %c0_65 = arith.constant 0 : index
    %c0_66 = arith.constant 0 : index
    %64 = vector.load %arg1[%c0_63, %c1_64, %c0_65, %c0_66] : memref<9x4x9x16xbf16, #tpu.memory_space<vmem>>, vector<8x1x8x16xbf16>
    %65 = vector.shape_cast %64 : vector<8x1x8x16xbf16> to vector<8x8x16xbf16>
    %66 = vector.shape_cast %65 : vector<8x8x16xbf16> to vector<64x16xbf16>
    %c9 = arith.constant 9 : index
    %c0_67 = arith.constant 0 : index
    %c0_68 = arith.constant 0 : index
    %67 = vector.load %arg2[%c9, %c0_67, %c0_68] : memref<64x16x128xbf16, #tpu.memory_space<vmem>>, vector<1x16x128xbf16>
    %68 = vector.shape_cast %67 : vector<1x16x128xbf16> to vector<16x128xbf16>
    %cst_69 = arith.constant dense<0.000000e+00> : vector<64x128xf32>
    %69 = tpu.matmul %66, %68, %cst_69 {dimension_numbers = #tpu.dot_dimension_numbers<[1], [0], [0], [1], [0, 0, 1, 1], [], []>} : vector<64x16xbf16>, vector<16x128xbf16>, vector<64x128xf32> -> vector<64x128xf32>
    %70 = arith.addf %63, %69 : vector<64x128xf32>
    %c0_70 = arith.constant 0 : index
    %c1_71 = arith.constant 1 : index
    %c0_72 = arith.constant 0 : index
    %c0_73 = arith.constant 0 : index
    %71 = vector.load %arg1[%c0_70, %c1_71, %c0_72, %c0_73] : memref<9x4x9x16xbf16, #tpu.memory_space<vmem>>, vector<8x1x8x16xbf16>
    %72 = vector.shape_cast %71 : vector<8x1x8x16xbf16> to vector<8x8x16xbf16>
    %73 = vector.shape_cast %72 : vector<8x8x16xbf16> to vector<64x16xbf16>
    %c10 = arith.constant 10 : index
    %c0_74 = arith.constant 0 : index
    %c0_75 = arith.constant 0 : index
    %74 = vector.load %arg2[%c10, %c0_74, %c0_75] : memref<64x16x128xbf16, #tpu.memory_space<vmem>>, vector<1x16x128xbf16>
    %75 = vector.shape_cast %74 : vector<1x16x128xbf16> to vector<16x128xbf16>
    %cst_76 = arith.constant dense<0.000000e+00> : vector<64x128xf32>
    %76 = tpu.matmul %73, %75, %cst_76 {dimension_numbers = #tpu.dot_dimension_numbers<[1], [0], [0], [1], [0, 0, 1, 1], [], []>} : vector<64x16xbf16>, vector<16x128xbf16>, vector<64x128xf32> -> vector<64x128xf32>
    %77 = arith.addf %70, %76 : vector<64x128xf32>
    %c0_77 = arith.constant 0 : index
    %c1_78 = arith.constant 1 : index
    %c0_79 = arith.constant 0 : index
    %c0_80 = arith.constant 0 : index
    %78 = vector.load %arg1[%c0_77, %c1_78, %c0_79, %c0_80] : memref<9x4x9x16xbf16, #tpu.memory_space<vmem>>, vector<8x1x8x16xbf16>
    %79 = vector.shape_cast %78 : vector<8x1x8x16xbf16> to vector<8x8x16xbf16>
    %80 = vector.shape_cast %79 : vector<8x8x16xbf16> to vector<64x16xbf16>
    %c11 = arith.constant 11 : index
    %c0_81 = arith.constant 0 : index
    %c0_82 = arith.constant 0 : index
    %81 = vector.load %arg2[%c11, %c0_81, %c0_82] : memref<64x16x128xbf16, #tpu.memory_space<vmem>>, vector<1x16x128xbf16>
    %82 = vector.shape_cast %81 : vector<1x16x128xbf16> to vector<16x128xbf16>
    %cst_83 = arith.constant dense<0.000000e+00> : vector<64x128xf32>
    %83 = tpu.matmul %80, %82, %cst_83 {dimension_numbers = #tpu.dot_dimension_numbers<[1], [0], [0], [1], [0, 0, 1, 1], [], []>} : vector<64x16xbf16>, vector<16x128xbf16>, vector<64x128xf32> -> vector<64x128xf32>
    %84 = arith.addf %77, %83 : vector<64x128xf32>
    %c0_84 = arith.constant 0 : index
    %c1_85 = arith.constant 1 : index
    %c1_86 = arith.constant 1 : index
    %c0_87 = arith.constant 0 : index
    %85 = vector.load %arg1[%c0_84, %c1_85, %c1_86, %c0_87] : memref<9x4x9x16xbf16, #tpu.memory_space<vmem>>, vector<8x1x8x16xbf16>
    %86 = vector.shape_cast %85 : vector<8x1x8x16xbf16> to vector<8x8x16xbf16>
    %87 = vector.shape_cast %86 : vector<8x8x16xbf16> to vector<64x16xbf16>
    %c12 = arith.constant 12 : index
    %c0_88 = arith.constant 0 : index
    %c0_89 = arith.constant 0 : index
    %88 = vector.load %arg2[%c12, %c0_88, %c0_89] : memref<64x16x128xbf16, #tpu.memory_space<vmem>>, vector<1x16x128xbf16>
    %89 = vector.shape_cast %88 : vector<1x16x128xbf16> to vector<16x128xbf16>
    %cst_90 = arith.constant dense<0.000000e+00> : vector<64x128xf32>
    %90 = tpu.matmul %87, %89, %cst_90 {dimension_numbers = #tpu.dot_dimension_numbers<[1], [0], [0], [1], [0, 0, 1, 1], [], []>} : vector<64x16xbf16>, vector<16x128xbf16>, vector<64x128xf32> -> vector<64x128xf32>
    %91 = arith.addf %84, %90 : vector<64x128xf32>
    %c0_91 = arith.constant 0 : index
    %c1_92 = arith.constant 1 : index
    %c1_93 = arith.constant 1 : index
    %c0_94 = arith.constant 0 : index
    %92 = vector.load %arg1[%c0_91, %c1_92, %c1_93, %c0_94] : memref<9x4x9x16xbf16, #tpu.memory_space<vmem>>, vector<8x1x8x16xbf16>
    %93 = vector.shape_cast %92 : vector<8x1x8x16xbf16> to vector<8x8x16xbf16>
    %94 = vector.shape_cast %93 : vector<8x8x16xbf16> to vector<64x16xbf16>
    %c13 = arith.constant 13 : index
    %c0_95 = arith.constant 0 : index
    %c0_96 = arith.constant 0 : index
    %95 = vector.load %arg2[%c13, %c0_95, %c0_96] : memref<64x16x128xbf16, #tpu.memory_space<vmem>>, vector<1x16x128xbf16>
    %96 = vector.shape_cast %95 : vector<1x16x128xbf16> to vector<16x128xbf16>
    %cst_97 = arith.constant dense<0.000000e+00> : vector<64x128xf32>
    %97 = tpu.matmul %94, %96, %cst_97 {dimension_numbers = #tpu.dot_dimension_numbers<[1], [0], [0], [1], [0, 0, 1, 1], [], []>} : vector<64x16xbf16>, vector<16x128xbf16>, vector<64x128xf32> -> vector<64x128xf32>
    %98 = arith.addf %91, %97 : vector<64x128xf32>
    %c0_98 = arith.constant 0 : index
    %c1_99 = arith.constant 1 : index
    %c1_100 = arith.constant 1 : index
    %c0_101 = arith.constant 0 : index
    %99 = vector.load %arg1[%c0_98, %c1_99, %c1_100, %c0_101] : memref<9x4x9x16xbf16, #tpu.memory_space<vmem>>, vector<8x1x8x16xbf16>
    %100 = vector.shape_cast %99 : vector<8x1x8x16xbf16> to vector<8x8x16xbf16>
    %101 = vector.shape_cast %100 : vector<8x8x16xbf16> to vector<64x16xbf16>
    %c14 = arith.constant 14 : index
    %c0_102 = arith.constant 0 : index
    %c0_103 = arith.constant 0 : index
    %102 = vector.load %arg2[%c14, %c0_102, %c0_103] : memref<64x16x128xbf16, #tpu.memory_space<vmem>>, vector<1x16x128xbf16>
    %103 = vector.shape_cast %102 : vector<1x16x128xbf16> to vector<16x128xbf16>
    %cst_104 = arith.constant dense<0.000000e+00> : vector<64x128xf32>
    %104 = tpu.matmul %101, %103, %cst_104 {dimension_numbers = #tpu.dot_dimension_numbers<[1], [0], [0], [1], [0, 0, 1, 1], [], []>} : vector<64x16xbf16>, vector<16x128xbf16>, vector<64x128xf32> -> vector<64x128xf32>
    %105 = arith.addf %98, %104 : vector<64x128xf32>
    %c0_105 = arith.constant 0 : index
    %c1_106 = arith.constant 1 : index
    %c1_107 = arith.constant 1 : index
    %c0_108 = arith.constant 0 : index
    %106 = vector.load %arg1[%c0_105, %c1_106, %c1_107, %c0_108] : memref<9x4x9x16xbf16, #tpu.memory_space<vmem>>, vector<8x1x8x16xbf16>
    %107 = vector.shape_cast %106 : vector<8x1x8x16xbf16> to vector<8x8x16xbf16>
    %108 = vector.shape_cast %107 : vector<8x8x16xbf16> to vector<64x16xbf16>
    %c15 = arith.constant 15 : index
    %c0_109 = arith.constant 0 : index
    %c0_110 = arith.constant 0 : index
    %109 = vector.load %arg2[%c15, %c0_109, %c0_110] : memref<64x16x128xbf16, #tpu.memory_space<vmem>>, vector<1x16x128xbf16>
    %110 = vector.shape_cast %109 : vector<1x16x128xbf16> to vector<16x128xbf16>
    %cst_111 = arith.constant dense<0.000000e+00> : vector<64x128xf32>
    %111 = tpu.matmul %108, %110, %cst_111 {dimension_numbers = #tpu.dot_dimension_numbers<[1], [0], [0], [1], [0, 0, 1, 1], [], []>} : vector<64x16xbf16>, vector<16x128xbf16>, vector<64x128xf32> -> vector<64x128xf32>
    %112 = arith.addf %105, %111 : vector<64x128xf32>
    %c0_112 = arith.constant 0 : index
    %c2_113 = arith.constant 2 : index
    %c0_114 = arith.constant 0 : index
    %c0_115 = arith.constant 0 : index
    %113 = vector.load %arg1[%c0_112, %c2_113, %c0_114, %c0_115] : memref<9x4x9x16xbf16, #tpu.memory_space<vmem>>, vector<8x1x8x16xbf16>
    %114 = vector.shape_cast %113 : vector<8x1x8x16xbf16> to vector<8x8x16xbf16>
    %115 = vector.shape_cast %114 : vector<8x8x16xbf16> to vector<64x16xbf16>
    %c16 = arith.constant 16 : index
    %c0_116 = arith.constant 0 : index
    %c0_117 = arith.constant 0 : index
    %116 = vector.load %arg2[%c16, %c0_116, %c0_117] : memref<64x16x128xbf16, #tpu.memory_space<vmem>>, vector<1x16x128xbf16>
    %117 = vector.shape_cast %116 : vector<1x16x128xbf16> to vector<16x128xbf16>
    %cst_118 = arith.constant dense<0.000000e+00> : vector<64x128xf32>
    %118 = tpu.matmul %115, %117, %cst_118 {dimension_numbers = #tpu.dot_dimension_numbers<[1], [0], [0], [1], [0, 0, 1, 1], [], []>} : vector<64x16xbf16>, vector<16x128xbf16>, vector<64x128xf32> -> vector<64x128xf32>
    %119 = arith.addf %112, %118 : vector<64x128xf32>
    %c0_119 = arith.constant 0 : index
    %c2_120 = arith.constant 2 : index
    %c0_121 = arith.constant 0 : index
    %c0_122 = arith.constant 0 : index
    %120 = vector.load %arg1[%c0_119, %c2_120, %c0_121, %c0_122] : memref<9x4x9x16xbf16, #tpu.memory_space<vmem>>, vector<8x1x8x16xbf16>
    %121 = vector.shape_cast %120 : vector<8x1x8x16xbf16> to vector<8x8x16xbf16>
    %122 = vector.shape_cast %121 : vector<8x8x16xbf16> to vector<64x16xbf16>
    %c17 = arith.constant 17 : index
    %c0_123 = arith.constant 0 : index
    %c0_124 = arith.constant 0 : index
    %123 = vector.load %arg2[%c17, %c0_123, %c0_124] : memref<64x16x128xbf16, #tpu.memory_space<vmem>>, vector<1x16x128xbf16>
    %124 = vector.shape_cast %123 : vector<1x16x128xbf16> to vector<16x128xbf16>
    %cst_125 = arith.constant dense<0.000000e+00> : vector<64x128xf32>
    %125 = tpu.matmul %122, %124, %cst_125 {dimension_numbers = #tpu.dot_dimension_numbers<[1], [0], [0], [1], [0, 0, 1, 1], [], []>} : vector<64x16xbf16>, vector<16x128xbf16>, vector<64x128xf32> -> vector<64x128xf32>
    %126 = arith.addf %119, %125 : vector<64x128xf32>
    %c0_126 = arith.constant 0 : index
    %c2_127 = arith.constant 2 : index
    %c0_128 = arith.constant 0 : index
    %c0_129 = arith.constant 0 : index
    %127 = vector.load %arg1[%c0_126, %c2_127, %c0_128, %c0_129] : memref<9x4x9x16xbf16, #tpu.memory_space<vmem>>, vector<8x1x8x16xbf16>
    %128 = vector.shape_cast %127 : vector<8x1x8x16xbf16> to vector<8x8x16xbf16>
    %129 = vector.shape_cast %128 : vector<8x8x16xbf16> to vector<64x16xbf16>
    %c18 = arith.constant 18 : index
    %c0_130 = arith.constant 0 : index
    %c0_131 = arith.constant 0 : index
    %130 = vector.load %arg2[%c18, %c0_130, %c0_131] : memref<64x16x128xbf16, #tpu.memory_space<vmem>>, vector<1x16x128xbf16>
    %131 = vector.shape_cast %130 : vector<1x16x128xbf16> to vector<16x128xbf16>
    %cst_132 = arith.constant dense<0.000000e+00> : vector<64x128xf32>
    %132 = tpu.matmul %129, %131, %cst_132 {dimension_numbers = #tpu.dot_dimension_numbers<[1], [0], [0], [1], [0, 0, 1, 1], [], []>} : vector<64x16xbf16>, vector<16x128xbf16>, vector<64x128xf32> -> vector<64x128xf32>
    %133 = arith.addf %126, %132 : vector<64x128xf32>
    %c0_133 = arith.constant 0 : index
    %c2_134 = arith.constant 2 : index
    %c0_135 = arith.constant 0 : index
    %c0_136 = arith.constant 0 : index
    %134 = vector.load %arg1[%c0_133, %c2_134, %c0_135, %c0_136] : memref<9x4x9x16xbf16, #tpu.memory_space<vmem>>, vector<8x1x8x16xbf16>
    %135 = vector.shape_cast %134 : vector<8x1x8x16xbf16> to vector<8x8x16xbf16>
    %136 = vector.shape_cast %135 : vector<8x8x16xbf16> to vector<64x16xbf16>
    %c19 = arith.constant 19 : index
    %c0_137 = arith.constant 0 : index
    %c0_138 = arith.constant 0 : index
    %137 = vector.load %arg2[%c19, %c0_137, %c0_138] : memref<64x16x128xbf16, #tpu.memory_space<vmem>>, vector<1x16x128xbf16>
    %138 = vector.shape_cast %137 : vector<1x16x128xbf16> to vector<16x128xbf16>
    %cst_139 = arith.constant dense<0.000000e+00> : vector<64x128xf32>
    %139 = tpu.matmul %136, %138, %cst_139 {dimension_numbers = #tpu.dot_dimension_numbers<[1], [0], [0], [1], [0, 0, 1, 1], [], []>} : vector<64x16xbf16>, vector<16x128xbf16>, vector<64x128xf32> -> vector<64x128xf32>
    %140 = arith.addf %133, %139 : vector<64x128xf32>
    %c0_140 = arith.constant 0 : index
    %c2_141 = arith.constant 2 : index
    %c1_142 = arith.constant 1 : index
    %c0_143 = arith.constant 0 : index
    %141 = vector.load %arg1[%c0_140, %c2_141, %c1_142, %c0_143] : memref<9x4x9x16xbf16, #tpu.memory_space<vmem>>, vector<8x1x8x16xbf16>
    %142 = vector.shape_cast %141 : vector<8x1x8x16xbf16> to vector<8x8x16xbf16>
    %143 = vector.shape_cast %142 : vector<8x8x16xbf16> to vector<64x16xbf16>
    %c20 = arith.constant 20 : index
    %c0_144 = arith.constant 0 : index
    %c0_145 = arith.constant 0 : index
    %144 = vector.load %arg2[%c20, %c0_144, %c0_145] : memref<64x16x128xbf16, #tpu.memory_space<vmem>>, vector<1x16x128xbf16>
    %145 = vector.shape_cast %144 : vector<1x16x128xbf16> to vector<16x128xbf16>
    %cst_146 = arith.constant dense<0.000000e+00> : vector<64x128xf32>
    %146 = tpu.matmul %143, %145, %cst_146 {dimension_numbers = #tpu.dot_dimension_numbers<[1], [0], [0], [1], [0, 0, 1, 1], [], []>} : vector<64x16xbf16>, vector<16x128xbf16>, vector<64x128xf32> -> vector<64x128xf32>
    %147 = arith.addf %140, %146 : vector<64x128xf32>
    %c0_147 = arith.constant 0 : index
    %c2_148 = arith.constant 2 : index
    %c1_149 = arith.constant 1 : index
    %c0_150 = arith.constant 0 : index
    %148 = vector.load %arg1[%c0_147, %c2_148, %c1_149, %c0_150] : memref<9x4x9x16xbf16, #tpu.memory_space<vmem>>, vector<8x1x8x16xbf16>
    %149 = vector.shape_cast %148 : vector<8x1x8x16xbf16> to vector<8x8x16xbf16>
    %150 = vector.shape_cast %149 : vector<8x8x16xbf16> to vector<64x16xbf16>
    %c21 = arith.constant 21 : index
    %c0_151 = arith.constant 0 : index
    %c0_152 = arith.constant 0 : index
    %151 = vector.load %arg2[%c21, %c0_151, %c0_152] : memref<64x16x128xbf16, #tpu.memory_space<vmem>>, vector<1x16x128xbf16>
    %152 = vector.shape_cast %151 : vector<1x16x128xbf16> to vector<16x128xbf16>
    %cst_153 = arith.constant dense<0.000000e+00> : vector<64x128xf32>
    %153 = tpu.matmul %150, %152, %cst_153 {dimension_numbers = #tpu.dot_dimension_numbers<[1], [0], [0], [1], [0, 0, 1, 1], [], []>} : vector<64x16xbf16>, vector<16x128xbf16>, vector<64x128xf32> -> vector<64x128xf32>
    %154 = arith.addf %147, %153 : vector<64x128xf32>
    %c0_154 = arith.constant 0 : index
    %c2_155 = arith.constant 2 : index
    %c1_156 = arith.constant 1 : index
    %c0_157 = arith.constant 0 : index
    %155 = vector.load %arg1[%c0_154, %c2_155, %c1_156, %c0_157] : memref<9x4x9x16xbf16, #tpu.memory_space<vmem>>, vector<8x1x8x16xbf16>
    %156 = vector.shape_cast %155 : vector<8x1x8x16xbf16> to vector<8x8x16xbf16>
    %157 = vector.shape_cast %156 : vector<8x8x16xbf16> to vector<64x16xbf16>
    %c22 = arith.constant 22 : index
    %c0_158 = arith.constant 0 : index
    %c0_159 = arith.constant 0 : index
    %158 = vector.load %arg2[%c22, %c0_158, %c0_159] : memref<64x16x128xbf16, #tpu.memory_space<vmem>>, vector<1x16x128xbf16>
    %159 = vector.shape_cast %158 : vector<1x16x128xbf16> to vector<16x128xbf16>
    %cst_160 = arith.constant dense<0.000000e+00> : vector<64x128xf32>
    %160 = tpu.matmul %157, %159, %cst_160 {dimension_numbers = #tpu.dot_dimension_numbers<[1], [0], [0], [1], [0, 0, 1, 1], [], []>} : vector<64x16xbf16>, vector<16x128xbf16>, vector<64x128xf32> -> vector<64x128xf32>
    %161 = arith.addf %154, %160 : vector<64x128xf32>
    %c0_161 = arith.constant 0 : index
    %c2_162 = arith.constant 2 : index
    %c1_163 = arith.constant 1 : index
    %c0_164 = arith.constant 0 : index
    %162 = vector.load %arg1[%c0_161, %c2_162, %c1_163, %c0_164] : memref<9x4x9x16xbf16, #tpu.memory_space<vmem>>, vector<8x1x8x16xbf16>
    %163 = vector.shape_cast %162 : vector<8x1x8x16xbf16> to vector<8x8x16xbf16>
    %164 = vector.shape_cast %163 : vector<8x8x16xbf16> to vector<64x16xbf16>
    %c23 = arith.constant 23 : index
    %c0_165 = arith.constant 0 : index
    %c0_166 = arith.constant 0 : index
    %165 = vector.load %arg2[%c23, %c0_165, %c0_166] : memref<64x16x128xbf16, #tpu.memory_space<vmem>>, vector<1x16x128xbf16>
    %166 = vector.shape_cast %165 : vector<1x16x128xbf16> to vector<16x128xbf16>
    %cst_167 = arith.constant dense<0.000000e+00> : vector<64x128xf32>
    %167 = tpu.matmul %164, %166, %cst_167 {dimension_numbers = #tpu.dot_dimension_numbers<[1], [0], [0], [1], [0, 0, 1, 1], [], []>} : vector<64x16xbf16>, vector<16x128xbf16>, vector<64x128xf32> -> vector<64x128xf32>
    %168 = arith.addf %161, %167 : vector<64x128xf32>
    %c0_168 = arith.constant 0 : index
    %c3_169 = arith.constant 3 : index
    %c0_170 = arith.constant 0 : index
    %c0_171 = arith.constant 0 : index
    %169 = vector.load %arg1[%c0_168, %c3_169, %c0_170, %c0_171] : memref<9x4x9x16xbf16, #tpu.memory_space<vmem>>, vector<8x1x8x16xbf16>
    %170 = vector.shape_cast %169 : vector<8x1x8x16xbf16> to vector<8x8x16xbf16>
    %171 = vector.shape_cast %170 : vector<8x8x16xbf16> to vector<64x16xbf16>
    %c24 = arith.constant 24 : index
    %c0_172 = arith.constant 0 : index
    %c0_173 = arith.constant 0 : index
    %172 = vector.load %arg2[%c24, %c0_172, %c0_173] : memref<64x16x128xbf16, #tpu.memory_space<vmem>>, vector<1x16x128xbf16>
    %173 = vector.shape_cast %172 : vector<1x16x128xbf16> to vector<16x128xbf16>
    %cst_174 = arith.constant dense<0.000000e+00> : vector<64x128xf32>
    %174 = tpu.matmul %171, %173, %cst_174 {dimension_numbers = #tpu.dot_dimension_numbers<[1], [0], [0], [1], [0, 0, 1, 1], [], []>} : vector<64x16xbf16>, vector<16x128xbf16>, vector<64x128xf32> -> vector<64x128xf32>
    %175 = arith.addf %168, %174 : vector<64x128xf32>
    %c0_175 = arith.constant 0 : index
    %c3_176 = arith.constant 3 : index
    %c0_177 = arith.constant 0 : index
    %c0_178 = arith.constant 0 : index
    %176 = vector.load %arg1[%c0_175, %c3_176, %c0_177, %c0_178] : memref<9x4x9x16xbf16, #tpu.memory_space<vmem>>, vector<8x1x8x16xbf16>
    %177 = vector.shape_cast %176 : vector<8x1x8x16xbf16> to vector<8x8x16xbf16>
    %178 = vector.shape_cast %177 : vector<8x8x16xbf16> to vector<64x16xbf16>
    %c25 = arith.constant 25 : index
    %c0_179 = arith.constant 0 : index
    %c0_180 = arith.constant 0 : index
    %179 = vector.load %arg2[%c25, %c0_179, %c0_180] : memref<64x16x128xbf16, #tpu.memory_space<vmem>>, vector<1x16x128xbf16>
    %180 = vector.shape_cast %179 : vector<1x16x128xbf16> to vector<16x128xbf16>
    %cst_181 = arith.constant dense<0.000000e+00> : vector<64x128xf32>
    %181 = tpu.matmul %178, %180, %cst_181 {dimension_numbers = #tpu.dot_dimension_numbers<[1], [0], [0], [1], [0, 0, 1, 1], [], []>} : vector<64x16xbf16>, vector<16x128xbf16>, vector<64x128xf32> -> vector<64x128xf32>
    %182 = arith.addf %175, %181 : vector<64x128xf32>
    %c0_182 = arith.constant 0 : index
    %c3_183 = arith.constant 3 : index
    %c0_184 = arith.constant 0 : index
    %c0_185 = arith.constant 0 : index
    %183 = vector.load %arg1[%c0_182, %c3_183, %c0_184, %c0_185] : memref<9x4x9x16xbf16, #tpu.memory_space<vmem>>, vector<8x1x8x16xbf16>
    %184 = vector.shape_cast %183 : vector<8x1x8x16xbf16> to vector<8x8x16xbf16>
    %185 = vector.shape_cast %184 : vector<8x8x16xbf16> to vector<64x16xbf16>
    %c26 = arith.constant 26 : index
    %c0_186 = arith.constant 0 : index
    %c0_187 = arith.constant 0 : index
    %186 = vector.load %arg2[%c26, %c0_186, %c0_187] : memref<64x16x128xbf16, #tpu.memory_space<vmem>>, vector<1x16x128xbf16>
    %187 = vector.shape_cast %186 : vector<1x16x128xbf16> to vector<16x128xbf16>
    %cst_188 = arith.constant dense<0.000000e+00> : vector<64x128xf32>
    %188 = tpu.matmul %185, %187, %cst_188 {dimension_numbers = #tpu.dot_dimension_numbers<[1], [0], [0], [1], [0, 0, 1, 1], [], []>} : vector<64x16xbf16>, vector<16x128xbf16>, vector<64x128xf32> -> vector<64x128xf32>
    %189 = arith.addf %182, %188 : vector<64x128xf32>
    %c0_189 = arith.constant 0 : index
    %c3_190 = arith.constant 3 : index
    %c0_191 = arith.constant 0 : index
    %c0_192 = arith.constant 0 : index
    %190 = vector.load %arg1[%c0_189, %c3_190, %c0_191, %c0_192] : memref<9x4x9x16xbf16, #tpu.memory_space<vmem>>, vector<8x1x8x16xbf16>
    %191 = vector.shape_cast %190 : vector<8x1x8x16xbf16> to vector<8x8x16xbf16>
    %192 = vector.shape_cast %191 : vector<8x8x16xbf16> to vector<64x16xbf16>
    %c27 = arith.constant 27 : index
    %c0_193 = arith.constant 0 : index
    %c0_194 = arith.constant 0 : index
    %193 = vector.load %arg2[%c27, %c0_193, %c0_194] : memref<64x16x128xbf16, #tpu.memory_space<vmem>>, vector<1x16x128xbf16>
    %194 = vector.shape_cast %193 : vector<1x16x128xbf16> to vector<16x128xbf16>
    %cst_195 = arith.constant dense<0.000000e+00> : vector<64x128xf32>
    %195 = tpu.matmul %192, %194, %cst_195 {dimension_numbers = #tpu.dot_dimension_numbers<[1], [0], [0], [1], [0, 0, 1, 1], [], []>} : vector<64x16xbf16>, vector<16x128xbf16>, vector<64x128xf32> -> vector<64x128xf32>
    %196 = arith.addf %189, %195 : vector<64x128xf32>
    %c0_196 = arith.constant 0 : index
    %c3_197 = arith.constant 3 : index
    %c1_198 = arith.constant 1 : index
    %c0_199 = arith.constant 0 : index
    %197 = vector.load %arg1[%c0_196, %c3_197, %c1_198, %c0_199] : memref<9x4x9x16xbf16, #tpu.memory_space<vmem>>, vector<8x1x8x16xbf16>
    %198 = vector.shape_cast %197 : vector<8x1x8x16xbf16> to vector<8x8x16xbf16>
    %199 = vector.shape_cast %198 : vector<8x8x16xbf16> to vector<64x16xbf16>
    %c28 = arith.constant 28 : index
    %c0_200 = arith.constant 0 : index
    %c0_201 = arith.constant 0 : index
    %200 = vector.load %arg2[%c28, %c0_200, %c0_201] : memref<64x16x128xbf16, #tpu.memory_space<vmem>>, vector<1x16x128xbf16>
    %201 = vector.shape_cast %200 : vector<1x16x128xbf16> to vector<16x128xbf16>
    %cst_202 = arith.constant dense<0.000000e+00> : vector<64x128xf32>
    %202 = tpu.matmul %199, %201, %cst_202 {dimension_numbers = #tpu.dot_dimension_numbers<[1], [0], [0], [1], [0, 0, 1, 1], [], []>} : vector<64x16xbf16>, vector<16x128xbf16>, vector<64x128xf32> -> vector<64x128xf32>
    %203 = arith.addf %196, %202 : vector<64x128xf32>
    %c0_203 = arith.constant 0 : index
    %c3_204 = arith.constant 3 : index
    %c1_205 = arith.constant 1 : index
    %c0_206 = arith.constant 0 : index
    %204 = vector.load %arg1[%c0_203, %c3_204, %c1_205, %c0_206] : memref<9x4x9x16xbf16, #tpu.memory_space<vmem>>, vector<8x1x8x16xbf16>
    %205 = vector.shape_cast %204 : vector<8x1x8x16xbf16> to vector<8x8x16xbf16>
    %206 = vector.shape_cast %205 : vector<8x8x16xbf16> to vector<64x16xbf16>
    %c29 = arith.constant 29 : index
    %c0_207 = arith.constant 0 : index
    %c0_208 = arith.constant 0 : index
    %207 = vector.load %arg2[%c29, %c0_207, %c0_208] : memref<64x16x128xbf16, #tpu.memory_space<vmem>>, vector<1x16x128xbf16>
    %208 = vector.shape_cast %207 : vector<1x16x128xbf16> to vector<16x128xbf16>
    %cst_209 = arith.constant dense<0.000000e+00> : vector<64x128xf32>
    %209 = tpu.matmul %206, %208, %cst_209 {dimension_numbers = #tpu.dot_dimension_numbers<[1], [0], [0], [1], [0, 0, 1, 1], [], []>} : vector<64x16xbf16>, vector<16x128xbf16>, vector<64x128xf32> -> vector<64x128xf32>
    %210 = arith.addf %203, %209 : vector<64x128xf32>
    %c0_210 = arith.constant 0 : index
    %c3_211 = arith.constant 3 : index
    %c1_212 = arith.constant 1 : index
    %c0_213 = arith.constant 0 : index
    %211 = vector.load %arg1[%c0_210, %c3_211, %c1_212, %c0_213] : memref<9x4x9x16xbf16, #tpu.memory_space<vmem>>, vector<8x1x8x16xbf16>
    %212 = vector.shape_cast %211 : vector<8x1x8x16xbf16> to vector<8x8x16xbf16>
    %213 = vector.shape_cast %212 : vector<8x8x16xbf16> to vector<64x16xbf16>
    %c30 = arith.constant 30 : index
    %c0_214 = arith.constant 0 : index
    %c0_215 = arith.constant 0 : index
    %214 = vector.load %arg2[%c30, %c0_214, %c0_215] : memref<64x16x128xbf16, #tpu.memory_space<vmem>>, vector<1x16x128xbf16>
    %215 = vector.shape_cast %214 : vector<1x16x128xbf16> to vector<16x128xbf16>
    %cst_216 = arith.constant dense<0.000000e+00> : vector<64x128xf32>
    %216 = tpu.matmul %213, %215, %cst_216 {dimension_numbers = #tpu.dot_dimension_numbers<[1], [0], [0], [1], [0, 0, 1, 1], [], []>} : vector<64x16xbf16>, vector<16x128xbf16>, vector<64x128xf32> -> vector<64x128xf32>
    %217 = arith.addf %210, %216 : vector<64x128xf32>
    %c0_217 = arith.constant 0 : index
    %c3_218 = arith.constant 3 : index
    %c1_219 = arith.constant 1 : index
    %c0_220 = arith.constant 0 : index
    %218 = vector.load %arg1[%c0_217, %c3_218, %c1_219, %c0_220] : memref<9x4x9x16xbf16, #tpu.memory_space<vmem>>, vector<8x1x8x16xbf16>
    %219 = vector.shape_cast %218 : vector<8x1x8x16xbf16> to vector<8x8x16xbf16>
    %220 = vector.shape_cast %219 : vector<8x8x16xbf16> to vector<64x16xbf16>
    %c31 = arith.constant 31 : index
    %c0_221 = arith.constant 0 : index
    %c0_222 = arith.constant 0 : index
    %221 = vector.load %arg2[%c31, %c0_221, %c0_222] : memref<64x16x128xbf16, #tpu.memory_space<vmem>>, vector<1x16x128xbf16>
    %222 = vector.shape_cast %221 : vector<1x16x128xbf16> to vector<16x128xbf16>
    %cst_223 = arith.constant dense<0.000000e+00> : vector<64x128xf32>
    %223 = tpu.matmul %220, %222, %cst_223 {dimension_numbers = #tpu.dot_dimension_numbers<[1], [0], [0], [1], [0, 0, 1, 1], [], []>} : vector<64x16xbf16>, vector<16x128xbf16>, vector<64x128xf32> -> vector<64x128xf32>
    %224 = arith.addf %217, %223 : vector<64x128xf32>
    %c1_224 = arith.constant 1 : index
    %c0_225 = arith.constant 0 : index
    %c0_226 = arith.constant 0 : index
    %c0_227 = arith.constant 0 : index
    %225 = vector.load %arg1[%c1_224, %c0_225, %c0_226, %c0_227] : memref<9x4x9x16xbf16, #tpu.memory_space<vmem>>, vector<8x1x8x16xbf16>
    %226 = vector.shape_cast %225 : vector<8x1x8x16xbf16> to vector<8x8x16xbf16>
    %227 = vector.shape_cast %226 : vector<8x8x16xbf16> to vector<64x16xbf16>
    %c32 = arith.constant 32 : index
    %c0_228 = arith.constant 0 : index
    %c0_229 = arith.constant 0 : index
    %228 = vector.load %arg2[%c32, %c0_228, %c0_229] : memref<64x16x128xbf16, #tpu.memory_space<vmem>>, vector<1x16x128xbf16>
    %229 = vector.shape_cast %228 : vector<1x16x128xbf16> to vector<16x128xbf16>
    %cst_230 = arith.constant dense<0.000000e+00> : vector<64x128xf32>
    %230 = tpu.matmul %227, %229, %cst_230 {dimension_numbers = #tpu.dot_dimension_numbers<[1], [0], [0], [1], [0, 0, 1, 1], [], []>} : vector<64x16xbf16>, vector<16x128xbf16>, vector<64x128xf32> -> vector<64x128xf32>
    %231 = arith.addf %224, %230 : vector<64x128xf32>
    %c1_231 = arith.constant 1 : index
    %c0_232 = arith.constant 0 : index
    %c0_233 = arith.constant 0 : index
    %c0_234 = arith.constant 0 : index
    %232 = vector.load %arg1[%c1_231, %c0_232, %c0_233, %c0_234] : memref<9x4x9x16xbf16, #tpu.memory_space<vmem>>, vector<8x1x8x16xbf16>
    %233 = vector.shape_cast %232 : vector<8x1x8x16xbf16> to vector<8x8x16xbf16>
    %234 = vector.shape_cast %233 : vector<8x8x16xbf16> to vector<64x16xbf16>
    %c33 = arith.constant 33 : index
    %c0_235 = arith.constant 0 : index
    %c0_236 = arith.constant 0 : index
    %235 = vector.load %arg2[%c33, %c0_235, %c0_236] : memref<64x16x128xbf16, #tpu.memory_space<vmem>>, vector<1x16x128xbf16>
    %236 = vector.shape_cast %235 : vector<1x16x128xbf16> to vector<16x128xbf16>
    %cst_237 = arith.constant dense<0.000000e+00> : vector<64x128xf32>
    %237 = tpu.matmul %234, %236, %cst_237 {dimension_numbers = #tpu.dot_dimension_numbers<[1], [0], [0], [1], [0, 0, 1, 1], [], []>} : vector<64x16xbf16>, vector<16x128xbf16>, vector<64x128xf32> -> vector<64x128xf32>
    %238 = arith.addf %231, %237 : vector<64x128xf32>
    %c1_238 = arith.constant 1 : index
    %c0_239 = arith.constant 0 : index
    %c0_240 = arith.constant 0 : index
    %c0_241 = arith.constant 0 : index
    %239 = vector.load %arg1[%c1_238, %c0_239, %c0_240, %c0_241] : memref<9x4x9x16xbf16, #tpu.memory_space<vmem>>, vector<8x1x8x16xbf16>
    %240 = vector.shape_cast %239 : vector<8x1x8x16xbf16> to vector<8x8x16xbf16>
    %241 = vector.shape_cast %240 : vector<8x8x16xbf16> to vector<64x16xbf16>
    %c34 = arith.constant 34 : index
    %c0_242 = arith.constant 0 : index
    %c0_243 = arith.constant 0 : index
    %242 = vector.load %arg2[%c34, %c0_242, %c0_243] : memref<64x16x128xbf16, #tpu.memory_space<vmem>>, vector<1x16x128xbf16>
    %243 = vector.shape_cast %242 : vector<1x16x128xbf16> to vector<16x128xbf16>
    %cst_244 = arith.constant dense<0.000000e+00> : vector<64x128xf32>
    %244 = tpu.matmul %241, %243, %cst_244 {dimension_numbers = #tpu.dot_dimension_numbers<[1], [0], [0], [1], [0, 0, 1, 1], [], []>} : vector<64x16xbf16>, vector<16x128xbf16>, vector<64x128xf32> -> vector<64x128xf32>
    %245 = arith.addf %238, %244 : vector<64x128xf32>
    %c1_245 = arith.constant 1 : index
    %c0_246 = arith.constant 0 : index
    %c0_247 = arith.constant 0 : index
    %c0_248 = arith.constant 0 : index
    %246 = vector.load %arg1[%c1_245, %c0_246, %c0_247, %c0_248] : memref<9x4x9x16xbf16, #tpu.memory_space<vmem>>, vector<8x1x8x16xbf16>
    %247 = vector.shape_cast %246 : vector<8x1x8x16xbf16> to vector<8x8x16xbf16>
    %248 = vector.shape_cast %247 : vector<8x8x16xbf16> to vector<64x16xbf16>
    %c35 = arith.constant 35 : index
    %c0_249 = arith.constant 0 : index
    %c0_250 = arith.constant 0 : index
    %249 = vector.load %arg2[%c35, %c0_249, %c0_250] : memref<64x16x128xbf16, #tpu.memory_space<vmem>>, vector<1x16x128xbf16>
    %250 = vector.shape_cast %249 : vector<1x16x128xbf16> to vector<16x128xbf16>
    %cst_251 = arith.constant dense<0.000000e+00> : vector<64x128xf32>
    %251 = tpu.matmul %248, %250, %cst_251 {dimension_numbers = #tpu.dot_dimension_numbers<[1], [0], [0], [1], [0, 0, 1, 1], [], []>} : vector<64x16xbf16>, vector<16x128xbf16>, vector<64x128xf32> -> vector<64x128xf32>
    %252 = arith.addf %245, %251 : vector<64x128xf32>
    %c1_252 = arith.constant 1 : index
    %c0_253 = arith.constant 0 : index
    %c1_254 = arith.constant 1 : index
    %c0_255 = arith.constant 0 : index
    %253 = vector.load %arg1[%c1_252, %c0_253, %c1_254, %c0_255] : memref<9x4x9x16xbf16, #tpu.memory_space<vmem>>, vector<8x1x8x16xbf16>
    %254 = vector.shape_cast %253 : vector<8x1x8x16xbf16> to vector<8x8x16xbf16>
    %255 = vector.shape_cast %254 : vector<8x8x16xbf16> to vector<64x16xbf16>
    %c36 = arith.constant 36 : index
    %c0_256 = arith.constant 0 : index
    %c0_257 = arith.constant 0 : index
    %256 = vector.load %arg2[%c36, %c0_256, %c0_257] : memref<64x16x128xbf16, #tpu.memory_space<vmem>>, vector<1x16x128xbf16>
    %257 = vector.shape_cast %256 : vector<1x16x128xbf16> to vector<16x128xbf16>
    %cst_258 = arith.constant dense<0.000000e+00> : vector<64x128xf32>
    %258 = tpu.matmul %255, %257, %cst_258 {dimension_numbers = #tpu.dot_dimension_numbers<[1], [0], [0], [1], [0, 0, 1, 1], [], []>} : vector<64x16xbf16>, vector<16x128xbf16>, vector<64x128xf32> -> vector<64x128xf32>
    %259 = arith.addf %252, %258 : vector<64x128xf32>
    %c1_259 = arith.constant 1 : index
    %c0_260 = arith.constant 0 : index
    %c1_261 = arith.constant 1 : index
    %c0_262 = arith.constant 0 : index
    %260 = vector.load %arg1[%c1_259, %c0_260, %c1_261, %c0_262] : memref<9x4x9x16xbf16, #tpu.memory_space<vmem>>, vector<8x1x8x16xbf16>
    %261 = vector.shape_cast %260 : vector<8x1x8x16xbf16> to vector<8x8x16xbf16>
    %262 = vector.shape_cast %261 : vector<8x8x16xbf16> to vector<64x16xbf16>
    %c37 = arith.constant 37 : index
    %c0_263 = arith.constant 0 : index
    %c0_264 = arith.constant 0 : index
    %263 = vector.load %arg2[%c37, %c0_263, %c0_264] : memref<64x16x128xbf16, #tpu.memory_space<vmem>>, vector<1x16x128xbf16>
    %264 = vector.shape_cast %263 : vector<1x16x128xbf16> to vector<16x128xbf16>
    %cst_265 = arith.constant dense<0.000000e+00> : vector<64x128xf32>
    %265 = tpu.matmul %262, %264, %cst_265 {dimension_numbers = #tpu.dot_dimension_numbers<[1], [0], [0], [1], [0, 0, 1, 1], [], []>} : vector<64x16xbf16>, vector<16x128xbf16>, vector<64x128xf32> -> vector<64x128xf32>
    %266 = arith.addf %259, %265 : vector<64x128xf32>
    %c1_266 = arith.constant 1 : index
    %c0_267 = arith.constant 0 : index
    %c1_268 = arith.constant 1 : index
    %c0_269 = arith.constant 0 : index
    %267 = vector.load %arg1[%c1_266, %c0_267, %c1_268, %c0_269] : memref<9x4x9x16xbf16, #tpu.memory_space<vmem>>, vector<8x1x8x16xbf16>
    %268 = vector.shape_cast %267 : vector<8x1x8x16xbf16> to vector<8x8x16xbf16>
    %269 = vector.shape_cast %268 : vector<8x8x16xbf16> to vector<64x16xbf16>
    %c38 = arith.constant 38 : index
    %c0_270 = arith.constant 0 : index
    %c0_271 = arith.constant 0 : index
    %270 = vector.load %arg2[%c38, %c0_270, %c0_271] : memref<64x16x128xbf16, #tpu.memory_space<vmem>>, vector<1x16x128xbf16>
    %271 = vector.shape_cast %270 : vector<1x16x128xbf16> to vector<16x128xbf16>
    %cst_272 = arith.constant dense<0.000000e+00> : vector<64x128xf32>
    %272 = tpu.matmul %269, %271, %cst_272 {dimension_numbers = #tpu.dot_dimension_numbers<[1], [0], [0], [1], [0, 0, 1, 1], [], []>} : vector<64x16xbf16>, vector<16x128xbf16>, vector<64x128xf32> -> vector<64x128xf32>
    %273 = arith.addf %266, %272 : vector<64x128xf32>
    %c1_273 = arith.constant 1 : index
    %c0_274 = arith.constant 0 : index
    %c1_275 = arith.constant 1 : index
    %c0_276 = arith.constant 0 : index
    %274 = vector.load %arg1[%c1_273, %c0_274, %c1_275, %c0_276] : memref<9x4x9x16xbf16, #tpu.memory_space<vmem>>, vector<8x1x8x16xbf16>
    %275 = vector.shape_cast %274 : vector<8x1x8x16xbf16> to vector<8x8x16xbf16>
    %276 = vector.shape_cast %275 : vector<8x8x16xbf16> to vector<64x16xbf16>
    %c39 = arith.constant 39 : index
    %c0_277 = arith.constant 0 : index
    %c0_278 = arith.constant 0 : index
    %277 = vector.load %arg2[%c39, %c0_277, %c0_278] : memref<64x16x128xbf16, #tpu.memory_space<vmem>>, vector<1x16x128xbf16>
    %278 = vector.shape_cast %277 : vector<1x16x128xbf16> to vector<16x128xbf16>
    %cst_279 = arith.constant dense<0.000000e+00> : vector<64x128xf32>
    %279 = tpu.matmul %276, %278, %cst_279 {dimension_numbers = #tpu.dot_dimension_numbers<[1], [0], [0], [1], [0, 0, 1, 1], [], []>} : vector<64x16xbf16>, vector<16x128xbf16>, vector<64x128xf32> -> vector<64x128xf32>
    %280 = arith.addf %273, %279 : vector<64x128xf32>
    %c1_280 = arith.constant 1 : index
    %c1_281 = arith.constant 1 : index
    %c0_282 = arith.constant 0 : index
    %c0_283 = arith.constant 0 : index
    %281 = vector.load %arg1[%c1_280, %c1_281, %c0_282, %c0_283] : memref<9x4x9x16xbf16, #tpu.memory_space<vmem>>, vector<8x1x8x16xbf16>
    %282 = vector.shape_cast %281 : vector<8x1x8x16xbf16> to vector<8x8x16xbf16>
    %283 = vector.shape_cast %282 : vector<8x8x16xbf16> to vector<64x16xbf16>
    %c40 = arith.constant 40 : index
    %c0_284 = arith.constant 0 : index
    %c0_285 = arith.constant 0 : index
    %284 = vector.load %arg2[%c40, %c0_284, %c0_285] : memref<64x16x128xbf16, #tpu.memory_space<vmem>>, vector<1x16x128xbf16>
    %285 = vector.shape_cast %284 : vector<1x16x128xbf16> to vector<16x128xbf16>
    %cst_286 = arith.constant dense<0.000000e+00> : vector<64x128xf32>
    %286 = tpu.matmul %283, %285, %cst_286 {dimension_numbers = #tpu.dot_dimension_numbers<[1], [0], [0], [1], [0, 0, 1, 1], [], []>} : vector<64x16xbf16>, vector<16x128xbf16>, vector<64x128xf32> -> vector<64x128xf32>
    %287 = arith.addf %280, %286 : vector<64x128xf32>
    %c1_287 = arith.constant 1 : index
    %c1_288 = arith.constant 1 : index
    %c0_289 = arith.constant 0 : index
    %c0_290 = arith.constant 0 : index
    %288 = vector.load %arg1[%c1_287, %c1_288, %c0_289, %c0_290] : memref<9x4x9x16xbf16, #tpu.memory_space<vmem>>, vector<8x1x8x16xbf16>
    %289 = vector.shape_cast %288 : vector<8x1x8x16xbf16> to vector<8x8x16xbf16>
    %290 = vector.shape_cast %289 : vector<8x8x16xbf16> to vector<64x16xbf16>
    %c41 = arith.constant 41 : index
    %c0_291 = arith.constant 0 : index
    %c0_292 = arith.constant 0 : index
    %291 = vector.load %arg2[%c41, %c0_291, %c0_292] : memref<64x16x128xbf16, #tpu.memory_space<vmem>>, vector<1x16x128xbf16>
    %292 = vector.shape_cast %291 : vector<1x16x128xbf16> to vector<16x128xbf16>
    %cst_293 = arith.constant dense<0.000000e+00> : vector<64x128xf32>
    %293 = tpu.matmul %290, %292, %cst_293 {dimension_numbers = #tpu.dot_dimension_numbers<[1], [0], [0], [1], [0, 0, 1, 1], [], []>} : vector<64x16xbf16>, vector<16x128xbf16>, vector<64x128xf32> -> vector<64x128xf32>
    %294 = arith.addf %287, %293 : vector<64x128xf32>
    %c1_294 = arith.constant 1 : index
    %c1_295 = arith.constant 1 : index
    %c0_296 = arith.constant 0 : index
    %c0_297 = arith.constant 0 : index
    %295 = vector.load %arg1[%c1_294, %c1_295, %c0_296, %c0_297] : memref<9x4x9x16xbf16, #tpu.memory_space<vmem>>, vector<8x1x8x16xbf16>
    %296 = vector.shape_cast %295 : vector<8x1x8x16xbf16> to vector<8x8x16xbf16>
    %297 = vector.shape_cast %296 : vector<8x8x16xbf16> to vector<64x16xbf16>
    %c42 = arith.constant 42 : index
    %c0_298 = arith.constant 0 : index
    %c0_299 = arith.constant 0 : index
    %298 = vector.load %arg2[%c42, %c0_298, %c0_299] : memref<64x16x128xbf16, #tpu.memory_space<vmem>>, vector<1x16x128xbf16>
    %299 = vector.shape_cast %298 : vector<1x16x128xbf16> to vector<16x128xbf16>
    %cst_300 = arith.constant dense<0.000000e+00> : vector<64x128xf32>
    %300 = tpu.matmul %297, %299, %cst_300 {dimension_numbers = #tpu.dot_dimension_numbers<[1], [0], [0], [1], [0, 0, 1, 1], [], []>} : vector<64x16xbf16>, vector<16x128xbf16>, vector<64x128xf32> -> vector<64x128xf32>
    %301 = arith.addf %294, %300 : vector<64x128xf32>
    %c1_301 = arith.constant 1 : index
    %c1_302 = arith.constant 1 : index
    %c0_303 = arith.constant 0 : index
    %c0_304 = arith.constant 0 : index
    %302 = vector.load %arg1[%c1_301, %c1_302, %c0_303, %c0_304] : memref<9x4x9x16xbf16, #tpu.memory_space<vmem>>, vector<8x1x8x16xbf16>
    %303 = vector.shape_cast %302 : vector<8x1x8x16xbf16> to vector<8x8x16xbf16>
    %304 = vector.shape_cast %303 : vector<8x8x16xbf16> to vector<64x16xbf16>
    %c43 = arith.constant 43 : index
    %c0_305 = arith.constant 0 : index
    %c0_306 = arith.constant 0 : index
    %305 = vector.load %arg2[%c43, %c0_305, %c0_306] : memref<64x16x128xbf16, #tpu.memory_space<vmem>>, vector<1x16x128xbf16>
    %306 = vector.shape_cast %305 : vector<1x16x128xbf16> to vector<16x128xbf16>
    %cst_307 = arith.constant dense<0.000000e+00> : vector<64x128xf32>
    %307 = tpu.matmul %304, %306, %cst_307 {dimension_numbers = #tpu.dot_dimension_numbers<[1], [0], [0], [1], [0, 0, 1, 1], [], []>} : vector<64x16xbf16>, vector<16x128xbf16>, vector<64x128xf32> -> vector<64x128xf32>
    %308 = arith.addf %301, %307 : vector<64x128xf32>
    %c1_308 = arith.constant 1 : index
    %c1_309 = arith.constant 1 : index
    %c1_310 = arith.constant 1 : index
    %c0_311 = arith.constant 0 : index
    %309 = vector.load %arg1[%c1_308, %c1_309, %c1_310, %c0_311] : memref<9x4x9x16xbf16, #tpu.memory_space<vmem>>, vector<8x1x8x16xbf16>
    %310 = vector.shape_cast %309 : vector<8x1x8x16xbf16> to vector<8x8x16xbf16>
    %311 = vector.shape_cast %310 : vector<8x8x16xbf16> to vector<64x16xbf16>
    %c44 = arith.constant 44 : index
    %c0_312 = arith.constant 0 : index
    %c0_313 = arith.constant 0 : index
    %312 = vector.load %arg2[%c44, %c0_312, %c0_313] : memref<64x16x128xbf16, #tpu.memory_space<vmem>>, vector<1x16x128xbf16>
    %313 = vector.shape_cast %312 : vector<1x16x128xbf16> to vector<16x128xbf16>
    %cst_314 = arith.constant dense<0.000000e+00> : vector<64x128xf32>
    %314 = tpu.matmul %311, %313, %cst_314 {dimension_numbers = #tpu.dot_dimension_numbers<[1], [0], [0], [1], [0, 0, 1, 1], [], []>} : vector<64x16xbf16>, vector<16x128xbf16>, vector<64x128xf32> -> vector<64x128xf32>
    %315 = arith.addf %308, %314 : vector<64x128xf32>
    %c1_315 = arith.constant 1 : index
    %c1_316 = arith.constant 1 : index
    %c1_317 = arith.constant 1 : index
    %c0_318 = arith.constant 0 : index
    %316 = vector.load %arg1[%c1_315, %c1_316, %c1_317, %c0_318] : memref<9x4x9x16xbf16, #tpu.memory_space<vmem>>, vector<8x1x8x16xbf16>
    %317 = vector.shape_cast %316 : vector<8x1x8x16xbf16> to vector<8x8x16xbf16>
    %318 = vector.shape_cast %317 : vector<8x8x16xbf16> to vector<64x16xbf16>
    %c45 = arith.constant 45 : index
    %c0_319 = arith.constant 0 : index
    %c0_320 = arith.constant 0 : index
    %319 = vector.load %arg2[%c45, %c0_319, %c0_320] : memref<64x16x128xbf16, #tpu.memory_space<vmem>>, vector<1x16x128xbf16>
    %320 = vector.shape_cast %319 : vector<1x16x128xbf16> to vector<16x128xbf16>
    %cst_321 = arith.constant dense<0.000000e+00> : vector<64x128xf32>
    %321 = tpu.matmul %318, %320, %cst_321 {dimension_numbers = #tpu.dot_dimension_numbers<[1], [0], [0], [1], [0, 0, 1, 1], [], []>} : vector<64x16xbf16>, vector<16x128xbf16>, vector<64x128xf32> -> vector<64x128xf32>
    %322 = arith.addf %315, %321 : vector<64x128xf32>
    %c1_322 = arith.constant 1 : index
    %c1_323 = arith.constant 1 : index
    %c1_324 = arith.constant 1 : index
    %c0_325 = arith.constant 0 : index
    %323 = vector.load %arg1[%c1_322, %c1_323, %c1_324, %c0_325] : memref<9x4x9x16xbf16, #tpu.memory_space<vmem>>, vector<8x1x8x16xbf16>
    %324 = vector.shape_cast %323 : vector<8x1x8x16xbf16> to vector<8x8x16xbf16>
    %325 = vector.shape_cast %324 : vector<8x8x16xbf16> to vector<64x16xbf16>
    %c46 = arith.constant 46 : index
    %c0_326 = arith.constant 0 : index
    %c0_327 = arith.constant 0 : index
    %326 = vector.load %arg2[%c46, %c0_326, %c0_327] : memref<64x16x128xbf16, #tpu.memory_space<vmem>>, vector<1x16x128xbf16>
    %327 = vector.shape_cast %326 : vector<1x16x128xbf16> to vector<16x128xbf16>
    %cst_328 = arith.constant dense<0.000000e+00> : vector<64x128xf32>
    %328 = tpu.matmul %325, %327, %cst_328 {dimension_numbers = #tpu.dot_dimension_numbers<[1], [0], [0], [1], [0, 0, 1, 1], [], []>} : vector<64x16xbf16>, vector<16x128xbf16>, vector<64x128xf32> -> vector<64x128xf32>
    %329 = arith.addf %322, %328 : vector<64x128xf32>
    %c1_329 = arith.constant 1 : index
    %c1_330 = arith.constant 1 : index
    %c1_331 = arith.constant 1 : index
    %c0_332 = arith.constant 0 : index
    %330 = vector.load %arg1[%c1_329, %c1_330, %c1_331, %c0_332] : memref<9x4x9x16xbf16, #tpu.memory_space<vmem>>, vector<8x1x8x16xbf16>
    %331 = vector.shape_cast %330 : vector<8x1x8x16xbf16> to vector<8x8x16xbf16>
    %332 = vector.shape_cast %331 : vector<8x8x16xbf16> to vector<64x16xbf16>
    %c47 = arith.constant 47 : index
    %c0_333 = arith.constant 0 : index
    %c0_334 = arith.constant 0 : index
    %333 = vector.load %arg2[%c47, %c0_333, %c0_334] : memref<64x16x128xbf16, #tpu.memory_space<vmem>>, vector<1x16x128xbf16>
    %334 = vector.shape_cast %333 : vector<1x16x128xbf16> to vector<16x128xbf16>
    %cst_335 = arith.constant dense<0.000000e+00> : vector<64x128xf32>
    %335 = tpu.matmul %332, %334, %cst_335 {dimension_numbers = #tpu.dot_dimension_numbers<[1], [0], [0], [1], [0, 0, 1, 1], [], []>} : vector<64x16xbf16>, vector<16x128xbf16>, vector<64x128xf32> -> vector<64x128xf32>
    %336 = arith.addf %329, %335 : vector<64x128xf32>
    %c1_336 = arith.constant 1 : index
    %c2_337 = arith.constant 2 : index
    %c0_338 = arith.constant 0 : index
    %c0_339 = arith.constant 0 : index
    %337 = vector.load %arg1[%c1_336, %c2_337, %c0_338, %c0_339] : memref<9x4x9x16xbf16, #tpu.memory_space<vmem>>, vector<8x1x8x16xbf16>
    %338 = vector.shape_cast %337 : vector<8x1x8x16xbf16> to vector<8x8x16xbf16>
    %339 = vector.shape_cast %338 : vector<8x8x16xbf16> to vector<64x16xbf16>
    %c48 = arith.constant 48 : index
    %c0_340 = arith.constant 0 : index
    %c0_341 = arith.constant 0 : index
    %340 = vector.load %arg2[%c48, %c0_340, %c0_341] : memref<64x16x128xbf16, #tpu.memory_space<vmem>>, vector<1x16x128xbf16>
    %341 = vector.shape_cast %340 : vector<1x16x128xbf16> to vector<16x128xbf16>
    %cst_342 = arith.constant dense<0.000000e+00> : vector<64x128xf32>
    %342 = tpu.matmul %339, %341, %cst_342 {dimension_numbers = #tpu.dot_dimension_numbers<[1], [0], [0], [1], [0, 0, 1, 1], [], []>} : vector<64x16xbf16>, vector<16x128xbf16>, vector<64x128xf32> -> vector<64x128xf32>
    %343 = arith.addf %336, %342 : vector<64x128xf32>
    %c1_343 = arith.constant 1 : index
    %c2_344 = arith.constant 2 : index
    %c0_345 = arith.constant 0 : index
    %c0_346 = arith.constant 0 : index
    %344 = vector.load %arg1[%c1_343, %c2_344, %c0_345, %c0_346] : memref<9x4x9x16xbf16, #tpu.memory_space<vmem>>, vector<8x1x8x16xbf16>
    %345 = vector.shape_cast %344 : vector<8x1x8x16xbf16> to vector<8x8x16xbf16>
    %346 = vector.shape_cast %345 : vector<8x8x16xbf16> to vector<64x16xbf16>
    %c49 = arith.constant 49 : index
    %c0_347 = arith.constant 0 : index
    %c0_348 = arith.constant 0 : index
    %347 = vector.load %arg2[%c49, %c0_347, %c0_348] : memref<64x16x128xbf16, #tpu.memory_space<vmem>>, vector<1x16x128xbf16>
    %348 = vector.shape_cast %347 : vector<1x16x128xbf16> to vector<16x128xbf16>
    %cst_349 = arith.constant dense<0.000000e+00> : vector<64x128xf32>
    %349 = tpu.matmul %346, %348, %cst_349 {dimension_numbers = #tpu.dot_dimension_numbers<[1], [0], [0], [1], [0, 0, 1, 1], [], []>} : vector<64x16xbf16>, vector<16x128xbf16>, vector<64x128xf32> -> vector<64x128xf32>
    %350 = arith.addf %343, %349 : vector<64x128xf32>
    %c1_350 = arith.constant 1 : index
    %c2_351 = arith.constant 2 : index
    %c0_352 = arith.constant 0 : index
    %c0_353 = arith.constant 0 : index
    %351 = vector.load %arg1[%c1_350, %c2_351, %c0_352, %c0_353] : memref<9x4x9x16xbf16, #tpu.memory_space<vmem>>, vector<8x1x8x16xbf16>
    %352 = vector.shape_cast %351 : vector<8x1x8x16xbf16> to vector<8x8x16xbf16>
    %353 = vector.shape_cast %352 : vector<8x8x16xbf16> to vector<64x16xbf16>
    %c50 = arith.constant 50 : index
    %c0_354 = arith.constant 0 : index
    %c0_355 = arith.constant 0 : index
    %354 = vector.load %arg2[%c50, %c0_354, %c0_355] : memref<64x16x128xbf16, #tpu.memory_space<vmem>>, vector<1x16x128xbf16>
    %355 = vector.shape_cast %354 : vector<1x16x128xbf16> to vector<16x128xbf16>
    %cst_356 = arith.constant dense<0.000000e+00> : vector<64x128xf32>
    %356 = tpu.matmul %353, %355, %cst_356 {dimension_numbers = #tpu.dot_dimension_numbers<[1], [0], [0], [1], [0, 0, 1, 1], [], []>} : vector<64x16xbf16>, vector<16x128xbf16>, vector<64x128xf32> -> vector<64x128xf32>
    %357 = arith.addf %350, %356 : vector<64x128xf32>
    %c1_357 = arith.constant 1 : index
    %c2_358 = arith.constant 2 : index
    %c0_359 = arith.constant 0 : index
    %c0_360 = arith.constant 0 : index
    %358 = vector.load %arg1[%c1_357, %c2_358, %c0_359, %c0_360] : memref<9x4x9x16xbf16, #tpu.memory_space<vmem>>, vector<8x1x8x16xbf16>
    %359 = vector.shape_cast %358 : vector<8x1x8x16xbf16> to vector<8x8x16xbf16>
    %360 = vector.shape_cast %359 : vector<8x8x16xbf16> to vector<64x16xbf16>
    %c51 = arith.constant 51 : index
    %c0_361 = arith.constant 0 : index
    %c0_362 = arith.constant 0 : index
    %361 = vector.load %arg2[%c51, %c0_361, %c0_362] : memref<64x16x128xbf16, #tpu.memory_space<vmem>>, vector<1x16x128xbf16>
    %362 = vector.shape_cast %361 : vector<1x16x128xbf16> to vector<16x128xbf16>
    %cst_363 = arith.constant dense<0.000000e+00> : vector<64x128xf32>
    %363 = tpu.matmul %360, %362, %cst_363 {dimension_numbers = #tpu.dot_dimension_numbers<[1], [0], [0], [1], [0, 0, 1, 1], [], []>} : vector<64x16xbf16>, vector<16x128xbf16>, vector<64x128xf32> -> vector<64x128xf32>
    %364 = arith.addf %357, %363 : vector<64x128xf32>
    %c1_364 = arith.constant 1 : index
    %c2_365 = arith.constant 2 : index
    %c1_366 = arith.constant 1 : index
    %c0_367 = arith.constant 0 : index
    %365 = vector.load %arg1[%c1_364, %c2_365, %c1_366, %c0_367] : memref<9x4x9x16xbf16, #tpu.memory_space<vmem>>, vector<8x1x8x16xbf16>
    %366 = vector.shape_cast %365 : vector<8x1x8x16xbf16> to vector<8x8x16xbf16>
    %367 = vector.shape_cast %366 : vector<8x8x16xbf16> to vector<64x16xbf16>
    %c52 = arith.constant 52 : index
    %c0_368 = arith.constant 0 : index
    %c0_369 = arith.constant 0 : index
    %368 = vector.load %arg2[%c52, %c0_368, %c0_369] : memref<64x16x128xbf16, #tpu.memory_space<vmem>>, vector<1x16x128xbf16>
    %369 = vector.shape_cast %368 : vector<1x16x128xbf16> to vector<16x128xbf16>
    %cst_370 = arith.constant dense<0.000000e+00> : vector<64x128xf32>
    %370 = tpu.matmul %367, %369, %cst_370 {dimension_numbers = #tpu.dot_dimension_numbers<[1], [0], [0], [1], [0, 0, 1, 1], [], []>} : vector<64x16xbf16>, vector<16x128xbf16>, vector<64x128xf32> -> vector<64x128xf32>
    %371 = arith.addf %364, %370 : vector<64x128xf32>
    %c1_371 = arith.constant 1 : index
    %c2_372 = arith.constant 2 : index
    %c1_373 = arith.constant 1 : index
    %c0_374 = arith.constant 0 : index
    %372 = vector.load %arg1[%c1_371, %c2_372, %c1_373, %c0_374] : memref<9x4x9x16xbf16, #tpu.memory_space<vmem>>, vector<8x1x8x16xbf16>
    %373 = vector.shape_cast %372 : vector<8x1x8x16xbf16> to vector<8x8x16xbf16>
    %374 = vector.shape_cast %373 : vector<8x8x16xbf16> to vector<64x16xbf16>
    %c53 = arith.constant 53 : index
    %c0_375 = arith.constant 0 : index
    %c0_376 = arith.constant 0 : index
    %375 = vector.load %arg2[%c53, %c0_375, %c0_376] : memref<64x16x128xbf16, #tpu.memory_space<vmem>>, vector<1x16x128xbf16>
    %376 = vector.shape_cast %375 : vector<1x16x128xbf16> to vector<16x128xbf16>
    %cst_377 = arith.constant dense<0.000000e+00> : vector<64x128xf32>
    %377 = tpu.matmul %374, %376, %cst_377 {dimension_numbers = #tpu.dot_dimension_numbers<[1], [0], [0], [1], [0, 0, 1, 1], [], []>} : vector<64x16xbf16>, vector<16x128xbf16>, vector<64x128xf32> -> vector<64x128xf32>
    %378 = arith.addf %371, %377 : vector<64x128xf32>
    %c1_378 = arith.constant 1 : index
    %c2_379 = arith.constant 2 : index
    %c1_380 = arith.constant 1 : index
    %c0_381 = arith.constant 0 : index
    %379 = vector.load %arg1[%c1_378, %c2_379, %c1_380, %c0_381] : memref<9x4x9x16xbf16, #tpu.memory_space<vmem>>, vector<8x1x8x16xbf16>
    %380 = vector.shape_cast %379 : vector<8x1x8x16xbf16> to vector<8x8x16xbf16>
    %381 = vector.shape_cast %380 : vector<8x8x16xbf16> to vector<64x16xbf16>
    %c54 = arith.constant 54 : index
    %c0_382 = arith.constant 0 : index
    %c0_383 = arith.constant 0 : index
    %382 = vector.load %arg2[%c54, %c0_382, %c0_383] : memref<64x16x128xbf16, #tpu.memory_space<vmem>>, vector<1x16x128xbf16>
    %383 = vector.shape_cast %382 : vector<1x16x128xbf16> to vector<16x128xbf16>
    %cst_384 = arith.constant dense<0.000000e+00> : vector<64x128xf32>
    %384 = tpu.matmul %381, %383, %cst_384 {dimension_numbers = #tpu.dot_dimension_numbers<[1], [0], [0], [1], [0, 0, 1, 1], [], []>} : vector<64x16xbf16>, vector<16x128xbf16>, vector<64x128xf32> -> vector<64x128xf32>
    %385 = arith.addf %378, %384 : vector<64x128xf32>
    %c1_385 = arith.constant 1 : index
    %c2_386 = arith.constant 2 : index
    %c1_387 = arith.constant 1 : index
    %c0_388 = arith.constant 0 : index
    %386 = vector.load %arg1[%c1_385, %c2_386, %c1_387, %c0_388] : memref<9x4x9x16xbf16, #tpu.memory_space<vmem>>, vector<8x1x8x16xbf16>
    %387 = vector.shape_cast %386 : vector<8x1x8x16xbf16> to vector<8x8x16xbf16>
    %388 = vector.shape_cast %387 : vector<8x8x16xbf16> to vector<64x16xbf16>
    %c55 = arith.constant 55 : index
    %c0_389 = arith.constant 0 : index
    %c0_390 = arith.constant 0 : index
    %389 = vector.load %arg2[%c55, %c0_389, %c0_390] : memref<64x16x128xbf16, #tpu.memory_space<vmem>>, vector<1x16x128xbf16>
    %390 = vector.shape_cast %389 : vector<1x16x128xbf16> to vector<16x128xbf16>
    %cst_391 = arith.constant dense<0.000000e+00> : vector<64x128xf32>
    %391 = tpu.matmul %388, %390, %cst_391 {dimension_numbers = #tpu.dot_dimension_numbers<[1], [0], [0], [1], [0, 0, 1, 1], [], []>} : vector<64x16xbf16>, vector<16x128xbf16>, vector<64x128xf32> -> vector<64x128xf32>
    %392 = arith.addf %385, %391 : vector<64x128xf32>
    %c1_392 = arith.constant 1 : index
    %c3_393 = arith.constant 3 : index
    %c0_394 = arith.constant 0 : index
    %c0_395 = arith.constant 0 : index
    %393 = vector.load %arg1[%c1_392, %c3_393, %c0_394, %c0_395] : memref<9x4x9x16xbf16, #tpu.memory_space<vmem>>, vector<8x1x8x16xbf16>
    %394 = vector.shape_cast %393 : vector<8x1x8x16xbf16> to vector<8x8x16xbf16>
    %395 = vector.shape_cast %394 : vector<8x8x16xbf16> to vector<64x16xbf16>
    %c56 = arith.constant 56 : index
    %c0_396 = arith.constant 0 : index
    %c0_397 = arith.constant 0 : index
    %396 = vector.load %arg2[%c56, %c0_396, %c0_397] : memref<64x16x128xbf16, #tpu.memory_space<vmem>>, vector<1x16x128xbf16>
    %397 = vector.shape_cast %396 : vector<1x16x128xbf16> to vector<16x128xbf16>
    %cst_398 = arith.constant dense<0.000000e+00> : vector<64x128xf32>
    %398 = tpu.matmul %395, %397, %cst_398 {dimension_numbers = #tpu.dot_dimension_numbers<[1], [0], [0], [1], [0, 0, 1, 1], [], []>} : vector<64x16xbf16>, vector<16x128xbf16>, vector<64x128xf32> -> vector<64x128xf32>
    %399 = arith.addf %392, %398 : vector<64x128xf32>
    %c1_399 = arith.constant 1 : index
    %c3_400 = arith.constant 3 : index
    %c0_401 = arith.constant 0 : index
    %c0_402 = arith.constant 0 : index
    %400 = vector.load %arg1[%c1_399, %c3_400, %c0_401, %c0_402] : memref<9x4x9x16xbf16, #tpu.memory_space<vmem>>, vector<8x1x8x16xbf16>
    %401 = vector.shape_cast %400 : vector<8x1x8x16xbf16> to vector<8x8x16xbf16>
    %402 = vector.shape_cast %401 : vector<8x8x16xbf16> to vector<64x16xbf16>
    %c57 = arith.constant 57 : index
    %c0_403 = arith.constant 0 : index
    %c0_404 = arith.constant 0 : index
    %403 = vector.load %arg2[%c57, %c0_403, %c0_404] : memref<64x16x128xbf16, #tpu.memory_space<vmem>>, vector<1x16x128xbf16>
    %404 = vector.shape_cast %403 : vector<1x16x128xbf16> to vector<16x128xbf16>
    %cst_405 = arith.constant dense<0.000000e+00> : vector<64x128xf32>
    %405 = tpu.matmul %402, %404, %cst_405 {dimension_numbers = #tpu.dot_dimension_numbers<[1], [0], [0], [1], [0, 0, 1, 1], [], []>} : vector<64x16xbf16>, vector<16x128xbf16>, vector<64x128xf32> -> vector<64x128xf32>
    %406 = arith.addf %399, %405 : vector<64x128xf32>
    %c1_406 = arith.constant 1 : index
    %c3_407 = arith.constant 3 : index
    %c0_408 = arith.constant 0 : index
    %c0_409 = arith.constant 0 : index
    %407 = vector.load %arg1[%c1_406, %c3_407, %c0_408, %c0_409] : memref<9x4x9x16xbf16, #tpu.memory_space<vmem>>, vector<8x1x8x16xbf16>
    %408 = vector.shape_cast %407 : vector<8x1x8x16xbf16> to vector<8x8x16xbf16>
    %409 = vector.shape_cast %408 : vector<8x8x16xbf16> to vector<64x16xbf16>
    %c58 = arith.constant 58 : index
    %c0_410 = arith.constant 0 : index
    %c0_411 = arith.constant 0 : index
    %410 = vector.load %arg2[%c58, %c0_410, %c0_411] : memref<64x16x128xbf16, #tpu.memory_space<vmem>>, vector<1x16x128xbf16>
    %411 = vector.shape_cast %410 : vector<1x16x128xbf16> to vector<16x128xbf16>
    %cst_412 = arith.constant dense<0.000000e+00> : vector<64x128xf32>
    %412 = tpu.matmul %409, %411, %cst_412 {dimension_numbers = #tpu.dot_dimension_numbers<[1], [0], [0], [1], [0, 0, 1, 1], [], []>} : vector<64x16xbf16>, vector<16x128xbf16>, vector<64x128xf32> -> vector<64x128xf32>
    %413 = arith.addf %406, %412 : vector<64x128xf32>
    %c1_413 = arith.constant 1 : index
    %c3_414 = arith.constant 3 : index
    %c0_415 = arith.constant 0 : index
    %c0_416 = arith.constant 0 : index
    %414 = vector.load %arg1[%c1_413, %c3_414, %c0_415, %c0_416] : memref<9x4x9x16xbf16, #tpu.memory_space<vmem>>, vector<8x1x8x16xbf16>
    %415 = vector.shape_cast %414 : vector<8x1x8x16xbf16> to vector<8x8x16xbf16>
    %416 = vector.shape_cast %415 : vector<8x8x16xbf16> to vector<64x16xbf16>
    %c59 = arith.constant 59 : index
    %c0_417 = arith.constant 0 : index
    %c0_418 = arith.constant 0 : index
    %417 = vector.load %arg2[%c59, %c0_417, %c0_418] : memref<64x16x128xbf16, #tpu.memory_space<vmem>>, vector<1x16x128xbf16>
    %418 = vector.shape_cast %417 : vector<1x16x128xbf16> to vector<16x128xbf16>
    %cst_419 = arith.constant dense<0.000000e+00> : vector<64x128xf32>
    %419 = tpu.matmul %416, %418, %cst_419 {dimension_numbers = #tpu.dot_dimension_numbers<[1], [0], [0], [1], [0, 0, 1, 1], [], []>} : vector<64x16xbf16>, vector<16x128xbf16>, vector<64x128xf32> -> vector<64x128xf32>
    %420 = arith.addf %413, %419 : vector<64x128xf32>
    %c1_420 = arith.constant 1 : index
    %c3_421 = arith.constant 3 : index
    %c1_422 = arith.constant 1 : index
    %c0_423 = arith.constant 0 : index
    %421 = vector.load %arg1[%c1_420, %c3_421, %c1_422, %c0_423] : memref<9x4x9x16xbf16, #tpu.memory_space<vmem>>, vector<8x1x8x16xbf16>
    %422 = vector.shape_cast %421 : vector<8x1x8x16xbf16> to vector<8x8x16xbf16>
    %423 = vector.shape_cast %422 : vector<8x8x16xbf16> to vector<64x16xbf16>
    %c60 = arith.constant 60 : index
    %c0_424 = arith.constant 0 : index
    %c0_425 = arith.constant 0 : index
    %424 = vector.load %arg2[%c60, %c0_424, %c0_425] : memref<64x16x128xbf16, #tpu.memory_space<vmem>>, vector<1x16x128xbf16>
    %425 = vector.shape_cast %424 : vector<1x16x128xbf16> to vector<16x128xbf16>
    %cst_426 = arith.constant dense<0.000000e+00> : vector<64x128xf32>
    %426 = tpu.matmul %423, %425, %cst_426 {dimension_numbers = #tpu.dot_dimension_numbers<[1], [0], [0], [1], [0, 0, 1, 1], [], []>} : vector<64x16xbf16>, vector<16x128xbf16>, vector<64x128xf32> -> vector<64x128xf32>
    %427 = arith.addf %420, %426 : vector<64x128xf32>
    %c1_427 = arith.constant 1 : index
    %c3_428 = arith.constant 3 : index
    %c1_429 = arith.constant 1 : index
    %c0_430 = arith.constant 0 : index
    %428 = vector.load %arg1[%c1_427, %c3_428, %c1_429, %c0_430] : memref<9x4x9x16xbf16, #tpu.memory_space<vmem>>, vector<8x1x8x16xbf16>
    %429 = vector.shape_cast %428 : vector<8x1x8x16xbf16> to vector<8x8x16xbf16>
    %430 = vector.shape_cast %429 : vector<8x8x16xbf16> to vector<64x16xbf16>
    %c61 = arith.constant 61 : index
    %c0_431 = arith.constant 0 : index
    %c0_432 = arith.constant 0 : index
    %431 = vector.load %arg2[%c61, %c0_431, %c0_432] : memref<64x16x128xbf16, #tpu.memory_space<vmem>>, vector<1x16x128xbf16>
    %432 = vector.shape_cast %431 : vector<1x16x128xbf16> to vector<16x128xbf16>
    %cst_433 = arith.constant dense<0.000000e+00> : vector<64x128xf32>
    %433 = tpu.matmul %430, %432, %cst_433 {dimension_numbers = #tpu.dot_dimension_numbers<[1], [0], [0], [1], [0, 0, 1, 1], [], []>} : vector<64x16xbf16>, vector<16x128xbf16>, vector<64x128xf32> -> vector<64x128xf32>
    %434 = arith.addf %427, %433 : vector<64x128xf32>
    %c1_434 = arith.constant 1 : index
    %c3_435 = arith.constant 3 : index
    %c1_436 = arith.constant 1 : index
    %c0_437 = arith.constant 0 : index
    %435 = vector.load %arg1[%c1_434, %c3_435, %c1_436, %c0_437] : memref<9x4x9x16xbf16, #tpu.memory_space<vmem>>, vector<8x1x8x16xbf16>
    %436 = vector.shape_cast %435 : vector<8x1x8x16xbf16> to vector<8x8x16xbf16>
    %437 = vector.shape_cast %436 : vector<8x8x16xbf16> to vector<64x16xbf16>
    %c62 = arith.constant 62 : index
    %c0_438 = arith.constant 0 : index
    %c0_439 = arith.constant 0 : index
    %438 = vector.load %arg2[%c62, %c0_438, %c0_439] : memref<64x16x128xbf16, #tpu.memory_space<vmem>>, vector<1x16x128xbf16>
    %439 = vector.shape_cast %438 : vector<1x16x128xbf16> to vector<16x128xbf16>
    %cst_440 = arith.constant dense<0.000000e+00> : vector<64x128xf32>
    %440 = tpu.matmul %437, %439, %cst_440 {dimension_numbers = #tpu.dot_dimension_numbers<[1], [0], [0], [1], [0, 0, 1, 1], [], []>} : vector<64x16xbf16>, vector<16x128xbf16>, vector<64x128xf32> -> vector<64x128xf32>
    %441 = arith.addf %434, %440 : vector<64x128xf32>
    %c1_441 = arith.constant 1 : index
    %c3_442 = arith.constant 3 : index
    %c1_443 = arith.constant 1 : index
    %c0_444 = arith.constant 0 : index
    %442 = vector.load %arg1[%c1_441, %c3_442, %c1_443, %c0_444] : memref<9x4x9x16xbf16, #tpu.memory_space<vmem>>, vector<8x1x8x16xbf16>
    %443 = vector.shape_cast %442 : vector<8x1x8x16xbf16> to vector<8x8x16xbf16>
    %444 = vector.shape_cast %443 : vector<8x8x16xbf16> to vector<64x16xbf16>
    %c63 = arith.constant 63 : index
    %c0_445 = arith.constant 0 : index
    %c0_446 = arith.constant 0 : index
    %445 = vector.load %arg2[%c63, %c0_445, %c0_446] : memref<64x16x128xbf16, #tpu.memory_space<vmem>>, vector<1x16x128xbf16>
    %446 = vector.shape_cast %445 : vector<1x16x128xbf16> to vector<16x128xbf16>
    %cst_447 = arith.constant dense<0.000000e+00> : vector<64x128xf32>
    %447 = tpu.matmul %444, %446, %cst_447 {dimension_numbers = #tpu.dot_dimension_numbers<[1], [0], [0], [1], [0, 0, 1, 1], [], []>} : vector<64x16xbf16>, vector<16x128xbf16>, vector<64x128xf32> -> vector<64x128xf32>
    %448 = arith.addf %441, %447 : vector<64x128xf32>
    %c0_448 = arith.constant 0 : index
    %c0_449 = arith.constant 0 : index
    %449 = vector.load %arg3[%c0_448, %c0_449] : memref<1x128xf32, #tpu.memory_space<vmem>>, vector<1x128xf32>
    %450 = vector.broadcast %449 : vector<1x128xf32> to vector<64x128xf32>
    %451 = arith.addf %448, %450 : vector<64x128xf32>
    %cst_450 = arith.constant 0.000000e+00 : f32
    %452 = vector.broadcast %cst_450 : f32 to vector<64x128xf32>
    %453 = arith.maximumf %451, %452 : vector<64x128xf32>
    %454 = arith.truncf %453 : vector<64x128xf32> to vector<64x128xbf16>
    %c0_451 = arith.constant 0 : index
    %c0_452 = arith.constant 0 : index
    %c0_453 = arith.constant 0 : index
    %455 = vector.load %arg4[%c0_451, %c0_452, %c0_453] : memref<1x64x128xbf16, #tpu.memory_space<vmem>>, vector<1x64x128xbf16>
    %456 = vector.shape_cast %455 : vector<1x64x128xbf16> to vector<64x128xbf16>
    %457 = vector.shape_cast %454 : vector<64x128xbf16> to vector<1x64x128xbf16>
    tpu.vector_store %arg4[%c0_451, %c0_452, %c0_453], %457 {strides = array<i32>} : memref<1x64x128xbf16, #tpu.memory_space<vmem>>, vector<1x64x128xbf16>,
    return
  }
  func.func @transform_0(%arg0: i32) -> (i32, i32, i32, i32) {
    %c0_i32 = arith.constant 0 : i32
    %c0_i32_0 = arith.constant 0 : i32
    %c0_i32_1 = arith.constant 0 : i32
    %c0_i32_2 = arith.constant 0 : i32
    return %arg0, %c0_i32, %c0_i32_0, %c0_i32_1 : i32, i32, i32, i32
  }
  func.func @transform_1(%arg0: i32) -> (i32, i32, i32) {
    %c0_i32 = arith.constant 0 : i32
    %c0_i32_0 = arith.constant 0 : i32
    %c0_i32_1 = arith.constant 0 : i32
    %c0_i32_2 = arith.constant 0 : i32
    return %c0_i32, %c0_i32_0, %c0_i32_1 : i32, i32, i32
  }
  func.func @transform_2(%arg0: i32) -> (i32, i32) {
    %c0_i32 = arith.constant 0 : i32
    %c0_i32_0 = arith.constant 0 : i32
    %c0_i32_1 = arith.constant 0 : i32
    return %c0_i32, %c0_i32_0 : i32, i32
  }
  func.func @transform_3(%arg0: i32) -> (i32, i32, i32) {
    %c0_i32 = arith.constant 0 : i32
    %c0_i32_0 = arith.constant 0 : i32
    %c0_i32_1 = arith.constant 0 : i32
    return %arg0, %c0_i32, %c0_i32_0 : i32, i32, i32
  }
}

module attributes {stable_mosaic.version = 11 : i64} {
  func.func @_conv_relu_kernel(%arg0: i32, %arg1: memref<4x2x4x256xbf16, #tpu.memory_space<vmem>>, %arg2: memref<16x256x128xbf16, #tpu.memory_space<vmem>>, %arg3: memref<1x128xf32, #tpu.memory_space<vmem>>, %arg4: memref<1x9x128xbf16, #tpu.memory_space<vmem>>) attributes {dimension_semantics = [#tpu.dimension_semantics<parallel>], iteration_bounds = array<i64: 2>, scalar_prefetch = 0 : i64, scratch_operands = 0 : i64, tpu.core_type = #tpu.core_type<tc>, window_params = [{transform_indices = @transform_0, window_bounds = array<i64: 4, 2, 4, 256>}, {pipeline_mode = #tpu.pipeline_mode<synchronous>, transform_indices = @transform_1, window_bounds = array<i64: 16, 256, 128>}, {pipeline_mode = #tpu.pipeline_mode<synchronous>, transform_indices = @transform_2, window_bounds = array<i64: 1, 128>}, {transform_indices = @transform_3, window_bounds = array<i64: 1, 9, 128>}]} {
    %cst = arith.constant 0.000000e+00 : f32
    %0 = vector.broadcast %cst : f32 to vector<9x128xf32>
    %c0 = arith.constant 0 : index
    %c0_0 = arith.constant 0 : index
    %c0_1 = arith.constant 0 : index
    %c0_2 = arith.constant 0 : index
    %1 = vector.load %arg1[%c0, %c0_0, %c0_1, %c0_2] : memref<4x2x4x256xbf16, #tpu.memory_space<vmem>>, vector<3x1x3x256xbf16>
    %2 = vector.shape_cast %1 : vector<3x1x3x256xbf16> to vector<3x3x256xbf16>
    %3 = vector.shape_cast %2 : vector<3x3x256xbf16> to vector<9x256xbf16>
    %c0_3 = arith.constant 0 : index
    %c0_4 = arith.constant 0 : index
    %c0_5 = arith.constant 0 : index
    %4 = vector.load %arg2[%c0_3, %c0_4, %c0_5] : memref<16x256x128xbf16, #tpu.memory_space<vmem>>, vector<1x256x128xbf16>
    %5 = vector.shape_cast %4 : vector<1x256x128xbf16> to vector<256x128xbf16>
    %cst_6 = arith.constant dense<0.000000e+00> : vector<9x128xf32>
    %6 = tpu.matmul %3, %5, %cst_6 {dimension_numbers = #tpu.dot_dimension_numbers<[1], [0], [0], [1], [0, 0, 1, 1], [], []>} : vector<9x256xbf16>, vector<256x128xbf16>, vector<9x128xf32> -> vector<9x128xf32>
    %7 = arith.addf %0, %6 : vector<9x128xf32>
    %c0_7 = arith.constant 0 : index
    %c0_8 = arith.constant 0 : index
    %c0_9 = arith.constant 0 : index
    %c0_10 = arith.constant 0 : index
    %8 = vector.load %arg1[%c0_7, %c0_8, %c0_9, %c0_10] : memref<4x2x4x256xbf16, #tpu.memory_space<vmem>>, vector<3x1x3x256xbf16>
    %9 = vector.shape_cast %8 : vector<3x1x3x256xbf16> to vector<3x3x256xbf16>
    %10 = vector.shape_cast %9 : vector<3x3x256xbf16> to vector<9x256xbf16>
    %c1 = arith.constant 1 : index
    %c0_11 = arith.constant 0 : index
    %c0_12 = arith.constant 0 : index
    %11 = vector.load %arg2[%c1, %c0_11, %c0_12] : memref<16x256x128xbf16, #tpu.memory_space<vmem>>, vector<1x256x128xbf16>
    %12 = vector.shape_cast %11 : vector<1x256x128xbf16> to vector<256x128xbf16>
    %cst_13 = arith.constant dense<0.000000e+00> : vector<9x128xf32>
    %13 = tpu.matmul %10, %12, %cst_13 {dimension_numbers = #tpu.dot_dimension_numbers<[1], [0], [0], [1], [0, 0, 1, 1], [], []>} : vector<9x256xbf16>, vector<256x128xbf16>, vector<9x128xf32> -> vector<9x128xf32>
    %14 = arith.addf %7, %13 : vector<9x128xf32>
    %c0_14 = arith.constant 0 : index
    %c0_15 = arith.constant 0 : index
    %c1_16 = arith.constant 1 : index
    %c0_17 = arith.constant 0 : index
    %15 = vector.load %arg1[%c0_14, %c0_15, %c1_16, %c0_17] : memref<4x2x4x256xbf16, #tpu.memory_space<vmem>>, vector<3x1x3x256xbf16>
    %16 = vector.shape_cast %15 : vector<3x1x3x256xbf16> to vector<3x3x256xbf16>
    %17 = vector.shape_cast %16 : vector<3x3x256xbf16> to vector<9x256xbf16>
    %c2 = arith.constant 2 : index
    %c0_18 = arith.constant 0 : index
    %c0_19 = arith.constant 0 : index
    %18 = vector.load %arg2[%c2, %c0_18, %c0_19] : memref<16x256x128xbf16, #tpu.memory_space<vmem>>, vector<1x256x128xbf16>
    %19 = vector.shape_cast %18 : vector<1x256x128xbf16> to vector<256x128xbf16>
    %cst_20 = arith.constant dense<0.000000e+00> : vector<9x128xf32>
    %20 = tpu.matmul %17, %19, %cst_20 {dimension_numbers = #tpu.dot_dimension_numbers<[1], [0], [0], [1], [0, 0, 1, 1], [], []>} : vector<9x256xbf16>, vector<256x128xbf16>, vector<9x128xf32> -> vector<9x128xf32>
    %21 = arith.addf %14, %20 : vector<9x128xf32>
    %c0_21 = arith.constant 0 : index
    %c0_22 = arith.constant 0 : index
    %c1_23 = arith.constant 1 : index
    %c0_24 = arith.constant 0 : index
    %22 = vector.load %arg1[%c0_21, %c0_22, %c1_23, %c0_24] : memref<4x2x4x256xbf16, #tpu.memory_space<vmem>>, vector<3x1x3x256xbf16>
    %23 = vector.shape_cast %22 : vector<3x1x3x256xbf16> to vector<3x3x256xbf16>
    %24 = vector.shape_cast %23 : vector<3x3x256xbf16> to vector<9x256xbf16>
    %c3 = arith.constant 3 : index
    %c0_25 = arith.constant 0 : index
    %c0_26 = arith.constant 0 : index
    %25 = vector.load %arg2[%c3, %c0_25, %c0_26] : memref<16x256x128xbf16, #tpu.memory_space<vmem>>, vector<1x256x128xbf16>
    %26 = vector.shape_cast %25 : vector<1x256x128xbf16> to vector<256x128xbf16>
    %cst_27 = arith.constant dense<0.000000e+00> : vector<9x128xf32>
    %27 = tpu.matmul %24, %26, %cst_27 {dimension_numbers = #tpu.dot_dimension_numbers<[1], [0], [0], [1], [0, 0, 1, 1], [], []>} : vector<9x256xbf16>, vector<256x128xbf16>, vector<9x128xf32> -> vector<9x128xf32>
    %28 = arith.addf %21, %27 : vector<9x128xf32>
    %c0_28 = arith.constant 0 : index
    %c1_29 = arith.constant 1 : index
    %c0_30 = arith.constant 0 : index
    %c0_31 = arith.constant 0 : index
    %29 = vector.load %arg1[%c0_28, %c1_29, %c0_30, %c0_31] : memref<4x2x4x256xbf16, #tpu.memory_space<vmem>>, vector<3x1x3x256xbf16>
    %30 = vector.shape_cast %29 : vector<3x1x3x256xbf16> to vector<3x3x256xbf16>
    %31 = vector.shape_cast %30 : vector<3x3x256xbf16> to vector<9x256xbf16>
    %c4 = arith.constant 4 : index
    %c0_32 = arith.constant 0 : index
    %c0_33 = arith.constant 0 : index
    %32 = vector.load %arg2[%c4, %c0_32, %c0_33] : memref<16x256x128xbf16, #tpu.memory_space<vmem>>, vector<1x256x128xbf16>
    %33 = vector.shape_cast %32 : vector<1x256x128xbf16> to vector<256x128xbf16>
    %cst_34 = arith.constant dense<0.000000e+00> : vector<9x128xf32>
    %34 = tpu.matmul %31, %33, %cst_34 {dimension_numbers = #tpu.dot_dimension_numbers<[1], [0], [0], [1], [0, 0, 1, 1], [], []>} : vector<9x256xbf16>, vector<256x128xbf16>, vector<9x128xf32> -> vector<9x128xf32>
    %35 = arith.addf %28, %34 : vector<9x128xf32>
    %c0_35 = arith.constant 0 : index
    %c1_36 = arith.constant 1 : index
    %c0_37 = arith.constant 0 : index
    %c0_38 = arith.constant 0 : index
    %36 = vector.load %arg1[%c0_35, %c1_36, %c0_37, %c0_38] : memref<4x2x4x256xbf16, #tpu.memory_space<vmem>>, vector<3x1x3x256xbf16>
    %37 = vector.shape_cast %36 : vector<3x1x3x256xbf16> to vector<3x3x256xbf16>
    %38 = vector.shape_cast %37 : vector<3x3x256xbf16> to vector<9x256xbf16>
    %c5 = arith.constant 5 : index
    %c0_39 = arith.constant 0 : index
    %c0_40 = arith.constant 0 : index
    %39 = vector.load %arg2[%c5, %c0_39, %c0_40] : memref<16x256x128xbf16, #tpu.memory_space<vmem>>, vector<1x256x128xbf16>
    %40 = vector.shape_cast %39 : vector<1x256x128xbf16> to vector<256x128xbf16>
    %cst_41 = arith.constant dense<0.000000e+00> : vector<9x128xf32>
    %41 = tpu.matmul %38, %40, %cst_41 {dimension_numbers = #tpu.dot_dimension_numbers<[1], [0], [0], [1], [0, 0, 1, 1], [], []>} : vector<9x256xbf16>, vector<256x128xbf16>, vector<9x128xf32> -> vector<9x128xf32>
    %42 = arith.addf %35, %41 : vector<9x128xf32>
    %c0_42 = arith.constant 0 : index
    %c1_43 = arith.constant 1 : index
    %c1_44 = arith.constant 1 : index
    %c0_45 = arith.constant 0 : index
    %43 = vector.load %arg1[%c0_42, %c1_43, %c1_44, %c0_45] : memref<4x2x4x256xbf16, #tpu.memory_space<vmem>>, vector<3x1x3x256xbf16>
    %44 = vector.shape_cast %43 : vector<3x1x3x256xbf16> to vector<3x3x256xbf16>
    %45 = vector.shape_cast %44 : vector<3x3x256xbf16> to vector<9x256xbf16>
    %c6 = arith.constant 6 : index
    %c0_46 = arith.constant 0 : index
    %c0_47 = arith.constant 0 : index
    %46 = vector.load %arg2[%c6, %c0_46, %c0_47] : memref<16x256x128xbf16, #tpu.memory_space<vmem>>, vector<1x256x128xbf16>
    %47 = vector.shape_cast %46 : vector<1x256x128xbf16> to vector<256x128xbf16>
    %cst_48 = arith.constant dense<0.000000e+00> : vector<9x128xf32>
    %48 = tpu.matmul %45, %47, %cst_48 {dimension_numbers = #tpu.dot_dimension_numbers<[1], [0], [0], [1], [0, 0, 1, 1], [], []>} : vector<9x256xbf16>, vector<256x128xbf16>, vector<9x128xf32> -> vector<9x128xf32>
    %49 = arith.addf %42, %48 : vector<9x128xf32>
    %c0_49 = arith.constant 0 : index
    %c1_50 = arith.constant 1 : index
    %c1_51 = arith.constant 1 : index
    %c0_52 = arith.constant 0 : index
    %50 = vector.load %arg1[%c0_49, %c1_50, %c1_51, %c0_52] : memref<4x2x4x256xbf16, #tpu.memory_space<vmem>>, vector<3x1x3x256xbf16>
    %51 = vector.shape_cast %50 : vector<3x1x3x256xbf16> to vector<3x3x256xbf16>
    %52 = vector.shape_cast %51 : vector<3x3x256xbf16> to vector<9x256xbf16>
    %c7 = arith.constant 7 : index
    %c0_53 = arith.constant 0 : index
    %c0_54 = arith.constant 0 : index
    %53 = vector.load %arg2[%c7, %c0_53, %c0_54] : memref<16x256x128xbf16, #tpu.memory_space<vmem>>, vector<1x256x128xbf16>
    %54 = vector.shape_cast %53 : vector<1x256x128xbf16> to vector<256x128xbf16>
    %cst_55 = arith.constant dense<0.000000e+00> : vector<9x128xf32>
    %55 = tpu.matmul %52, %54, %cst_55 {dimension_numbers = #tpu.dot_dimension_numbers<[1], [0], [0], [1], [0, 0, 1, 1], [], []>} : vector<9x256xbf16>, vector<256x128xbf16>, vector<9x128xf32> -> vector<9x128xf32>
    %56 = arith.addf %49, %55 : vector<9x128xf32>
    %c1_56 = arith.constant 1 : index
    %c0_57 = arith.constant 0 : index
    %c0_58 = arith.constant 0 : index
    %c0_59 = arith.constant 0 : index
    %57 = vector.load %arg1[%c1_56, %c0_57, %c0_58, %c0_59] : memref<4x2x4x256xbf16, #tpu.memory_space<vmem>>, vector<3x1x3x256xbf16>
    %58 = vector.shape_cast %57 : vector<3x1x3x256xbf16> to vector<3x3x256xbf16>
    %59 = vector.shape_cast %58 : vector<3x3x256xbf16> to vector<9x256xbf16>
    %c8 = arith.constant 8 : index
    %c0_60 = arith.constant 0 : index
    %c0_61 = arith.constant 0 : index
    %60 = vector.load %arg2[%c8, %c0_60, %c0_61] : memref<16x256x128xbf16, #tpu.memory_space<vmem>>, vector<1x256x128xbf16>
    %61 = vector.shape_cast %60 : vector<1x256x128xbf16> to vector<256x128xbf16>
    %cst_62 = arith.constant dense<0.000000e+00> : vector<9x128xf32>
    %62 = tpu.matmul %59, %61, %cst_62 {dimension_numbers = #tpu.dot_dimension_numbers<[1], [0], [0], [1], [0, 0, 1, 1], [], []>} : vector<9x256xbf16>, vector<256x128xbf16>, vector<9x128xf32> -> vector<9x128xf32>
    %63 = arith.addf %56, %62 : vector<9x128xf32>
    %c1_63 = arith.constant 1 : index
    %c0_64 = arith.constant 0 : index
    %c0_65 = arith.constant 0 : index
    %c0_66 = arith.constant 0 : index
    %64 = vector.load %arg1[%c1_63, %c0_64, %c0_65, %c0_66] : memref<4x2x4x256xbf16, #tpu.memory_space<vmem>>, vector<3x1x3x256xbf16>
    %65 = vector.shape_cast %64 : vector<3x1x3x256xbf16> to vector<3x3x256xbf16>
    %66 = vector.shape_cast %65 : vector<3x3x256xbf16> to vector<9x256xbf16>
    %c9 = arith.constant 9 : index
    %c0_67 = arith.constant 0 : index
    %c0_68 = arith.constant 0 : index
    %67 = vector.load %arg2[%c9, %c0_67, %c0_68] : memref<16x256x128xbf16, #tpu.memory_space<vmem>>, vector<1x256x128xbf16>
    %68 = vector.shape_cast %67 : vector<1x256x128xbf16> to vector<256x128xbf16>
    %cst_69 = arith.constant dense<0.000000e+00> : vector<9x128xf32>
    %69 = tpu.matmul %66, %68, %cst_69 {dimension_numbers = #tpu.dot_dimension_numbers<[1], [0], [0], [1], [0, 0, 1, 1], [], []>} : vector<9x256xbf16>, vector<256x128xbf16>, vector<9x128xf32> -> vector<9x128xf32>
    %70 = arith.addf %63, %69 : vector<9x128xf32>
    %c1_70 = arith.constant 1 : index
    %c0_71 = arith.constant 0 : index
    %c1_72 = arith.constant 1 : index
    %c0_73 = arith.constant 0 : index
    %71 = vector.load %arg1[%c1_70, %c0_71, %c1_72, %c0_73] : memref<4x2x4x256xbf16, #tpu.memory_space<vmem>>, vector<3x1x3x256xbf16>
    %72 = vector.shape_cast %71 : vector<3x1x3x256xbf16> to vector<3x3x256xbf16>
    %73 = vector.shape_cast %72 : vector<3x3x256xbf16> to vector<9x256xbf16>
    %c10 = arith.constant 10 : index
    %c0_74 = arith.constant 0 : index
    %c0_75 = arith.constant 0 : index
    %74 = vector.load %arg2[%c10, %c0_74, %c0_75] : memref<16x256x128xbf16, #tpu.memory_space<vmem>>, vector<1x256x128xbf16>
    %75 = vector.shape_cast %74 : vector<1x256x128xbf16> to vector<256x128xbf16>
    %cst_76 = arith.constant dense<0.000000e+00> : vector<9x128xf32>
    %76 = tpu.matmul %73, %75, %cst_76 {dimension_numbers = #tpu.dot_dimension_numbers<[1], [0], [0], [1], [0, 0, 1, 1], [], []>} : vector<9x256xbf16>, vector<256x128xbf16>, vector<9x128xf32> -> vector<9x128xf32>
    %77 = arith.addf %70, %76 : vector<9x128xf32>
    %c1_77 = arith.constant 1 : index
    %c0_78 = arith.constant 0 : index
    %c1_79 = arith.constant 1 : index
    %c0_80 = arith.constant 0 : index
    %78 = vector.load %arg1[%c1_77, %c0_78, %c1_79, %c0_80] : memref<4x2x4x256xbf16, #tpu.memory_space<vmem>>, vector<3x1x3x256xbf16>
    %79 = vector.shape_cast %78 : vector<3x1x3x256xbf16> to vector<3x3x256xbf16>
    %80 = vector.shape_cast %79 : vector<3x3x256xbf16> to vector<9x256xbf16>
    %c11 = arith.constant 11 : index
    %c0_81 = arith.constant 0 : index
    %c0_82 = arith.constant 0 : index
    %81 = vector.load %arg2[%c11, %c0_81, %c0_82] : memref<16x256x128xbf16, #tpu.memory_space<vmem>>, vector<1x256x128xbf16>
    %82 = vector.shape_cast %81 : vector<1x256x128xbf16> to vector<256x128xbf16>
    %cst_83 = arith.constant dense<0.000000e+00> : vector<9x128xf32>
    %83 = tpu.matmul %80, %82, %cst_83 {dimension_numbers = #tpu.dot_dimension_numbers<[1], [0], [0], [1], [0, 0, 1, 1], [], []>} : vector<9x256xbf16>, vector<256x128xbf16>, vector<9x128xf32> -> vector<9x128xf32>
    %84 = arith.addf %77, %83 : vector<9x128xf32>
    %c1_84 = arith.constant 1 : index
    %c1_85 = arith.constant 1 : index
    %c0_86 = arith.constant 0 : index
    %c0_87 = arith.constant 0 : index
    %85 = vector.load %arg1[%c1_84, %c1_85, %c0_86, %c0_87] : memref<4x2x4x256xbf16, #tpu.memory_space<vmem>>, vector<3x1x3x256xbf16>
    %86 = vector.shape_cast %85 : vector<3x1x3x256xbf16> to vector<3x3x256xbf16>
    %87 = vector.shape_cast %86 : vector<3x3x256xbf16> to vector<9x256xbf16>
    %c12 = arith.constant 12 : index
    %c0_88 = arith.constant 0 : index
    %c0_89 = arith.constant 0 : index
    %88 = vector.load %arg2[%c12, %c0_88, %c0_89] : memref<16x256x128xbf16, #tpu.memory_space<vmem>>, vector<1x256x128xbf16>
    %89 = vector.shape_cast %88 : vector<1x256x128xbf16> to vector<256x128xbf16>
    %cst_90 = arith.constant dense<0.000000e+00> : vector<9x128xf32>
    %90 = tpu.matmul %87, %89, %cst_90 {dimension_numbers = #tpu.dot_dimension_numbers<[1], [0], [0], [1], [0, 0, 1, 1], [], []>} : vector<9x256xbf16>, vector<256x128xbf16>, vector<9x128xf32> -> vector<9x128xf32>
    %91 = arith.addf %84, %90 : vector<9x128xf32>
    %c1_91 = arith.constant 1 : index
    %c1_92 = arith.constant 1 : index
    %c0_93 = arith.constant 0 : index
    %c0_94 = arith.constant 0 : index
    %92 = vector.load %arg1[%c1_91, %c1_92, %c0_93, %c0_94] : memref<4x2x4x256xbf16, #tpu.memory_space<vmem>>, vector<3x1x3x256xbf16>
    %93 = vector.shape_cast %92 : vector<3x1x3x256xbf16> to vector<3x3x256xbf16>
    %94 = vector.shape_cast %93 : vector<3x3x256xbf16> to vector<9x256xbf16>
    %c13 = arith.constant 13 : index
    %c0_95 = arith.constant 0 : index
    %c0_96 = arith.constant 0 : index
    %95 = vector.load %arg2[%c13, %c0_95, %c0_96] : memref<16x256x128xbf16, #tpu.memory_space<vmem>>, vector<1x256x128xbf16>
    %96 = vector.shape_cast %95 : vector<1x256x128xbf16> to vector<256x128xbf16>
    %cst_97 = arith.constant dense<0.000000e+00> : vector<9x128xf32>
    %97 = tpu.matmul %94, %96, %cst_97 {dimension_numbers = #tpu.dot_dimension_numbers<[1], [0], [0], [1], [0, 0, 1, 1], [], []>} : vector<9x256xbf16>, vector<256x128xbf16>, vector<9x128xf32> -> vector<9x128xf32>
    %98 = arith.addf %91, %97 : vector<9x128xf32>
    %c1_98 = arith.constant 1 : index
    %c1_99 = arith.constant 1 : index
    %c1_100 = arith.constant 1 : index
    %c0_101 = arith.constant 0 : index
    %99 = vector.load %arg1[%c1_98, %c1_99, %c1_100, %c0_101] : memref<4x2x4x256xbf16, #tpu.memory_space<vmem>>, vector<3x1x3x256xbf16>
    %100 = vector.shape_cast %99 : vector<3x1x3x256xbf16> to vector<3x3x256xbf16>
    %101 = vector.shape_cast %100 : vector<3x3x256xbf16> to vector<9x256xbf16>
    %c14 = arith.constant 14 : index
    %c0_102 = arith.constant 0 : index
    %c0_103 = arith.constant 0 : index
    %102 = vector.load %arg2[%c14, %c0_102, %c0_103] : memref<16x256x128xbf16, #tpu.memory_space<vmem>>, vector<1x256x128xbf16>
    %103 = vector.shape_cast %102 : vector<1x256x128xbf16> to vector<256x128xbf16>
    %cst_104 = arith.constant dense<0.000000e+00> : vector<9x128xf32>
    %104 = tpu.matmul %101, %103, %cst_104 {dimension_numbers = #tpu.dot_dimension_numbers<[1], [0], [0], [1], [0, 0, 1, 1], [], []>} : vector<9x256xbf16>, vector<256x128xbf16>, vector<9x128xf32> -> vector<9x128xf32>
    %105 = arith.addf %98, %104 : vector<9x128xf32>
    %c1_105 = arith.constant 1 : index
    %c1_106 = arith.constant 1 : index
    %c1_107 = arith.constant 1 : index
    %c0_108 = arith.constant 0 : index
    %106 = vector.load %arg1[%c1_105, %c1_106, %c1_107, %c0_108] : memref<4x2x4x256xbf16, #tpu.memory_space<vmem>>, vector<3x1x3x256xbf16>
    %107 = vector.shape_cast %106 : vector<3x1x3x256xbf16> to vector<3x3x256xbf16>
    %108 = vector.shape_cast %107 : vector<3x3x256xbf16> to vector<9x256xbf16>
    %c15 = arith.constant 15 : index
    %c0_109 = arith.constant 0 : index
    %c0_110 = arith.constant 0 : index
    %109 = vector.load %arg2[%c15, %c0_109, %c0_110] : memref<16x256x128xbf16, #tpu.memory_space<vmem>>, vector<1x256x128xbf16>
    %110 = vector.shape_cast %109 : vector<1x256x128xbf16> to vector<256x128xbf16>
    %cst_111 = arith.constant dense<0.000000e+00> : vector<9x128xf32>
    %111 = tpu.matmul %108, %110, %cst_111 {dimension_numbers = #tpu.dot_dimension_numbers<[1], [0], [0], [1], [0, 0, 1, 1], [], []>} : vector<9x256xbf16>, vector<256x128xbf16>, vector<9x128xf32> -> vector<9x128xf32>
    %112 = arith.addf %105, %111 : vector<9x128xf32>
    %c0_112 = arith.constant 0 : index
    %c0_113 = arith.constant 0 : index
    %113 = vector.load %arg3[%c0_112, %c0_113] : memref<1x128xf32, #tpu.memory_space<vmem>>, vector<1x128xf32>
    %114 = vector.broadcast %113 : vector<1x128xf32> to vector<9x128xf32>
    %115 = arith.addf %112, %114 : vector<9x128xf32>
    %cst_114 = arith.constant 0.000000e+00 : f32
    %116 = vector.broadcast %cst_114 : f32 to vector<9x128xf32>
    %117 = arith.maximumf %115, %116 : vector<9x128xf32>
    %118 = arith.truncf %117 : vector<9x128xf32> to vector<9x128xbf16>
    %c0_115 = arith.constant 0 : index
    %c0_116 = arith.constant 0 : index
    %c0_117 = arith.constant 0 : index
    %119 = vector.load %arg4[%c0_115, %c0_116, %c0_117] : memref<1x9x128xbf16, #tpu.memory_space<vmem>>, vector<1x9x128xbf16>
    %120 = vector.shape_cast %119 : vector<1x9x128xbf16> to vector<9x128xbf16>
    %121 = vector.shape_cast %118 : vector<9x128xbf16> to vector<1x9x128xbf16>
    tpu.vector_store %arg4[%c0_115, %c0_116, %c0_117], %121 {strides = array<i32>} : memref<1x9x128xbf16, #tpu.memory_space<vmem>>, vector<1x9x128xbf16>,
    return
  }
  func.func @transform_0(%arg0: i32) -> (i32, i32, i32, i32) {
    %c0_i32 = arith.constant 0 : i32
    %c0_i32_0 = arith.constant 0 : i32
    %c0_i32_1 = arith.constant 0 : i32
    %c0_i32_2 = arith.constant 0 : i32
    return %arg0, %c0_i32, %c0_i32_0, %c0_i32_1 : i32, i32, i32, i32
  }
  func.func @transform_1(%arg0: i32) -> (i32, i32, i32) {
    %c0_i32 = arith.constant 0 : i32
    %c0_i32_0 = arith.constant 0 : i32
    %c0_i32_1 = arith.constant 0 : i32
    %c0_i32_2 = arith.constant 0 : i32
    return %c0_i32, %c0_i32_0, %c0_i32_1 : i32, i32, i32
  }
  func.func @transform_2(%arg0: i32) -> (i32, i32) {
    %c0_i32 = arith.constant 0 : i32
    %c0_i32_0 = arith.constant 0 : i32
    %c0_i32_1 = arith.constant 0 : i32
    return %c0_i32, %c0_i32_0 : i32, i32
  }
  func.func @transform_3(%arg0: i32) -> (i32, i32, i32) {
    %c0_i32 = arith.constant 0 : i32
    %c0_i32_0 = arith.constant 0 : i32
    %c0_i32_1 = arith.constant 0 : i32
    return %arg0, %c0_i32, %c0_i32_0 : i32, i32, i32
  }
}

module attributes {stable_mosaic.version = 11 : i64} {
  func.func @_conv_relu_kernel(%arg0: i32, %arg1: memref<3x1x3x128xbf16, #tpu.memory_space<vmem>>, %arg2: memref<9x128x128xbf16, #tpu.memory_space<vmem>>, %arg3: memref<1x128xf32, #tpu.memory_space<vmem>>, %arg4: memref<1x1x128xbf16, #tpu.memory_space<vmem>>) attributes {dimension_semantics = [#tpu.dimension_semantics<parallel>], iteration_bounds = array<i64: 2>, scalar_prefetch = 0 : i64, scratch_operands = 0 : i64, tpu.core_type = #tpu.core_type<tc>, window_params = [{transform_indices = @transform_0, window_bounds = array<i64: 3, 1, 3, 128>}, {pipeline_mode = #tpu.pipeline_mode<synchronous>, transform_indices = @transform_1, window_bounds = array<i64: 9, 128, 128>}, {pipeline_mode = #tpu.pipeline_mode<synchronous>, transform_indices = @transform_2, window_bounds = array<i64: 1, 128>}, {transform_indices = @transform_3, window_bounds = array<i64: 1, 1, 128>}]} {
    %cst = arith.constant 0.000000e+00 : f32
    %0 = vector.broadcast %cst : f32 to vector<1x128xf32>
    %c0 = arith.constant 0 : index
    %c0_0 = arith.constant 0 : index
    %c0_1 = arith.constant 0 : index
    %c0_2 = arith.constant 0 : index
    %1 = vector.load %arg1[%c0, %c0_0, %c0_1, %c0_2] : memref<3x1x3x128xbf16, #tpu.memory_space<vmem>>, vector<1x1x1x128xbf16>
    %2 = vector.shape_cast %1 : vector<1x1x1x128xbf16> to vector<1x1x128xbf16>
    %3 = vector.shape_cast %2 : vector<1x1x128xbf16> to vector<1x128xbf16>
    %c0_3 = arith.constant 0 : index
    %c0_4 = arith.constant 0 : index
    %c0_5 = arith.constant 0 : index
    %4 = vector.load %arg2[%c0_3, %c0_4, %c0_5] : memref<9x128x128xbf16, #tpu.memory_space<vmem>>, vector<1x128x128xbf16>
    %5 = vector.shape_cast %4 : vector<1x128x128xbf16> to vector<128x128xbf16>
    %cst_6 = arith.constant dense<0.000000e+00> : vector<1x128xf32>
    %6 = tpu.matmul %3, %5, %cst_6 {dimension_numbers = #tpu.dot_dimension_numbers<[1], [0], [0], [1], [0, 0, 1, 1], [], []>} : vector<1x128xbf16>, vector<128x128xbf16>, vector<1x128xf32> -> vector<1x128xf32>
    %7 = arith.addf %0, %6 : vector<1x128xf32>
    %c0_7 = arith.constant 0 : index
    %c0_8 = arith.constant 0 : index
    %c1 = arith.constant 1 : index
    %c0_9 = arith.constant 0 : index
    %8 = vector.load %arg1[%c0_7, %c0_8, %c1, %c0_9] : memref<3x1x3x128xbf16, #tpu.memory_space<vmem>>, vector<1x1x1x128xbf16>
    %9 = vector.shape_cast %8 : vector<1x1x1x128xbf16> to vector<1x1x128xbf16>
    %10 = vector.shape_cast %9 : vector<1x1x128xbf16> to vector<1x128xbf16>
    %c1_10 = arith.constant 1 : index
    %c0_11 = arith.constant 0 : index
    %c0_12 = arith.constant 0 : index
    %11 = vector.load %arg2[%c1_10, %c0_11, %c0_12] : memref<9x128x128xbf16, #tpu.memory_space<vmem>>, vector<1x128x128xbf16>
    %12 = vector.shape_cast %11 : vector<1x128x128xbf16> to vector<128x128xbf16>
    %cst_13 = arith.constant dense<0.000000e+00> : vector<1x128xf32>
    %13 = tpu.matmul %10, %12, %cst_13 {dimension_numbers = #tpu.dot_dimension_numbers<[1], [0], [0], [1], [0, 0, 1, 1], [], []>} : vector<1x128xbf16>, vector<128x128xbf16>, vector<1x128xf32> -> vector<1x128xf32>
    %14 = arith.addf %7, %13 : vector<1x128xf32>
    %c0_14 = arith.constant 0 : index
    %c0_15 = arith.constant 0 : index
    %c2 = arith.constant 2 : index
    %c0_16 = arith.constant 0 : index
    %15 = vector.load %arg1[%c0_14, %c0_15, %c2, %c0_16] : memref<3x1x3x128xbf16, #tpu.memory_space<vmem>>, vector<1x1x1x128xbf16>
    %16 = vector.shape_cast %15 : vector<1x1x1x128xbf16> to vector<1x1x128xbf16>
    %17 = vector.shape_cast %16 : vector<1x1x128xbf16> to vector<1x128xbf16>
    %c2_17 = arith.constant 2 : index
    %c0_18 = arith.constant 0 : index
    %c0_19 = arith.constant 0 : index
    %18 = vector.load %arg2[%c2_17, %c0_18, %c0_19] : memref<9x128x128xbf16, #tpu.memory_space<vmem>>, vector<1x128x128xbf16>
    %19 = vector.shape_cast %18 : vector<1x128x128xbf16> to vector<128x128xbf16>
    %cst_20 = arith.constant dense<0.000000e+00> : vector<1x128xf32>
    %20 = tpu.matmul %17, %19, %cst_20 {dimension_numbers = #tpu.dot_dimension_numbers<[1], [0], [0], [1], [0, 0, 1, 1], [], []>} : vector<1x128xbf16>, vector<128x128xbf16>, vector<1x128xf32> -> vector<1x128xf32>
    %21 = arith.addf %14, %20 : vector<1x128xf32>
    %c1_21 = arith.constant 1 : index
    %c0_22 = arith.constant 0 : index
    %c0_23 = arith.constant 0 : index
    %c0_24 = arith.constant 0 : index
    %22 = vector.load %arg1[%c1_21, %c0_22, %c0_23, %c0_24] : memref<3x1x3x128xbf16, #tpu.memory_space<vmem>>, vector<1x1x1x128xbf16>
    %23 = vector.shape_cast %22 : vector<1x1x1x128xbf16> to vector<1x1x128xbf16>
    %24 = vector.shape_cast %23 : vector<1x1x128xbf16> to vector<1x128xbf16>
    %c3 = arith.constant 3 : index
    %c0_25 = arith.constant 0 : index
    %c0_26 = arith.constant 0 : index
    %25 = vector.load %arg2[%c3, %c0_25, %c0_26] : memref<9x128x128xbf16, #tpu.memory_space<vmem>>, vector<1x128x128xbf16>
    %26 = vector.shape_cast %25 : vector<1x128x128xbf16> to vector<128x128xbf16>
    %cst_27 = arith.constant dense<0.000000e+00> : vector<1x128xf32>
    %27 = tpu.matmul %24, %26, %cst_27 {dimension_numbers = #tpu.dot_dimension_numbers<[1], [0], [0], [1], [0, 0, 1, 1], [], []>} : vector<1x128xbf16>, vector<128x128xbf16>, vector<1x128xf32> -> vector<1x128xf32>
    %28 = arith.addf %21, %27 : vector<1x128xf32>
    %c1_28 = arith.constant 1 : index
    %c0_29 = arith.constant 0 : index
    %c1_30 = arith.constant 1 : index
    %c0_31 = arith.constant 0 : index
    %29 = vector.load %arg1[%c1_28, %c0_29, %c1_30, %c0_31] : memref<3x1x3x128xbf16, #tpu.memory_space<vmem>>, vector<1x1x1x128xbf16>
    %30 = vector.shape_cast %29 : vector<1x1x1x128xbf16> to vector<1x1x128xbf16>
    %31 = vector.shape_cast %30 : vector<1x1x128xbf16> to vector<1x128xbf16>
    %c4 = arith.constant 4 : index
    %c0_32 = arith.constant 0 : index
    %c0_33 = arith.constant 0 : index
    %32 = vector.load %arg2[%c4, %c0_32, %c0_33] : memref<9x128x128xbf16, #tpu.memory_space<vmem>>, vector<1x128x128xbf16>
    %33 = vector.shape_cast %32 : vector<1x128x128xbf16> to vector<128x128xbf16>
    %cst_34 = arith.constant dense<0.000000e+00> : vector<1x128xf32>
    %34 = tpu.matmul %31, %33, %cst_34 {dimension_numbers = #tpu.dot_dimension_numbers<[1], [0], [0], [1], [0, 0, 1, 1], [], []>} : vector<1x128xbf16>, vector<128x128xbf16>, vector<1x128xf32> -> vector<1x128xf32>
    %35 = arith.addf %28, %34 : vector<1x128xf32>
    %c1_35 = arith.constant 1 : index
    %c0_36 = arith.constant 0 : index
    %c2_37 = arith.constant 2 : index
    %c0_38 = arith.constant 0 : index
    %36 = vector.load %arg1[%c1_35, %c0_36, %c2_37, %c0_38] : memref<3x1x3x128xbf16, #tpu.memory_space<vmem>>, vector<1x1x1x128xbf16>
    %37 = vector.shape_cast %36 : vector<1x1x1x128xbf16> to vector<1x1x128xbf16>
    %38 = vector.shape_cast %37 : vector<1x1x128xbf16> to vector<1x128xbf16>
    %c5 = arith.constant 5 : index
    %c0_39 = arith.constant 0 : index
    %c0_40 = arith.constant 0 : index
    %39 = vector.load %arg2[%c5, %c0_39, %c0_40] : memref<9x128x128xbf16, #tpu.memory_space<vmem>>, vector<1x128x128xbf16>
    %40 = vector.shape_cast %39 : vector<1x128x128xbf16> to vector<128x128xbf16>
    %cst_41 = arith.constant dense<0.000000e+00> : vector<1x128xf32>
    %41 = tpu.matmul %38, %40, %cst_41 {dimension_numbers = #tpu.dot_dimension_numbers<[1], [0], [0], [1], [0, 0, 1, 1], [], []>} : vector<1x128xbf16>, vector<128x128xbf16>, vector<1x128xf32> -> vector<1x128xf32>
    %42 = arith.addf %35, %41 : vector<1x128xf32>
    %c2_42 = arith.constant 2 : index
    %c0_43 = arith.constant 0 : index
    %c0_44 = arith.constant 0 : index
    %c0_45 = arith.constant 0 : index
    %43 = vector.load %arg1[%c2_42, %c0_43, %c0_44, %c0_45] : memref<3x1x3x128xbf16, #tpu.memory_space<vmem>>, vector<1x1x1x128xbf16>
    %44 = vector.shape_cast %43 : vector<1x1x1x128xbf16> to vector<1x1x128xbf16>
    %45 = vector.shape_cast %44 : vector<1x1x128xbf16> to vector<1x128xbf16>
    %c6 = arith.constant 6 : index
    %c0_46 = arith.constant 0 : index
    %c0_47 = arith.constant 0 : index
    %46 = vector.load %arg2[%c6, %c0_46, %c0_47] : memref<9x128x128xbf16, #tpu.memory_space<vmem>>, vector<1x128x128xbf16>
    %47 = vector.shape_cast %46 : vector<1x128x128xbf16> to vector<128x128xbf16>
    %cst_48 = arith.constant dense<0.000000e+00> : vector<1x128xf32>
    %48 = tpu.matmul %45, %47, %cst_48 {dimension_numbers = #tpu.dot_dimension_numbers<[1], [0], [0], [1], [0, 0, 1, 1], [], []>} : vector<1x128xbf16>, vector<128x128xbf16>, vector<1x128xf32> -> vector<1x128xf32>
    %49 = arith.addf %42, %48 : vector<1x128xf32>
    %c2_49 = arith.constant 2 : index
    %c0_50 = arith.constant 0 : index
    %c1_51 = arith.constant 1 : index
    %c0_52 = arith.constant 0 : index
    %50 = vector.load %arg1[%c2_49, %c0_50, %c1_51, %c0_52] : memref<3x1x3x128xbf16, #tpu.memory_space<vmem>>, vector<1x1x1x128xbf16>
    %51 = vector.shape_cast %50 : vector<1x1x1x128xbf16> to vector<1x1x128xbf16>
    %52 = vector.shape_cast %51 : vector<1x1x128xbf16> to vector<1x128xbf16>
    %c7 = arith.constant 7 : index
    %c0_53 = arith.constant 0 : index
    %c0_54 = arith.constant 0 : index
    %53 = vector.load %arg2[%c7, %c0_53, %c0_54] : memref<9x128x128xbf16, #tpu.memory_space<vmem>>, vector<1x128x128xbf16>
    %54 = vector.shape_cast %53 : vector<1x128x128xbf16> to vector<128x128xbf16>
    %cst_55 = arith.constant dense<0.000000e+00> : vector<1x128xf32>
    %55 = tpu.matmul %52, %54, %cst_55 {dimension_numbers = #tpu.dot_dimension_numbers<[1], [0], [0], [1], [0, 0, 1, 1], [], []>} : vector<1x128xbf16>, vector<128x128xbf16>, vector<1x128xf32> -> vector<1x128xf32>
    %56 = arith.addf %49, %55 : vector<1x128xf32>
    %c2_56 = arith.constant 2 : index
    %c0_57 = arith.constant 0 : index
    %c2_58 = arith.constant 2 : index
    %c0_59 = arith.constant 0 : index
    %57 = vector.load %arg1[%c2_56, %c0_57, %c2_58, %c0_59] : memref<3x1x3x128xbf16, #tpu.memory_space<vmem>>, vector<1x1x1x128xbf16>
    %58 = vector.shape_cast %57 : vector<1x1x1x128xbf16> to vector<1x1x128xbf16>
    %59 = vector.shape_cast %58 : vector<1x1x128xbf16> to vector<1x128xbf16>
    %c8 = arith.constant 8 : index
    %c0_60 = arith.constant 0 : index
    %c0_61 = arith.constant 0 : index
    %60 = vector.load %arg2[%c8, %c0_60, %c0_61] : memref<9x128x128xbf16, #tpu.memory_space<vmem>>, vector<1x128x128xbf16>
    %61 = vector.shape_cast %60 : vector<1x128x128xbf16> to vector<128x128xbf16>
    %cst_62 = arith.constant dense<0.000000e+00> : vector<1x128xf32>
    %62 = tpu.matmul %59, %61, %cst_62 {dimension_numbers = #tpu.dot_dimension_numbers<[1], [0], [0], [1], [0, 0, 1, 1], [], []>} : vector<1x128xbf16>, vector<128x128xbf16>, vector<1x128xf32> -> vector<1x128xf32>
    %63 = arith.addf %56, %62 : vector<1x128xf32>
    %c0_63 = arith.constant 0 : index
    %c0_64 = arith.constant 0 : index
    %64 = vector.load %arg3[%c0_63, %c0_64] : memref<1x128xf32, #tpu.memory_space<vmem>>, vector<1x128xf32>
    %65 = arith.addf %63, %64 : vector<1x128xf32>
    %cst_65 = arith.constant 0.000000e+00 : f32
    %66 = vector.broadcast %cst_65 : f32 to vector<1x128xf32>
    %67 = arith.maximumf %65, %66 : vector<1x128xf32>
    %68 = arith.truncf %67 : vector<1x128xf32> to vector<1x128xbf16>
    %c0_66 = arith.constant 0 : index
    %c0_67 = arith.constant 0 : index
    %c0_68 = arith.constant 0 : index
    %69 = vector.load %arg4[%c0_66, %c0_67, %c0_68] : memref<1x1x128xbf16, #tpu.memory_space<vmem>>, vector<1x1x128xbf16>
    %70 = vector.shape_cast %69 : vector<1x1x128xbf16> to vector<1x128xbf16>
    %71 = vector.shape_cast %68 : vector<1x128xbf16> to vector<1x1x128xbf16>
    tpu.vector_store %arg4[%c0_66, %c0_67, %c0_68], %71 {strides = array<i32>} : memref<1x1x128xbf16, #tpu.memory_space<vmem>>, vector<1x1x128xbf16>,
    return
  }
  func.func @transform_0(%arg0: i32) -> (i32, i32, i32, i32) {
    %c0_i32 = arith.constant 0 : i32
    %c0_i32_0 = arith.constant 0 : i32
    %c0_i32_1 = arith.constant 0 : i32
    %c0_i32_2 = arith.constant 0 : i32
    return %arg0, %c0_i32, %c0_i32_0, %c0_i32_1 : i32, i32, i32, i32
  }
  func.func @transform_1(%arg0: i32) -> (i32, i32, i32) {
    %c0_i32 = arith.constant 0 : i32
    %c0_i32_0 = arith.constant 0 : i32
    %c0_i32_1 = arith.constant 0 : i32
    %c0_i32_2 = arith.constant 0 : i32
    return %c0_i32, %c0_i32_0, %c0_i32_1 : i32, i32, i32
  }
  func.func @transform_2(%arg0: i32) -> (i32, i32) {
    %c0_i32 = arith.constant 0 : i32
    %c0_i32_0 = arith.constant 0 : i32
    %c0_i32_1 = arith.constant 0 : i32
    return %c0_i32, %c0_i32_0 : i32, i32
  }
  func.func @transform_3(%arg0: i32) -> (i32, i32, i32) {
    %c0_i32 = arith.constant 0 : i32
    %c0_i32_0 = arith.constant 0 : i32
    %c0_i32_1 = arith.constant 0 : i32
    return %arg0, %c0_i32, %c0_i32_0 : i32, i32, i32
  }
}

module attributes {stable_mosaic.version = 11 : i64} {
  func.func @_policy_head_kernel(%arg0: i32, %arg1: i32, %arg2: memref<16x128xbf16, #tpu.memory_space<vmem>>, %arg3: memref<128x512xbf16, #tpu.memory_space<vmem>>, %arg4: memref<1x512xf32, #tpu.memory_space<vmem>>, %arg5: memref<512x128xbf16, #tpu.memory_space<vmem>>, %arg6: memref<1x128xf32, #tpu.memory_space<vmem>>, %arg7: memref<16x128xf32, #tpu.memory_space<vmem>>, %arg8: memref<16x512xf32, #tpu.memory_space<vmem>>) attributes {dimension_semantics = [#tpu.dimension_semantics<parallel>, #tpu.dimension_semantics<arbitrary>], iteration_bounds = array<i64: 1, 1>, scalar_prefetch = 0 : i64, scratch_operands = 1 : i64, tpu.core_type = #tpu.core_type<tc>, window_params = [{transform_indices = @transform_0, window_bounds = array<i64: 16, 128>}, {transform_indices = @transform_1, window_bounds = array<i64: 128, 512>}, {pipeline_mode = #tpu.pipeline_mode<synchronous>, transform_indices = @transform_2, window_bounds = array<i64: 1, 512>}, {pipeline_mode = #tpu.pipeline_mode<synchronous>, transform_indices = @transform_3, window_bounds = array<i64: 512, 128>}, {pipeline_mode = #tpu.pipeline_mode<synchronous>, transform_indices = @transform_4, window_bounds = array<i64: 1, 128>}, {transform_indices = @transform_5, window_bounds = array<i64: 16, 128>}]} {
    %c0_i32 = arith.constant 0 : i32
    %0 = arith.cmpi eq, %arg1, %c0_i32 : i32
    %1 = arith.extui %0 : i1 to i32
    %c0_i32_0 = arith.constant 0 : i32
    %2 = arith.cmpi ne, %1, %c0_i32_0 : i32
    scf.if %2 {
      %cst_10 = arith.constant 0.000000e+00 : f32
      %12 = vector.broadcast %cst_10 : f32 to vector<16x512xf32>
      %c0_11 = arith.constant 0 : index
      %c0_12 = arith.constant 0 : index
      %13 = vector.load %arg8[%c0_11, %c0_12] : memref<16x512xf32, #tpu.memory_space<vmem>>, vector<16x512xf32>
      tpu.vector_store %arg8[%c0_11, %c0_12], %12 {strides = array<i32>} : memref<16x512xf32, #tpu.memory_space<vmem>>, vector<16x512xf32>,
    } else {
    }
    %c0 = arith.constant 0 : index
    %c0_1 = arith.constant 0 : index
    %3 = vector.load %arg8[%c0, %c0_1] : memref<16x512xf32, #tpu.memory_space<vmem>>, vector<16x512xf32>
    %c0_2 = arith.constant 0 : index
    %c0_3 = arith.constant 0 : index
    %4 = vector.load %arg2[%c0_2, %c0_3] : memref<16x128xbf16, #tpu.memory_space<vmem>>, vector<16x128xbf16>
    %c0_4 = arith.constant 0 : index
    %c0_5 = arith.constant 0 : index
    %5 = vector.load %arg3[%c0_4, %c0_5] : memref<128x512xbf16, #tpu.memory_space<vmem>>, vector<128x512xbf16>
    %cst = arith.constant dense<0.000000e+00> : vector<16x512xf32>
    %6 = tpu.matmul %4, %5, %cst {dimension_numbers = #tpu.dot_dimension_numbers<[1], [0], [0], [1], [0, 0, 1, 1], [], []>} : vector<16x128xbf16>, vector<128x512xbf16>, vector<16x512xf32> -> vector<16x512xf32>
    %7 = arith.addf %3, %6 : vector<16x512xf32>
    %c0_6 = arith.constant 0 : index
    %c0_7 = arith.constant 0 : index
    %8 = vector.load %arg8[%c0_6, %c0_7] : memref<16x512xf32, #tpu.memory_space<vmem>>, vector<16x512xf32>
    tpu.vector_store %arg8[%c0_6, %c0_7], %7 {strides = array<i32>} : memref<16x512xf32, #tpu.memory_space<vmem>>, vector<16x512xf32>,
    %c0_i32_8 = arith.constant 0 : i32
    %9 = arith.cmpi eq, %arg1, %c0_i32_8 : i32
    %10 = arith.extui %9 : i1 to i32
    %c0_i32_9 = arith.constant 0 : i32
    %11 = arith.cmpi ne, %10, %c0_i32_9 : i32
    scf.if %11 {
      %c0_10 = arith.constant 0 : index
      %c0_11 = arith.constant 0 : index
      %12 = vector.load %arg8[%c0_10, %c0_11] : memref<16x512xf32, #tpu.memory_space<vmem>>, vector<16x512xf32>
      %c0_12 = arith.constant 0 : index
      %c0_13 = arith.constant 0 : index
      %13 = vector.load %arg4[%c0_12, %c0_13] : memref<1x512xf32, #tpu.memory_space<vmem>>, vector<1x512xf32>
      %14 = vector.broadcast %13 : vector<1x512xf32> to vector<16x512xf32>
      %15 = arith.addf %12, %14 : vector<16x512xf32>
      %cst_14 = arith.constant 0.000000e+00 : f32
      %16 = vector.broadcast %cst_14 : f32 to vector<16x512xf32>
      %17 = arith.maximumf %15, %16 : vector<16x512xf32>
      %18 = arith.truncf %17 : vector<16x512xf32> to vector<16x512xbf16>
      %c0_15 = arith.constant 0 : index
      %c0_16 = arith.constant 0 : index
      %19 = vector.load %arg5[%c0_15, %c0_16] : memref<512x128xbf16, #tpu.memory_space<vmem>>, vector<512x128xbf16>
      %cst_17 = arith.constant dense<0.000000e+00> : vector<16x128xf32>
      %20 = tpu.matmul %18, %19, %cst_17 {dimension_numbers = #tpu.dot_dimension_numbers<[1], [0], [0], [1], [0, 0, 1, 1], [], []>} : vector<16x512xbf16>, vector<512x128xbf16>, vector<16x128xf32> -> vector<16x128xf32>
      %c0_18 = arith.constant 0 : index
      %c0_19 = arith.constant 0 : index
      %21 = vector.load %arg6[%c0_18, %c0_19] : memref<1x128xf32, #tpu.memory_space<vmem>>, vector<1x128xf32>
      %22 = vector.broadcast %21 : vector<1x128xf32> to vector<16x128xf32>
      %23 = arith.addf %20, %22 : vector<16x128xf32>
      %c0_20 = arith.constant 0 : index
      %c0_21 = arith.constant 0 : index
      %24 = vector.load %arg7[%c0_20, %c0_21] : memref<16x128xf32, #tpu.memory_space<vmem>>, vector<16x128xf32>
      tpu.vector_store %arg7[%c0_20, %c0_21], %23 {strides = array<i32>} : memref<16x128xf32, #tpu.memory_space<vmem>>, vector<16x128xf32>,
    } else {
    }
    return
  }
  func.func @transform_0(%arg0: i32, %arg1: i32) -> (i32, i32) {
    %c0_i32 = arith.constant 0 : i32
    return %arg0, %arg1 : i32, i32
  }
  func.func @transform_1(%arg0: i32, %arg1: i32) -> (i32, i32) {
    %c0_i32 = arith.constant 0 : i32
    %c0_i32_0 = arith.constant 0 : i32
    return %arg1, %c0_i32 : i32, i32
  }
  func.func @transform_2(%arg0: i32, %arg1: i32) -> (i32, i32) {
    %c0_i32 = arith.constant 0 : i32
    %c0_i32_0 = arith.constant 0 : i32
    %c0_i32_1 = arith.constant 0 : i32
    return %c0_i32, %c0_i32_0 : i32, i32
  }
  func.func @transform_3(%arg0: i32, %arg1: i32) -> (i32, i32) {
    %c0_i32 = arith.constant 0 : i32
    %c0_i32_0 = arith.constant 0 : i32
    %c0_i32_1 = arith.constant 0 : i32
    return %c0_i32, %c0_i32_0 : i32, i32
  }
  func.func @transform_4(%arg0: i32, %arg1: i32) -> (i32, i32) {
    %c0_i32 = arith.constant 0 : i32
    %c0_i32_0 = arith.constant 0 : i32
    %c0_i32_1 = arith.constant 0 : i32
    return %c0_i32, %c0_i32_0 : i32, i32
  }
  func.func @transform_5(%arg0: i32, %arg1: i32) -> (i32, i32) {
    %c0_i32 = arith.constant 0 : i32
    %c0_i32_0 = arith.constant 0 : i32
    return %arg0, %c0_i32 : i32, i32
  }
}

</mosaic_0001>

<bundles_post_ra>
// kernel: ppo_vision_forward.5
= control target key start
LH: loop header
LB: loop body
LE: loop exit
PB: predicated region body
PF: predicated region fallthrough
CT: control target
= control target key end

     0   :  { %s5433_s12 = smov 0   ;;  %s6574_s0 = inlined_call_operand.vmem [shape: bf16[8,2,4,256], index: 0, kind: input, shape index: {}]   ;;  %s6575_s1 = inlined_call_operand.vmem [shape: bf16[16,256,128], index: 1, kind: input, shape index: {}]   ;;  %s6576_s2 = inlined_call_operand.vmem [shape: f32[1,128], index: 2, kind: input, shape index: {}]   ;;  %s6577_s3 = inlined_call_operand.vmem [shape: bf16[2,9,128], index: 3, kind: output, shape index: {}]  }
   0x1 LB: > { %s5439_s13 = sadd.s32 4294967295, %s5411_s12   ;;  %p3592_p0 = scmp.ge.s32.totalorder %s5411_s12, 1  ;;  %s5411_s12 = sphi %s5433_s12, %s13_s12  }
   0x2   : > { %p139_p1 = scmp.lt.s32.totalorder %s5411_s12, 3 }
   0x4   : > { %p140_p2 = pnand %p3592_p0, %p139_p1 }
   0x5   : > { %s3593_s20 = sshll.u32 (!%p140_p2), %s5439_s13, 2  ;;  %p171_p4 = scmp.lt.s32.totalorder (!%p140_p2), %s5439_s13, 1 }
   0x6   : > { %143 = sbr.rel (%p140_p2) target bundleno = 422 (0x1a6), region = 32  ;;  %p165_p3 = scmp.lt.s32.totalorder (!%p140_p2), %s3593_s20, 7 }
   0xb   : > { %v5163_v0 = vld [vmem:[%s6575_s1 + $0xb8] sm:$0xff]  ;;  %v5162_v4 = vld [vmem:[%s6575_s1 + $0xb0] sm:$0xff]  ;;  %v5161_v8 = vld [vmem:[%s6575_s1 + $0xa8] sm:$0xff]  ;;  %s6579_s20 = smov (!%p165_p3, %s3593_s20), 7  ;;  %vm191_vm0 = vcmask 1040384   ;;  %vm195_vm1 = vcmask 1042434  }
   0xc   : > { %v5171_v1 = vld [vmem:[%s6575_s1 + $0xf8] sm:$0xff]  ;;  %429 = vmatpush.bf16.msra.mxu0 %v5163_v0  ;;  %v5170_v5 = vld [vmem:[%s6575_s1 + $0xf0] sm:$0xff]  ;;  %v5169_v9 = vld [vmem:[%s6575_s1 + $0xe8] sm:$0xff]  ;;  %s5138_s18 = sshll.u32 %s6579_s20, 3  ;;  %vm199_vm2 = vcmask 1041408   ;;  %vm202_vm3 = vcmask 1041409  }
   0xd   : > { %v5147_v2 = vld [vmem:[%s6575_s1 + $0x38] sm:$0xff]  ;;  %443 = vmatpush.bf16.msra.mxu1 %v5171_v1  ;;  %v5146_v6 = vld [vmem:[%s6575_s1 + $0x30] sm:$0xff]  ;;  %v5145_v10 = vld [vmem:[%s6575_s1 + $0x28] sm:$0xff]  ;;  %s5495_s26 = scalar_lea.vmem %s6574_s0, %s5138_s18  ;;  %vm204_vm4 = vcmask 1043459   ;;  %vm206_vm5 = vcmask 1042433   ;;  %s6581_s13 = smov (!%p171_p4, %s5439_s13), 1 }
   0xe   : > { %v5155_v3 = vld [vmem:[%s6575_s1 + $0x78] sm:$0xff]  ;;  %566 = vmatpush.bf16.msra.mxu2 %v5147_v2  ;;  %v5154_v7 = vld [vmem:[%s6575_s1 + $0x70] sm:$0xff]  ;;  %v5153_v11 = vld [vmem:[%s6575_s1 + $0x68] sm:$0xff]  ;;  %s5139_s24 = sshll.u32 %s6581_s13, 3  ;;  %vm3528_vm6 = vsmask.f32 256 }
   0xf   : > { %580 = vmatpush.bf16.msra.mxu3 %v5155_v3  ;;  %v5160_v12 = vld [vmem:[%s6575_s1 + $0xa0] sm:$0xff]  ;;  %v5159_v16 = vld [vmem:[%s6575_s1 + $0x98] sm:$0xff]  ;;  %v177_v21 = vld [vmem:[%s5495_s26 + $0x8] sm:$0xf]  ;;  %s175_s20 = scalar_lea.vmem %s6577_s3, %s5139_s24 }
  0x10   : > { %430 = vmatpush.bf16.msra.mxu0 %v5162_v4  ;;  %v5168_v13 = vld [vmem:[%s6575_s1 + $0xe0] sm:$0xff]  ;;  %v5167_v17 = vld [vmem:[%s6575_s1 + $0xd8] sm:$0xff]  ;;  %v178_v22 = vld [vmem:[%s5495_s26 + $0x10] sm:$0xf]  ;;  %v185_v26 = vrot.slane %v177_v21, 1  ;;  %v186_v29 = vrot.slane %v177_v21, 2 }
  0x11   : > { %444 = vmatpush.bf16.msra.mxu1 %v5170_v5  ;;  %v5144_v14 = vld [vmem:[%s6575_s1 + $0x20] sm:$0xff]  ;;  %v5143_v18 = vld [vmem:[%s6575_s1 + $0x18] sm:$0xff]  ;;  %v5158_v27 = vld [vmem:[%s6575_s1 + $0x90] sm:$0xff]  ;;  %v187_v30 = vrot.slane %v177_v21, 3  ;;  %v188_v31 = vrot.slane %v178_v22, 1  ;;  %v189_v32 = vrot.slane %v178_v22, 2 }
  0x12   : > { %567 = vmatpush.bf16.msra.mxu2 %v5146_v6  ;;  %v5152_v15 = vld [vmem:[%s6575_s1 + $0x60] sm:$0xff]  ;;  %v5151_v19 = vld [vmem:[%s6575_s1 + $0x58] sm:$0xff]  ;;  %v5166_v28 = vld [vmem:[%s6575_s1 + $0xd0] sm:$0xff]  ;;  %v190_v35 = vrot.slane %v178_v22, 3  ;;  %v212_v41 = vsel %vm191_vm0, %v177_v21, %v185_v26  ;;  %v218_v45 = vsel %vm202_vm3, %v177_v21, %v185_v26 }
  0x13   : > { %581 = vmatpush.bf16.msra.mxu3 %v5154_v7  ;;  %v176_v20 = vld [vmem:[%s5495_s26] sm:$0xf]  ;;  %v5142_v33 = vld [vmem:[%s6575_s1 + $0x10] sm:$0xff]  ;;  %v215_v42 = vsel %vm195_vm1, %v186_v29, %v187_v30  ;;  %v219_v46 = vsel %vm204_vm4, %v186_v29, %v187_v30  ;;  %v5157_v47 = vld [vmem:[%s6575_s1 + $0x88] sm:$0xff]  ;;  %v225_v51 = vsel %vm191_vm0, %v178_v22, %v188_v31  ;;  %v231_v57 = vsel %vm202_vm3, %v178_v22, %v188_v31 }
  0x14   : > { %431 = vmatpush.bf16.msra.mxu0 %v5161_v8  ;;  %v182_v23 = vrot.slane %v176_v20, 1  ;;  %v183_v24 = vrot.slane %v176_v20, 2  ;;  %v184_v25 = vrot.slane %v176_v20, 3  ;;  %v5150_v34 = vld [vmem:[%s6575_s1 + $0x50] sm:$0xff]  ;;  %v216_v44 = vsel %vm199_vm2, %v212_v41, %v215_v42  ;;  %v5165_v48 = vld [vmem:[%s6575_s1 + $0xc8] sm:$0xff]  ;;  %v5156_v0 = vld [vmem:[%s6575_s1 + $0x80] sm:$0xff] }
  0x15   : > { %445 = vmatpush.bf16.msra.mxu1 %v5169_v9  ;;  %v220_v50 = vsel %vm206_vm5, %v218_v45, %v219_v46  ;;  %v228_v52 = vsel %vm195_vm1, %v189_v32, %v190_v35  ;;  %v5141_v53 = vld [vmem:[%s6575_s1 + $0x8] sm:$0xff]  ;;  %v232_v58 = vsel %vm204_vm4, %v189_v32, %v190_v35  ;;  %v240_v60 = vunpack.i.h.s16 %v216_v44  ;;  %v594_v62 = vld [vmem:[%s5495_s26] sm:$0xf]  ;;  %v5179_v9 = vld [vmem:[%s6575_s1 + $0x138] sm:$0xff] }
  0x16   : > { %568 = vmatpush.bf16.msra.mxu2 %v5145_v10  ;;  %v194_v36 = vsel %vm191_vm0, %v176_v20, %v182_v23  ;;  %v198_v37 = vsel %vm195_vm1, %v183_v24, %v184_v25  ;;  %v203_v38 = vsel %vm202_vm3, %v176_v20, %v182_v23  ;;  %v205_v40 = vsel %vm204_vm4, %v183_v24, %v184_v25  ;;  %v5149_v54 = vld [vmem:[%s6575_s1 + $0x48] sm:$0xff]  ;;  %v5164_v1 = vld [vmem:[%s6575_s1 + $0xc0] sm:$0xff]  ;;  %v5187_v10 = vld [vmem:[%s6575_s1 + $0x178] sm:$0xff] }
  0x17   : > { %582 = vmatpush.bf16.msra.mxu3 %v5153_v11  ;;  %v5528_v39 = vsel %vm199_vm2, %v194_v36, %v198_v37  ;;  %v207_v43 = vsel %vm206_vm5, %v203_v38, %v205_v40  ;;  %v222_v55 = vrot.slane %v220_v50, 1  ;;  %v5554_v56 = vsel %vm199_vm2, %v225_v51, %v228_v52  ;;  %v5140_v3 = vld [vmem:[%s6575_s1] sm:$0xff]  ;;  %v5195_v11 = vld [vmem:[%s6575_s1 + $0x1b8] sm:$0xff]  ;;  %v5194_v22 = vld [vmem:[%s6575_s1 + $0x1b0] sm:$0xff] }
  0x18   : > { %432 = vmatpush.bf16.msra.mxu0 %v5160_v12  ;;  %316 = vst [vmem:[#allocation1] ss:$9 sm:$0xff] %v5528_v39  ;;  %v209_v49 = vrot.slane %v207_v43, 1  ;;  %v233_v59 = vsel %vm206_vm5, %v231_v57, %v232_v58  ;;  %v5148_v4 = vld [vmem:[%s6575_s1 + $0x40] sm:$0xff]  ;;  %v600_v6 = vrot.slane %v594_v62, 1  ;;  %v601_v7 = vrot.slane %v594_v62, 2  ;;  %vm3529_vm7 = vmand %vm191_vm0, %vm3528_vm6 }
  0x19   : > { %446 = vmatpush.bf16.msra.mxu1 %v5168_v13  ;;  %325 = vst [vmem:[#allocation1 + $0x3] ss:$9 sm:$0xff] %v5554_v56  ;;  %v235_v63 = vrot.slane %v233_v59, 1  ;;  %v5569_v2 = vpack.i.b16 %v222_v55, %v240_v60  ;;  %v602_v8 = vrot.slane %v594_v62, 3  ;;  %v5203_v12 = vld [vmem:[%s6575_s1 + $0x1f8] sm:$0xff]  ;;  %v5202_v23 = vld [vmem:[%s6575_s1 + $0x1f0] sm:$0xff] }
  0x1a   : > { %569 = vmatpush.bf16.msra.mxu2 %v5144_v14  ;;  %v5559_v61 = vpack.i.b16 %v216_v44, %v209_v49  ;;  %v595_v13 = vld [vmem:[%s5495_s26 + $0x8] sm:$0xf]  ;;  %v596_v14 = vld [vmem:[%s5495_s26 + $0x10] sm:$0xf]  ;;  %v5184_v46 = vld [vmem:[%s6575_s1 + $0x160] sm:$0xff] }
  0x1b   : > { %583 = vmatpush.bf16.msra.mxu3 %v5152_v15  ;;  %v5578_v5 = vunpack.i.l.s16 %v235_v63  ;;  %322 = vst [vmem:[#allocation1 + $0x2] ss:$9 sm:$0xff] %v5569_v2  ;;  %v617_v15 = vsel %vm202_vm3, %v594_v62, %v600_v6  ;;  %v604_v20 = vrot.slane %v595_v13, 2  ;;  %v605_v21 = vrot.slane %v595_v13, 3  ;;  %v5177_v30 = vld [vmem:[%s6575_s1 + $0x128] sm:$0xff]  ;;  %v5192_v49 = vld [vmem:[%s6575_s1 + $0x1a0] sm:$0xff] }
  0x1c   : > { %433 = vmatpush.bf16.msra.mxu0 %v5159_v16  ;;  %319 = vst [vmem:[#allocation1 + $0x1] ss:$9 sm:$0xff] %v5559_v61  ;;  %v618_v16 = vsel %vm204_vm4, %v601_v7, %v602_v8  ;;  %v606_v24 = vrot.slane %v596_v14, 1  ;;  %v607_v25 = vrot.slane %v596_v14, 2  ;;  %v608_v26 = vrot.slane %v596_v14, 3  ;;  %v5185_v31 = vld [vmem:[%s6575_s1 + $0x168] sm:$0xff] }
  0x1d   : > { %447 = vmatpush.bf16.msra.mxu1 %v5167_v17  ;;  %328 = vst [vmem:[#allocation1 + $0x4] ss:$9 sm:$0xff] %v5578_v5  ;;  %v5178_v17 = vld [vmem:[%s6575_s1 + $0x130] sm:$0xff]  ;;  %v619_v29 = vsel %vm206_vm5, %v617_v15, %v618_v16  ;;  %v627_v35 = vsel %vm195_vm1, %v604_v20, %v605_v21  ;;  %v5193_v36 = vld [vmem:[%s6575_s1 + $0x1a8] sm:$0xff]  ;;  %v5200_v50 = vld [vmem:[%s6575_s1 + $0x1e0] sm:$0xff] }
  0x1e   : > { %570 = vmatpush.bf16.msra.mxu2 %v5143_v18  ;;  %v5186_v18 = vld [vmem:[%s6575_s1 + $0x170] sm:$0xff]  ;;  %v5201_v37 = vld [vmem:[%s6575_s1 + $0x1e8] sm:$0xff]  ;;  %v621_v40 = vrot.slane %v619_v29, 1  ;;  %v637_v41 = vsel %vm191_vm0, %v596_v14, %v606_v24  ;;  %v640_v42 = vsel %vm195_vm1, %v607_v25, %v608_v26  ;;  %v643_v43 = vsel %vm202_vm3, %v596_v14, %v606_v24  ;;  %v5183_v57 = vld [vmem:[%s6575_s1 + $0x158] sm:$0xff] }
  0x1f   : > { %584 = vmatpush.bf16.msra.mxu3 %v5151_v19  ;;  %v603_v19 = vrot.slane %v595_v13, 1  ;;  %v644_v44 = vsel %vm204_vm4, %v607_v25, %v608_v26  ;;  %v641_v51 = vsel %vm199_vm2, %v637_v41, %v640_v42  ;;  %v5199_v63 = vld [vmem:[%s6575_s1 + $0x1d8] sm:$0xff]  ;;  %v5189_v14 = vld [vmem:[%s6575_s1 + $0x188] sm:$0xff]  ;;  %v5172_v16 = vld [vmem:[%s6575_s1 + $0x100] sm:$0xff] }
  0x20   : > { %434 = vmatpush.bf16.msra.mxu0 %v5158_v27  ;;  %v611_v27 = vsel %vm191_vm0, %v594_v62, %v600_v6  ;;  %v645_v52 = vsel %vm206_vm5, %v643_v43, %v644_v44  ;;  %v654_v60 = vunpack.i.h.s16 %v641_v51  ;;  %v5191_v62 = vld [vmem:[%s6575_s1 + $0x198] sm:$0xff]  ;;  %v5197_v15 = vld [vmem:[%s6575_s1 + $0x1c8] sm:$0xff]  ;;  %v5218_v41 = vld [vmem:[%s6575_s1 + $0x270] sm:$0xff] }
  0x21   : > { %448 = vmatpush.bf16.msra.mxu1 %v5166_v28  ;;  %v614_v28 = vsel %vm195_vm1, %v601_v7, %v602_v8  ;;  %v647_v59 = vrot.slane %v645_v52, 1  ;;  %v5190_v8 = vld [vmem:[%s6575_s1 + $0x190] sm:$0xff]  ;;  %v5219_v24 = vld [vmem:[%s6575_s1 + $0x278] sm:$0xff]  ;;  %v5209_v51 = vld [vmem:[%s6575_s1 + $0x228] sm:$0xff] }
  0x22   : > { %571 = vmatpush.bf16.msra.mxu2 %v5142_v33  ;;  %v615_v38 = vsel %vm199_vm2, %v611_v27, %v614_v28  ;;  %v5188_v27 = vld [vmem:[%s6575_s1 + $0x180] sm:$0xff]  ;;  %v5227_v29 = vld [vmem:[%s6575_s1 + $0x2b8] sm:$0xff]  ;;  %v5217_v52 = vld [vmem:[%s6575_s1 + $0x268] sm:$0xff] }
  0x23   : > { %585 = vmatpush.bf16.msra.mxu3 %v5150_v34  ;;  %v624_v34 = vsel %vm191_vm0, %v595_v13, %v603_v19  ;;  %v5680_v6 = vpack.i.b16 %v647_v59, %v654_v60  ;;  %v5682_v7 = vunpack.i.h.s16 %v647_v59  ;;  %v5196_v28 = vld [vmem:[%s6575_s1 + $0x1c0] sm:$0xff] }
  0x24   : > { %435 = vmatpush.bf16.msra.mxu0 %v5157_v47  ;;  %v329_v32 = vld [vmem:[#allocation1] sm:$0xff]  ;;  %v330_v33 = vld [vmem:[#allocation1 + $0x9] sm:$0xff]  ;;  %v628_v45 = vsel %vm199_vm2, %v624_v34, %v627_v35  ;;  %v630_v47 = vsel %vm202_vm3, %v595_v13, %v603_v19 }
  0x25   : > { %449 = vmatpush.bf16.msra.mxu1 %v5165_v48  ;;  %457 = vst [vmem:[#allocation1] ss:$9 sm:$0xff] %v5528_v39  ;;  %v5176_v39 = vld [vmem:[%s6575_s1 + $0x120] sm:$0xff]  ;;  %v631_v48 = vsel %vm204_vm4, %v604_v20, %v605_v21  ;;  %v651_v55 = vunpack.i.h.s16 %v628_v45  ;;  %v3955_v13 = vld [vmem:[%s5495_s26 + $0xc] sm:$0xf]  ;;  %v5226_v45 = vld [vmem:[%s6575_s1 + $0x2b0] sm:$0xff] }
  0x26   : > { %572 = vmatpush.bf16.msra.mxu2 %v5141_v53  ;;  %459 = vst [vmem:[#allocation1 + $0x1] ss:$9 sm:$0xff] %v5559_v61  ;;  %v648_v53 = vunpack.i.h.s16 %v615_v38  ;;  %v5661_v58 = vsel %vm206_vm5, %v630_v47, %v631_v48  ;;  %v1022_v25 = vrot.slane %v3955_v13, 2  ;;  %v1023_v26 = vrot.slane %v3955_v13, 3 }
  0x27   : > { %586 = vmatpush.bf16.msra.mxu3 %v5149_v54  ;;  %461 = vst [vmem:[#allocation1 + $0x2] ss:$9 sm:$0xff] %v5569_v2  ;;  %v650_v54 = vunpack.i.h.s16 %v621_v40  ;;  %v634_v2 = vrot.slane %v5661_v58, 1 }
  0x28   : > { %436 = vmatpush.bf16.msra.mxu0 %v5156_v0  ;;  %463 = vst [vmem:[#allocation1 + $0x3] ss:$9 sm:$0xff] %v5554_v56  ;;  %v5175_v56 = vld [vmem:[%s6575_s1 + $0x118] sm:$0xff]  ;;  %v5663_v61 = vpack.i.b16 %v621_v40, %v648_v53  ;;  %v5210_v40 = vld [vmem:[%s6575_s1 + $0x230] sm:$0xff]  ;;  %v1045_v42 = vsel %vm195_vm1, %v1022_v25, %v1023_v26  ;;  %v1049_v44 = vsel %vm204_vm4, %v1022_v25, %v1023_v26 }
  0x29   : > { %450 = vmatpush.bf16.msra.mxu1 %v5164_v1  ;;  %465 = vst [vmem:[#allocation1 + $0x4] ss:$9 sm:$0xff] %v5578_v5  ;;  %v5671_v0 = vpack.i.b16 %v651_v55, %v650_v54  ;;  %v5174_v1 = vld [vmem:[%s6575_s1 + $0x110] sm:$0xff]  ;;  %v5225_v55 = vld [vmem:[%s6575_s1 + $0x2a8] sm:$0xff] }
  0x2a   : > { %573 = vmatpush.bf16.msra.mxu2 %v5140_v3  ;;  %v5182_v5 = vld [vmem:[%s6575_s1 + $0x150] sm:$0xff] }
  0x2b   : > { %587 = vmatpush.bf16.msra.mxu3 %v5148_v4  ;;  %437 = vmatmul.bf16.vlgmr.msra.gmra.mxu0 %v329_v32 }
  0x2c   : > { %809 = vmatpush.bf16.msrb.mxu0 %v5179_v9  ;;  %451 = vmatmul.bf16.vlgmr.msra.gmra.mxu1 %v330_v33  ;;  %v5198_v9 = vld [vmem:[%s6575_s1 + $0x1d0] sm:$0xff] }
  0x2d   : > { %823 = vmatpush.bf16.msrb.mxu1 %v5187_v10  ;;  %v5173_v10 = vld [vmem:[%s6575_s1 + $0x108] sm:$0xff] }
  0x2e   : > { %981 = vmatpush.bf16.msrb.mxu2 %v5195_v11  ;;  %v5181_v11 = vld [vmem:[%s6575_s1 + $0x148] sm:$0xff] }
  0x2f   : > { %995 = vmatpush.bf16.msrb.mxu3 %v5203_v12  ;;  %v5703_v12 = vld [vmem:[%s5495_s26 + $0x4] sm:$0xf] }
  0x30   : > { %810 = vmatpush.bf16.msrb.mxu0 %v5178_v17  ;;  %v466_v3 = vld [vmem:[#allocation1] sm:$0xff]  ;;  %v467_v4 = vld [vmem:[#allocation1 + $0x9] sm:$0xff]  ;;  %v1018_v19 = vrot.slane %v5703_v12, 1  ;;  %v1019_v20 = vrot.slane %v5703_v12, 2  ;;  %v1020_v21 = vrot.slane %v5703_v12, 3 }
  0x31   : > { %824 = vmatpush.bf16.msrb.mxu1 %v5186_v18  ;;  %574 = vmatmul.bf16.vlgmr.msra.gmra.mxu2 %v466_v3  ;;  %696 = vst [vmem:[#allocation1] ss:$9 sm:$0xff] %v5663_v61  ;;  %v5180_v17 = vld [vmem:[%s6575_s1 + $0x140] sm:$0xff]  ;;  %v5719_v18 = vld [vmem:[%s5495_s26 + $0x14] sm:$0xf] }
  0x32   : > { %982 = vmatpush.bf16.msrb.mxu2 %v5194_v22  ;;  %588 = vmatmul.bf16.vlgmr.msra.gmra.mxu3 %v467_v4  ;;  %699 = vst [vmem:[#allocation1 + $0x1] ss:$9 sm:$0xff] %v5671_v0  ;;  %v1021_v22 = vrot.slane %v3955_v13, 1  ;;  %v1025_v32 = vrot.slane %v5719_v18, 2  ;;  %v1026_v33 = vrot.slane %v5719_v18, 3  ;;  %v1032_v58 = vsel %vm195_vm1, %v1019_v20, %v1020_v21  ;;  %v5224_v4 = vld [vmem:[%s6575_s1 + $0x2a0] sm:$0xff] }
  0x33   : > { %996 = vmatpush.bf16.msrb.mxu3 %v5202_v23  ;;  %702 = vst [vmem:[#allocation1 + $0x2] ss:$9 sm:$0xff] %v634_v2  ;;  %v5211_v23 = vld [vmem:[%s6575_s1 + $0x238] sm:$0xff] }
  0x34   : > { %811 = vmatpush.bf16.msrb.mxu0 %v5177_v30  ;;  %705 = vst [vmem:[#allocation1 + $0x3] ss:$9 sm:$0xff] %v5680_v6  ;;  %v5235_v30 = vld [vmem:[%s6575_s1 + $0x2f8] sm:$0xff]  ;;  %v1042_v38 = vsel %vm191_vm0, %v3955_v13, %v1021_v22  ;;  %v1048_v43 = vsel %vm202_vm3, %v3955_v13, %v1021_v22  ;;  %v1062_v48 = vsel %vm204_vm4, %v1025_v32, %v1026_v33  ;;  %v4153_v22 = vld [vmem:[%s5495_s26 + $0x14] sm:$0xf] }
  0x35   : > { %825 = vmatpush.bf16.msrb.mxu1 %v5185_v31  ;;  %708 = vst [vmem:[#allocation1 + $0x4] ss:$9 sm:$0xff] %v5682_v7  ;;  %v1024_v31 = vrot.slane %v5719_v18, 1  ;;  %v5215_v13 = vld [vmem:[%s6575_s1 + $0x258] sm:$0xff] }
  0x36   : > { %983 = vmatpush.bf16.msrb.mxu2 %v5193_v36  ;;  %v1035_v36 = vsel %vm202_vm3, %v5703_v12, %v1018_v19 }
  0x37   : > { %997 = vmatpush.bf16.msrb.mxu3 %v5201_v37  ;;  %v1036_v37 = vsel %vm204_vm4, %v1019_v20, %v1020_v21  ;;  %v1061_v47 = vsel %vm202_vm3, %v5719_v18, %v1024_v31  ;;  %v5206_v20 = vld [vmem:[%s6575_s1 + $0x210] sm:$0xff] }
  0x38   : > { %812 = vmatpush.bf16.msrb.mxu0 %v5176_v39  ;;  %v5234_v39 = vld [vmem:[%s6575_s1 + $0x2f0] sm:$0xff]  ;;  %v1063_v54 = vsel %vm206_vm5, %v1061_v47, %v1062_v48  ;;  %v5204_v47 = vld [vmem:[%s6575_s1 + $0x200] sm:$0xff] }
  0x39   : > { %826 = vmatpush.bf16.msrb.mxu1 %v5184_v46  ;;  %v1037_v46 = vsel %vm206_vm5, %v1035_v36, %v1036_v37  ;;  %v5214_v21 = vld [vmem:[%s6575_s1 + $0x250] sm:$0xff]  ;;  %v5212_v48 = vld [vmem:[%s6575_s1 + $0x240] sm:$0xff] }
  0x3a   : > { %984 = vmatpush.bf16.msrb.mxu2 %v5192_v49  ;;  %v1046_v49 = vsel %vm199_vm2, %v1042_v38, %v1045_v42  ;;  %v1039_v53 = vrot.slane %v1037_v46, 1  ;;  %v5221_v38 = vld [vmem:[%s6575_s1 + $0x288] sm:$0xff] }
  0x3b   : > { %998 = vmatpush.bf16.msrb.mxu3 %v5200_v50  ;;  %v1050_v50 = vsel %vm206_vm5, %v1048_v43, %v1049_v44  ;;  %v1070_v60 = vunpack.i.h.s16 %v1046_v49 }
  0x3c   : > { %813 = vmatpush.bf16.msrb.mxu0 %v5175_v56  ;;  %v709_v34 = vld [vmem:[#allocation1] sm:$0xff]  ;;  %v710_v35 = vld [vmem:[#allocation1 + $0x9] sm:$0xff]  ;;  %v1052_v59 = vrot.slane %v1050_v50, 1  ;;  %v5804_v3 = vpack.i.b16 %v1046_v49, %v1039_v53 }
  0x3d   : > { %827 = vmatpush.bf16.msrb.mxu1 %v5183_v57  ;;  %872 = vst [vmem:[#allocation1] ss:$9 sm:$0xff] %v5663_v61  ;;  %v5233_v56 = vld [vmem:[%s6575_s1 + $0x2e8] sm:$0xff]  ;;  %v1029_v57 = vsel %vm191_vm0, %v5703_v12, %v1018_v19  ;;  %v1065_v61 = vrot.slane %v1063_v54, 1  ;;  %v5207_v12 = vld [vmem:[%s6575_s1 + $0x218] sm:$0xff]  ;;  %v5228_v53 = vld [vmem:[%s6575_s1 + $0x2c0] sm:$0xff] }
  0x3e   : > { %985 = vmatpush.bf16.msrb.mxu2 %v5191_v62  ;;  %874 = vst [vmem:[#allocation1 + $0x1] ss:$9 sm:$0xff] %v5671_v0  ;;  %v5208_v62 = vld [vmem:[%s6575_s1 + $0x220] sm:$0xff]  ;;  %v5799_v0 = vsel %vm199_vm2, %v1029_v57, %v1032_v58  ;;  %v4152_v19 = vld [vmem:[%s5495_s26 + $0xc] sm:$0xf]  ;;  %v5259_v58 = vld [vmem:[%s6575_s1 + $0x3b8] sm:$0xff] }
  0x3f   : > { %999 = vmatpush.bf16.msrb.mxu3 %v5199_v63  ;;  %876 = vst [vmem:[#allocation1 + $0x2] ss:$9 sm:$0xff] %v634_v2  ;;  %v5216_v63 = vld [vmem:[%s6575_s1 + $0x260] sm:$0xff]  ;;  %v1058_v2 = vsel %vm195_vm1, %v1025_v32, %v1026_v33  ;;  %v5205_v32 = vld [vmem:[%s6575_s1 + $0x208] sm:$0xff] }
  0x40   : > { %814 = vmatpush.bf16.msrb.mxu0 %v5174_v1  ;;  %878 = vst [vmem:[#allocation1 + $0x3] ss:$9 sm:$0xff] %v5680_v6  ;;  %v1055_v1 = vsel %vm191_vm0, %v5719_v18, %v1024_v31  ;;  %v5812_v6 = vpack.i.b16 %v1052_v59, %v1070_v60  ;;  %v1442_v31 = vrot.slane %v4153_v22, 2  ;;  %v5213_v33 = vld [vmem:[%s6575_s1 + $0x248] sm:$0xff]  ;;  %v5267_v59 = vld [vmem:[%s6575_s1 + $0x3f8] sm:$0xff] }
  0x41   : > { %828 = vmatpush.bf16.msrb.mxu1 %v5182_v5  ;;  %880 = vst [vmem:[#allocation1 + $0x4] ss:$9 sm:$0xff] %v5682_v7  ;;  %v5232_v5 = vld [vmem:[%s6575_s1 + $0x2e0] sm:$0xff] }
  0x42   : > { %986 = vmatpush.bf16.msrb.mxu2 %v5190_v8 }
  0x43   : > { %1000 = vmatpush.bf16.msrb.mxu3 %v5198_v9  ;;  %v5815_v9 = vsel %vm199_vm2, %v1055_v1, %v1058_v2  ;;  %v5242_v2 = vld [vmem:[%s6575_s1 + $0x330] sm:$0xff] }
  0x44   : > { %815 = vmatpush.bf16.msrb.mxu0 %v5173_v10  ;;  %v5817_v10 = vunpack.i.l.s16 %v1065_v61 }
  0x45   : > { %829 = vmatpush.bf16.msrb.mxu1 %v5181_v11  ;;  %v4151_v11 = vld [vmem:[%s5495_s26 + $0x4] sm:$0xf] }
  0x46   : > { %987 = vmatpush.bf16.msrb.mxu2 %v5189_v14  ;;  %v5223_v14 = vld [vmem:[%s6575_s1 + $0x298] sm:$0xff]  ;;  %v1437_v18 = vrot.slane %v4151_v11, 3 }
  0x47   : > { %1001 = vmatpush.bf16.msrb.mxu3 %v5197_v15  ;;  %v5231_v15 = vld [vmem:[%s6575_s1 + $0x2d8] sm:$0xff] }
  0x48   : > { %816 = vmatpush.bf16.msrb.mxu0 %v5172_v16  ;;  %v881_v7 = vld [vmem:[#allocation1] sm:$0xff]  ;;  %v882_v8 = vld [vmem:[#allocation1 + $0x9] sm:$0xff]  ;;  %v1435_v16 = vrot.slane %v4151_v11, 1 }
  0x49   : > { %830 = vmatpush.bf16.msrb.mxu1 %v5180_v17  ;;  %1114 = vst [vmem:[#allocation1] ss:$9 sm:$0xff] %v5799_v0  ;;  %v1436_v17 = vrot.slane %v4151_v11, 2 }
  0x4a   : > { %988 = vmatpush.bf16.msrb.mxu2 %v5188_v27  ;;  %1117 = vst [vmem:[#allocation1 + $0x1] ss:$9 sm:$0xff] %v5804_v3  ;;  %v1452_v25 = vsel %vm202_vm3, %v4151_v11, %v1435_v16  ;;  %v1438_v27 = vrot.slane %v4152_v19, 1 }
  0x4b   : > { %1002 = vmatpush.bf16.msrb.mxu3 %v5196_v28  ;;  %817 = vmatmul.bf16.vlgmr.msrb.gmra.mxu0 %v709_v34  ;;  %1120 = vst [vmem:[#allocation1 + $0x2] ss:$9 sm:$0xff] %v5812_v6  ;;  %v1453_v26 = vsel %vm204_vm4, %v1436_v17, %v1437_v18  ;;  %v1439_v28 = vrot.slane %v4152_v19, 2  ;;  %v1443_v34 = vrot.slane %v4153_v22, 3  ;;  %v1449_v36 = vsel %vm195_vm1, %v1436_v17, %v1437_v18  ;;  %v5257_v18 = vld [vmem:[%s6575_s1 + $0x3a8] sm:$0xff] }
  0x4c   : > { %1227 = vmatpush.bf16.msra.mxu0 %v5211_v23  ;;  %831 = vmatmul.bf16.vlgmr.msrb.gmra.mxu1 %v710_v35  ;;  %1123 = vst [vmem:[#allocation1 + $0x3] ss:$9 sm:$0xff] %v5815_v9  ;;  %v5222_v23 = vld [vmem:[%s6575_s1 + $0x290] sm:$0xff]  ;;  %v1446_v35 = vsel %vm191_vm0, %v4151_v11, %v1435_v16  ;;  %v1454_v37 = vsel %vm206_vm5, %v1452_v25, %v1453_v26  ;;  %v5241_v11 = vld [vmem:[%s6575_s1 + $0x328] sm:$0xff]  ;;  %v5247_v25 = vld [vmem:[%s6575_s1 + $0x358] sm:$0xff] }
  0x4d   : > { %1241 = vmatpush.bf16.msra.mxu1 %v5219_v24  ;;  %989 = vmatmul.bf16.vlgmr.msrb.gmra.mxu2 %v881_v7  ;;  %1126 = vst [vmem:[#allocation1 + $0x4] ss:$9 sm:$0xff] %v5817_v10  ;;  %v5230_v24 = vld [vmem:[%s6575_s1 + $0x2d0] sm:$0xff]  ;;  %v1459_v43 = vsel %vm191_vm0, %v4152_v19, %v1438_v27  ;;  %v1475_v49 = vsel %vm195_vm1, %v1442_v31, %v1443_v34  ;;  %v4348_v26 = vld [vmem:[%s5495_s26 + $0x8] sm:$0xf] }
  0x4e   : > { %1399 = vmatpush.bf16.msra.mxu2 %v5227_v29  ;;  %1003 = vmatmul.bf16.vlgmr.msrb.gmra.mxu3 %v882_v8  ;;  %v1440_v29 = vrot.slane %v4152_v19, 3  ;;  %v1465_v57 = vsel %vm202_vm3, %v4152_v19, %v1438_v27  ;;  %v5258_v8 = vld [vmem:[%s6575_s1 + $0x3b0] sm:$0xff]  ;;  %v5265_v19 = vld [vmem:[%s6575_s1 + $0x3e8] sm:$0xff] }
  0x4f   : > { %1413 = vmatpush.bf16.msra.mxu3 %v5235_v30  ;;  %v1441_v30 = vrot.slane %v4153_v22, 1  ;;  %v4349_v27 = vld [vmem:[%s5495_s26 + $0x10] sm:$0xf] }
  0x50   : > { %1228 = vmatpush.bf16.msra.mxu0 %v5210_v40  ;;  %v5229_v40 = vld [vmem:[%s6575_s1 + $0x2c8] sm:$0xff]  ;;  %v1462_v44 = vsel %vm195_vm1, %v1439_v28, %v1440_v29  ;;  %v1466_v60 = vsel %vm204_vm4, %v1439_v28, %v1440_v29  ;;  %v5972_v28 = vld [vmem:[%s5495_s26 + $0x18] sm:$0xf]  ;;  %v1853_v29 = vrot.slane %v4348_v26, 1 }
  0x51   : > { %1242 = vmatpush.bf16.msra.mxu1 %v5218_v41  ;;  %v1472_v46 = vsel %vm191_vm0, %v4153_v22, %v1441_v30  ;;  %v1478_v50 = vsel %vm202_vm3, %v4153_v22, %v1441_v30  ;;  %v1463_v54 = vsel %vm199_vm2, %v1459_v43, %v1462_v44  ;;  %v5256_v22 = vld [vmem:[%s6575_s1 + $0x3a0] sm:$0xff]  ;;  %v1854_v30 = vrot.slane %v4348_v26, 2 }
  0x52   : > { %1400 = vmatpush.bf16.msra.mxu2 %v5226_v45  ;;  %v1450_v45 = vsel %vm199_vm2, %v1446_v35, %v1449_v36  ;;  %v1476_v61 = vsel %vm199_vm2, %v1472_v46, %v1475_v49  ;;  %v1486_v1 = vunpack.i.h.s16 %v1463_v54  ;;  %v5255_v35 = vld [vmem:[%s6575_s1 + $0x398] sm:$0xff] }
  0x53   : > { %1414 = vmatpush.bf16.msra.mxu3 %v5234_v39  ;;  %v1456_v39 = vrot.slane %v1454_v37, 1  ;;  %v5263_v36 = vld [vmem:[%s6575_s1 + $0x3d8] sm:$0xff]  ;;  %v5238_v37 = vld [vmem:[%s6575_s1 + $0x310] sm:$0xff] }
  0x54   : > { %1229 = vmatpush.bf16.msra.mxu0 %v5209_v51  ;;  %v1127_v41 = vld [vmem:[#allocation1] sm:$0xff]  ;;  %v1128_v42 = vld [vmem:[#allocation1 + $0x9] sm:$0xff]  ;;  %v1479_v51 = vsel %vm204_vm4, %v1442_v31, %v1443_v34  ;;  %v1855_v31 = vrot.slane %v4348_v26, 3  ;;  %v1858_v34 = vrot.slane %v4349_v27, 3 }
  0x55   : > { %1243 = vmatpush.bf16.msra.mxu1 %v5217_v52  ;;  %1290 = vst [vmem:[#allocation1] ss:$9 sm:$0xff] %v5799_v0  ;;  %v5220_v52 = vld [vmem:[%s6575_s1 + $0x280] sm:$0xff]  ;;  %v1485_v0 = vunpack.i.h.s16 %v1456_v39 }
  0x56   : > { %1401 = vmatpush.bf16.msra.mxu2 %v5225_v55  ;;  %1292 = vst [vmem:[#allocation1 + $0x1] ss:$9 sm:$0xff] %v5804_v3  ;;  %v5243_v55 = vld [vmem:[%s6575_s1 + $0x338] sm:$0xff]  ;;  %v5250_v3 = vld [vmem:[%s6575_s1 + $0x370] sm:$0xff] }
  0x57   : > { %1415 = vmatpush.bf16.msra.mxu3 %v5233_v56  ;;  %1294 = vst [vmem:[#allocation1 + $0x2] ss:$9 sm:$0xff] %v5812_v6  ;;  %v5251_v56 = vld [vmem:[%s6575_s1 + $0x378] sm:$0xff]  ;;  %v1489_v6 = vunpack.i.h.s16 %v1476_v61  ;;  %v1864_v61 = vsel %vm191_vm0, %v4348_v26, %v1853_v29 }
  0x58   : > { %1230 = vmatpush.bf16.msra.mxu0 %v5208_v62  ;;  %1296 = vst [vmem:[#allocation1 + $0x3] ss:$9 sm:$0xff] %v5815_v9  ;;  %v1480_v62 = vsel %vm206_vm5, %v1478_v50, %v1479_v51  ;;  %v5266_v9 = vld [vmem:[%s6575_s1 + $0x3f0] sm:$0xff] }
  0x59   : > { %1244 = vmatpush.bf16.msra.mxu1 %v5216_v63  ;;  %1298 = vst [vmem:[#allocation1 + $0x4] ss:$9 sm:$0xff] %v5817_v10  ;;  %v1483_v63 = vunpack.i.h.s16 %v1450_v45  ;;  %v5926_v10 = vpack.i.b16 %v1486_v1, %v1485_v0  ;;  %v1870_v45 = vsel %vm202_vm3, %v4348_v26, %v1853_v29  ;;  %v5254_v50 = vld [vmem:[%s6575_s1 + $0x390] sm:$0xff]  ;;  %v5281_v26 = vld [vmem:[%s6575_s1 + $0x468] sm:$0xff]  ;;  %v5272_v29 = vld [vmem:[%s6575_s1 + $0x420] sm:$0xff] }
  0x5a   : > { %1402 = vmatpush.bf16.msra.mxu2 %v5224_v4  ;;  %v5916_v4 = vsel %vm206_vm5, %v1465_v57, %v1466_v60  ;;  %v5262_v51 = vld [vmem:[%s6575_s1 + $0x3d0] sm:$0xff]  ;;  %v5261_v60 = vld [vmem:[%s6575_s1 + $0x3c8] sm:$0xff] }
  0x5b   : > { %1416 = vmatpush.bf16.msra.mxu3 %v5232_v5  ;;  %v1482_v5 = vrot.slane %v1480_v62, 1  ;;  %v5918_v7 = vpack.i.b16 %v1456_v39, %v1483_v63  ;;  %v1871_v39 = vsel %vm204_vm4, %v1854_v30, %v1855_v31  ;;  %v1867_v62 = vsel %vm195_vm1, %v1854_v30, %v1855_v31  ;;  %v5280_v30 = vld [vmem:[%s6575_s1 + $0x460] sm:$0xff]  ;;  %v4545_v31 = vld [vmem:[%s5495_s26 + $0x8] sm:$0xf] }
  0x5c   : > { %1231 = vmatpush.bf16.msra.mxu0 %v5207_v12  ;;  %v1469_v12 = vrot.slane %v5916_v4, 1  ;;  %v5244_v4 = vld [vmem:[%s6575_s1 + $0x340] sm:$0xff] }
  0x5d   : > { %1245 = vmatpush.bf16.msra.mxu1 %v5215_v13  ;;  %v5935_v16 = vpack.i.b16 %v1482_v5, %v1489_v6  ;;  %v5937_v17 = vunpack.i.h.s16 %v1482_v5  ;;  %v5275_v5 = vld [vmem:[%s6575_s1 + $0x438] sm:$0xff] }
  0x5e   : > { %1403 = vmatpush.bf16.msra.mxu2 %v5223_v14  ;;  %v5283_v6 = vld [vmem:[%s6575_s1 + $0x478] sm:$0xff] }
  0x5f   : > { %1417 = vmatpush.bf16.msra.mxu3 %v5231_v15  ;;  %v5249_v15 = vld [vmem:[%s6575_s1 + $0x368] sm:$0xff] }
  0x60   : > { %1232 = vmatpush.bf16.msra.mxu0 %v5206_v20  ;;  %v1299_v13 = vld [vmem:[#allocation1] sm:$0xff]  ;;  %v1300_v14 = vld [vmem:[#allocation1 + $0x9] sm:$0xff] }
  0x61   : > { %1246 = vmatpush.bf16.msra.mxu1 %v5214_v21  ;;  %1531 = vst [vmem:[#allocation1] ss:$9 sm:$0xff] %v5918_v7  ;;  %v5240_v20 = vld [vmem:[%s6575_s1 + $0x320] sm:$0xff] }
  0x62   : > { %1404 = vmatpush.bf16.msra.mxu2 %v5222_v23  ;;  %1534 = vst [vmem:[#allocation1 + $0x1] ss:$9 sm:$0xff] %v5926_v10  ;;  %v5248_v21 = vld [vmem:[%s6575_s1 + $0x360] sm:$0xff] }
  0x63   : > { %1418 = vmatpush.bf16.msra.mxu3 %v5230_v24  ;;  %1537 = vst [vmem:[#allocation1 + $0x2] ss:$9 sm:$0xff] %v1469_v12  ;;  %v5264_v23 = vld [vmem:[%s6575_s1 + $0x3e0] sm:$0xff]  ;;  %v5239_v24 = vld [vmem:[%s6575_s1 + $0x318] sm:$0xff] }
  0x64   : > { %1233 = vmatpush.bf16.msra.mxu0 %v5205_v32  ;;  %1540 = vst [vmem:[#allocation1 + $0x3] ss:$9 sm:$0xff] %v5935_v16  ;;  %v1856_v32 = vrot.slane %v4349_v27, 1 }
  0x65   : > { %1247 = vmatpush.bf16.msra.mxu1 %v5213_v33  ;;  %1543 = vst [vmem:[#allocation1 + $0x4] ss:$9 sm:$0xff] %v5937_v17  ;;  %v1857_v33 = vrot.slane %v4349_v27, 2 }
  0x66   : > { %1405 = vmatpush.bf16.msra.mxu2 %v5221_v38  ;;  %v1859_v38 = vrot.slane %v5972_v28, 1  ;;  %v1877_v46 = vsel %vm191_vm0, %v4349_v27, %v1856_v32 }
  0x67   : > { %1419 = vmatpush.bf16.msra.mxu3 %v5229_v40  ;;  %v1860_v40 = vrot.slane %v5972_v28, 2  ;;  %v1884_v49 = vsel %vm204_vm4, %v1857_v33, %v1858_v34 }
  0x68   : > { %1234 = vmatpush.bf16.msra.mxu0 %v5204_v47  ;;  %v1880_v47 = vsel %vm195_vm1, %v1857_v33, %v1858_v34  ;;  %v5296_v33 = vld [vmem:[%s6575_s1 + $0x4e0] sm:$0xff]  ;;  %v2270_v34 = vrot.slane %v4545_v31, 1 }
  0x69   : > { %1248 = vmatpush.bf16.msra.mxu1 %v5212_v48  ;;  %v1883_v48 = vsel %vm202_vm3, %v4349_v27, %v1856_v32  ;;  %v1881_v57 = vsel %vm199_vm2, %v1877_v46, %v1880_v47  ;;  %v5289_v27 = vld [vmem:[%s6575_s1 + $0x4a8] sm:$0xff]  ;;  %v5288_v32 = vld [vmem:[%s6575_s1 + $0x4a0] sm:$0xff]  ;;  %v4547_v46 = vld [vmem:[%s5495_s26 + $0x18] sm:$0xf] }
  0x6a   : > { %1406 = vmatpush.bf16.msra.mxu2 %v5220_v52  ;;  %v1872_v52 = vsel %vm206_vm5, %v1870_v45, %v1871_v39  ;;  %v4546_v39 = vld [vmem:[%s5495_s26 + $0x10] sm:$0xf] }
  0x6b   : > { %1420 = vmatpush.bf16.msra.mxu3 %v5228_v53  ;;  %1235 = vmatmul.bf16.vlgmr.msra.gmra.mxu0 %v1127_v41  ;;  %v1861_v41 = vrot.slane %v5972_v28, 3  ;;  %v1896_v53 = vsel %vm202_vm3, %v5972_v28, %v1859_v38  ;;  %v1874_v63 = vrot.slane %v1872_v52, 1  ;;  %v2277_v52 = vrot.slane %v4547_v46, 2 }
  0x6c   : > { %1644 = vmatpush.bf16.msrb.mxu0 %v5243_v55  ;;  %1249 = vmatmul.bf16.vlgmr.msra.gmra.mxu1 %v1128_v42  ;;  %v5246_v42 = vld [vmem:[%s6575_s1 + $0x350] sm:$0xff]  ;;  %v5989_v43 = vld [vmem:[#allocation1] sm:$0xff]  ;;  %v5237_v55 = vld [vmem:[%s6575_s1 + $0x308] sm:$0xff] }
  0x6d   : > { %1658 = vmatpush.bf16.msrb.mxu1 %v5251_v56  ;;  %1407 = vmatmul.bf16.vlgmr.msra.gmra.mxu2 %v1299_v13  ;;  %v5991_v44 = vld [vmem:[#allocation1 + $0x9] sm:$0xff]  ;;  %v1897_v54 = vsel %vm204_vm4, %v1860_v40, %v1861_v41  ;;  %v4383_v13 = vpack.i.b16 %v1881_v57, %v1874_v63 }
  0x6e   : > { %1816 = vmatpush.bf16.msrb.mxu2 %v5259_v58  ;;  %1421 = vmatmul.bf16.vlgmr.msra.gmra.mxu3 %v1300_v14  ;;  %1707 = vst [vmem:[#allocation1] ss:$9 sm:$0xff] %v5918_v7  ;;  %v5245_v56 = vld [vmem:[%s6575_s1 + $0x348] sm:$0xff]  ;;  %v1885_v58 = vsel %vm206_vm5, %v1883_v48, %v1884_v49  ;;  %v1898_v0 = vsel %vm206_vm5, %v1896_v53, %v1897_v54  ;;  %v5291_v14 = vld [vmem:[%s6575_s1 + $0x4b8] sm:$0xff]  ;;  %v2273_v48 = vrot.slane %v4546_v39, 1  ;;  %v2274_v49 = vrot.slane %v4546_v39, 2 }
  0x6f   : > { %1830 = vmatpush.bf16.msrb.mxu3 %v5267_v59  ;;  %1709 = vst [vmem:[#allocation1 + $0x1] ss:$9 sm:$0xff] %v5926_v10  ;;  %v5253_v59 = vld [vmem:[%s6575_s1 + $0x388] sm:$0xff]  ;;  %v1887_v1 = vrot.slane %v1885_v58, 1  ;;  %v1868_v7 = vsel %vm199_vm2, %v1864_v61, %v1867_v62  ;;  %v5260_v10 = vld [vmem:[%s6575_s1 + $0x3c0] sm:$0xff]  ;;  %v2278_v53 = vrot.slane %v4547_v46, 3  ;;  %v2281_v54 = vsel %vm191_vm0, %v4545_v31, %v2270_v34 }
  0x70   : > { %1645 = vmatpush.bf16.msrb.mxu0 %v5242_v2  ;;  %1711 = vst [vmem:[#allocation1 + $0x2] ss:$9 sm:$0xff] %v1469_v12  ;;  %v1905_v2 = vunpack.i.h.s16 %v1881_v57  ;;  %v1893_v12 = vsel %vm195_vm1, %v1860_v40, %v1861_v41  ;;  %v5279_v41 = vld [vmem:[%s6575_s1 + $0x458] sm:$0xff]  ;;  %v2294_v58 = vsel %vm191_vm0, %v4546_v39, %v2273_v48  ;;  %v5278_v61 = vld [vmem:[%s6575_s1 + $0x450] sm:$0xff]  ;;  %v2300_v63 = vsel %vm202_vm3, %v4546_v39, %v2273_v48  ;;  %v4742_v48 = vld [vmem:[%s5495_s26 + $0xc] sm:$0xf] }
  0x71   : > { %1659 = vmatpush.bf16.msrb.mxu1 %v5250_v3  ;;  %1713 = vst [vmem:[#allocation1 + $0x3] ss:$9 sm:$0xff] %v5935_v16  ;;  %v5236_v3 = vld [vmem:[%s6575_s1 + $0x300] sm:$0xff] }
  0x72   : > { %1817 = vmatpush.bf16.msrb.mxu2 %v5258_v8  ;;  %1715 = vst [vmem:[#allocation1 + $0x4] ss:$9 sm:$0xff] %v5937_v17  ;;  %v1900_v8 = vrot.slane %v1898_v0, 1  ;;  %v4384_v16 = vpack.i.b16 %v1887_v1, %v1905_v2  ;;  %v5286_v2 = vld [vmem:[%s6575_s1 + $0x490] sm:$0xff] }
  0x73   : > { %1831 = vmatpush.bf16.msrb.mxu3 %v5266_v9  ;;  %v5252_v9 = vld [vmem:[%s6575_s1 + $0x380] sm:$0xff] }
  0x74   : > { %1646 = vmatpush.bf16.msrb.mxu0 %v5241_v11  ;;  %v1890_v11 = vsel %vm191_vm0, %v5972_v28, %v1859_v38  ;;  %v5297_v28 = vld [vmem:[%s6575_s1 + $0x4e8] sm:$0xff] }
  0x75   : > { %1660 = vmatpush.bf16.msrb.mxu1 %v5249_v15  ;;  %v5299_v15 = vld [vmem:[%s6575_s1 + $0x4f8] sm:$0xff] }
  0x76   : > { %1818 = vmatpush.bf16.msrb.mxu2 %v5257_v18 }
  0x77   : > { %1832 = vmatpush.bf16.msrb.mxu3 %v5265_v19  ;;  %v1894_v19 = vsel %vm199_vm2, %v1890_v11, %v1893_v12 }
  0x78   : > { %1647 = vmatpush.bf16.msrb.mxu0 %v5240_v20  ;;  %v6061_v20 = vunpack.i.l.s16 %v1900_v8 }
  0x79   : > { %1661 = vmatpush.bf16.msrb.mxu1 %v5248_v21  ;;  %v1716_v17 = vld [vmem:[#allocation1] sm:$0xff]  ;;  %v1717_v18 = vld [vmem:[#allocation1 + $0x9] sm:$0xff] }
  0x7a   : > { %1819 = vmatpush.bf16.msrb.mxu2 %v5256_v22  ;;  %1949 = vst [vmem:[#allocation1] ss:$9 sm:$0xff] %v1868_v7  ;;  %v5274_v21 = vld [vmem:[%s6575_s1 + $0x430] sm:$0xff] }
  0x7b   : > { %1833 = vmatpush.bf16.msrb.mxu3 %v5264_v23  ;;  %v5282_v22 = vld [vmem:[%s6575_s1 + $0x470] sm:$0xff]  ;;  %1952 = vst [vmem:[#allocation1 + $0x1] ss:$9 sm:$0xff] %v4383_v13 }
  0x7c   : > { %1648 = vmatpush.bf16.msrb.mxu0 %v5239_v24  ;;  %v5290_v23 = vld [vmem:[%s6575_s1 + $0x4b0] sm:$0xff]  ;;  %1955 = vst [vmem:[#allocation1 + $0x2] ss:$9 sm:$0xff] %v4384_v16 }
  0x7d   : > { %1662 = vmatpush.bf16.msrb.mxu1 %v5247_v25  ;;  %v5298_v24 = vld [vmem:[%s6575_s1 + $0x4f0] sm:$0xff]  ;;  %1958 = vst [vmem:[#allocation1 + $0x3] ss:$9 sm:$0xff] %v1894_v19  ;;  %v5273_v25 = vld [vmem:[%s6575_s1 + $0x428] sm:$0xff] }
  0x7e   : > { %1820 = vmatpush.bf16.msrb.mxu2 %v5255_v35  ;;  %1961 = vst [vmem:[#allocation1 + $0x4] ss:$9 sm:$0xff] %v6061_v20  ;;  %v2271_v35 = vrot.slane %v4545_v31, 2 }
  0x7f   : > { %1834 = vmatpush.bf16.msrb.mxu3 %v5263_v36  ;;  %v2272_v36 = vrot.slane %v4545_v31, 3 }
  0x80   : > { %1649 = vmatpush.bf16.msrb.mxu0 %v5238_v37  ;;  %v5271_v37 = vld [vmem:[%s6575_s1 + $0x418] sm:$0xff] }
  0x81   : > { %1663 = vmatpush.bf16.msrb.mxu1 %v5246_v42  ;;  %v5287_v42 = vld [vmem:[%s6575_s1 + $0x498] sm:$0xff]  ;;  %v2288_v45 = vsel %vm204_vm4, %v2271_v35, %v2272_v36 }
  0x82   : > { %1821 = vmatpush.bf16.msrb.mxu2 %v5254_v50  ;;  %v2275_v50 = vrot.slane %v4546_v39, 3  ;;  %v5312_v39 = vld [vmem:[%s6575_s1 + $0x560] sm:$0xff] }
  0x83   : > { %1835 = vmatpush.bf16.msrb.mxu3 %v5262_v51  ;;  %v2276_v51 = vrot.slane %v4547_v46, 1 }
  0x84   : > { %1650 = vmatpush.bf16.msrb.mxu0 %v5237_v55  ;;  %v2284_v55 = vsel %vm195_vm1, %v2271_v35, %v2272_v36  ;;  %v2301_v0 = vsel %vm204_vm4, %v2274_v49, %v2275_v50  ;;  %v5314_v35 = vld [vmem:[%s6575_s1 + $0x570] sm:$0xff] }
  0x85   : > { %1664 = vmatpush.bf16.msrb.mxu1 %v5245_v56  ;;  %v6106_v38 = vld [vmem:[#allocation1] sm:$0xff]  ;;  %v6108_v40 = vld [vmem:[#allocation1 + $0x9] sm:$0xff]  ;;  %v2285_v56 = vsel %vm199_vm2, %v2281_v54, %v2284_v55  ;;  %v2690_v55 = vrot.slane %v4742_v48, 3 }
  0x86   : > { %1822 = vmatpush.bf16.msrb.mxu2 %v5253_v59  ;;  %2125 = vst [vmem:[#allocation1] ss:$9 sm:$0xff] %v1868_v7  ;;  %v2297_v59 = vsel %vm195_vm1, %v2274_v49, %v2275_v50  ;;  %v2318_v1 = vunpack.i.h.s16 %v2285_v56  ;;  %v6148_v7 = vsel %vm206_vm5, %v2300_v63, %v2301_v0  ;;  %v5322_v36 = vld [vmem:[%s6575_s1 + $0x5b0] sm:$0xff]  ;;  %v4744_v50 = vld [vmem:[%s5495_s26 + $0x1c] sm:$0xf] }
  0x87   : > { %1836 = vmatpush.bf16.msrb.mxu3 %v5261_v60  ;;  %2127 = vst [vmem:[#allocation1 + $0x1] ss:$9 sm:$0xff] %v4383_v13  ;;  %v5270_v60 = vld [vmem:[%s6575_s1 + $0x410] sm:$0xff]  ;;  %v2298_v62 = vsel %vm199_vm2, %v2294_v58, %v2297_v59  ;;  %v5303_v59 = vld [vmem:[%s6575_s1 + $0x518] sm:$0xff]  ;;  %v2695_v63 = vrot.slane %v4744_v50, 2 }
  0x88   : > { %1651 = vmatpush.bf16.msrb.mxu0 %v5236_v3  ;;  %2129 = vst [vmem:[#allocation1 + $0x2] ss:$9 sm:$0xff] %v4384_v16  ;;  %v5294_v3 = vld [vmem:[%s6575_s1 + $0x4d0] sm:$0xff]  ;;  %v2321_v12 = vunpack.i.h.s16 %v2298_v62  ;;  %v5277_v16 = vld [vmem:[%s6575_s1 + $0x448] sm:$0xff]  ;;  %v2694_v62 = vrot.slane %v4744_v50, 1  ;;  %v5319_v0 = vld [vmem:[%s6575_s1 + $0x598] sm:$0xff] }
  0x89   : > { %1665 = vmatpush.bf16.msrb.mxu1 %v5244_v4  ;;  %2131 = vst [vmem:[#allocation1 + $0x3] ss:$9 sm:$0xff] %v1894_v19  ;;  %v2307_v4 = vsel %vm191_vm0, %v4547_v46, %v2276_v51  ;;  %v5293_v19 = vld [vmem:[%s6575_s1 + $0x4c8] sm:$0xff]  ;;  %v4743_v49 = vld [vmem:[%s5495_s26 + $0x14] sm:$0xf] }
  0x8a   : > { %1823 = vmatpush.bf16.msrb.mxu2 %v5252_v9  ;;  %2133 = vst [vmem:[#allocation1 + $0x4] ss:$9 sm:$0xff] %v6061_v20  ;;  %v2313_v9 = vsel %vm202_vm3, %v4547_v46, %v2276_v51  ;;  %v2304_v20 = vrot.slane %v6148_v7, 1  ;;  %v5320_v46 = vld [vmem:[%s6575_s1 + $0x5a0] sm:$0xff]  ;;  %v2688_v51 = vrot.slane %v4742_v48, 1  ;;  %v2691_v56 = vrot.slane %v4743_v49, 1 }
  0x8b   : > { %1837 = vmatpush.bf16.msrb.mxu3 %v5260_v10  ;;  %1652 = vmatmul.bf16.vlgmr.msrb.gmra.mxu0 %v5989_v43  ;;  %v5295_v43 = vld [vmem:[%s6575_s1 + $0x4d8] sm:$0xff]  ;;  %v2314_v10 = vsel %vm204_vm4, %v2277_v52, %v2278_v53  ;;  %v2693_v58 = vrot.slane %v4743_v49, 3 }
  0x8c   : > { %2062 = vmatpush.bf16.msra.mxu0 %v5275_v5  ;;  %1666 = vmatmul.bf16.vlgmr.msrb.gmra.mxu1 %v5991_v44  ;;  %v2287_v44 = vsel %vm202_vm3, %v4545_v31, %v2270_v34  ;;  %v2310_v5 = vsel %vm195_vm1, %v2277_v52, %v2278_v53  ;;  %v2315_v11 = vsel %vm206_vm5, %v2313_v9, %v2314_v10  ;;  %v5315_v31 = vld [vmem:[%s6575_s1 + $0x578] sm:$0xff]  ;;  %v5306_v34 = vld [vmem:[%s6575_s1 + $0x530] sm:$0xff]  ;;  %v2689_v52 = vrot.slane %v4742_v48, 2 }
  0x8d   : > { %2076 = vmatpush.bf16.msra.mxu1 %v5283_v6  ;;  %1824 = vmatmul.bf16.vlgmr.msrb.gmra.mxu2 %v1716_v17  ;;  %v2289_v47 = vsel %vm206_vm5, %v2287_v44, %v2288_v45  ;;  %v2311_v8 = vsel %vm199_vm2, %v2307_v4, %v2310_v5  ;;  %v2317_v17 = vrot.slane %v2315_v11, 1  ;;  %v5304_v45 = vld [vmem:[%s6575_s1 + $0x520] sm:$0xff]  ;;  %v2712_v5 = vsel %vm191_vm0, %v4743_v49, %v2691_v56 }
  0x8e   : > { %2234 = vmatpush.bf16.msra.mxu2 %v5291_v14  ;;  %1838 = vmatmul.bf16.vlgmr.msrb.gmra.mxu3 %v1717_v18  ;;  %v2291_v57 = vrot.slane %v2289_v47, 1  ;;  %v2324_v13 = vunpack.i.h.s16 %v2311_v8  ;;  %v5285_v18 = vld [vmem:[%s6575_s1 + $0x488] sm:$0xff]  ;;  %v5328_v47 = vld [vmem:[%s6575_s1 + $0x5e0] sm:$0xff]  ;;  %v2706_v4 = vsel %vm204_vm4, %v2689_v52, %v2690_v55  ;;  %v2718_v8 = vsel %vm202_vm3, %v4743_v49, %v2691_v56 }
  0x8f   : > { %2248 = vmatpush.bf16.msra.mxu3 %v5299_v15  ;;  %v5269_v15 = vld [vmem:[%s6575_s1 + $0x408] sm:$0xff] }
  0x90   : > { %2063 = vmatpush.bf16.msra.mxu0 %v5274_v21  ;;  %v2320_v6 = vunpack.i.h.s16 %v2291_v57  ;;  %v4580_v14 = vpack.i.b16 %v2291_v57, %v2318_v1  ;;  %v2692_v57 = vrot.slane %v4743_v49, 2  ;;  %v5327_v1 = vld [vmem:[%s6575_s1 + $0x5d8] sm:$0xff] }
  0x91   : > { %2077 = vmatpush.bf16.msra.mxu1 %v5282_v22  ;;  %v2134_v22 = vld [vmem:[#allocation1] sm:$0xff]  ;;  %v5355_v49 = vld [vmem:[%s6575_s1 + $0x6b8] sm:$0xff] }
  0x92   : > { %2235 = vmatpush.bf16.msra.mxu2 %v5290_v23  ;;  %v2361_v21 = vpack.i.b16 %v2321_v12, %v2320_v6  ;;  %v2135_v23 = vld [vmem:[#allocation1 + $0x9] sm:$0xff]  ;;  %v2715_v7 = vsel %vm195_vm1, %v2692_v57, %v2693_v58  ;;  %v2719_v9 = vsel %vm204_vm4, %v2692_v57, %v2693_v58 }
  0x93   : > { %2249 = vmatpush.bf16.msra.mxu3 %v5298_v24  ;;  %v4581_v24 = vpack.i.b16 %v2317_v17, %v2324_v13  ;;  %2366 = vst [vmem:[#allocation1] ss:$9 sm:$0xff] %v4580_v14  ;;  %v2716_v11 = vsel %vm199_vm2, %v2712_v5, %v2715_v7  ;;  %v2720_v12 = vsel %vm206_vm5, %v2718_v8, %v2719_v9  ;;  %v5354_v57 = vld [vmem:[%s6575_s1 + $0x6b0] sm:$0xff] }
  0x94   : > { %2064 = vmatpush.bf16.msra.mxu0 %v5273_v25  ;;  %v2326_v25 = vunpack.i.h.s16 %v2317_v17  ;;  %2369 = vst [vmem:[#allocation1 + $0x1] ss:$9 sm:$0xff] %v2361_v21  ;;  %v2731_v13 = vsel %vm202_vm3, %v4744_v50, %v2694_v62  ;;  %v2699_v17 = vsel %vm191_vm0, %v4742_v48, %v2688_v51  ;;  %v5362_v58 = vld [vmem:[%s6575_s1 + $0x6f0] sm:$0xff] }
  0x95   : > { %2078 = vmatpush.bf16.msra.mxu1 %v5281_v26  ;;  %v5268_v26 = vld [vmem:[%s6575_s1 + $0x400] sm:$0xff]  ;;  %2372 = vst [vmem:[#allocation1 + $0x2] ss:$9 sm:$0xff] %v2304_v20 }
  0x96   : > { %2236 = vmatpush.bf16.msra.mxu2 %v5289_v27  ;;  %v5276_v27 = vld [vmem:[%s6575_s1 + $0x440] sm:$0xff]  ;;  %2375 = vst [vmem:[#allocation1 + $0x3] ss:$9 sm:$0xff] %v4581_v24 }
  0x97   : > { %2250 = vmatpush.bf16.msra.mxu3 %v5297_v28  ;;  %v5284_v28 = vld [vmem:[%s6575_s1 + $0x480] sm:$0xff]  ;;  %2378 = vst [vmem:[#allocation1 + $0x4] ss:$9 sm:$0xff] %v2326_v25 }
  0x98   : > { %2065 = vmatpush.bf16.msra.mxu0 %v5272_v29  ;;  %v5292_v29 = vld [vmem:[%s6575_s1 + $0x4c0] sm:$0xff] }
  0x99   : > { %2079 = vmatpush.bf16.msra.mxu1 %v5280_v30  ;;  %v5307_v30 = vld [vmem:[%s6575_s1 + $0x538] sm:$0xff] }
  0x9a   : > { %2237 = vmatpush.bf16.msra.mxu2 %v5288_v32  ;;  %v5323_v32 = vld [vmem:[%s6575_s1 + $0x5b8] sm:$0xff] }
  0x9b   : > { %2251 = vmatpush.bf16.msra.mxu3 %v5296_v33  ;;  %v5331_v33 = vld [vmem:[%s6575_s1 + $0x5f8] sm:$0xff] }
  0x9c   : > { %2066 = vmatpush.bf16.msra.mxu0 %v5271_v37  ;;  %v5330_v37 = vld [vmem:[%s6575_s1 + $0x5f0] sm:$0xff] }
  0x9d   : > { %2080 = vmatpush.bf16.msra.mxu1 %v5279_v41  ;;  %v5305_v41 = vld [vmem:[%s6575_s1 + $0x528] sm:$0xff] }
  0x9e   : > { %2238 = vmatpush.bf16.msra.mxu2 %v5287_v42  ;;  %v5313_v42 = vld [vmem:[%s6575_s1 + $0x568] sm:$0xff] }
  0x9f   : > { %2252 = vmatpush.bf16.msra.mxu3 %v5295_v43  ;;  %v6211_v43 = vld [vmem:[#allocation1] sm:$0xff]  ;;  %v6213_v44 = vld [vmem:[#allocation1 + $0x9] sm:$0xff] }
  0xa0   : > { %2067 = vmatpush.bf16.msra.mxu0 %v5270_v60  ;;  %2542 = vst [vmem:[#allocation1] ss:$9 sm:$0xff] %v4580_v14  ;;  %v5311_v60 = vld [vmem:[%s6575_s1 + $0x558] sm:$0xff]  ;;  %v5302_v14 = vld [vmem:[%s6575_s1 + $0x510] sm:$0xff] }
  0xa1   : > { %2081 = vmatpush.bf16.msra.mxu1 %v5278_v61  ;;  %2544 = vst [vmem:[#allocation1 + $0x1] ss:$9 sm:$0xff] %v2361_v21  ;;  %v5326_v21 = vld [vmem:[%s6575_s1 + $0x5d0] sm:$0xff] }
  0xa2   : > { %2239 = vmatpush.bf16.msra.mxu2 %v5286_v2  ;;  %2546 = vst [vmem:[#allocation1 + $0x2] ss:$9 sm:$0xff] %v2304_v20  ;;  %v2696_v2 = vrot.slane %v4744_v50, 3  ;;  %v2725_v20 = vsel %vm191_vm0, %v4744_v50, %v2694_v62  ;;  %v5363_v50 = vld [vmem:[%s6575_s1 + $0x6f8] sm:$0xff]  ;;  %v5345_v62 = vld [vmem:[%s6575_s1 + $0x668] sm:$0xff] }
  0xa3   : > { %2253 = vmatpush.bf16.msra.mxu3 %v5294_v3  ;;  %2548 = vst [vmem:[#allocation1 + $0x3] ss:$9 sm:$0xff] %v4581_v24  ;;  %v2705_v3 = vsel %vm202_vm3, %v4742_v48, %v2688_v51  ;;  %v5347_v48 = vld [vmem:[%s6575_s1 + $0x678] sm:$0xff] }
  0xa4   : > { %2068 = vmatpush.bf16.msra.mxu0 %v5269_v15  ;;  %2550 = vst [vmem:[#allocation1 + $0x4] ss:$9 sm:$0xff] %v2326_v25  ;;  %v2707_v6 = vsel %vm206_vm5, %v2705_v3, %v2706_v4  ;;  %v5310_v15 = vld [vmem:[%s6575_s1 + $0x550] sm:$0xff]  ;;  %v2728_v25 = vsel %vm195_vm1, %v2695_v63, %v2696_v2  ;;  %v5336_v4 = vld [vmem:[%s6575_s1 + $0x620] sm:$0xff] }
  0xa5   : > { %2082 = vmatpush.bf16.msra.mxu1 %v5277_v16  ;;  %v2709_v10 = vrot.slane %v2707_v6, 1  ;;  %v5318_v16 = vld [vmem:[%s6575_s1 + $0x590] sm:$0xff] }
  0xa6   : > { %2240 = vmatpush.bf16.msra.mxu2 %v5285_v18  ;;  %v2702_v18 = vsel %vm195_vm1, %v2689_v52, %v2690_v55  ;;  %v5346_v55 = vld [vmem:[%s6575_s1 + $0x670] sm:$0xff] }
  0xa7   : > { %2254 = vmatpush.bf16.msra.mxu3 %v5293_v19  ;;  %v2722_v19 = vrot.slane %v2720_v12, 1  ;;  %v2703_v24 = vsel %vm199_vm2, %v2699_v17, %v2702_v18  ;;  %v4941_v12 = vld [vmem:[%s5495_s26 + $0x1c] sm:$0xf] }
  0xa8   : > { %2069 = vmatpush.bf16.msra.mxu0 %v5268_v26  ;;  %v438_v53 = vpop.f32.mrf.mxu0  ;;  %v2732_v26 = vsel %vm204_vm4, %v2695_v63, %v2696_v2 }
  0xa9   : > { %2083 = vmatpush.bf16.msra.mxu1 %v5276_v27  ;;  %v452_v54 = vpop.f32.mrf.mxu1  ;;  %v2740_v27 = vunpack.i.h.s16 %v2716_v11 }
  0xaa   : > { %2241 = vmatpush.bf16.msra.mxu2 %v5284_v28  ;;  %v6242_v61 = vadd.f32 %v452_v54, %v438_v53  ;;  %v6279_v28 = vsel %vm199_vm2, %v2725_v20, %v2728_v25  ;;  %v5338_v54 = vld [vmem:[%s6575_s1 + $0x630] sm:$0xff]  ;;  %v3111_v20 = vrot.slane %v4941_v12, 1 }
  0xab   : > { %2255 = vmatpush.bf16.msra.mxu3 %v5292_v29  ;;  %2070 = vmatmul.bf16.vlgmr.msra.gmra.mxu0 %v6106_v38  ;;  %v5321_v38 = vld [vmem:[%s6575_s1 + $0x5a8] sm:$0xff]  ;;  %v2733_v29 = vsel %vm206_vm5, %v2731_v13, %v2732_v26 }
  0xac   : > { %2479 = vmatpush.bf16.msrb.mxu0 %v5307_v30  ;;  %2084 = vmatmul.bf16.vlgmr.msra.gmra.mxu1 %v6108_v40  ;;  %v5329_v40 = vld [vmem:[%s6575_s1 + $0x5e8] sm:$0xff]  ;;  %v4777_v30 = vpack.i.b16 %v2716_v11, %v2709_v10  ;;  %v5344_v10 = vld [vmem:[%s6575_s1 + $0x660] sm:$0xff]  ;;  %v4940_v11 = vld [vmem:[%s5495_s26 + $0x14] sm:$0xf] }
  0xad   : > { %2493 = vmatpush.bf16.msrb.mxu1 %v5315_v31  ;;  %2242 = vmatmul.bf16.vlgmr.msra.gmra.mxu2 %v2134_v22  ;;  %v2551_v22 = vld [vmem:[#allocation1] sm:$0xff]  ;;  %v3109_v17 = vrot.slane %v4940_v11, 2  ;;  %v3110_v18 = vrot.slane %v4940_v11, 3 }
  0xae   : > { %2651 = vmatpush.bf16.msrb.mxu2 %v5323_v32  ;;  %2256 = vmatmul.bf16.vlgmr.msra.gmra.mxu3 %v2135_v23  ;;  %v2552_v23 = vld [vmem:[#allocation1 + $0x9] sm:$0xff] }
  0xaf   : > { %2665 = vmatpush.bf16.msrb.mxu3 %v5331_v33  ;;  %2784 = vst [vmem:[#allocation1] ss:$9 sm:$0xff] %v2703_v24  ;;  %v2735_v33 = vrot.slane %v2733_v29, 1 }
  0xb0   : > { %2480 = vmatpush.bf16.msrb.mxu0 %v5306_v34  ;;  %v440_v31 = vpop.f32.mrf.mxu0  ;;  %v4778_v34 = vpack.i.b16 %v2722_v19, %v2740_v27  ;;  %2793 = vst [vmem:[#allocation1 + $0x3] ss:$9 sm:$0xff] %v6279_v28  ;;  %v5335_v27 = vld [vmem:[%s6575_s1 + $0x618] sm:$0xff] }
  0xb1   : > { %2494 = vmatpush.bf16.msrb.mxu1 %v5314_v35  ;;  %v454_v32 = vpop.f32.mrf.mxu1  ;;  %v5301_v35 = vld [vmem:[%s6575_s1 + $0x508] sm:$0xff]  ;;  %2787 = vst [vmem:[#allocation1 + $0x1] ss:$9 sm:$0xff] %v4777_v30 }
  0xb2   : > { %2652 = vmatpush.bf16.msrb.mxu2 %v5322_v36  ;;  %v5309_v36 = vld [vmem:[%s6575_s1 + $0x548] sm:$0xff]  ;;  %2790 = vst [vmem:[#allocation1 + $0x2] ss:$9 sm:$0xff] %v4778_v34 }
  0xb3   : > { %2666 = vmatpush.bf16.msrb.mxu3 %v5330_v37  ;;  %v455_v37 = vadd.f32 %v454_v32, %v440_v31  ;;  %v5351_v32 = vld [vmem:[%s6575_s1 + $0x698] sm:$0xff] }
  0xb4   : > { %2481 = vmatpush.bf16.msrb.mxu0 %v5305_v41  ;;  %v5317_v41 = vld [vmem:[%s6575_s1 + $0x588] sm:$0xff]  ;;  %v575_v51 = vpop.f32.mrf.mxu2 }
  0xb5   : > { %2495 = vmatpush.bf16.msrb.mxu1 %v5313_v42  ;;  %v5325_v42 = vld [vmem:[%s6575_s1 + $0x5c8] sm:$0xff]  ;;  %v589_v52 = vpop.f32.mrf.mxu3  ;;  %v576_v53 = vadd.f32 %v575_v51, %v6242_v61 }
  0xb6   : > { %2653 = vmatpush.bf16.msrb.mxu2 %v5321_v38  ;;  %v2744_v38 = vunpack.i.l.s16 %v2735_v33  ;;  %v5337_v61 = vld [vmem:[%s6575_s1 + $0x628] sm:$0xff]  ;;  %v5359_v33 = vld [vmem:[%s6575_s1 + $0x6d8] sm:$0xff] }
  0xb7   : > { %2667 = vmatpush.bf16.msrb.mxu3 %v5329_v40  ;;  %v5300_v40 = vld [vmem:[%s6575_s1 + $0x500] sm:$0xff]  ;;  %v590_v56 = vadd.f32 %v589_v52, %v576_v53  ;;  %v5342_v52 = vld [vmem:[%s6575_s1 + $0x650] sm:$0xff] }
  0xb8   : > { %2482 = vmatpush.bf16.msrb.mxu0 %v5304_v45  ;;  %2796 = vst [vmem:[#allocation1 + $0x4] ss:$9 sm:$0xff] %v2744_v38  ;;  %v5308_v45 = vld [vmem:[%s6575_s1 + $0x540] sm:$0xff] }
  0xb9   : > { %2496 = vmatpush.bf16.msrb.mxu1 %v5312_v39  ;;  %v5316_v39 = vld [vmem:[%s6575_s1 + $0x580] sm:$0xff] }
  0xba   : > { %2654 = vmatpush.bf16.msrb.mxu2 %v5320_v46  ;;  %v5324_v46 = vld [vmem:[%s6575_s1 + $0x5c0] sm:$0xff] }
  0xbb   : > { %2668 = vmatpush.bf16.msrb.mxu3 %v5328_v47  ;;  %v5339_v47 = vld [vmem:[%s6575_s1 + $0x638] sm:$0xff] }
  0xbc   : > { %2483 = vmatpush.bf16.msrb.mxu0 %v5303_v59  ;;  %v577_v63 = vpop.f32.mrf.mxu2 }
  0xbd   : > { %2497 = vmatpush.bf16.msrb.mxu1 %v5311_v60  ;;  %v591_v8 = vpop.f32.mrf.mxu3 }
  0xbe   : > { %2655 = vmatpush.bf16.msrb.mxu2 %v5319_v0  ;;  %v4939_v0 = vld [vmem:[%s5495_s26 + $0xc] sm:$0xf] }
  0xbf   : > { %2669 = vmatpush.bf16.msrb.mxu3 %v5327_v1  ;;  %v6332_v59 = vld [vmem:[#allocation1] sm:$0xff]  ;;  %v6336_v60 = vld [vmem:[#allocation1 + $0x9] sm:$0xff]  ;;  %v578_v1 = vadd.f32 %v577_v63, %v455_v37  ;;  %v3105_v5 = vrot.slane %v4939_v0, 1  ;;  %v3106_v6 = vrot.slane %v4939_v0, 2  ;;  %v3107_v7 = vrot.slane %v4939_v0, 3 }
  0xc0   : > { %2484 = vmatpush.bf16.msrb.mxu0 %v5302_v14  ;;  %2960 = vst [vmem:[#allocation1] ss:$9 sm:$0xff] %v2703_v24  ;;  %v5352_v14 = vld [vmem:[%s6575_s1 + $0x6a0] sm:$0xff]  ;;  %v3136_v37 = vsel %vm204_vm4, %v3109_v17, %v3110_v18 }
  0xc1   : > { %2498 = vmatpush.bf16.msrb.mxu1 %v5310_v15  ;;  %2962 = vst [vmem:[#allocation1 + $0x1] ss:$9 sm:$0xff] %v4777_v30  ;;  %v592_v13 = vadd.f32 %v591_v8, %v578_v1  ;;  %v5360_v15 = vld [vmem:[%s6575_s1 + $0x6e0] sm:$0xff]  ;;  %v3119_v24 = vsel %vm195_vm1, %v3106_v6, %v3107_v7  ;;  %v3122_v25 = vsel %vm202_vm3, %v4939_v0, %v3105_v5 }
  0xc2   : > { %2656 = vmatpush.bf16.msrb.mxu2 %v5318_v16  ;;  %2964 = vst [vmem:[#allocation1 + $0x2] ss:$9 sm:$0xff] %v4778_v34  ;;  %v3108_v16 = vrot.slane %v4940_v11, 1  ;;  %v3123_v26 = vsel %vm204_vm4, %v3106_v6, %v3107_v7  ;;  %v5349_v6 = vld [vmem:[%s6575_s1 + $0x688] sm:$0xff] }
  0xc3   : > { %2670 = vmatpush.bf16.msrb.mxu3 %v5326_v21  ;;  %2966 = vst [vmem:[#allocation1 + $0x3] ss:$9 sm:$0xff] %v6279_v28  ;;  %v3112_v21 = vrot.slane %v4941_v12, 2  ;;  %v5343_v28 = vld [vmem:[%s6575_s1 + $0x658] sm:$0xff]  ;;  %v3124_v30 = vsel %vm206_vm5, %v3122_v25, %v3123_v26  ;;  %v5357_v7 = vld [vmem:[%s6575_s1 + $0x6c8] sm:$0xff] }
  0xc4   : > { %2485 = vmatpush.bf16.msrb.mxu0 %v5301_v35  ;;  %2968 = vst [vmem:[#allocation1 + $0x4] ss:$9 sm:$0xff] %v2744_v38  ;;  %v3129_v31 = vsel %vm191_vm0, %v4940_v11, %v3108_v16  ;;  %v3126_v34 = vrot.slane %v3124_v30, 1  ;;  %v3132_v35 = vsel %vm195_vm1, %v3109_v17, %v3110_v18  ;;  %v3142_v38 = vsel %vm191_vm0, %v4941_v12, %v3111_v20  ;;  %v5379_v17 = vld [vmem:[%s6575_s1 + $0x778] sm:$0xff]  ;;  %v5369_v30 = vld [vmem:[%s6575_s1 + $0x728] sm:$0xff] }
  0xc5   : > { %2499 = vmatpush.bf16.msrb.mxu1 %v5309_v36  ;;  %v3135_v36 = vsel %vm202_vm3, %v4940_v11, %v3108_v16  ;;  %v5332_v11 = vld [vmem:[%s6575_s1 + $0x600] sm:$0xff]  ;;  %v5371_v16 = vld [vmem:[%s6575_s1 + $0x738] sm:$0xff] }
  0xc6   : > { %2657 = vmatpush.bf16.msrb.mxu2 %v5317_v41  ;;  %v3133_v41 = vsel %vm199_vm2, %v3129_v31, %v3132_v35  ;;  %v5387_v18 = vld [vmem:[%s6575_s1 + $0x7b8] sm:$0xff]  ;;  %v5393_v31 = vld [vmem:[%s6575_s1 + $0x7e8] sm:$0xff]  ;;  %v5392_v35 = vld [vmem:[%s6575_s1 + $0x7e0] sm:$0xff] }
  0xc7   : > { %2671 = vmatpush.bf16.msrb.mxu3 %v5325_v42  ;;  %v6392_v42 = vsel %vm206_vm5, %v3135_v36, %v3136_v37  ;;  %v5367_v36 = vld [vmem:[%s6575_s1 + $0x718] sm:$0xff] }
  0xc8   : > { %2486 = vmatpush.bf16.msrb.mxu0 %v5300_v40  ;;  %v818_v2 = vpop.f32.mrf.mxu0  ;;  %v5375_v37 = vld [vmem:[%s6575_s1 + $0x758] sm:$0xff] }
  0xc9   : > { %2500 = vmatpush.bf16.msrb.mxu1 %v5308_v45  ;;  %v832_v3 = vpop.f32.mrf.mxu1 }
  0xca   : > { %2658 = vmatpush.bf16.msrb.mxu2 %v5316_v39  ;;  %v833_v9 = vadd.f32 %v832_v3, %v818_v2 }
  0xcb   : > { %2672 = vmatpush.bf16.msrb.mxu3 %v5324_v46  ;;  %2487 = vmatmul.bf16.vlgmr.msrb.gmra.mxu0 %v6211_v43  ;;  %v5353_v43 = vld [vmem:[%s6575_s1 + $0x6a8] sm:$0xff]  ;;  %v5334_v46 = vld [vmem:[%s6575_s1 + $0x610] sm:$0xff]  ;;  %v6406_v53 = vld [vmem:[#allocation1] sm:$0xff] }
  0xcc   : > { %2897 = vmatpush.bf16.msra.mxu0 %v5339_v47  ;;  %2501 = vmatmul.bf16.vlgmr.msrb.gmra.mxu1 %v6213_v44  ;;  %v5361_v44 = vld [vmem:[%s6575_s1 + $0x6e8] sm:$0xff]  ;;  %v6366_v19 = vadd.f32 %v833_v9, %v590_v56  ;;  %v3139_v47 = vrot.slane %v6392_v42, 1  ;;  %v5391_v42 = vld [vmem:[%s6575_s1 + $0x7d8] sm:$0xff] }
  0xcd   : > { %2911 = vmatpush.bf16.msra.mxu1 %v5347_v48  ;;  %2659 = vmatmul.bf16.vlgmr.msrb.gmra.mxu2 %v2551_v22  ;;  %v3113_v22 = vrot.slane %v4941_v12, 3 }
  0xce   : > { %3069 = vmatpush.bf16.msra.mxu2 %v5355_v49  ;;  %2673 = vmatmul.bf16.vlgmr.msrb.gmra.mxu3 %v2552_v23  ;;  %v3116_v23 = vsel %vm191_vm0, %v4939_v0, %v3105_v5  ;;  %v3148_v49 = vsel %vm202_vm3, %v4941_v12, %v3111_v20  ;;  %v5341_v5 = vld [vmem:[%s6575_s1 + $0x648] sm:$0xff]  ;;  %v5340_v12 = vld [vmem:[%s6575_s1 + $0x640] sm:$0xff]  ;;  %v5370_v20 = vld [vmem:[%s6575_s1 + $0x730] sm:$0xff] }
  0xcf   : > { %3083 = vmatpush.bf16.msra.mxu3 %v5363_v50  ;;  %v3120_v29 = vsel %vm199_vm2, %v3116_v23, %v3119_v24  ;;  %v3145_v40 = vsel %vm195_vm1, %v3112_v21, %v3113_v22  ;;  %v3149_v50 = vsel %vm204_vm4, %v3112_v21, %v3113_v22  ;;  %v5378_v23 = vld [vmem:[%s6575_s1 + $0x770] sm:$0xff] }
  0xd0   : > { %2898 = vmatpush.bf16.msra.mxu0 %v5338_v54  ;;  %v820_v45 = vpop.f32.mrf.mxu0  ;;  %v3146_v48 = vsel %vm199_vm2, %v3142_v38, %v3145_v40  ;;  %v6408_v54 = vld [vmem:[#allocation1 + $0x9] sm:$0xff]  ;;  %v3153_v56 = vunpack.i.h.s16 %v3120_v29  ;;  %v990_v8 = vpop.f32.mrf.mxu2 }
  0xd1   : > { %2912 = vmatpush.bf16.msra.mxu1 %v5346_v55  ;;  %v834_v39 = vpop.f32.mrf.mxu1  ;;  %v3150_v55 = vsel %vm206_vm5, %v3148_v49, %v3149_v50  ;;  %3207 = vst [vmem:[#allocation1 + $0x2] ss:$9 sm:$0xff] %v3139_v47  ;;  %v1004_v9 = vpop.f32.mrf.mxu3  ;;  %v5366_v38 = vld [vmem:[%s6575_s1 + $0x710] sm:$0xff]  ;;  %v5389_v49 = vld [vmem:[%s6575_s1 + $0x7c8] sm:$0xff]  ;;  %v5364_v50 = vld [vmem:[%s6575_s1 + $0x700] sm:$0xff] }
  0xd2   : > { %3070 = vmatpush.bf16.msra.mxu2 %v5354_v57  ;;  %v835_v51 = vadd.f32 %v834_v39, %v820_v45  ;;  %v3155_v57 = vunpack.i.h.s16 %v3126_v34  ;;  %v4974_v0 = vpack.i.b16 %v3126_v34, %v3153_v56  ;;  %v5384_v34 = vld [vmem:[%s6575_s1 + $0x7a0] sm:$0xff]  ;;  %v5374_v40 = vld [vmem:[%s6575_s1 + $0x750] sm:$0xff] }
  0xd3   : > { %3084 = vmatpush.bf16.msra.mxu3 %v5362_v58  ;;  %v5350_v58 = vld [vmem:[%s6575_s1 + $0x690] sm:$0xff] }
  0xd4   : > { %2899 = vmatpush.bf16.msra.mxu0 %v5337_v61  ;;  %v5358_v61 = vld [vmem:[%s6575_s1 + $0x6d0] sm:$0xff]  ;;  %v838_v63 = vadd.f32 %v835_v51, %v592_v13  ;;  %3201 = vst [vmem:[#allocation1] ss:$9 sm:$0xff] %v4974_v0  ;;  %v5372_v51 = vld [vmem:[%s6575_s1 + $0x740] sm:$0xff] }
  0xd5   : > { %2913 = vmatpush.bf16.msra.mxu1 %v5345_v62  ;;  %v3152_v62 = vrot.slane %v3150_v55, 1  ;;  %v5382_v45 = vld [vmem:[%s6575_s1 + $0x790] sm:$0xff] }
  0xd6   : > { %3071 = vmatpush.bf16.msra.mxu2 %v5353_v43  ;;  %v3156_v43 = vunpack.i.h.s16 %v3133_v41  ;;  %v5383_v41 = vld [vmem:[%s6575_s1 + $0x798] sm:$0xff]  ;;  %v5390_v39 = vld [vmem:[%s6575_s1 + $0x7d0] sm:$0xff] }
  0xd7   : > { %3085 = vmatpush.bf16.msra.mxu3 %v5361_v44  ;;  %v3159_v44 = vunpack.i.h.s16 %v3146_v48  ;;  %v6419_v1 = vunpack.i.h.s16 %v3152_v62  ;;  %v5381_v48 = vld [vmem:[%s6575_s1 + $0x788] sm:$0xff] }
  0xd8   : > { %2900 = vmatpush.bf16.msra.mxu0 %v5336_v4  ;;  %v3196_v2 = vpack.i.b16 %v3156_v43, %v3155_v57  ;;  %v5333_v4 = vld [vmem:[%s6575_s1 + $0x608] sm:$0xff]  ;;  %v992_v21 = vpop.f32.mrf.mxu2 }
  0xd9   : > { %2914 = vmatpush.bf16.msra.mxu1 %v5344_v10  ;;  %v4975_v3 = vpack.i.b16 %v3152_v62, %v3159_v44  ;;  %v1005_v10 = vadd.f32 %v1004_v9, %v990_v8  ;;  %3213 = vst [vmem:[#allocation1 + $0x4] ss:$9 sm:$0xff] %v6419_v1  ;;  %v1006_v22 = vpop.f32.mrf.mxu3 }
  0xda   : > { %3072 = vmatpush.bf16.msra.mxu2 %v5352_v14  ;;  %3204 = vst [vmem:[#allocation1 + $0x1] ss:$9 sm:$0xff] %v3196_v2  ;;  %v5348_v14 = vld [vmem:[%s6575_s1 + $0x680] sm:$0xff]  ;;  %v1007_v26 = vadd.f32 %v1006_v22, %v992_v21 }
  0xdb   : > { %3086 = vmatpush.bf16.msra.mxu3 %v5360_v15  ;;  %3210 = vst [vmem:[#allocation1 + $0x3] ss:$9 sm:$0xff] %v4975_v3  ;;  %v6441_v13 = vadd.f32 %v1005_v10, %v6366_v19  ;;  %v5356_v15 = vld [vmem:[%s6575_s1 + $0x6c0] sm:$0xff]  ;;  %v5395_v19 = vld [vmem:[%s6575_s1 + $0x7f8] sm:$0xff] }
  0xdc   : > { %2901 = vmatpush.bf16.msra.mxu0 %v5335_v27  ;;  %v5386_v27 = vld [vmem:[%s6575_s1 + $0x7b0] sm:$0xff]  ;;  %v6479_v29 = vadd.f32 %v1007_v26, %v838_v63 }
  0xdd   : > { %2915 = vmatpush.bf16.msra.mxu1 %v5343_v28  ;;  %v5394_v28 = vld [vmem:[%s6575_s1 + $0x7f0] sm:$0xff] }
  0xde   : > { %3073 = vmatpush.bf16.msra.mxu2 %v5351_v32  ;;  %v5368_v32 = vld [vmem:[%s6575_s1 + $0x720] sm:$0xff] }
  0xdf   : > { %3087 = vmatpush.bf16.msra.mxu3 %v5359_v33  ;;  %v5376_v33 = vld [vmem:[%s6575_s1 + $0x760] sm:$0xff] }
  0xe0   : > { %2902 = vmatpush.bf16.msra.mxu0 %v5334_v46  ;;  %v5365_v46 = vld [vmem:[%s6575_s1 + $0x708] sm:$0xff] }
  0xe1   : > { %2916 = vmatpush.bf16.msra.mxu1 %v5342_v52  ;;  %v5380_v52 = vld [vmem:[%s6575_s1 + $0x780] sm:$0xff] }
  0xe2   : > { %3074 = vmatpush.bf16.msra.mxu2 %v5350_v58  ;;  %v6467_v24 = vld [vmem:[#allocation1] sm:$0xff]  ;;  %v6469_v25 = vld [vmem:[#allocation1 + $0x9] sm:$0xff] }
  0xe3   : > { %3088 = vmatpush.bf16.msra.mxu3 %v5358_v61  ;;  %3377 = vst [vmem:[#allocation1] ss:$9 sm:$0xff] %v4974_v0 }
  0xe4   : > { %2903 = vmatpush.bf16.msra.mxu0 %v5333_v4  ;;  %3379 = vst [vmem:[#allocation1 + $0x1] ss:$9 sm:$0xff] %v3196_v2 }
  0xe5   : > { %2917 = vmatpush.bf16.msra.mxu1 %v5341_v5  ;;  %3381 = vst [vmem:[#allocation1 + $0x2] ss:$9 sm:$0xff] %v3139_v47  ;;  %v5373_v47 = vld [vmem:[%s6575_s1 + $0x748] sm:$0xff] }
  0xe6   : > { %3075 = vmatpush.bf16.msra.mxu2 %v5349_v6  ;;  %3383 = vst [vmem:[#allocation1 + $0x3] ss:$9 sm:$0xff] %v4975_v3 }
  0xe7   : > { %3089 = vmatpush.bf16.msra.mxu3 %v5357_v7  ;;  %3385 = vst [vmem:[#allocation1 + $0x4] ss:$9 sm:$0xff] %v6419_v1 }
  0xe8   : > { %2904 = vmatpush.bf16.msra.mxu0 %v5332_v11  ;;  %v1236_v56 = vpop.f32.mrf.mxu0 }
  0xe9   : > { %2918 = vmatpush.bf16.msra.mxu1 %v5340_v12  ;;  %v1250_v57 = vpop.f32.mrf.mxu1 }
  0xea   : > { %3076 = vmatpush.bf16.msra.mxu2 %v5348_v14 }
  0xeb   : > { %3090 = vmatpush.bf16.msra.mxu3 %v5356_v15  ;;  %2905 = vmatmul.bf16.vlgmr.msra.gmra.mxu0 %v6332_v59  ;;  %v5377_v59 = vld [vmem:[%s6575_s1 + $0x768] sm:$0xff] }
  0xec   : > { %3314 = vmatpush.bf16.msrb.mxu0 %v5371_v16  ;;  %2919 = vmatmul.bf16.vlgmr.msra.gmra.mxu1 %v6336_v60  ;;  %v5385_v60 = vld [vmem:[%s6575_s1 + $0x7a8] sm:$0xff] }
  0xed   : > { %3328 = vmatpush.bf16.msrb.mxu1 %v5379_v17  ;;  %3077 = vmatmul.bf16.vlgmr.msra.gmra.mxu2 %v6406_v53  ;;  %v5388_v53 = vld [vmem:[%s6575_s1 + $0x7c0] sm:$0xff] }
  0xee   : > { %3486 = vmatpush.bf16.msrb.mxu2 %v5387_v18  ;;  %3091 = vmatmul.bf16.vlgmr.msra.gmra.mxu3 %v6408_v54  ;;  %v3386_v54 = vld [vmem:[#allocation1] sm:$0xff]  ;;  %v3387_v55 = vld [vmem:[#allocation1 + $0x9] sm:$0xff] }
  0xef   : > { %3500 = vmatpush.bf16.msrb.mxu3 %v5395_v19 }
  0xf0   : > { %3315 = vmatpush.bf16.msrb.mxu0 %v5370_v20  ;;  %v1408_v58 = vpop.f32.mrf.mxu2  ;;  %v1238_v62 = vpop.f32.mrf.mxu0 }
  0xf1   : > { %3329 = vmatpush.bf16.msrb.mxu1 %v5378_v23  ;;  %v1422_v61 = vpop.f32.mrf.mxu3  ;;  %v1252_v43 = vpop.f32.mrf.mxu1 }
  0xf2   : > { %3487 = vmatpush.bf16.msrb.mxu2 %v5386_v27  ;;  %v1251_v27 = vadd.f32 %v1250_v57, %v1236_v56 }
  0xf3   : > { %3501 = vmatpush.bf16.msrb.mxu3 %v5394_v28  ;;  %v1423_v28 = vadd.f32 %v1422_v61, %v1408_v58 }
  0xf4   : > { %3316 = vmatpush.bf16.msrb.mxu0 %v5369_v30  ;;  %v1255_v30 = vadd.f32 %v1251_v27, %v6441_v13 }
  0xf5   : > { %3330 = vmatpush.bf16.msrb.mxu1 %v5377_v59 }
  0xf6   : > { %3488 = vmatpush.bf16.msrb.mxu2 %v5385_v60 }
  0xf7   : > { %3502 = vmatpush.bf16.msrb.mxu3 %v5393_v31 }
  0xf8   : > { %3317 = vmatpush.bf16.msrb.mxu0 %v5368_v32  ;;  %v1410_v44 = vpop.f32.mrf.mxu2  ;;  %v1427_v32 = vadd.f32 %v1423_v28, %v1255_v30 }
  0xf9   : > { %3331 = vmatpush.bf16.msrb.mxu1 %v5376_v33  ;;  %v1424_v63 = vpop.f32.mrf.mxu3 }
  0xfa   : > { %3489 = vmatpush.bf16.msrb.mxu2 %v5384_v34  ;;  %v1253_v34 = vadd.f32 %v1252_v43, %v1238_v62 }
  0xfb   : > { %3503 = vmatpush.bf16.msrb.mxu3 %v5392_v35 }
  0xfc   : > { %3318 = vmatpush.bf16.msrb.mxu0 %v5367_v36 }
  0xfd   : > { %3332 = vmatpush.bf16.msrb.mxu1 %v5375_v37 }
  0xfe   : > { %3490 = vmatpush.bf16.msrb.mxu2 %v5383_v41 }
  0xff   : > { %3504 = vmatpush.bf16.msrb.mxu3 %v5391_v42  ;;  %v1425_v42 = vadd.f32 %v1424_v63, %v1410_v44 }
 0x100   : > { %3319 = vmatpush.bf16.msrb.mxu0 %v5366_v38 }
 0x101   : > { %3333 = vmatpush.bf16.msrb.mxu1 %v5374_v40 }
 0x102   : > { %3491 = vmatpush.bf16.msrb.mxu2 %v5382_v45  ;;  %v1256_v45 = vadd.f32 %v1253_v34, %v6479_v29 }
 0x103   : > { %3505 = vmatpush.bf16.msrb.mxu3 %v5390_v39 }
 0x104   : > { %3320 = vmatpush.bf16.msrb.mxu0 %v5365_v46 }
 0x105   : > { %3334 = vmatpush.bf16.msrb.mxu1 %v5373_v47 }
 0x106   : > { %3492 = vmatpush.bf16.msrb.mxu2 %v5381_v48  ;;  %v1428_v48 = vadd.f32 %v1425_v42, %v1256_v45 }
 0x107   : > { %3506 = vmatpush.bf16.msrb.mxu3 %v5389_v49 }
 0x108   : > { %3321 = vmatpush.bf16.msrb.mxu0 %v5364_v50  ;;  %v1653_v0 = vpop.f32.mrf.mxu0 }
 0x109   : > { %3335 = vmatpush.bf16.msrb.mxu1 %v5372_v51  ;;  %v1667_v1 = vpop.f32.mrf.mxu1 }
 0x10a   : > { %3493 = vmatpush.bf16.msrb.mxu2 %v5380_v52  ;;  %v1668_v59 = vadd.f32 %v1667_v1, %v1653_v0 }
 0x10b   : > { %3507 = vmatpush.bf16.msrb.mxu3 %v5388_v53  ;;  %3322 = vmatmul.bf16.vlgmr.msrb.gmra.mxu0 %v6467_v24 }
 0x10c   : > { %3336 = vmatmul.bf16.vlgmr.msrb.gmra.mxu1 %v6469_v25  ;;  %v1672_v35 = vadd.f32 %v1668_v59, %v1427_v32 }
 0x10d   : > { %3494 = vmatmul.bf16.vlgmr.msrb.gmra.mxu2 %v3386_v54 }
 0x10e   : > { %3508 = vmatmul.bf16.vlgmr.msrb.gmra.mxu3 %v3387_v55 }
 0x110   : > { %v1825_v2 = vpop.f32.mrf.mxu2  ;;  %v1655_v4 = vpop.f32.mrf.mxu0 }
 0x111   : > { %v1839_v3 = vpop.f32.mrf.mxu3  ;;  %v1669_v5 = vpop.f32.mrf.mxu1 }
 0x112   : > { %v1840_v33 = vadd.f32 %v1839_v3, %v1825_v2  ;;  %v1670_v39 = vadd.f32 %v1669_v5, %v1655_v4 }
 0x114   : > { %v1844_v38 = vadd.f32 %v1840_v33, %v1672_v35  ;;  %v1673_v53 = vadd.f32 %v1670_v39, %v1428_v48 }
 0x118   : > { %v1827_v6 = vpop.f32.mrf.mxu2 }
 0x119   : > { %v1841_v7 = vpop.f32.mrf.mxu3 }
 0x11a   : > { %v1842_v13 = vadd.f32 %v1841_v7, %v1827_v6 }
 0x11c   : > { %v1845_v61 = vadd.f32 %v1842_v13, %v1673_v53 }
 0x128   : > { %v2071_v8 = vpop.f32.mrf.mxu0 }
 0x129   : > { %v2085_v9 = vpop.f32.mrf.mxu1 }
 0x12a   : > { %v2086_v36 = vadd.f32 %v2085_v9, %v2071_v8 }
 0x12c   : > { %v2090_v46 = vadd.f32 %v2086_v36, %v1844_v38 }
 0x130   : > { %v2243_v10 = vpop.f32.mrf.mxu2  ;;  %v2073_v12 = vpop.f32.mrf.mxu0 }
 0x131   : > { %v2257_v11 = vpop.f32.mrf.mxu3  ;;  %v2087_v14 = vpop.f32.mrf.mxu1 }
 0x132   : > { %v2258_v40 = vadd.f32 %v2257_v11, %v2243_v10  ;;  %v2088_v54 = vadd.f32 %v2087_v14, %v2073_v12  ;;  %v5404_v11 = vld [vmem:[%s6576_s2] ss:$0 sm:$0xff] }
 0x134   : > { %v2262_v49 = vadd.f32 %v2258_v40, %v2090_v46  ;;  %v2091_v44 = vadd.f32 %v2088_v54, %v1845_v61 }
 0x138   : > { %v2245_v15 = vpop.f32.mrf.mxu2 }
 0x139   : > { %v2259_v16 = vpop.f32.mrf.mxu3 }
 0x13a   : > { %v2260_v62 = vadd.f32 %v2259_v16, %v2245_v15 }
 0x13c   : > { %v2263_v2 = vadd.f32 %v2260_v62, %v2091_v44 }
 0x148   : > { %v2488_v17 = vpop.f32.mrf.mxu0 }
 0x149   : > { %v2502_v18 = vpop.f32.mrf.mxu1 }
 0x14a   : > { %v2503_v47 = vadd.f32 %v2502_v18, %v2488_v17 }
 0x14c   : > { %v2507_v55 = vadd.f32 %v2503_v47, %v2262_v49 }
 0x150   : > { %v2660_v19 = vpop.f32.mrf.mxu2  ;;  %v2490_v21 = vpop.f32.mrf.mxu0 }
 0x151   : > { %v2674_v20 = vpop.f32.mrf.mxu3  ;;  %v2504_v22 = vpop.f32.mrf.mxu1 }
 0x152   : > { %v2675_v50 = vadd.f32 %v2674_v20, %v2660_v19  ;;  %v2505_v63 = vadd.f32 %v2504_v22, %v2490_v21 }
 0x154   : > { %v2679_v29 = vadd.f32 %v2675_v50, %v2507_v55  ;;  %v2508_v7 = vadd.f32 %v2505_v63, %v2263_v2 }
 0x158   : > { %v2662_v23 = vpop.f32.mrf.mxu2 }
 0x159   : > { %v2676_v24 = vpop.f32.mrf.mxu3 }
 0x15a   : > { %v2677_v3 = vadd.f32 %v2676_v24, %v2662_v23 }
 0x15c   : > { %v2680_v15 = vadd.f32 %v2677_v3, %v2508_v7 }
 0x168   : > { %v2906_v25 = vpop.f32.mrf.mxu0 }
 0x169   : > { %v2920_v26 = vpop.f32.mrf.mxu1 }
 0x16a   : > { %v2921_v56 = vadd.f32 %v2920_v26, %v2906_v25 }
 0x16c   : > { %v2925_v0 = vadd.f32 %v2921_v56, %v2679_v29 }
 0x170   : > { %v3078_v60 = vpop.f32.mrf.mxu2  ;;  %v2908_v37 = vpop.f32.mrf.mxu0 }
 0x171   : > { %v3092_v31 = vpop.f32.mrf.mxu3  ;;  %v2922_v41 = vpop.f32.mrf.mxu1 }
 0x172   : > { %v3093_v43 = vadd.f32 %v3092_v31, %v3078_v60  ;;  %v2923_v8 = vadd.f32 %v2922_v41, %v2908_v37  ;;  %v3530_v60 = vld [vmem:[%s175_s20 + $0x4] sm:$0x1] }
 0x174   : > { %v3097_v4 = vadd.f32 %v3093_v43, %v2925_v0  ;;  %v2926_v18 = vadd.f32 %v2923_v8, %v2680_v15 }
 0x178   : > { %v3080_v51 = vpop.f32.mrf.mxu2 }
 0x179   : > { %v3094_v52 = vpop.f32.mrf.mxu3 }
 0x17a   : > { %v3095_v16 = vadd.f32 %v3094_v52, %v3080_v51 }
 0x17c   : > { %v3098_v21 = vadd.f32 %v3095_v16, %v2926_v18 }
 0x188   : > { %v3323_v57 = vpop.f32.mrf.mxu0 }
 0x189   : > { %v3337_v58 = vpop.f32.mrf.mxu1 }
 0x18a   : > { %v3338_v1 = vadd.f32 %v3337_v58, %v3323_v57 }
 0x18c   : > { %v3342_v9 = vadd.f32 %v3338_v1, %v3097_v4 }
 0x190   : > { %v3495_v5 = vpop.f32.mrf.mxu2  ;;  %v3325_v12 = vpop.f32.mrf.mxu0 }
 0x191   : > { %v3509_v6 = vpop.f32.mrf.mxu3  ;;  %v3339_v14 = vpop.f32.mrf.mxu1 }
 0x192   : > { %v3510_v10 = vadd.f32 %v3509_v6, %v3495_v5  ;;  %v3340_v20 = vadd.f32 %v3339_v14, %v3325_v12 }
 0x194   : > { %v3514_v17 = vadd.f32 %v3510_v10, %v3342_v9  ;;  %v3343_v26 = vadd.f32 %v3340_v20, %v3098_v21 }
 0x196   : > { %v3520_v19 = vadd.f32 %v5404_v11, %v3514_v17 }
 0x198   : > { %v3522_v22 = vmax.f32 %v3520_v19, 0.0  ;;  %v3497_v23 = vpop.f32.mrf.mxu2 }
 0x199   : > { %v3511_v24 = vpop.f32.mrf.mxu3 }
 0x19a   : > { %v3524_v25 = vpack.c.bf16 %v3522_v22, %v3522_v22  ;;  %v3512_v27 = vadd.f32 %v3511_v24, %v3497_v23 }
 0x19c   : > { %3526 = vst [vmem:[%s175_s20] sm:$0xf] %v3524_v25  ;;  %v3515_v28 = vadd.f32 %v3512_v27, %v3343_v26 }
 0x19e   : > { %v3521_v30 = vadd.f32 %v5404_v11, %v3515_v28 }
 0x1a0   : > { %v3523_v59 = vmax.f32 %v3521_v30, 0.0 }
 0x1a2   : > { %v3525_v31 = vpack.c.bf16 %v3523_v59, %v3523_v59 }
 0x1a4   : > { %v3531_v32 = vsel %vm3529_vm7, %v3525_v31, %v3530_v60 }
 0x1a5   : > { %3532 = vst [vmem:[%s175_s20 + $0x4] sm:$0x1] %v3531_v32 }
 0x1a6 PF: > { %s13_s12 = sadd.s32 1, %s5411_s12  }
 0x1a7   : > { %p10_p5 = scmp.ge.s32.totalorder %s13_s12, 4  }
 0x1a9   :  { %12 = sbr.rel (!%p10_p5) target bundleno = 1 (0x1), region = 144 }

// kernel: ppo_vision_forward.4
= control target key start
LH: loop header
LB: loop body
LE: loop exit
PB: predicated region body
PF: predicated region fallthrough
CT: control target
= control target key end

     0   :  { %s5845_s12 = smov 0   ;;  %s7017_s0 = inlined_call_operand.vmem [shape: bf16[18,4,9,16], index: 0, kind: input, shape index: {}]   ;;  %s7018_s1 = inlined_call_operand.vmem [shape: bf16[64,16,128], index: 1, kind: input, shape index: {}]   ;;  %s7019_s2 = inlined_call_operand.vmem [shape: f32[1,128], index: 2, kind: input, shape index: {}]   ;;  %s7020_s3 = inlined_call_operand.vmem [shape: bf16[2,64,128], index: 3, kind: output, shape index: {}]  }
   0x1 LB: > { %s5851_s13 = sadd.s32 4294967295, %s5823_s12   ;;  %p4746_p0 = scmp.ge.s32.totalorder %s5823_s12, 1  ;;  %s5823_s12 = sphi %s5845_s12, %s13_s12  }
   0x2   : > { %p139_p1 = scmp.lt.s32.totalorder %s5823_s12, 3 }
   0x4   : > { %p140_p2 = pnand %p4746_p0, %p139_p1 }
   0x5   : > { %s164_s20 = smul.u32 (!%p140_p2), 9, %s5851_s13  ;;  %p171_p4 = scmp.lt.s32.totalorder (!%p140_p2), %s5851_s13, 1 }
   0x6   : > { %143 = sbr.rel (%p140_p2) target bundleno = 1178 (0x49a), region = 32 }
   0x7   : > { %p165_p3 = scmp.lt.s32.totalorder (!%p140_p2), %s164_s20, 17 }
   0xb   : > { %v5694_v0 = vld [vmem:[%s7018_s1 + $0x8] sm:$0xff]  ;;  %v5693_v1 = vld [vmem:[%s7018_s1] sm:$0xff]  ;;  %v5695_v2 = vld [vmem:[%s7018_s1 + $0x10] sm:$0xff]  ;;  %s7024_s20 = smov (!%p165_p3, %s164_s20), 17  ;;  %vm216_vm0 = vcmask 130048   ;;  %s7026_s13 = smov (!%p171_p4, %s5851_s13), 1 }
   0xc   : > { %v5696_v3 = vld [vmem:[%s7018_s1 + $0x18] sm:$0xff]  ;;  %v5699_v4 = vld [vmem:[%s7018_s1 + $0x30] sm:$0xff]  ;;  %v5697_v5 = vld [vmem:[%s7018_s1 + $0x20] sm:$0xff]  ;;  %236 = vmatpush.bf16.msra.mxu0 %v5694_v0  ;;  %271 = vmatpush.bf16.msra.mxu1 %v5693_v1  ;;  %s5687_s4 = sshll.u32 %s7024_s20, 5  ;;  %vm401_vm1 = vsmask.f32 3328 }
   0xd   : > { %v5700_v6 = vld [vmem:[%s7018_s1 + $0x38] sm:$0xff]  ;;  %v5698_v7 = vld [vmem:[%s7018_s1 + $0x28] sm:$0xff]  ;;  %309 = vmatpush.bf16.msra.mxu2 %v5695_v2  ;;  %355 = vmatpush.bf16.msra.mxu3 %v5696_v3  ;;  %s5883_s7 = scalar_lea.vmem %s7017_s0, %s5687_s4  ;;  %v5707_v17 = vld [vmem:[%s7018_s1 + $0x50] sm:$0xff]  ;;  %vm402_vm2 = vsmask.f32 7440  ;;  %s5688_s27 = sshll.u32 %s7026_s13, 5 }
   0xe   : > { %v4755_v8 = vld [vmem:[%s5883_s7] sm:$0xf]  ;;  %v5708_v19 = vld [vmem:[%s7018_s1 + $0x58] sm:$0xff]  ;;  %v5706_v22 = vld [vmem:[%s7018_s1 + $0x48] sm:$0xff]  ;;  %s6991_s30 = scalar_lea.vmem %s7020_s3, %s5688_s27 }
   0xf   : > { %v5689_v9 = vld [vmem:[%s5883_s7 + $0x1c] sm:$0xf0]  ;;  %v386_v33 = vld [vmem:[%s5883_s7 + $0x4] sm:$0x1]  ;;  %vm5927_vm3 = vmor %vm401_vm1, %vm402_vm2 }
  0x10   : > { %556 = vmatpush.bf16.msrb.mxu0 %v5697_v5  ;;  %602 = vmatpush.bf16.msrb.mxu1 %v5698_v7  ;;  %v4756_v10 = vor.u32 %v5689_v9, %v4755_v8  ;;  %v4759_v11 = vld [vmem:[%s5883_s7 + $0x40] sm:$0xf]  ;;  %v388_v34 = vld [vmem:[%s5883_s7 + $0x24] sm:$0x1]  ;;  %v414_v37 = vshll.u32 %v386_v33, 16 }
  0x11   : > { %648 = vmatpush.bf16.msrb.mxu2 %v5699_v4  ;;  %694 = vmatpush.bf16.msrb.mxu3 %v5700_v6  ;;  %v5690_v12 = vld [vmem:[%s5883_s7 + $0x5c] sm:$0xf0]  ;;  %v428_v39 = vshll.u32 %v388_v34, 16  ;;  %v390_v59 = vld [vmem:[%s5883_s7 + $0x44] sm:$0x1] }
  0x12   : > { %4773 = vmatmul.msk.bf16.vlgmr.msra.gmra.mxu0 %vm216_vm0, %v4756_v10  ;;  %4781 = vmatmul.msk.bf16.vlgmr.msra.gmra.mxu1 %vm216_vm0, %v4756_v10  ;;  %v4760_v13 = vor.u32 %v5690_v12, %v4759_v11  ;;  %v4763_v14 = vld [vmem:[%s5883_s7 + $0x80] sm:$0xf]  ;;  %v416_v43 = vrot.slane %v414_v37, 5  ;;  %v392_v60 = vld [vmem:[%s5883_s7 + $0x64] sm:$0x1]  ;;  %v442_v62 = vshll.u32 %v390_v59, 16 }
  0x13   : > { %4791 = vmatmul.msk.bf16.vlgmr.msra.gmra.mxu2 %vm216_vm0, %v4756_v10  ;;  %4801 = vmatmul.msk.bf16.vlgmr.msra.gmra.mxu3 %vm216_vm0, %v4756_v10  ;;  %v5691_v15 = vld [vmem:[%s5883_s7 + $0x9c] sm:$0xf0]  ;;  %v430_v45 = vrot.slane %v428_v39, 5  ;;  %v456_v0 = vshll.u32 %v392_v60, 16  ;;  %v5712_v59 = vld [vmem:[%s7018_s1 + $0x78] sm:$0xff] }
  0x14   : > { %v4764_v16 = vor.u32 %v5691_v15, %v4763_v14  ;;  %v5705_v18 = vld [vmem:[%s7018_s1 + $0x40] sm:$0xff]  ;;  %827 = vmatpush.bf16.msra.mxu1 %v5706_v22  ;;  %v444_v3 = vrot.slane %v442_v62, 5  ;;  %v5710_v62 = vld [vmem:[%s7018_s1 + $0x68] sm:$0xff] }
  0x15   : > { %v385_v20 = vld [vmem:[%s5883_s7] sm:$0xf]  ;;  %873 = vmatpush.bf16.msra.mxu2 %v5707_v17  ;;  %781 = vmatpush.bf16.msra.mxu0 %v5705_v18  ;;  %v458_v5 = vrot.slane %v456_v0, 5 }
  0x16   : > { %v387_v21 = vld [vmem:[%s5883_s7 + $0x20] sm:$0xf]  ;;  %919 = vmatpush.bf16.msra.mxu3 %v5708_v19  ;;  %v405_v23 = vshrl.u32 %v385_v20, 16  ;;  %v408_v24 = vshll.u32 %v385_v20, 16  ;;  %v394_v20 = vld [vmem:[%s5883_s7 + $0x84] sm:$0x1] }
  0x17   : > { %v419_v25 = vshrl.u32 %v387_v21, 16  ;;  %v422_v26 = vshll.u32 %v387_v21, 16  ;;  %v4767_v27 = vld [vmem:[%s5883_s7 + $0xc0] sm:$0xf]  ;;  %v396_v21 = vld [vmem:[%s5883_s7 + $0xa4] sm:$0x1] }
  0x18   : > { %v5692_v28 = vld [vmem:[%s5883_s7 + $0xdc] sm:$0xf0]  ;;  %v407_v29 = vrot.slane %v405_v23, 4  ;;  %v410_v30 = vrot.slane %v408_v24, 5  ;;  %v470_v24 = vshll.u32 %v394_v20, 16 }
  0x19   : > { %v421_v31 = vrot.slane %v419_v25, 4  ;;  %v424_v32 = vrot.slane %v422_v26, 5  ;;  %v4768_v35 = vor.u32 %v5692_v28, %v4767_v27  ;;  %v389_v40 = vld [vmem:[%s5883_s7 + $0x40] sm:$0xf]  ;;  %v484_v26 = vshll.u32 %v396_v21, 16 }
  0x1a   : > { %v411_v36 = vor.u32 %v410_v30, %v407_v29  ;;  %v391_v41 = vld [vmem:[%s5883_s7 + $0x60] sm:$0xf]  ;;  %v433_v47 = vshrl.u32 %v389_v40, 16  ;;  %v436_v48 = vshll.u32 %v389_v40, 16  ;;  %v472_v28 = vrot.slane %v470_v24, 5 }
  0x1b   : > { %v425_v38 = vor.u32 %v424_v32, %v421_v31  ;;  %v447_v49 = vshrl.u32 %v391_v41, 16  ;;  %v450_v50 = vshll.u32 %v391_v41, 16  ;;  %v393_v6 = vld [vmem:[%s5883_s7 + $0x80] sm:$0xf]  ;;  %v486_v30 = vrot.slane %v484_v26, 5 }
  0x1c   : > { %v412_v42 = vrot.slane %v411_v36, 4  ;;  %v435_v53 = vrot.slane %v433_v47, 4  ;;  %v438_v54 = vrot.slane %v436_v48, 5  ;;  %v395_v7 = vld [vmem:[%s5883_s7 + $0xa0] sm:$0xf]  ;;  %v461_v10 = vshrl.u32 %v393_v6, 16 }
  0x1d   : > { %v426_v44 = vrot.slane %v425_v38, 4  ;;  %v449_v55 = vrot.slane %v447_v49, 4  ;;  %v452_v56 = vrot.slane %v450_v50, 5  ;;  %v464_v11 = vshll.u32 %v393_v6, 16  ;;  %v397_v31 = vld [vmem:[%s5883_s7 + $0xc0] sm:$0xf] }
  0x1e   : > { %v417_v51 = vsel %vm5927_vm3, %v412_v42, %v416_v43  ;;  %v439_v61 = vor.u32 %v438_v54, %v435_v53  ;;  %v475_v12 = vshrl.u32 %v395_v7, 16  ;;  %v399_v32 = vld [vmem:[%s5883_s7 + $0xe0] sm:$0xf]  ;;  %v492_v36 = vshll.u32 %v397_v31, 16  ;;  %v398_v41 = vld [vmem:[%s5883_s7 + $0xc4] sm:$0x1] }
  0x1f   : > { %v431_v52 = vsel %vm5927_vm3, %v426_v44, %v430_v45  ;;  %v519_v57 = vunpack.c.l.b16 %v417_v51  ;;  %v453_v63 = vor.u32 %v452_v56, %v449_v55  ;;  %v466_v17 = vrot.slane %v464_v11, 5  ;;  %v400_v47 = vld [vmem:[%s5883_s7 + $0xe4] sm:$0x1] }
  0x20   : > { %v520_v58 = vunpack.c.l.b16 %v431_v52  ;;  %v440_v2 = vrot.slane %v439_v61, 4  ;;  %v477_v18 = vrot.slane %v475_v12, 4  ;;  %v503_v37 = vshrl.u32 %v399_v32, 16 }
  0x21   : > { %v454_v4 = vrot.slane %v453_v63, 4  ;;  %v506_v38 = vshll.u32 %v399_v32, 16  ;;  %v494_v43 = vrot.slane %v492_v36, 5  ;;  %v498_v49 = vshll.u32 %v398_v41, 16  ;;  %v4865_v32 = vld [vmem:[%s5883_s7 + $0x88] sm:$0xf] }
  0x22   : > { %4774 = vmatmul.msk.bf16.gmra.mxu0 %vm216_vm0, %v4760_v13  ;;  %4782 = vmatmul.msk.bf16.gmra.mxu1 %vm216_vm0, %v4760_v13  ;;  %v527_v1 = vpack.c.b16 %v520_v58, %v519_v57  ;;  %v445_v8 = vsel %vm5927_vm3, %v440_v2, %v444_v3  ;;  %v505_v44 = vrot.slane %v503_v37, 4  ;;  %v512_v52 = vshll.u32 %v400_v47, 16  ;;  %v5711_v57 = vld [vmem:[%s7018_s1 + $0x70] sm:$0xff]  ;;  %v5709_v58 = vld [vmem:[%s7018_s1 + $0x60] sm:$0xff]  ;;  %v4857_v2 = vld [vmem:[%s5883_s7 + $0x8] sm:$0xf] }
  0x23   : > { %4792 = vmatmul.msk.bf16.gmra.mxu2 %vm216_vm0, %v4760_v13  ;;  %4802 = vmatmul.msk.bf16.gmra.mxu3 %vm216_vm0, %v4760_v13  ;;  %v459_v9 = vsel %vm5927_vm3, %v454_v4, %v458_v5  ;;  %v478_v13 = vshll.u32 %v395_v7, 16  ;;  %v521_v14 = vunpack.c.l.b16 %v445_v8  ;;  %v508_v45 = vrot.slane %v506_v38, 5  ;;  %v5701_v3 = vld [vmem:[%s5883_s7 + $0x24] sm:$0xf0] }
  0x24   : > { %v522_v15 = vunpack.c.l.b16 %v459_v9  ;;  %v500_v53 = vrot.slane %v498_v49, 5  ;;  %v514_v56 = vrot.slane %v512_v52, 5  ;;  %v4858_v4 = vor.u32 %v5701_v3, %v4857_v2  ;;  %v4911_v47 = vld [vmem:[%s5883_s7 + $0x28] sm:$0xf]  ;;  %v4912_v3 = vld [vmem:[%s5883_s7 + $0x2c] sm:$0x1] }
  0x25   : > { %v480_v19 = vrot.slane %v478_v13, 5  ;;  %v509_v51 = vor.u32 %v508_v45, %v505_v44  ;;  %v5717_v44 = vld [vmem:[%s7018_s1 + $0x80] sm:$0xff]  ;;  %v5720_v45 = vld [vmem:[%s7018_s1 + $0x98] sm:$0xff] }
  0x26   : > { %v528_v22 = vpack.c.b16 %v522_v15, %v521_v14  ;;  %v4861_v15 = vld [vmem:[%s5883_s7 + $0x48] sm:$0xf] }
  0x27   : > { %v481_v25 = vor.u32 %v480_v19, %v477_v18  ;;  %v510_v55 = vrot.slane %v509_v51, 4 }
  0x29   : > { %v482_v29 = vrot.slane %v481_v25, 4  ;;  %v515_v61 = vsel %vm5927_vm3, %v510_v55, %v514_v56  ;;  %v980_v55 = vshrl.u32 %v4911_v47, 16  ;;  %v983_v56 = vshll.u32 %v4911_v47, 16  ;;  %v4916_v47 = vld [vmem:[%s5883_s7 + $0x6c] sm:$0x1] }
  0x2a   : > { %v526_v0 = vunpack.c.l.b16 %v515_v61 }
  0x2b   : > { %v487_v34 = vsel %vm5927_vm3, %v482_v29, %v486_v30  ;;  %v985_v2 = vrot.slane %v983_v56, 5 }
  0x2c   : > { %v524_v40 = vunpack.c.l.b16 %v487_v34 }
  0x32   : > { %4775 = vmatmul.msk.bf16.gmra.mxu0 %vm216_vm0, %v4764_v16  ;;  %4783 = vmatmul.msk.bf16.gmra.mxu1 %vm216_vm0, %v4764_v16 }
  0x33   : > { %4793 = vmatmul.msk.bf16.gmra.mxu2 %vm216_vm0, %v4764_v16  ;;  %4803 = vmatmul.msk.bf16.gmra.mxu3 %vm216_vm0, %v4764_v16  ;;  %v463_v16 = vrot.slane %v461_v10, 4 }
  0x35   : > { %v467_v23 = vor.u32 %v466_v17, %v463_v16  ;;  %v5702_v16 = vld [vmem:[%s5883_s7 + $0x64] sm:$0xf0] }
  0x36   : > { %v4862_v19 = vor.u32 %v5702_v16, %v4861_v15 }
  0x37   : > { %v468_v27 = vrot.slane %v467_v23, 4 }
  0x39   : > { %v473_v33 = vsel %vm5927_vm3, %v468_v27, %v472_v28 }
  0x3a   : > { %v523_v39 = vunpack.c.l.b16 %v473_v33  ;;  %v5703_v33 = vld [vmem:[%s5883_s7 + $0xa4] sm:$0xf0] }
  0x3b   : > { %v4866_v36 = vor.u32 %v5703_v33, %v4865_v32 }
  0x3c   : > { %v529_v48 = vpack.c.b16 %v524_v40, %v523_v39 }
  0x42   : > { %4776 = vmatmul.msk.bf16.gmra.mxu0 %vm216_vm0, %v4768_v35  ;;  %4784 = vmatmul.msk.bf16.gmra.mxu1 %vm216_vm0, %v4768_v35 }
  0x43   : > { %4794 = vmatmul.msk.bf16.gmra.mxu2 %vm216_vm0, %v4768_v35  ;;  %4804 = vmatmul.msk.bf16.gmra.mxu3 %vm216_vm0, %v4768_v35  ;;  %v489_v35 = vshrl.u32 %v397_v31, 16 }
  0x45   : > { %v491_v42 = vrot.slane %v489_v35, 4 }
  0x47   : > { %v495_v50 = vor.u32 %v494_v43, %v491_v42  ;;  %v4909_v42 = vld [vmem:[%s5883_s7 + $0x8] sm:$0xf]  ;;  %v5719_v43 = vld [vmem:[%s7018_s1 + $0x90] sm:$0xff] }
  0x48   : > { %v969_v51 = vshll.u32 %v4909_v42, 16 }
  0x49   : > { %v496_v54 = vrot.slane %v495_v50, 4  ;;  %v966_v50 = vshrl.u32 %v4909_v42, 16 }
  0x4b   : > { %v501_v60 = vsel %vm5927_vm3, %v496_v54, %v500_v53  ;;  %v968_v61 = vrot.slane %v966_v50, 4 }
  0x4c   : > { %v525_v63 = vunpack.c.l.b16 %v501_v60  ;;  %v4869_v60 = vld [vmem:[%s5883_s7 + $0xc8] sm:$0xf] }
  0x52   : > { %4811 = vmatmul.msk.bf16.vlgmr.msrb.gmra.mxu0 %vm216_vm0, %v527_v1  ;;  %4821 = vmatmul.msk.bf16.vlgmr.msrb.gmra.mxu1 %vm216_vm0, %v527_v1 }
  0x53   : > { %4831 = vmatmul.msk.bf16.vlgmr.msrb.gmra.mxu2 %vm216_vm0, %v527_v1  ;;  %4841 = vmatmul.msk.bf16.vlgmr.msrb.gmra.mxu3 %vm216_vm0, %v527_v1  ;;  %v530_v1 = vpack.c.b16 %v526_v0, %v525_v63  ;;  %v5704_v63 = vld [vmem:[%s5883_s7 + $0xe4] sm:$0xf0]  ;;  %v4910_v0 = vld [vmem:[%s5883_s7 + $0xc] sm:$0x1] }
  0x54   : > { %1209 = vmatpush.bf16.msrb.mxu2 %v5711_v57  ;;  %1117 = vmatpush.bf16.msrb.mxu0 %v5709_v58 }
  0x55   : > { %1255 = vmatpush.bf16.msrb.mxu3 %v5712_v59  ;;  %1163 = vmatpush.bf16.msrb.mxu1 %v5710_v62  ;;  %v5718_v59 = vld [vmem:[%s7018_s1 + $0x88] sm:$0xff]  ;;  %v971_v62 = vrot.slane %v969_v51, 5 }
  0x62   : > { %4812 = vmatmul.msk.bf16.gmra.mxu0 %vm216_vm0, %v528_v22  ;;  %4822 = vmatmul.msk.bf16.gmra.mxu1 %vm216_vm0, %v528_v22 }
  0x63   : > { %4832 = vmatmul.msk.bf16.gmra.mxu2 %vm216_vm0, %v528_v22  ;;  %4842 = vmatmul.msk.bf16.gmra.mxu3 %vm216_vm0, %v528_v22 }
  0x72   : > { %4813 = vmatmul.msk.bf16.gmra.mxu0 %vm216_vm0, %v529_v48  ;;  %4823 = vmatmul.msk.bf16.gmra.mxu1 %vm216_vm0, %v529_v48 }
  0x73   : > { %4833 = vmatmul.msk.bf16.gmra.mxu2 %vm216_vm0, %v529_v48  ;;  %4843 = vmatmul.msk.bf16.gmra.mxu3 %vm216_vm0, %v529_v48 }
  0x82   : > { %4814 = vmatmul.msk.bf16.gmra.mxu0 %vm216_vm0, %v530_v1  ;;  %4824 = vmatmul.msk.bf16.gmra.mxu1 %vm216_vm0, %v530_v1 }
  0x83   : > { %4834 = vmatmul.msk.bf16.gmra.mxu2 %vm216_vm0, %v530_v1  ;;  %4844 = vmatmul.msk.bf16.gmra.mxu3 %vm216_vm0, %v530_v1  ;;  %v982_v1 = vrot.slane %v980_v55, 4 }
  0x8f   : > { %v238_v5 = vpop.f32.mrf.mxu0  ;;  %v273_v6 = vpop.f32.mrf.mxu1 }
  0x90   : > { %v274_v7 = vadd.f32 %v273_v6, %v238_v5  ;;  %v4870_v6 = vor.u32 %v5704_v63, %v4869_v60 }
  0x92   : > { %4875 = vmatmul.msk.bf16.vlgmr.msra.gmra.mxu0 %vm216_vm0, %v4858_v4  ;;  %4885 = vmatmul.msk.bf16.vlgmr.msra.gmra.mxu1 %vm216_vm0, %v4858_v4 }
  0x93   : > { %4895 = vmatmul.msk.bf16.vlgmr.msra.gmra.mxu2 %vm216_vm0, %v4858_v4  ;;  %4905 = vmatmul.msk.bf16.vlgmr.msra.gmra.mxu3 %vm216_vm0, %v4858_v4 }
  0x94   : > { %1434 = vmatpush.bf16.msra.mxu2 %v5719_v43  ;;  %1342 = vmatpush.bf16.msra.mxu0 %v5717_v44  ;;  %v4914_v43 = vld [vmem:[%s5883_s7 + $0x4c] sm:$0x1] }
  0x95   : > { %1480 = vmatpush.bf16.msra.mxu3 %v5720_v45  ;;  %1388 = vmatpush.bf16.msra.mxu1 %v5718_v59 }
  0x96   : > { %v311_v8 = vpop.f32.mrf.mxu2  ;;  %v357_v9 = vpop.f32.mrf.mxu3 }
  0x97   : > { %v331_v10 = vadd.f32 %v311_v8, %v274_v7  ;;  %v240_v11 = vpop.f32.mrf.mxu0  ;;  %v275_v12 = vpop.f32.mrf.mxu1  ;;  %v972_v7 = vor.u32 %v971_v62, %v968_v61  ;;  %v975_v8 = vshll.u32 %v4910_v0, 16 }
  0x98   : > { %v276_v13 = vadd.f32 %v275_v12, %v240_v11  ;;  %v986_v12 = vor.u32 %v985_v2, %v982_v1  ;;  %v4917_v2 = vld [vmem:[%s5883_s7 + $0x88] sm:$0xf] }
  0x99   : > { %v5991_v14 = vadd.f32 %v357_v9, %v331_v10 }
  0x9e   : > { %v313_v17 = vpop.f32.mrf.mxu2  ;;  %v359_v18 = vpop.f32.mrf.mxu3 }
  0x9f   : > { %v332_v20 = vadd.f32 %v313_v17, %v276_v13  ;;  %v243_v21 = vpop.f32.mrf.mxu0  ;;  %v278_v22 = vpop.f32.mrf.mxu1  ;;  %v989_v13 = vshll.u32 %v4912_v3, 16  ;;  %v973_v17 = vrot.slane %v972_v7, 4  ;;  %v4919_v3 = vld [vmem:[%s5883_s7 + $0xa8] sm:$0xf]  ;;  %v1025_v7 = vshll.u32 %v4917_v2, 16 }
  0xa0   : > { %v279_v23 = vadd.f32 %v278_v22, %v243_v21  ;;  %v4913_v21 = vld [vmem:[%s5883_s7 + $0x48] sm:$0xf] }
  0xa1   : > { %v5995_v24 = vadd.f32 %v359_v18, %v332_v20  ;;  %v977_v18 = vrot.slane %v975_v8, 5  ;;  %v991_v20 = vrot.slane %v989_v13, 5  ;;  %v4915_v22 = vld [vmem:[%s5883_s7 + $0x68] sm:$0xf]  ;;  %v1039_v13 = vshll.u32 %v4919_v3, 16 }
  0xa2   : > { %4876 = vmatmul.msk.bf16.gmra.mxu0 %vm216_vm0, %v4862_v19  ;;  %4886 = vmatmul.msk.bf16.gmra.mxu1 %vm216_vm0, %v4862_v19 }
  0xa3   : > { %4896 = vmatmul.msk.bf16.gmra.mxu2 %vm216_vm0, %v4862_v19  ;;  %4906 = vmatmul.msk.bf16.gmra.mxu3 %vm216_vm0, %v4862_v19  ;;  %v987_v19 = vrot.slane %v986_v12, 4  ;;  %v1036_v12 = vshrl.u32 %v4919_v3, 16 }
  0xa5   : > { %v992_v33 = vsel %vm5927_vm3, %v987_v19, %v991_v20 }
  0xa6   : > { %v316_v25 = vpop.f32.mrf.mxu2  ;;  %v362_v26 = vpop.f32.mrf.mxu3 }
  0xa7   : > { %v333_v27 = vadd.f32 %v316_v25, %v279_v23  ;;  %v245_v28 = vpop.f32.mrf.mxu0  ;;  %v280_v29 = vpop.f32.mrf.mxu1 }
  0xa8   : > { %v281_v30 = vadd.f32 %v280_v29, %v245_v28  ;;  %v997_v28 = vshll.u32 %v4913_v21, 16 }
  0xa9   : > { %v6001_v31 = vadd.f32 %v362_v26, %v333_v27  ;;  %v978_v26 = vsel %vm5927_vm3, %v973_v17, %v977_v18  ;;  %v994_v27 = vshrl.u32 %v4913_v21, 16 }
  0xaa   : > { %v999_v42 = vrot.slane %v997_v28, 5 }
  0xae   : > { %v318_v34 = vpop.f32.mrf.mxu2  ;;  %v364_v35 = vpop.f32.mrf.mxu3 }
  0xaf   : > { %v334_v37 = vadd.f32 %v318_v34, %v281_v30  ;;  %v248_v38 = vpop.f32.mrf.mxu0  ;;  %v283_v39 = vpop.f32.mrf.mxu1  ;;  %v1008_v34 = vshrl.u32 %v4915_v22, 16 }
  0xb0   : > { %v284_v40 = vadd.f32 %v283_v39, %v248_v38  ;;  %v1080_v38 = vunpack.c.l.b16 %v978_v26  ;;  %v1081_v39 = vunpack.c.l.b16 %v992_v33  ;;  %v1041_v26 = vrot.slane %v1039_v13, 5 }
  0xb1   : > { %v6005_v41 = vadd.f32 %v364_v35, %v334_v37  ;;  %v1011_v35 = vshll.u32 %v4915_v22, 16  ;;  %v1010_v44 = vrot.slane %v1008_v34, 4  ;;  %v1027_v22 = vrot.slane %v1025_v7, 5  ;;  %v4924_v7 = vld [vmem:[%s5883_s7 + $0xec] sm:$0x1] }
  0xb2   : > { %4877 = vmatmul.msk.bf16.gmra.mxu0 %vm216_vm0, %v4866_v36  ;;  %4887 = vmatmul.msk.bf16.gmra.mxu1 %vm216_vm0, %v4866_v36  ;;  %v1088_v50 = vpack.c.b16 %v1081_v39, %v1080_v38 }
  0xb3   : > { %4897 = vmatmul.msk.bf16.gmra.mxu2 %vm216_vm0, %v4866_v36  ;;  %4907 = vmatmul.msk.bf16.gmra.mxu3 %vm216_vm0, %v4866_v36  ;;  %v1013_v45 = vrot.slane %v1011_v35, 5 }
  0xb5   : > { %v1014_v56 = vor.u32 %v1013_v45, %v1010_v44 }
  0xb6   : > { %v321_v48 = vpop.f32.mrf.mxu2  ;;  %v367_v49 = vpop.f32.mrf.mxu3 }
  0xb7   : > { %v335_v52 = vadd.f32 %v321_v48, %v284_v40  ;;  %v250_v53 = vpop.f32.mrf.mxu0  ;;  %v285_v54 = vpop.f32.mrf.mxu1  ;;  %v996_v40 = vrot.slane %v994_v27, 4  ;;  %v1015_v0 = vrot.slane %v1014_v56, 4  ;;  %v4920_v27 = vld [vmem:[%s5883_s7 + $0xac] sm:$0x1] }
  0xb8   : > { %v286_v57 = vadd.f32 %v285_v54, %v250_v53  ;;  %v1045_v38 = vshll.u32 %v4920_v27, 16 }
  0xb9   : > { %v6022_v58 = vadd.f32 %v367_v49, %v335_v52  ;;  %v1000_v51 = vor.u32 %v999_v42, %v996_v40  ;;  %v1003_v52 = vshll.u32 %v4914_v43, 16 }
  0xbb   : > { %v1001_v62 = vrot.slane %v1000_v51, 4  ;;  %v1005_v63 = vrot.slane %v1003_v52, 5 }
  0xbe   : > { %v323_v4 = vpop.f32.mrf.mxu2  ;;  %v369_v5 = vpop.f32.mrf.mxu3 }
  0xbf   : > { %v336_v9 = vadd.f32 %v323_v4, %v286_v57  ;;  %v253_v10 = vpop.f32.mrf.mxu0  ;;  %v288_v11 = vpop.f32.mrf.mxu1  ;;  %v1017_v57 = vshll.u32 %v4916_v47, 16  ;;  %v1047_v47 = vrot.slane %v1045_v38, 5 }
  0xc0   : > { %v289_v15 = vadd.f32 %v288_v11, %v253_v10 }
  0xc1   : > { %v6031_v16 = vadd.f32 %v369_v5, %v336_v9  ;;  %v1019_v1 = vrot.slane %v1017_v57, 5 }
  0xc2   : > { %4878 = vmatmul.msk.bf16.gmra.mxu0 %vm216_vm0, %v4870_v6  ;;  %4888 = vmatmul.msk.bf16.gmra.mxu1 %vm216_vm0, %v4870_v6 }
  0xc3   : > { %4898 = vmatmul.msk.bf16.gmra.mxu2 %vm216_vm0, %v4870_v6  ;;  %4908 = vmatmul.msk.bf16.gmra.mxu3 %vm216_vm0, %v4870_v6  ;;  %v1022_v6 = vshrl.u32 %v4917_v2, 16  ;;  %v1020_v11 = vsel %vm5927_vm3, %v1015_v0, %v1019_v1 }
  0xc4   : > { %v1083_v20 = vunpack.c.l.b16 %v1020_v11 }
  0xc5   : > { %v1024_v21 = vrot.slane %v1022_v6, 4  ;;  %v4922_v6 = vld [vmem:[%s5883_s7 + $0xcc] sm:$0x1] }
  0xc6   : > { %v326_v23 = vpop.f32.mrf.mxu2  ;;  %v372_v25 = vpop.f32.mrf.mxu3 }
  0xc7   : > { %v337_v29 = vadd.f32 %v326_v23, %v289_v15  ;;  %v255_v30 = vpop.f32.mrf.mxu0  ;;  %v290_v32 = vpop.f32.mrf.mxu1  ;;  %v4918_v23 = vld [vmem:[%s5883_s7 + $0x8c] sm:$0x1] }
  0xc8   : > { %v291_v36 = vadd.f32 %v290_v32, %v255_v30  ;;  %v1028_v32 = vor.u32 %v1027_v22, %v1024_v21  ;;  %v1031_v33 = vshll.u32 %v4918_v23, 16 }
  0xc9   : > { %v6043_v37 = vadd.f32 %v372_v25, %v337_v29  ;;  %v1038_v25 = vrot.slane %v1036_v12, 4 }
  0xca   : > { %v1029_v43 = vrot.slane %v1028_v32, 4  ;;  %v1033_v44 = vrot.slane %v1031_v33, 5 }
  0xce   : > { %v328_v48 = vpop.f32.mrf.mxu2  ;;  %v374_v49 = vpop.f32.mrf.mxu3 }
  0xcf   : > { %v338_v53 = vadd.f32 %v328_v48, %v291_v36  ;;  %v558_v54 = vpop.f32.mrf.mxu0  ;;  %v604_v55 = vpop.f32.mrf.mxu1  ;;  %v1042_v36 = vor.u32 %v1041_v26, %v1038_v25  ;;  %v4921_v48 = vld [vmem:[%s5883_s7 + $0xc8] sm:$0xf] }
  0xd0   : > { %v578_v59 = vadd.f32 %v558_v54, %v5991_v14  ;;  %v1006_v14 = vsel %vm5927_vm3, %v1001_v62, %v1005_v63  ;;  %v1050_v52 = vshrl.u32 %v4921_v48, 16 }
  0xd1   : > { %v6048_v60 = vadd.f32 %v374_v49, %v338_v53  ;;  %v1082_v18 = vunpack.c.l.b16 %v1006_v14  ;;  %v1043_v45 = vrot.slane %v1042_v36, 4  ;;  %v4923_v49 = vld [vmem:[%s5883_s7 + $0xe8] sm:$0xf]  ;;  %v1053_v53 = vshll.u32 %v4921_v48, 16 }
  0xd2   : > { %v624_v61 = vadd.f32 %v604_v55, %v578_v59  ;;  %4931 = vmatmul.msk.bf16.vlgmr.msrb.gmra.mxu0 %vm216_vm0, %v1088_v50  ;;  %4941 = vmatmul.msk.bf16.vlgmr.msrb.gmra.mxu1 %vm216_vm0, %v1088_v50  ;;  %v1064_v59 = vshrl.u32 %v4923_v49, 16  ;;  %v1052_v3 = vrot.slane %v1050_v52, 4 }
  0xd3   : > { %4951 = vmatmul.msk.bf16.vlgmr.msrb.gmra.mxu2 %vm216_vm0, %v1088_v50  ;;  %4961 = vmatmul.msk.bf16.vlgmr.msrb.gmra.mxu3 %vm216_vm0, %v1088_v50  ;;  %v1089_v30 = vpack.c.b16 %v1083_v20, %v1082_v18  ;;  %v1048_v57 = vsel %vm5927_vm3, %v1043_v45, %v1047_v47  ;;  %v1059_v18 = vshll.u32 %v4922_v6, 16 }
  0xd4   : > { %v1085_v2 = vunpack.c.l.b16 %v1048_v57 }
  0xd5   : > { %v1061_v25 = vrot.slane %v1059_v18, 5 }
  0xd6   : > { %v650_v4 = vpop.f32.mrf.mxu2  ;;  %v696_v5 = vpop.f32.mrf.mxu3 }
  0xd7   : > { %v670_v8 = vadd.f32 %v650_v4, %v624_v61  ;;  %v560_v9 = vpop.f32.mrf.mxu0  ;;  %v606_v10 = vpop.f32.mrf.mxu1  ;;  %v1067_v61 = vshll.u32 %v4923_v49, 16  ;;  %v1055_v4 = vrot.slane %v1053_v53, 5 }
  0xd8   : > { %v579_v15 = vadd.f32 %v560_v9, %v5995_v24 }
  0xd9   : > { %v6061_v17 = vadd.f32 %v696_v5, %v670_v8  ;;  %v1066_v5 = vrot.slane %v1064_v59, 4  ;;  %v1069_v14 = vrot.slane %v1067_v61, 5  ;;  %v1056_v11 = vor.u32 %v1055_v4, %v1052_v3 }
  0xda   : > { %v625_v19 = vadd.f32 %v606_v10, %v579_v15 }
  0xdb   : > { %v1057_v23 = vrot.slane %v1056_v11, 4 }
  0xde   : > { %v652_v28 = vpop.f32.mrf.mxu2  ;;  %v698_v29 = vpop.f32.mrf.mxu3 }
  0xdf   : > { %v671_v34 = vadd.f32 %v652_v28, %v625_v19  ;;  %v563_v35 = vpop.f32.mrf.mxu0  ;;  %v609_v24 = vpop.f32.mrf.mxu1  ;;  %v1073_v19 = vshll.u32 %v4924_v7, 16  ;;  %v5723_v28 = vld [vmem:[%s7018_s1 + $0xb0] sm:$0xff] }
  0xe0   : > { %v580_v39 = vadd.f32 %v563_v35, %v6001_v31  ;;  %v1034_v31 = vsel %vm5927_vm3, %v1029_v43, %v1033_v44  ;;  %1770 = vmatpush.bf16.msrb.mxu2 %v5723_v28 }
  0xe1   : > { %v6066_v40 = vadd.f32 %v698_v29, %v671_v34  ;;  %v1084_v0 = vunpack.c.l.b16 %v1034_v31  ;;  %v1075_v27 = vrot.slane %v1073_v19, 5  ;;  %v5724_v29 = vld [vmem:[%s7018_s1 + $0xb8] sm:$0xff]  ;;  %v5714_v19 = vld [vmem:[%s5883_s7 + $0x6c] sm:$0xf0] }
  0xe2   : > { %v626_v42 = vadd.f32 %v609_v24, %v580_v39  ;;  %4932 = vmatmul.msk.bf16.gmra.mxu0 %vm216_vm0, %v1089_v30  ;;  %4942 = vmatmul.msk.bf16.gmra.mxu1 %vm216_vm0, %v1089_v30  ;;  %v1062_v24 = vsel %vm5927_vm3, %v1057_v23, %v1061_v25 }
  0xe3   : > { %4952 = vmatmul.msk.bf16.gmra.mxu2 %vm216_vm0, %v1089_v30  ;;  %4962 = vmatmul.msk.bf16.gmra.mxu3 %vm216_vm0, %v1089_v30  ;;  %v1090_v10 = vpack.c.b16 %v1085_v2, %v1084_v0  ;;  %v1086_v44 = vunpack.c.l.b16 %v1062_v24  ;;  %v4977_v0 = vld [vmem:[%s5883_s7 + $0x10] sm:$0xf] }
  0xe4   : > { %1816 = vmatpush.bf16.msrb.mxu3 %v5724_v29 }
  0xe6   : > { %v655_v50 = vpop.f32.mrf.mxu2  ;;  %v701_v51 = vpop.f32.mrf.mxu3 }
  0xe7   : > { %v672_v54 = vadd.f32 %v655_v50, %v626_v42  ;;  %v565_v55 = vpop.f32.mrf.mxu0  ;;  %v611_v56 = vpop.f32.mrf.mxu1  ;;  %v5722_v42 = vld [vmem:[%s7018_s1 + $0xa8] sm:$0xff] }
  0xe8   : > { %v581_v62 = vadd.f32 %v565_v55, %v6005_v41  ;;  %v1070_v41 = vor.u32 %v1069_v14, %v1066_v5  ;;  %1724 = vmatpush.bf16.msrb.mxu1 %v5722_v42 }
  0xe9   : > { %v6079_v63 = vadd.f32 %v701_v51, %v672_v54 }
  0xea   : > { %v627_v1 = vadd.f32 %v611_v56, %v581_v62  ;;  %v1071_v26 = vrot.slane %v1070_v41, 4  ;;  %v4981_v41 = vld [vmem:[%s5883_s7 + $0x50] sm:$0xf] }
  0xeb   : > { %v4982_v23 = vor.u32 %v5714_v19, %v4981_v41 }
  0xec   : > { %v1076_v36 = vsel %vm5927_vm3, %v1071_v26, %v1075_v27 }
  0xed   : > { %v1087_v45 = vunpack.c.l.b16 %v1076_v36  ;;  %v4985_v36 = vld [vmem:[%s5883_s7 + $0x90] sm:$0xf] }
  0xee   : > { %v657_v8 = vpop.f32.mrf.mxu2  ;;  %v703_v9 = vpop.f32.mrf.mxu3 }
  0xef   : > { %v673_v12 = vadd.f32 %v657_v8, %v627_v1  ;;  %v568_v13 = vpop.f32.mrf.mxu0  ;;  %v614_v15 = vpop.f32.mrf.mxu1  ;;  %v1091_v49 = vpack.c.b16 %v1087_v45, %v1086_v44  ;;  %v5713_v1 = vld [vmem:[%s5883_s7 + $0x2c] sm:$0xf0] }
  0xf0   : > { %v582_v20 = vadd.f32 %v568_v13, %v6022_v58  ;;  %v5721_v58 = vld [vmem:[%s7018_s1 + $0xa0] sm:$0xff]  ;;  %v4978_v4 = vor.u32 %v5713_v1, %v4977_v0 }
  0xf1   : > { %v6084_v21 = vadd.f32 %v703_v9, %v673_v12  ;;  %1678 = vmatpush.bf16.msrb.mxu0 %v5721_v58 }
  0xf2   : > { %v628_v22 = vadd.f32 %v614_v15, %v582_v20  ;;  %4933 = vmatmul.msk.bf16.gmra.mxu0 %vm216_vm0, %v1090_v10  ;;  %4943 = vmatmul.msk.bf16.gmra.mxu1 %vm216_vm0, %v1090_v10 }
  0xf3   : > { %4953 = vmatmul.msk.bf16.gmra.mxu2 %vm216_vm0, %v1090_v10  ;;  %4963 = vmatmul.msk.bf16.gmra.mxu3 %vm216_vm0, %v1090_v10 }
  0xf6   : > { %v660_v30 = vpop.f32.mrf.mxu2  ;;  %v706_v32 = vpop.f32.mrf.mxu3 }
  0xf7   : > { %v674_v33 = vadd.f32 %v660_v30, %v628_v22  ;;  %v570_v34 = vpop.f32.mrf.mxu0  ;;  %v616_v35 = vpop.f32.mrf.mxu1 }
  0xf8   : > { %v583_v38 = vadd.f32 %v570_v34, %v6031_v16 }
  0xf9   : > { %v6104_v39 = vadd.f32 %v706_v32, %v674_v33 }
  0xfa   : > { %v629_v43 = vadd.f32 %v616_v35, %v583_v38  ;;  %v5715_v38 = vld [vmem:[%s5883_s7 + $0xac] sm:$0xf0] }
  0xfb   : > { %v4986_v44 = vor.u32 %v5715_v38, %v4985_v36 }
  0xfe   : > { %v662_v47 = vpop.f32.mrf.mxu2  ;;  %v708_v48 = vpop.f32.mrf.mxu3 }
  0xff   : > { %v675_v50 = vadd.f32 %v662_v47, %v629_v43  ;;  %v573_v51 = vpop.f32.mrf.mxu0  ;;  %v619_v31 = vpop.f32.mrf.mxu1 }
 0x100   : > { %v584_v52 = vadd.f32 %v573_v51, %v6043_v37 }
 0x101   : > { %v6110_v16 = vadd.f32 %v708_v48, %v675_v50 }
 0x102   : > { %v630_v53 = vadd.f32 %v619_v31, %v584_v52  ;;  %4934 = vmatmul.msk.bf16.gmra.mxu0 %vm216_vm0, %v1091_v49  ;;  %4944 = vmatmul.msk.bf16.gmra.mxu1 %vm216_vm0, %v1091_v49  ;;  %v5731_v31 = vld [vmem:[%s7018_s1 + $0xd0] sm:$0xff]  ;;  %v5732_v52 = vld [vmem:[%s7018_s1 + $0xd8] sm:$0xff] }
 0x103   : > { %4954 = vmatmul.msk.bf16.gmra.mxu2 %vm216_vm0, %v1091_v49  ;;  %4964 = vmatmul.msk.bf16.gmra.mxu3 %vm216_vm0, %v1091_v49 }
 0x106   : > { %v665_v54 = vpop.f32.mrf.mxu2  ;;  %v711_v55 = vpop.f32.mrf.mxu3 }
 0x107   : > { %v676_v56 = vadd.f32 %v665_v54, %v630_v53  ;;  %v575_v57 = vpop.f32.mrf.mxu0  ;;  %v621_v59 = vpop.f32.mrf.mxu1  ;;  %v5031_v53 = vld [vmem:[%s5883_s7 + $0x30] sm:$0xf] }
 0x108   : > { %v585_v61 = vadd.f32 %v575_v57, %v6048_v60  ;;  %v1541_v0 = vshrl.u32 %v5031_v53, 16  ;;  %v1544_v1 = vshll.u32 %v5031_v53, 16 }
 0x109   : > { %v6117_v37 = vadd.f32 %v711_v55, %v676_v56 }
 0x10a   : > { %v631_v62 = vadd.f32 %v621_v59, %v585_v61 }
 0x10e   : > { %v667_v2 = vpop.f32.mrf.mxu2  ;;  %v713_v3 = vpop.f32.mrf.mxu3 }
 0x10f   : > { %v677_v5 = vadd.f32 %v667_v2, %v631_v62  ;;  %v783_v14 = vpop.f32.mrf.mxu0  ;;  %v829_v6 = vpop.f32.mrf.mxu1 }
 0x110   : > { %v803_v7 = vadd.f32 %v783_v14, %v6061_v17  ;;  %v4989_v14 = vld [vmem:[%s5883_s7 + $0xd0] sm:$0xf] }
 0x111   : > { %v6122_v8 = vadd.f32 %v713_v3, %v677_v5 }
 0x112   : > { %v849_v9 = vadd.f32 %v829_v6, %v803_v7  ;;  %4995 = vmatmul.msk.bf16.vlgmr.msra.gmra.mxu0 %vm216_vm0, %v4978_v4  ;;  %5005 = vmatmul.msk.bf16.vlgmr.msra.gmra.mxu1 %vm216_vm0, %v4978_v4 }
 0x113   : > { %5015 = vmatmul.msk.bf16.vlgmr.msra.gmra.mxu2 %vm216_vm0, %v4978_v4  ;;  %5025 = vmatmul.msk.bf16.vlgmr.msra.gmra.mxu3 %vm216_vm0, %v4978_v4  ;;  %v5730_v4 = vld [vmem:[%s7018_s1 + $0xc8] sm:$0xff] }
 0x114   : > { %1995 = vmatpush.bf16.msra.mxu2 %v5731_v31  ;;  %2041 = vmatpush.bf16.msra.mxu3 %v5732_v52 }
 0x115   : > { %1949 = vmatpush.bf16.msra.mxu1 %v5730_v4 }
 0x116   : > { %v875_v60 = vpop.f32.mrf.mxu2  ;;  %v921_v10 = vpop.f32.mrf.mxu3 }
 0x117   : > { %v895_v11 = vadd.f32 %v875_v60, %v849_v9  ;;  %v785_v12 = vpop.f32.mrf.mxu0  ;;  %v831_v13 = vpop.f32.mrf.mxu1  ;;  %v5716_v9 = vld [vmem:[%s5883_s7 + $0xec] sm:$0xf0]  ;;  %v5030_v60 = vld [vmem:[%s5883_s7 + $0x14] sm:$0x1] }
 0x118   : > { %v804_v15 = vadd.f32 %v785_v12, %v6066_v40  ;;  %v5032_v12 = vld [vmem:[%s5883_s7 + $0x34] sm:$0x1]  ;;  %v1536_v41 = vshll.u32 %v5030_v60, 16 }
 0x119   : > { %v6129_v17 = vadd.f32 %v921_v10, %v895_v11  ;;  %v1543_v10 = vrot.slane %v1541_v0, 4  ;;  %v1546_v11 = vrot.slane %v1544_v1, 5 }
 0x11a   : > { %v850_v18 = vadd.f32 %v831_v13, %v804_v15 }
 0x11e   : > { %v877_v20 = vpop.f32.mrf.mxu2  ;;  %v923_v22 = vpop.f32.mrf.mxu3 }
 0x11f   : > { %v896_v25 = vadd.f32 %v877_v20, %v850_v18  ;;  %v788_v26 = vpop.f32.mrf.mxu0  ;;  %v834_v27 = vpop.f32.mrf.mxu1  ;;  %v4990_v18 = vor.u32 %v5716_v9, %v4989_v14 }
 0x120   : > { %v805_v28 = vadd.f32 %v788_v26, %v6079_v63 }
 0x121   : > { %v6134_v58 = vadd.f32 %v923_v22, %v896_v25  ;;  %v1550_v25 = vshll.u32 %v5032_v12, 16 }
 0x122   : > { %v851_v29 = vadd.f32 %v834_v27, %v805_v28  ;;  %4996 = vmatmul.msk.bf16.gmra.mxu0 %vm216_vm0, %v4982_v23  ;;  %5006 = vmatmul.msk.bf16.gmra.mxu1 %vm216_vm0, %v4982_v23 }
 0x123   : > { %5016 = vmatmul.msk.bf16.gmra.mxu2 %vm216_vm0, %v4982_v23  ;;  %5026 = vmatmul.msk.bf16.gmra.mxu3 %vm216_vm0, %v4982_v23  ;;  %v1547_v23 = vor.u32 %v1546_v11, %v1543_v10 }
 0x126   : > { %v880_v40 = vpop.f32.mrf.mxu2  ;;  %v926_v30 = vpop.f32.mrf.mxu3 }
 0x127   : > { %v897_v32 = vadd.f32 %v880_v40, %v851_v29  ;;  %v790_v33 = vpop.f32.mrf.mxu0  ;;  %v836_v34 = vpop.f32.mrf.mxu1  ;;  %v1538_v40 = vrot.slane %v1536_v41, 5 }
 0x128   : > { %v806_v35 = vadd.f32 %v790_v33, %v6084_v21  ;;  %v5029_v21 = vld [vmem:[%s5883_s7 + $0x10] sm:$0xf] }
 0x129   : > { %v6141_v63 = vadd.f32 %v926_v30, %v897_v32  ;;  %v1527_v56 = vshrl.u32 %v5029_v21, 16  ;;  %v1530_v57 = vshll.u32 %v5029_v21, 16  ;;  %v1548_v30 = vrot.slane %v1547_v23, 4  ;;  %v5033_v33 = vld [vmem:[%s5883_s7 + $0x50] sm:$0xf] }
 0x12a   : > { %v852_v24 = vadd.f32 %v836_v34, %v806_v35  ;;  %v1552_v32 = vrot.slane %v1550_v25, 5  ;;  %v5035_v34 = vld [vmem:[%s5883_s7 + $0x70] sm:$0xf]  ;;  %v1555_v36 = vshrl.u32 %v5033_v33, 16  ;;  %v1558_v38 = vshll.u32 %v5033_v33, 16 }
 0x12b   : > { %v1529_v6 = vrot.slane %v1527_v56, 4  ;;  %v1532_v7 = vrot.slane %v1530_v57, 5  ;;  %v5036_v57 = vld [vmem:[%s5883_s7 + $0x74] sm:$0x1] }
 0x12c   : > { %v1557_v52 = vrot.slane %v1555_v36, 4  ;;  %v1560_v53 = vrot.slane %v1558_v38, 5  ;;  %v1578_v14 = vshll.u32 %v5036_v57, 16  ;;  %v5040_v38 = vld [vmem:[%s5883_s7 + $0xb4] sm:$0x1] }
 0x12e   : > { %v882_v42 = vpop.f32.mrf.mxu2  ;;  %v928_v43 = vpop.f32.mrf.mxu3  ;;  %v1561_v0 = vor.u32 %v1560_v53, %v1557_v52  ;;  %v1580_v12 = vrot.slane %v1578_v14, 5 }
 0x12f   : > { %v898_v45 = vadd.f32 %v882_v42, %v852_v24  ;;  %v793_v47 = vpop.f32.mrf.mxu0  ;;  %v839_v48 = vpop.f32.mrf.mxu1 }
 0x130   : > { %v807_v49 = vadd.f32 %v793_v47, %v6104_v39  ;;  %v5729_v39 = vld [vmem:[%s7018_s1 + $0xc0] sm:$0xff]  ;;  %v1569_v47 = vshrl.u32 %v5035_v34, 16  ;;  %v1562_v60 = vrot.slane %v1561_v0, 4 }
 0x131   : > { %v6146_v50 = vadd.f32 %v928_v43, %v898_v45  ;;  %1903 = vmatpush.bf16.msra.mxu0 %v5729_v39  ;;  %v1553_v45 = vsel %vm5927_vm3, %v1548_v30, %v1552_v32 }
 0x132   : > { %v853_v51 = vadd.f32 %v839_v48, %v807_v49  ;;  %4997 = vmatmul.msk.bf16.gmra.mxu0 %vm216_vm0, %v4986_v44  ;;  %5007 = vmatmul.msk.bf16.gmra.mxu1 %vm216_vm0, %v4986_v44  ;;  %v1572_v48 = vshll.u32 %v5035_v34, 16  ;;  %v1642_v39 = vunpack.c.l.b16 %v1553_v45 }
 0x133   : > { %5017 = vmatmul.msk.bf16.gmra.mxu2 %vm216_vm0, %v4986_v44  ;;  %5027 = vmatmul.msk.bf16.gmra.mxu3 %vm216_vm0, %v4986_v44 }
 0x134   : > { %v1574_v56 = vrot.slane %v1572_v48, 5 }
 0x136   : > { %v885_v54 = vpop.f32.mrf.mxu2  ;;  %v931_v55 = vpop.f32.mrf.mxu3 }
 0x137   : > { %v899_v59 = vadd.f32 %v885_v54, %v853_v51  ;;  %v795_v61 = vpop.f32.mrf.mxu0  ;;  %v841_v62 = vpop.f32.mrf.mxu1  ;;  %v5034_v54 = vld [vmem:[%s5883_s7 + $0x54] sm:$0x1] }
 0x138   : > { %v808_v2 = vadd.f32 %v795_v61, %v6110_v16  ;;  %v1533_v16 = vor.u32 %v1532_v7, %v1529_v6  ;;  %v1564_v1 = vshll.u32 %v5034_v54, 16 }
 0x139   : > { %v6164_v3 = vadd.f32 %v931_v55, %v899_v59  ;;  %v1571_v55 = vrot.slane %v1569_v47, 4 }
 0x13a   : > { %v854_v5 = vadd.f32 %v841_v62, %v808_v2  ;;  %v1534_v29 = vrot.slane %v1533_v16, 4  ;;  %v1566_v10 = vrot.slane %v1564_v1, 5 }
 0x13e   : > { %v887_v13 = vpop.f32.mrf.mxu2  ;;  %v933_v15 = vpop.f32.mrf.mxu3 }
 0x13f   : > { %v900_v19 = vadd.f32 %v887_v13, %v854_v5  ;;  %v798_v20 = vpop.f32.mrf.mxu0  ;;  %v844_v22 = vpop.f32.mrf.mxu1  ;;  %v1575_v5 = vor.u32 %v1574_v56, %v1571_v55  ;;  %v5037_v13 = vld [vmem:[%s5883_s7 + $0x90] sm:$0xf] }
 0x140   : > { %v809_v26 = vadd.f32 %v798_v20, %v6117_v37  ;;  %v1539_v37 = vsel %vm5927_vm3, %v1534_v29, %v1538_v40  ;;  %v1583_v41 = vshrl.u32 %v5037_v13, 16 }
 0x141   : > { %v6174_v27 = vadd.f32 %v933_v15, %v900_v19  ;;  %v1641_v21 = vunpack.c.l.b16 %v1539_v37  ;;  %v1576_v11 = vrot.slane %v1575_v5, 4  ;;  %v5039_v15 = vld [vmem:[%s5883_s7 + $0xb0] sm:$0xf]  ;;  %v1586_v19 = vshll.u32 %v5037_v13, 16 }
 0x142   : > { %v855_v28 = vadd.f32 %v844_v22, %v809_v26  ;;  %4998 = vmatmul.msk.bf16.gmra.mxu0 %vm216_vm0, %v4990_v18  ;;  %5008 = vmatmul.msk.bf16.gmra.mxu1 %vm216_vm0, %v4990_v18  ;;  %v1597_v26 = vshrl.u32 %v5039_v15, 16  ;;  %v1585_v34 = vrot.slane %v1583_v41, 4  ;;  %v5042_v41 = vld [vmem:[%s5883_s7 + $0xd4] sm:$0x1] }
 0x143   : > { %5018 = vmatmul.msk.bf16.gmra.mxu2 %vm216_vm0, %v4990_v18  ;;  %5028 = vmatmul.msk.bf16.gmra.mxu3 %vm216_vm0, %v4990_v18  ;;  %v1649_v62 = vpack.c.b16 %v1642_v39, %v1641_v21  ;;  %v1581_v25 = vsel %vm5927_vm3, %v1576_v11, %v1580_v12 }
 0x144   : > { %v1644_v33 = vunpack.c.l.b16 %v1581_v25  ;;  %v1599_v37 = vrot.slane %v1597_v26, 4 }
 0x146   : > { %v890_v35 = vpop.f32.mrf.mxu2  ;;  %v936_v24 = vpop.f32.mrf.mxu3 }
 0x147   : > { %v901_v42 = vadd.f32 %v890_v35, %v855_v28  ;;  %v800_v43 = vpop.f32.mrf.mxu0  ;;  %v846_v44 = vpop.f32.mrf.mxu1  ;;  %v1600_v28 = vshll.u32 %v5039_v15, 16  ;;  %v1588_v35 = vrot.slane %v1586_v19, 5  ;;  %v5044_v19 = vld [vmem:[%s5883_s7 + $0xf4] sm:$0x1] }
 0x148   : > { %v810_v49 = vadd.f32 %v800_v43, %v6122_v8 }
 0x149   : > { %v6187_v51 = vadd.f32 %v936_v24, %v901_v42  ;;  %v5038_v24 = vld [vmem:[%s5883_s7 + $0x94] sm:$0x1]  ;;  %v1602_v36 = vrot.slane %v1600_v28, 5  ;;  %v1589_v45 = vor.u32 %v1588_v35, %v1585_v34 }
 0x14a   : > { %v856_v31 = vadd.f32 %v846_v44, %v810_v49  ;;  %v1592_v47 = vshll.u32 %v5038_v24, 16 }
 0x14b   : > { %v1603_v21 = vor.u32 %v1602_v36, %v1599_v37  ;;  %v1590_v54 = vrot.slane %v1589_v45, 4 }
 0x14c   : > { %v1594_v55 = vrot.slane %v1592_v47, 5 }
 0x14d   : > { %v1604_v56 = vrot.slane %v1603_v21, 4 }
 0x14e   : > { %v892_v59 = vpop.f32.mrf.mxu2  ;;  %v938_v61 = vpop.f32.mrf.mxu3 }
 0x14f   : > { %v902_v2 = vadd.f32 %v892_v59, %v856_v31  ;;  %v1119_v4 = vpop.f32.mrf.mxu0  ;;  %v1165_v8 = vpop.f32.mrf.mxu1  ;;  %v1606_v31 = vshll.u32 %v5040_v38, 16  ;;  %v5041_v59 = vld [vmem:[%s5883_s7 + $0xd0] sm:$0xf] }
 0x150   : > { %v1139_v6 = vadd.f32 %v1119_v4, %v6129_v17  ;;  %v1567_v17 = vsel %vm5927_vm3, %v1562_v60, %v1566_v10  ;;  %v1611_v1 = vshrl.u32 %v5041_v59, 16 }
 0x151   : > { %v6192_v7 = vadd.f32 %v938_v61, %v902_v2  ;;  %v1643_v30 = vunpack.c.l.b16 %v1567_v17  ;;  %v1608_v57 = vrot.slane %v1606_v31, 5  ;;  %v5043_v61 = vld [vmem:[%s5883_s7 + $0xf0] sm:$0xf]  ;;  %v1614_v2 = vshll.u32 %v5041_v59, 16 }
 0x152   : > { %v1185_v9 = vadd.f32 %v1165_v8, %v1139_v6  ;;  %5051 = vmatmul.msk.bf16.vlgmr.msrb.gmra.mxu0 %vm216_vm0, %v1649_v62  ;;  %5061 = vmatmul.msk.bf16.vlgmr.msrb.gmra.mxu1 %vm216_vm0, %v1649_v62  ;;  %v1625_v6 = vshrl.u32 %v5043_v61, 16  ;;  %v1613_v15 = vrot.slane %v1611_v1, 4 }
 0x153   : > { %5071 = vmatmul.msk.bf16.vlgmr.msrb.gmra.mxu2 %vm216_vm0, %v1649_v62  ;;  %5081 = vmatmul.msk.bf16.vlgmr.msrb.gmra.mxu3 %vm216_vm0, %v1649_v62  ;;  %v1650_v44 = vpack.c.b16 %v1644_v33, %v1643_v30  ;;  %v1609_v14 = vsel %vm5927_vm3, %v1604_v56, %v1608_v57  ;;  %v1620_v30 = vshll.u32 %v5042_v41, 16 }
 0x154   : > { %v1646_v13 = vunpack.c.l.b16 %v1609_v14 }
 0x155   : > { %v1622_v37 = vrot.slane %v1620_v30, 5 }
 0x156   : > { %v1211_v18 = vpop.f32.mrf.mxu2  ;;  %v1257_v16 = vpop.f32.mrf.mxu3 }
 0x157   : > { %v1231_v20 = vadd.f32 %v1211_v18, %v1185_v9  ;;  %v1121_v22 = vpop.f32.mrf.mxu0  ;;  %v1167_v23 = vpop.f32.mrf.mxu1  ;;  %v1628_v9 = vshll.u32 %v5043_v61, 16  ;;  %v1616_v18 = vrot.slane %v1614_v2, 5 }
 0x158   : > { %v1140_v29 = vadd.f32 %v1121_v22, %v6134_v58 }
 0x159   : > { %v6205_v40 = vadd.f32 %v1257_v16, %v1231_v20  ;;  %v1627_v16 = vrot.slane %v1625_v6, 4  ;;  %v1630_v17 = vrot.slane %v1628_v9, 5  ;;  %v1617_v25 = vor.u32 %v1616_v18, %v1613_v15 }
 0x15a   : > { %v1186_v32 = vadd.f32 %v1167_v23, %v1140_v29 }
 0x15b   : > { %v1618_v24 = vrot.slane %v1617_v25, 4 }
 0x15e   : > { %v1213_v42 = vpop.f32.mrf.mxu2  ;;  %v1259_v43 = vpop.f32.mrf.mxu3 }
 0x15f   : > { %v1232_v48 = vadd.f32 %v1213_v42, %v1186_v32  ;;  %v1124_v49 = vpop.f32.mrf.mxu0  ;;  %v1170_v58 = vpop.f32.mrf.mxu1  ;;  %v1634_v32 = vshll.u32 %v5044_v19, 16  ;;  %v5735_v42 = vld [vmem:[%s7018_s1 + $0xf0] sm:$0xff] }
 0x160   : > { %v1141_v39 = vadd.f32 %v1124_v49, %v6141_v63  ;;  %v1595_v63 = vsel %vm5927_vm3, %v1590_v54, %v1594_v55  ;;  %2331 = vmatpush.bf16.msrb.mxu2 %v5735_v42 }
 0x161   : > { %v6210_v52 = vadd.f32 %v1259_v43, %v1232_v48  ;;  %v1645_v11 = vunpack.c.l.b16 %v1595_v63  ;;  %v1636_v38 = vrot.slane %v1634_v32, 5  ;;  %v5736_v43 = vld [vmem:[%s7018_s1 + $0xf8] sm:$0xff] }
 0x162   : > { %v1187_v53 = vadd.f32 %v1170_v58, %v1141_v39  ;;  %5052 = vmatmul.msk.bf16.gmra.mxu0 %vm216_vm0, %v1650_v44  ;;  %5062 = vmatmul.msk.bf16.gmra.mxu1 %vm216_vm0, %v1650_v44  ;;  %v1623_v58 = vsel %vm5927_vm3, %v1618_v24, %v1622_v37  ;;  %v5726_v32 = vld [vmem:[%s5883_s7 + $0x74] sm:$0xf0] }
 0x163   : > { %5072 = vmatmul.msk.bf16.gmra.mxu2 %vm216_vm0, %v1650_v44  ;;  %5082 = vmatmul.msk.bf16.gmra.mxu3 %vm216_vm0, %v1650_v44  ;;  %v1651_v23 = vpack.c.b16 %v1646_v13, %v1645_v11  ;;  %v1647_v55 = vunpack.c.l.b16 %v1623_v58  ;;  %v5097_v11 = vld [vmem:[%s5883_s7 + $0x18] sm:$0xf] }
 0x164   : > { %2377 = vmatpush.bf16.msrb.mxu3 %v5736_v43 }
 0x166   : > { %v1216_v62 = vpop.f32.mrf.mxu2  ;;  %v1262_v0 = vpop.f32.mrf.mxu3 }
 0x167   : > { %v1233_v4 = vadd.f32 %v1216_v62, %v1187_v53  ;;  %v1126_v8 = vpop.f32.mrf.mxu0  ;;  %v1172_v5 = vpop.f32.mrf.mxu1  ;;  %v5734_v53 = vld [vmem:[%s7018_s1 + $0xe8] sm:$0xff] }
 0x168   : > { %v1142_v60 = vadd.f32 %v1126_v8, %v6146_v50  ;;  %v1631_v50 = vor.u32 %v1630_v17, %v1627_v16  ;;  %2285 = vmatpush.bf16.msrb.mxu1 %v5734_v53 }
 0x169   : > { %v6223_v10 = vadd.f32 %v1262_v0, %v1233_v4 }
 0x16a   : > { %v1188_v12 = vadd.f32 %v1172_v5, %v1142_v60  ;;  %v1632_v36 = vrot.slane %v1631_v50, 4  ;;  %v5101_v50 = vld [vmem:[%s5883_s7 + $0x58] sm:$0xf] }
 0x16b   : > { %v5102_v24 = vor.u32 %v5726_v32, %v5101_v50 }
 0x16c   : > { %v1637_v21 = vsel %vm5927_vm3, %v1632_v36, %v1636_v38 }
 0x16d   : > { %v1648_v56 = vunpack.c.l.b16 %v1637_v21  ;;  %v5105_v21 = vld [vmem:[%s5883_s7 + $0x98] sm:$0xf] }
 0x16e   : > { %v1218_v20 = vpop.f32.mrf.mxu2  ;;  %v1264_v22 = vpop.f32.mrf.mxu3 }
 0x16f   : > { %v1234_v26 = vadd.f32 %v1218_v20, %v1188_v12  ;;  %v1129_v28 = vpop.f32.mrf.mxu0  ;;  %v1175_v29 = vpop.f32.mrf.mxu1  ;;  %v1652_v61 = vpack.c.b16 %v1648_v56, %v1647_v55  ;;  %v5725_v12 = vld [vmem:[%s5883_s7 + $0x34] sm:$0xf0] }
 0x170   : > { %v1143_v33 = vadd.f32 %v1129_v28, %v6164_v3  ;;  %v5733_v3 = vld [vmem:[%s7018_s1 + $0xe0] sm:$0xff]  ;;  %v5098_v18 = vor.u32 %v5725_v12, %v5097_v11 }
 0x171   : > { %v6228_v34 = vadd.f32 %v1264_v22, %v1234_v26  ;;  %2239 = vmatpush.bf16.msrb.mxu0 %v5733_v3 }
 0x172   : > { %v1189_v35 = vadd.f32 %v1175_v29, %v1143_v33  ;;  %5053 = vmatmul.msk.bf16.gmra.mxu0 %vm216_vm0, %v1651_v23  ;;  %5063 = vmatmul.msk.bf16.gmra.mxu1 %vm216_vm0, %v1651_v23 }
 0x173   : > { %5073 = vmatmul.msk.bf16.gmra.mxu2 %vm216_vm0, %v1651_v23  ;;  %5083 = vmatmul.msk.bf16.gmra.mxu3 %vm216_vm0, %v1651_v23 }
 0x176   : > { %v1221_v44 = vpop.f32.mrf.mxu2  ;;  %v1267_v45 = vpop.f32.mrf.mxu3 }
 0x177   : > { %v1235_v47 = vadd.f32 %v1221_v44, %v1189_v35  ;;  %v1131_v48 = vpop.f32.mrf.mxu0  ;;  %v1177_v49 = vpop.f32.mrf.mxu1 }
 0x178   : > { %v1144_v31 = vadd.f32 %v1131_v48, %v6174_v27 }
 0x179   : > { %v6248_v39 = vadd.f32 %v1267_v45, %v1235_v47 }
 0x17a   : > { %v1190_v54 = vadd.f32 %v1177_v49, %v1144_v31  ;;  %v5727_v31 = vld [vmem:[%s5883_s7 + $0xb4] sm:$0xf0] }
 0x17b   : > { %v5106_v55 = vor.u32 %v5727_v31, %v5105_v21 }
 0x17e   : > { %v1223_v57 = vpop.f32.mrf.mxu2  ;;  %v1269_v59 = vpop.f32.mrf.mxu3 }
 0x17f   : > { %v1236_v62 = vadd.f32 %v1223_v57, %v1190_v54  ;;  %v1134_v0 = vpop.f32.mrf.mxu0  ;;  %v1180_v63 = vpop.f32.mrf.mxu1 }
 0x180   : > { %v1145_v1 = vadd.f32 %v1134_v0, %v6187_v51 }
 0x181   : > { %v6254_v27 = vadd.f32 %v1269_v59, %v1236_v62 }
 0x182   : > { %v1191_v2 = vadd.f32 %v1180_v63, %v1145_v1  ;;  %5054 = vmatmul.msk.bf16.gmra.mxu0 %vm216_vm0, %v1652_v61  ;;  %5064 = vmatmul.msk.bf16.gmra.mxu1 %vm216_vm0, %v1652_v61  ;;  %v5743_v63 = vld [vmem:[%s7018_s1 + $0x110] sm:$0xff]  ;;  %v5744_v1 = vld [vmem:[%s7018_s1 + $0x118] sm:$0xff] }
 0x183   : > { %5074 = vmatmul.msk.bf16.gmra.mxu2 %vm216_vm0, %v1652_v61  ;;  %5084 = vmatmul.msk.bf16.gmra.mxu3 %vm216_vm0, %v1652_v61 }
 0x186   : > { %v1226_v4 = vpop.f32.mrf.mxu2  ;;  %v1272_v8 = vpop.f32.mrf.mxu3 }
 0x187   : > { %v1237_v5 = vadd.f32 %v1226_v4, %v1191_v2  ;;  %v1136_v14 = vpop.f32.mrf.mxu0  ;;  %v1182_v6 = vpop.f32.mrf.mxu1  ;;  %v5151_v2 = vld [vmem:[%s5883_s7 + $0x38] sm:$0xf] }
 0x188   : > { %v1146_v9 = vadd.f32 %v1136_v14, %v6192_v7  ;;  %v2102_v11 = vshrl.u32 %v5151_v2, 16  ;;  %v2105_v12 = vshll.u32 %v5151_v2, 16 }
 0x189   : > { %v6261_v51 = vadd.f32 %v1272_v8, %v1237_v5 }
 0x18a   : > { %v1192_v60 = vadd.f32 %v1182_v6, %v1146_v9 }
 0x18e   : > { %v1228_v13 = vpop.f32.mrf.mxu2  ;;  %v1274_v15 = vpop.f32.mrf.mxu3 }
 0x18f   : > { %v1238_v16 = vadd.f32 %v1228_v13, %v1192_v60  ;;  %v1344_v17 = vpop.f32.mrf.mxu0  ;;  %v1390_v41 = vpop.f32.mrf.mxu1 }
 0x190   : > { %v1364_v19 = vadd.f32 %v1344_v17, %v6205_v40  ;;  %v5109_v17 = vld [vmem:[%s5883_s7 + $0xd8] sm:$0xf] }
 0x191   : > { %v6266_v20 = vadd.f32 %v1274_v15, %v1238_v16 }
 0x192   : > { %v1410_v22 = vadd.f32 %v1390_v41, %v1364_v19  ;;  %5115 = vmatmul.msk.bf16.vlgmr.msra.gmra.mxu0 %vm216_vm0, %v5098_v18  ;;  %5125 = vmatmul.msk.bf16.vlgmr.msra.gmra.mxu1 %vm216_vm0, %v5098_v18 }
 0x193   : > { %5135 = vmatmul.msk.bf16.vlgmr.msra.gmra.mxu2 %vm216_vm0, %v5098_v18  ;;  %5145 = vmatmul.msk.bf16.vlgmr.msra.gmra.mxu3 %vm216_vm0, %v5098_v18  ;;  %v5742_v18 = vld [vmem:[%s7018_s1 + $0x108] sm:$0xff] }
 0x194   : > { %2556 = vmatpush.bf16.msra.mxu2 %v5743_v63  ;;  %2602 = vmatpush.bf16.msra.mxu3 %v5744_v1 }
 0x195   : > { %2510 = vmatpush.bf16.msra.mxu1 %v5742_v18 }
 0x196   : > { %v1436_v7 = vpop.f32.mrf.mxu2  ;;  %v1482_v23 = vpop.f32.mrf.mxu3 }
 0x197   : > { %v1456_v25 = vadd.f32 %v1436_v7, %v1410_v22  ;;  %v1346_v26 = vpop.f32.mrf.mxu0  ;;  %v1392_v28 = vpop.f32.mrf.mxu1  ;;  %v5728_v22 = vld [vmem:[%s5883_s7 + $0xf4] sm:$0xf0]  ;;  %v5150_v7 = vld [vmem:[%s5883_s7 + $0x1c] sm:$0x1] }
 0x198   : > { %v1365_v29 = vadd.f32 %v1346_v26, %v6210_v52  ;;  %v5152_v26 = vld [vmem:[%s5883_s7 + $0x3c] sm:$0x1]  ;;  %v2097_v50 = vshll.u32 %v5150_v7, 16 }
 0x199   : > { %v6273_v40 = vadd.f32 %v1482_v23, %v1456_v25  ;;  %v2104_v23 = vrot.slane %v2102_v11, 4  ;;  %v2107_v25 = vrot.slane %v2105_v12, 5 }
 0x19a   : > { %v1411_v30 = vadd.f32 %v1392_v28, %v1365_v29 }
 0x19e   : > { %v1438_v33 = vpop.f32.mrf.mxu2  ;;  %v1484_v35 = vpop.f32.mrf.mxu3 }
 0x19f   : > { %v1457_v37 = vadd.f32 %v1438_v33, %v1411_v30  ;;  %v1349_v36 = vpop.f32.mrf.mxu0  ;;  %v1395_v38 = vpop.f32.mrf.mxu1  ;;  %v5110_v30 = vor.u32 %v5728_v22, %v5109_v17 }
 0x1a0   : > { %v1366_v42 = vadd.f32 %v1349_v36, %v6223_v10 }
 0x1a1   : > { %v6278_v3 = vadd.f32 %v1484_v35, %v1457_v37  ;;  %v2111_v37 = vshll.u32 %v5152_v26, 16 }
 0x1a2   : > { %v1412_v43 = vadd.f32 %v1395_v38, %v1366_v42  ;;  %5116 = vmatmul.msk.bf16.gmra.mxu0 %vm216_vm0, %v5102_v24  ;;  %5126 = vmatmul.msk.bf16.gmra.mxu1 %vm216_vm0, %v5102_v24 }
 0x1a3   : > { %5136 = vmatmul.msk.bf16.gmra.mxu2 %vm216_vm0, %v5102_v24  ;;  %5146 = vmatmul.msk.bf16.gmra.mxu3 %vm216_vm0, %v5102_v24  ;;  %v2108_v24 = vor.u32 %v2107_v25, %v2104_v23 }
 0x1a6   : > { %v1441_v52 = vpop.f32.mrf.mxu2  ;;  %v1487_v44 = vpop.f32.mrf.mxu3 }
 0x1a7   : > { %v1458_v45 = vadd.f32 %v1441_v52, %v1412_v43  ;;  %v1351_v47 = vpop.f32.mrf.mxu0  ;;  %v1397_v48 = vpop.f32.mrf.mxu1  ;;  %v2099_v52 = vrot.slane %v2097_v50, 5 }
 0x1a8   : > { %v1367_v49 = vadd.f32 %v1351_v47, %v6228_v34  ;;  %v5149_v34 = vld [vmem:[%s5883_s7 + $0x18] sm:$0xf] }
 0x1a9   : > { %v6285_v10 = vadd.f32 %v1487_v44, %v1458_v45  ;;  %v2088_v5 = vshrl.u32 %v5149_v34, 16  ;;  %v2091_v14 = vshll.u32 %v5149_v34, 16  ;;  %v2109_v44 = vrot.slane %v2108_v24, 4  ;;  %v5153_v47 = vld [vmem:[%s5883_s7 + $0x58] sm:$0xf] }
 0x1aa   : > { %v1413_v58 = vadd.f32 %v1397_v48, %v1367_v49  ;;  %v2113_v45 = vrot.slane %v2111_v37, 5  ;;  %v5155_v48 = vld [vmem:[%s5883_s7 + $0x78] sm:$0xf]  ;;  %v2116_v21 = vshrl.u32 %v5153_v47, 16  ;;  %v2119_v31 = vshll.u32 %v5153_v47, 16 }
 0x1ab   : > { %v2090_v41 = vrot.slane %v2088_v5, 4  ;;  %v2093_v19 = vrot.slane %v2091_v14, 5  ;;  %v5156_v14 = vld [vmem:[%s5883_s7 + $0x7c] sm:$0x1] }
 0x1ac   : > { %v2118_v1 = vrot.slane %v2116_v21, 4  ;;  %v2121_v2 = vrot.slane %v2119_v31, 5  ;;  %v2139_v17 = vshll.u32 %v5156_v14, 16  ;;  %v5160_v31 = vld [vmem:[%s5883_s7 + $0xbc] sm:$0x1] }
 0x1ae   : > { %v1443_v53 = vpop.f32.mrf.mxu2  ;;  %v1489_v54 = vpop.f32.mrf.mxu3  ;;  %v2122_v11 = vor.u32 %v2121_v2, %v2118_v1  ;;  %v2141_v26 = vrot.slane %v2139_v17, 5 }
 0x1af   : > { %v1459_v56 = vadd.f32 %v1443_v53, %v1413_v58  ;;  %v1354_v57 = vpop.f32.mrf.mxu0  ;;  %v1400_v59 = vpop.f32.mrf.mxu1 }
 0x1b0   : > { %v1368_v61 = vadd.f32 %v1354_v57, %v6248_v39  ;;  %v5741_v39 = vld [vmem:[%s7018_s1 + $0x100] sm:$0xff]  ;;  %v2130_v57 = vshrl.u32 %v5155_v48, 16  ;;  %v2123_v7 = vrot.slane %v2122_v11, 4 }
 0x1b1   : > { %v6290_v62 = vadd.f32 %v1489_v54, %v1459_v56  ;;  %2464 = vmatpush.bf16.msra.mxu0 %v5741_v39  ;;  %v2114_v56 = vsel %vm5927_vm3, %v2109_v44, %v2113_v45 }
 0x1b2   : > { %v1414_v0 = vadd.f32 %v1400_v59, %v1368_v61  ;;  %5117 = vmatmul.msk.bf16.gmra.mxu0 %vm216_vm0, %v5106_v55  ;;  %5127 = vmatmul.msk.bf16.gmra.mxu1 %vm216_vm0, %v5106_v55  ;;  %v2133_v59 = vshll.u32 %v5155_v48, 16  ;;  %v2203_v39 = vunpack.c.l.b16 %v2114_v56 }
 0x1b3   : > { %5137 = vmatmul.msk.bf16.gmra.mxu2 %vm216_vm0, %v5106_v55  ;;  %5147 = vmatmul.msk.bf16.gmra.mxu3 %vm216_vm0, %v5106_v55 }
 0x1b4   : > { %v2135_v5 = vrot.slane %v2133_v59, 5 }
 0x1b6   : > { %v1446_v4 = vpop.f32.mrf.mxu2  ;;  %v1492_v8 = vpop.f32.mrf.mxu3 }
 0x1b7   : > { %v1460_v6 = vadd.f32 %v1446_v4, %v1414_v0  ;;  %v1356_v9 = vpop.f32.mrf.mxu0  ;;  %v1402_v60 = vpop.f32.mrf.mxu1  ;;  %v5154_v4 = vld [vmem:[%s5883_s7 + $0x5c] sm:$0x1] }
 0x1b8   : > { %v1369_v13 = vadd.f32 %v1356_v9, %v6254_v27  ;;  %v2094_v27 = vor.u32 %v2093_v19, %v2090_v41  ;;  %v2125_v12 = vshll.u32 %v5154_v4, 16 }
 0x1b9   : > { %v6308_v15 = vadd.f32 %v1492_v8, %v1460_v6  ;;  %v2132_v8 = vrot.slane %v2130_v57, 4 }
 0x1ba   : > { %v1415_v16 = vadd.f32 %v1402_v60, %v1369_v13  ;;  %v2095_v43 = vrot.slane %v2094_v27, 4  ;;  %v2127_v23 = vrot.slane %v2125_v12, 5 }
 0x1be   : > { %v1448_v28 = vpop.f32.mrf.mxu2  ;;  %v1494_v29 = vpop.f32.mrf.mxu3 }
 0x1bf   : > { %v1461_v32 = vadd.f32 %v1448_v28, %v1415_v16  ;;  %v1359_v33 = vpop.f32.mrf.mxu0  ;;  %v1405_v35 = vpop.f32.mrf.mxu1  ;;  %v2136_v16 = vor.u32 %v2135_v5, %v2132_v8  ;;  %v5157_v28 = vld [vmem:[%s5883_s7 + $0x98] sm:$0xf] }
 0x1c0   : > { %v1370_v36 = vadd.f32 %v1359_v33, %v6261_v51  ;;  %v2100_v51 = vsel %vm5927_vm3, %v2095_v43, %v2099_v52  ;;  %v2144_v50 = vshrl.u32 %v5157_v28, 16 }
 0x1c1   : > { %v6318_v38 = vadd.f32 %v1494_v29, %v1461_v32  ;;  %v2202_v34 = vunpack.c.l.b16 %v2100_v51  ;;  %v2137_v25 = vrot.slane %v2136_v16, 4  ;;  %v5159_v29 = vld [vmem:[%s5883_s7 + $0xb8] sm:$0xf]  ;;  %v2147_v32 = vshll.u32 %v5157_v28, 16 }
 0x1c2   : > { %v1416_v42 = vadd.f32 %v1405_v35, %v1370_v36  ;;  %5118 = vmatmul.msk.bf16.gmra.mxu0 %vm216_vm0, %v5110_v30  ;;  %5128 = vmatmul.msk.bf16.gmra.mxu1 %vm216_vm0, %v5110_v30  ;;  %v2158_v36 = vshrl.u32 %v5159_v29, 16  ;;  %v2146_v48 = vrot.slane %v2144_v50, 4  ;;  %v5162_v50 = vld [vmem:[%s5883_s7 + $0xdc] sm:$0x1] }
 0x1c3   : > { %5138 = vmatmul.msk.bf16.gmra.mxu2 %vm216_vm0, %v5110_v30  ;;  %5148 = vmatmul.msk.bf16.gmra.mxu3 %vm216_vm0, %v5110_v30  ;;  %v2210_v60 = vpack.c.b16 %v2203_v39, %v2202_v34  ;;  %v2142_v37 = vsel %vm5927_vm3, %v2137_v25, %v2141_v26 }
 0x1c4   : > { %v2205_v47 = vunpack.c.l.b16 %v2142_v37  ;;  %v2160_v51 = vrot.slane %v2158_v36, 4 }
 0x1c6   : > { %v1451_v49 = vpop.f32.mrf.mxu2  ;;  %v1497_v58 = vpop.f32.mrf.mxu3 }
 0x1c7   : > { %v1462_v53 = vadd.f32 %v1451_v49, %v1416_v42  ;;  %v1361_v54 = vpop.f32.mrf.mxu0  ;;  %v1407_v55 = vpop.f32.mrf.mxu1  ;;  %v2161_v42 = vshll.u32 %v5159_v29, 16  ;;  %v2149_v49 = vrot.slane %v2147_v32, 5  ;;  %v5164_v32 = vld [vmem:[%s5883_s7 + $0xfc] sm:$0x1] }
 0x1c8   : > { %v1371_v61 = vadd.f32 %v1361_v54, %v6266_v20 }
 0x1c9   : > { %v6331_v0 = vadd.f32 %v1497_v58, %v1462_v53  ;;  %v5158_v58 = vld [vmem:[%s5883_s7 + $0x9c] sm:$0x1]  ;;  %v2163_v21 = vrot.slane %v2161_v42, 5  ;;  %v2150_v56 = vor.u32 %v2149_v49, %v2146_v48 }
 0x1ca   : > { %v1417_v63 = vadd.f32 %v1407_v55, %v1371_v61  ;;  %v2153_v57 = vshll.u32 %v5158_v58, 16 }
 0x1cb   : > { %v2164_v34 = vor.u32 %v2163_v21, %v2160_v51  ;;  %v2151_v4 = vrot.slane %v2150_v56, 4 }
 0x1cc   : > { %v2155_v8 = vrot.slane %v2153_v57, 5 }
 0x1cd   : > { %v2165_v5 = vrot.slane %v2164_v34, 4 }
 0x1ce   : > { %v1453_v6 = vpop.f32.mrf.mxu2  ;;  %v1499_v9 = vpop.f32.mrf.mxu3 }
 0x1cf   : > { %v1463_v13 = vadd.f32 %v1453_v6, %v1417_v63  ;;  %v1680_v18 = vpop.f32.mrf.mxu0  ;;  %v1726_v20 = vpop.f32.mrf.mxu1  ;;  %v2167_v63 = vshll.u32 %v5160_v31, 16  ;;  %v5161_v6 = vld [vmem:[%s5883_s7 + $0xd8] sm:$0xf] }
 0x1d0   : > { %v1700_v41 = vadd.f32 %v1680_v18, %v6273_v40  ;;  %v2128_v40 = vsel %vm5927_vm3, %v2123_v7, %v2127_v23  ;;  %v2172_v12 = vshrl.u32 %v5161_v6, 16 }
 0x1d1   : > { %v6336_v19 = vadd.f32 %v1499_v9, %v1463_v13  ;;  %v2204_v44 = vunpack.c.l.b16 %v2128_v40  ;;  %v2169_v14 = vrot.slane %v2167_v63, 5  ;;  %v5163_v9 = vld [vmem:[%s5883_s7 + $0xf8] sm:$0xf]  ;;  %v2175_v13 = vshll.u32 %v5161_v6, 16 }
 0x1d2   : > { %v1746_v22 = vadd.f32 %v1726_v20, %v1700_v41  ;;  %5171 = vmatmul.msk.bf16.vlgmr.msrb.gmra.mxu0 %vm216_vm0, %v2210_v60  ;;  %5181 = vmatmul.msk.bf16.vlgmr.msrb.gmra.mxu1 %vm216_vm0, %v2210_v60  ;;  %v2186_v41 = vshrl.u32 %v5163_v9, 16  ;;  %v2174_v29 = vrot.slane %v2172_v12, 4 }
 0x1d3   : > { %5191 = vmatmul.msk.bf16.vlgmr.msrb.gmra.mxu2 %vm216_vm0, %v2210_v60  ;;  %5201 = vmatmul.msk.bf16.vlgmr.msrb.gmra.mxu3 %vm216_vm0, %v2210_v60  ;;  %v2211_v55 = vpack.c.b16 %v2205_v47, %v2204_v44  ;;  %v2170_v17 = vsel %vm5927_vm3, %v2165_v5, %v2169_v14  ;;  %v2181_v44 = vshll.u32 %v5162_v50, 16 }
 0x1d4   : > { %v2207_v28 = vunpack.c.l.b16 %v2170_v17 }
 0x1d5   : > { %v2183_v51 = vrot.slane %v2181_v44, 5 }
 0x1d6   : > { %v1772_v30 = vpop.f32.mrf.mxu2  ;;  %v1818_v27 = vpop.f32.mrf.mxu3 }
 0x1d7   : > { %v1792_v33 = vadd.f32 %v1772_v30, %v1746_v22  ;;  %v1682_v35 = vpop.f32.mrf.mxu0  ;;  %v1728_v24 = vpop.f32.mrf.mxu1  ;;  %v2189_v22 = vshll.u32 %v5163_v9, 16  ;;  %v2177_v30 = vrot.slane %v2175_v13, 5 }
 0x1d8   : > { %v1701_v43 = vadd.f32 %v1682_v35, %v6278_v3 }
 0x1d9   : > { %v6349_v52 = vadd.f32 %v1818_v27, %v1792_v33  ;;  %v2188_v27 = vrot.slane %v2186_v41, 4  ;;  %v2191_v40 = vrot.slane %v2189_v22, 5  ;;  %v2178_v37 = vor.u32 %v2177_v30, %v2174_v29 }
 0x1da   : > { %v1747_v45 = vadd.f32 %v1728_v24, %v1701_v43 }
 0x1db   : > { %v2179_v58 = vrot.slane %v2178_v37, 4 }
 0x1de   : > { %v1774_v53 = vpop.f32.mrf.mxu2  ;;  %v1820_v54 = vpop.f32.mrf.mxu3 }
 0x1df   : > { %v1793_v59 = vadd.f32 %v1774_v53, %v1747_v45  ;;  %v1685_v61 = vpop.f32.mrf.mxu0  ;;  %v1731_v3 = vpop.f32.mrf.mxu1  ;;  %v2195_v45 = vshll.u32 %v5164_v32, 16  ;;  %v5747_v53 = vld [vmem:[%s7018_s1 + $0x130] sm:$0xff] }
 0x1e0   : > { %v1702_v39 = vadd.f32 %v1685_v61, %v6285_v10  ;;  %v2156_v10 = vsel %vm5927_vm3, %v2151_v4, %v2155_v8  ;;  %2892 = vmatpush.bf16.msrb.mxu2 %v5747_v53 }
 0x1e1   : > { %v6354_v1 = vadd.f32 %v1820_v54, %v1793_v59  ;;  %v2206_v25 = vunpack.c.l.b16 %v2156_v10  ;;  %v2197_v31 = vrot.slane %v2195_v45, 5  ;;  %v5748_v54 = vld [vmem:[%s7018_s1 + $0x138] sm:$0xff]  ;;  %v5738_v45 = vld [vmem:[%s5883_s7 + $0x7c] sm:$0xf0] }
 0x1e2   : > { %v1748_v2 = vadd.f32 %v1731_v3, %v1702_v39  ;;  %5172 = vmatmul.msk.bf16.gmra.mxu0 %vm216_vm0, %v2211_v55  ;;  %5182 = vmatmul.msk.bf16.gmra.mxu1 %vm216_vm0, %v2211_v55  ;;  %v2184_v3 = vsel %vm5927_vm3, %v2179_v58, %v2183_v51 }
 0x1e3   : > { %5192 = vmatmul.msk.bf16.gmra.mxu2 %vm216_vm0, %v2211_v55  ;;  %5202 = vmatmul.msk.bf16.gmra.mxu3 %vm216_vm0, %v2211_v55  ;;  %v2212_v24 = vpack.c.b16 %v2207_v28, %v2206_v25  ;;  %v2208_v8 = vunpack.c.l.b16 %v2184_v3  ;;  %v5217_v25 = vld [vmem:[%s5883_s7 + $0x20] sm:$0xf] }
 0x1e4   : > { %2938 = vmatpush.bf16.msrb.mxu3 %v5748_v54 }
 0x1e6   : > { %v1777_v60 = vpop.f32.mrf.mxu2  ;;  %v1823_v11 = vpop.f32.mrf.mxu3 }
 0x1e7   : > { %v1794_v18 = vadd.f32 %v1777_v60, %v1748_v2  ;;  %v1687_v20 = vpop.f32.mrf.mxu0  ;;  %v1733_v16 = vpop.f32.mrf.mxu1  ;;  %v5746_v2 = vld [vmem:[%s7018_s1 + $0x128] sm:$0xff] }
 0x1e8   : > { %v1703_v7 = vadd.f32 %v1687_v20, %v6290_v62  ;;  %v2192_v62 = vor.u32 %v2191_v40, %v2188_v27  ;;  %2846 = vmatpush.bf16.msrb.mxu1 %v5746_v2 }
 0x1e9   : > { %v6367_v23 = vadd.f32 %v1823_v11, %v1794_v18 }
 0x1ea   : > { %v1749_v26 = vadd.f32 %v1733_v16, %v1703_v7  ;;  %v2193_v21 = vrot.slane %v2192_v62, 4  ;;  %v5221_v62 = vld [vmem:[%s5883_s7 + $0x60] sm:$0xf] }
 0x1eb   : > { %v5222_v58 = vor.u32 %v5738_v45, %v5221_v62 }
 0x1ec   : > { %v2198_v34 = vsel %vm5927_vm3, %v2193_v21, %v2197_v31 }
 0x1ed   : > { %v2209_v5 = vunpack.c.l.b16 %v2198_v34  ;;  %v5225_v34 = vld [vmem:[%s5883_s7 + $0xa0] sm:$0xf] }
 0x1ee   : > { %v1779_v33 = vpop.f32.mrf.mxu2  ;;  %v1825_v35 = vpop.f32.mrf.mxu3 }
 0x1ef   : > { %v1795_v36 = vadd.f32 %v1779_v33, %v1749_v26  ;;  %v1690_v42 = vpop.f32.mrf.mxu0  ;;  %v1736_v43 = vpop.f32.mrf.mxu1  ;;  %v2213_v9 = vpack.c.b16 %v2209_v5, %v2208_v8  ;;  %v5737_v26 = vld [vmem:[%s5883_s7 + $0x3c] sm:$0xf0] }
 0x1f0   : > { %v1704_v47 = vadd.f32 %v1690_v42, %v6308_v15  ;;  %v5745_v15 = vld [vmem:[%s7018_s1 + $0x120] sm:$0xff]  ;;  %v5218_v30 = vor.u32 %v5737_v26, %v5217_v25 }
 0x1f1   : > { %v6372_v48 = vadd.f32 %v1825_v35, %v1795_v36  ;;  %2800 = vmatpush.bf16.msrb.mxu0 %v5745_v15 }
 0x1f2   : > { %v1750_v49 = vadd.f32 %v1736_v43, %v1704_v47  ;;  %5173 = vmatmul.msk.bf16.gmra.mxu0 %vm216_vm0, %v2212_v24  ;;  %5183 = vmatmul.msk.bf16.gmra.mxu1 %vm216_vm0, %v2212_v24 }
 0x1f3   : > { %5193 = vmatmul.msk.bf16.gmra.mxu2 %vm216_vm0, %v2212_v24  ;;  %5203 = vmatmul.msk.bf16.gmra.mxu3 %vm216_vm0, %v2212_v24 }
 0x1f6   : > { %v1782_v55 = vpop.f32.mrf.mxu2  ;;  %v1828_v56 = vpop.f32.mrf.mxu3 }
 0x1f7   : > { %v1796_v57 = vadd.f32 %v1782_v55, %v1750_v49  ;;  %v1692_v59 = vpop.f32.mrf.mxu0  ;;  %v1738_v61 = vpop.f32.mrf.mxu1 }
 0x1f8   : > { %v1705_v63 = vadd.f32 %v1692_v59, %v6318_v38 }
 0x1f9   : > { %v6392_v39 = vadd.f32 %v1828_v56, %v1796_v57 }
 0x1fa   : > { %v1751_v4 = vadd.f32 %v1738_v61, %v1705_v63  ;;  %v5739_v63 = vld [vmem:[%s5883_s7 + $0xbc] sm:$0xf0] }
 0x1fb   : > { %v5226_v8 = vor.u32 %v5739_v63, %v5225_v34 }
 0x1fe   : > { %v1784_v14 = vpop.f32.mrf.mxu2  ;;  %v1830_v6 = vpop.f32.mrf.mxu3 }
 0x1ff   : > { %v1797_v60 = vadd.f32 %v1784_v14, %v1751_v4  ;;  %v1695_v11 = vpop.f32.mrf.mxu0  ;;  %v1741_v10 = vpop.f32.mrf.mxu1 }
 0x200   : > { %v1706_v12 = vadd.f32 %v1695_v11, %v6331_v0 }
 0x201   : > { %v6398_v38 = vadd.f32 %v1830_v6, %v1797_v60 }
 0x202   : > { %v1752_v13 = vadd.f32 %v1741_v10, %v1706_v12  ;;  %5174 = vmatmul.msk.bf16.gmra.mxu0 %vm216_vm0, %v2213_v9  ;;  %5184 = vmatmul.msk.bf16.gmra.mxu1 %vm216_vm0, %v2213_v9  ;;  %v5755_v10 = vld [vmem:[%s7018_s1 + $0x150] sm:$0xff]  ;;  %v5756_v12 = vld [vmem:[%s7018_s1 + $0x158] sm:$0xff] }
 0x203   : > { %5194 = vmatmul.msk.bf16.gmra.mxu2 %vm216_vm0, %v2213_v9  ;;  %5204 = vmatmul.msk.bf16.gmra.mxu3 %vm216_vm0, %v2213_v9 }
 0x206   : > { %v1787_v18 = vpop.f32.mrf.mxu2  ;;  %v1833_v20 = vpop.f32.mrf.mxu3 }
 0x207   : > { %v1798_v16 = vadd.f32 %v1787_v18, %v1752_v13  ;;  %v1697_v17 = vpop.f32.mrf.mxu0  ;;  %v1743_v41 = vpop.f32.mrf.mxu1  ;;  %v5271_v13 = vld [vmem:[%s5883_s7 + $0x40] sm:$0xf] }
 0x208   : > { %v1707_v22 = vadd.f32 %v1697_v17, %v6336_v19  ;;  %v2663_v25 = vshrl.u32 %v5271_v13, 16  ;;  %v2666_v26 = vshll.u32 %v5271_v13, 16 }
 0x209   : > { %v6405_v0 = vadd.f32 %v1833_v20, %v1798_v16 }
 0x20a   : > { %v1753_v7 = vadd.f32 %v1743_v41, %v1707_v22 }
 0x20e   : > { %v1789_v28 = vpop.f32.mrf.mxu2  ;;  %v1835_v29 = vpop.f32.mrf.mxu3 }
 0x20f   : > { %v1799_v27 = vadd.f32 %v1789_v28, %v1753_v7  ;;  %v1905_v40 = vpop.f32.mrf.mxu0  ;;  %v1951_v50 = vpop.f32.mrf.mxu1 }
 0x210   : > { %v1925_v32 = vadd.f32 %v1905_v40, %v6349_v52  ;;  %v5229_v40 = vld [vmem:[%s5883_s7 + $0xe0] sm:$0xf] }
 0x211   : > { %v6410_v33 = vadd.f32 %v1835_v29, %v1799_v27 }
 0x212   : > { %v1971_v35 = vadd.f32 %v1951_v50, %v1925_v32  ;;  %5235 = vmatmul.msk.bf16.vlgmr.msra.gmra.mxu0 %vm216_vm0, %v5218_v30  ;;  %5245 = vmatmul.msk.bf16.vlgmr.msra.gmra.mxu1 %vm216_vm0, %v5218_v30 }
 0x213   : > { %5255 = vmatmul.msk.bf16.vlgmr.msra.gmra.mxu2 %vm216_vm0, %v5218_v30  ;;  %5265 = vmatmul.msk.bf16.vlgmr.msra.gmra.mxu3 %vm216_vm0, %v5218_v30  ;;  %v5754_v30 = vld [vmem:[%s7018_s1 + $0x148] sm:$0xff] }
 0x214   : > { %3117 = vmatpush.bf16.msra.mxu2 %v5755_v10  ;;  %3163 = vmatpush.bf16.msra.mxu3 %v5756_v12 }
 0x215   : > { %3071 = vmatpush.bf16.msra.mxu1 %v5754_v30 }
 0x216   : > { %v1997_v19 = vpop.f32.mrf.mxu2  ;;  %v2043_v24 = vpop.f32.mrf.mxu3 }
 0x217   : > { %v2017_v37 = vadd.f32 %v1997_v19, %v1971_v35  ;;  %v1907_v36 = vpop.f32.mrf.mxu0  ;;  %v1953_v42 = vpop.f32.mrf.mxu1  ;;  %v5740_v35 = vld [vmem:[%s5883_s7 + $0xfc] sm:$0xf0]  ;;  %v5270_v19 = vld [vmem:[%s5883_s7 + $0x24] sm:$0x1] }
 0x218   : > { %v1926_v43 = vadd.f32 %v1907_v36, %v6354_v1  ;;  %v5272_v36 = vld [vmem:[%s5883_s7 + $0x44] sm:$0x1]  ;;  %v2658_v62 = vshll.u32 %v5270_v19, 16 }
 0x219   : > { %v6417_v52 = vadd.f32 %v2043_v24, %v2017_v37  ;;  %v2665_v24 = vrot.slane %v2663_v25, 4  ;;  %v2668_v37 = vrot.slane %v2666_v26, 5 }
 0x21a   : > { %v1972_v44 = vadd.f32 %v1953_v42, %v1926_v43 }
 0x21e   : > { %v1999_v47 = vpop.f32.mrf.mxu2  ;;  %v2045_v49 = vpop.f32.mrf.mxu3 }
 0x21f   : > { %v2018_v51 = vadd.f32 %v1999_v47, %v1972_v44  ;;  %v1910_v21 = vpop.f32.mrf.mxu0  ;;  %v1956_v31 = vpop.f32.mrf.mxu1  ;;  %v5230_v44 = vor.u32 %v5740_v35, %v5229_v40 }
 0x220   : > { %v1927_v53 = vadd.f32 %v1910_v21, %v6367_v23 }
 0x221   : > { %v6422_v15 = vadd.f32 %v2045_v49, %v2018_v51  ;;  %v2672_v51 = vshll.u32 %v5272_v36, 16 }
 0x222   : > { %v1973_v54 = vadd.f32 %v1956_v31, %v1927_v53  ;;  %5236 = vmatmul.msk.bf16.gmra.mxu0 %vm216_vm0, %v5222_v58  ;;  %5246 = vmatmul.msk.bf16.gmra.mxu1 %vm216_vm0, %v5222_v58 }
 0x223   : > { %5256 = vmatmul.msk.bf16.gmra.mxu2 %vm216_vm0, %v5222_v58  ;;  %5266 = vmatmul.msk.bf16.gmra.mxu3 %vm216_vm0, %v5222_v58  ;;  %v2669_v58 = vor.u32 %v2668_v37, %v2665_v24 }
 0x226   : > { %v2002_v1 = vpop.f32.mrf.mxu2  ;;  %v2048_v55 = vpop.f32.mrf.mxu3 }
 0x227   : > { %v2019_v56 = vadd.f32 %v2002_v1, %v1973_v54  ;;  %v1912_v57 = vpop.f32.mrf.mxu0  ;;  %v1958_v59 = vpop.f32.mrf.mxu1  ;;  %v2660_v1 = vrot.slane %v2658_v62, 5 }
 0x228   : > { %v1928_v61 = vadd.f32 %v1912_v57, %v6372_v48  ;;  %v5269_v48 = vld [vmem:[%s5883_s7 + $0x20] sm:$0xf] }
 0x229   : > { %v6429_v23 = vadd.f32 %v2048_v55, %v2019_v56  ;;  %v2649_v16 = vshrl.u32 %v5269_v48, 16  ;;  %v2652_v17 = vshll.u32 %v5269_v48, 16  ;;  %v2670_v55 = vrot.slane %v2669_v58, 4  ;;  %v5273_v57 = vld [vmem:[%s5883_s7 + $0x60] sm:$0xf] }
 0x22a   : > { %v1974_v3 = vadd.f32 %v1958_v59, %v1928_v61  ;;  %v2674_v56 = vrot.slane %v2672_v51, 5  ;;  %v5275_v59 = vld [vmem:[%s5883_s7 + $0x80] sm:$0xf]  ;;  %v2677_v34 = vshrl.u32 %v5273_v57, 16  ;;  %v2680_v63 = vshll.u32 %v5273_v57, 16 }
 0x22b   : > { %v2651_v50 = vrot.slane %v2649_v16, 4  ;;  %v2654_v32 = vrot.slane %v2652_v17, 5  ;;  %v5276_v17 = vld [vmem:[%s5883_s7 + $0x84] sm:$0x1] }
 0x22c   : > { %v2679_v12 = vrot.slane %v2677_v34, 4  ;;  %v2682_v13 = vrot.slane %v2680_v63, 5  ;;  %v2700_v40 = vshll.u32 %v5276_v17, 16  ;;  %v5280_v63 = vld [vmem:[%s5883_s7 + $0xc4] sm:$0x1] }
 0x22e   : > { %v2004_v2 = vpop.f32.mrf.mxu2  ;;  %v2050_v4 = vpop.f32.mrf.mxu3  ;;  %v2683_v25 = vor.u32 %v2682_v13, %v2679_v12  ;;  %v2702_v36 = vrot.slane %v2700_v40, 5 }
 0x22f   : > { %v2020_v5 = vadd.f32 %v2004_v2, %v1974_v3  ;;  %v1915_v14 = vpop.f32.mrf.mxu0  ;;  %v1961_v6 = vpop.f32.mrf.mxu1 }
 0x230   : > { %v1929_v9 = vadd.f32 %v1915_v14, %v6392_v39  ;;  %v5753_v39 = vld [vmem:[%s7018_s1 + $0x140] sm:$0xff]  ;;  %v2691_v14 = vshrl.u32 %v5275_v59, 16  ;;  %v2684_v19 = vrot.slane %v2683_v25, 4 }
 0x231   : > { %v6434_v60 = vadd.f32 %v2050_v4, %v2020_v5  ;;  %3025 = vmatpush.bf16.msra.mxu0 %v5753_v39  ;;  %v2675_v5 = vsel %vm5927_vm3, %v2670_v55, %v2674_v56 }
 0x232   : > { %v1975_v11 = vadd.f32 %v1961_v6, %v1929_v9  ;;  %5237 = vmatmul.msk.bf16.gmra.mxu0 %vm216_vm0, %v5226_v8  ;;  %5247 = vmatmul.msk.bf16.gmra.mxu1 %vm216_vm0, %v5226_v8  ;;  %v2694_v6 = vshll.u32 %v5275_v59, 16  ;;  %v2764_v39 = vunpack.c.l.b16 %v2675_v5 }
 0x233   : > { %5257 = vmatmul.msk.bf16.gmra.mxu2 %vm216_vm0, %v5226_v8  ;;  %5267 = vmatmul.msk.bf16.gmra.mxu3 %vm216_vm0, %v5226_v8 }
 0x234   : > { %v2696_v16 = vrot.slane %v2694_v6, 5 }
 0x236   : > { %v2007_v18 = vpop.f32.mrf.mxu2  ;;  %v2053_v20 = vpop.f32.mrf.mxu3 }
 0x237   : > { %v2021_v41 = vadd.f32 %v2007_v18, %v1975_v11  ;;  %v1917_v22 = vpop.f32.mrf.mxu0  ;;  %v1963_v7 = vpop.f32.mrf.mxu1  ;;  %v5274_v18 = vld [vmem:[%s5883_s7 + $0x64] sm:$0x1] }
 0x238   : > { %v1930_v28 = vadd.f32 %v1917_v22, %v6398_v38  ;;  %v2655_v38 = vor.u32 %v2654_v32, %v2651_v50  ;;  %v2686_v26 = vshll.u32 %v5274_v18, 16 }
 0x239   : > { %v6452_v29 = vadd.f32 %v2053_v20, %v2021_v41  ;;  %v2693_v20 = vrot.slane %v2691_v14, 4 }
 0x23a   : > { %v1976_v27 = vadd.f32 %v1963_v7, %v1930_v28  ;;  %v2656_v54 = vrot.slane %v2655_v38, 4  ;;  %v2688_v24 = vrot.slane %v2686_v26, 5 }
 0x23e   : > { %v2009_v42 = vpop.f32.mrf.mxu2  ;;  %v2055_v43 = vpop.f32.mrf.mxu3 }
 0x23f   : > { %v2022_v45 = vadd.f32 %v2009_v42, %v1976_v27  ;;  %v1920_v47 = vpop.f32.mrf.mxu0  ;;  %v1966_v49 = vpop.f32.mrf.mxu1  ;;  %v2697_v27 = vor.u32 %v2696_v16, %v2693_v20  ;;  %v5277_v42 = vld [vmem:[%s5883_s7 + $0xa0] sm:$0xf] }
 0x240   : > { %v1931_v21 = vadd.f32 %v1920_v47, %v6405_v0  ;;  %v2661_v0 = vsel %vm5927_vm3, %v2656_v54, %v2660_v1  ;;  %v2705_v62 = vshrl.u32 %v5277_v42, 16 }
 0x241   : > { %v6462_v31 = vadd.f32 %v2055_v43, %v2022_v45  ;;  %v2763_v48 = vunpack.c.l.b16 %v2661_v0  ;;  %v2698_v37 = vrot.slane %v2697_v27, 4  ;;  %v5279_v43 = vld [vmem:[%s5883_s7 + $0xc0] sm:$0xf]  ;;  %v2708_v45 = vshll.u32 %v5277_v42, 16 }
 0x242   : > { %v1977_v53 = vadd.f32 %v1966_v49, %v1931_v21  ;;  %5238 = vmatmul.msk.bf16.gmra.mxu0 %vm216_vm0, %v5230_v44  ;;  %5248 = vmatmul.msk.bf16.gmra.mxu1 %vm216_vm0, %v5230_v44  ;;  %v2719_v21 = vshrl.u32 %v5279_v43, 16  ;;  %v2707_v59 = vrot.slane %v2705_v62, 4  ;;  %v5282_v62 = vld [vmem:[%s5883_s7 + $0xe4] sm:$0x1] }
 0x243   : > { %5258 = vmatmul.msk.bf16.gmra.mxu2 %vm216_vm0, %v5230_v44  ;;  %5268 = vmatmul.msk.bf16.gmra.mxu3 %vm216_vm0, %v5230_v44  ;;  %v2771_v7 = vpack.c.b16 %v2764_v39, %v2763_v48  ;;  %v2703_v51 = vsel %vm5927_vm3, %v2698_v37, %v2702_v36 }
 0x244   : > { %v2766_v57 = vunpack.c.l.b16 %v2703_v51  ;;  %v2721_v0 = vrot.slane %v2719_v21, 4 }
 0x246   : > { %v2012_v61 = vpop.f32.mrf.mxu2  ;;  %v2058_v3 = vpop.f32.mrf.mxu3 }
 0x247   : > { %v2023_v2 = vadd.f32 %v2012_v61, %v1977_v53  ;;  %v1922_v4 = vpop.f32.mrf.mxu0  ;;  %v1968_v8 = vpop.f32.mrf.mxu1  ;;  %v2722_v53 = vshll.u32 %v5279_v43, 16  ;;  %v2710_v61 = vrot.slane %v2708_v45, 5  ;;  %v5284_v45 = vld [vmem:[%s5883_s7 + $0x104] sm:$0x1] }
 0x248   : > { %v1932_v9 = vadd.f32 %v1922_v4, %v6410_v33 }
 0x249   : > { %v6475_v11 = vadd.f32 %v2058_v3, %v2023_v2  ;;  %v5278_v3 = vld [vmem:[%s5883_s7 + $0xa4] sm:$0x1]  ;;  %v2724_v34 = vrot.slane %v2722_v53, 5  ;;  %v2711_v5 = vor.u32 %v2710_v61, %v2707_v59 }
 0x24a   : > { %v1978_v10 = vadd.f32 %v1968_v8, %v1932_v9  ;;  %v2714_v14 = vshll.u32 %v5278_v3, 16 }
 0x24b   : > { %v2725_v48 = vor.u32 %v2724_v34, %v2721_v0  ;;  %v2712_v18 = vrot.slane %v2711_v5, 4 }
 0x24c   : > { %v2716_v20 = vrot.slane %v2714_v14, 5 }
 0x24d   : > { %v2726_v16 = vrot.slane %v2725_v48, 4 }
 0x24e   : > { %v2014_v41 = vpop.f32.mrf.mxu2  ;;  %v2060_v22 = vpop.f32.mrf.mxu3 }
 0x24f   : > { %v2024_v28 = vadd.f32 %v2014_v41, %v1978_v10  ;;  %v2241_v30 = vpop.f32.mrf.mxu0  ;;  %v2287_v33 = vpop.f32.mrf.mxu1  ;;  %v2728_v10 = vshll.u32 %v5280_v63, 16  ;;  %v5281_v41 = vld [vmem:[%s5883_s7 + $0xe0] sm:$0xf] }
 0x250   : > { %v2261_v50 = vadd.f32 %v2241_v30, %v6417_v52  ;;  %v2689_v52 = vsel %vm5927_vm3, %v2684_v19, %v2688_v24  ;;  %v2733_v26 = vshrl.u32 %v5281_v41, 16 }
 0x251   : > { %v6480_v32 = vadd.f32 %v2060_v22, %v2024_v28  ;;  %v2765_v55 = vunpack.c.l.b16 %v2689_v52  ;;  %v2730_v17 = vrot.slane %v2728_v10, 5  ;;  %v5283_v22 = vld [vmem:[%s5883_s7 + $0x100] sm:$0xf]  ;;  %v2736_v28 = vshll.u32 %v5281_v41, 16 }
 0x252   : > { %v2307_v35 = vadd.f32 %v2287_v33, %v2261_v50  ;;  %5291 = vmatmul.msk.bf16.vlgmr.msrb.gmra.mxu0 %vm216_vm0, %v2771_v7  ;;  %5301 = vmatmul.msk.bf16.vlgmr.msrb.gmra.mxu1 %vm216_vm0, %v2771_v7  ;;  %v2747_v50 = vshrl.u32 %v5283_v22, 16  ;;  %v2735_v43 = vrot.slane %v2733_v26, 4 }
 0x253   : > { %5311 = vmatmul.msk.bf16.vlgmr.msrb.gmra.mxu2 %vm216_vm0, %v2771_v7  ;;  %5321 = vmatmul.msk.bf16.vlgmr.msrb.gmra.mxu3 %vm216_vm0, %v2771_v7  ;;  %v2772_v8 = vpack.c.b16 %v2766_v57, %v2765_v55  ;;  %v2731_v40 = vsel %vm5927_vm3, %v2726_v16, %v2730_v17  ;;  %v2742_v55 = vshll.u32 %v5282_v62, 16 }
 0x254   : > { %v2768_v42 = vunpack.c.l.b16 %v2731_v40 }
 0x255   : > { %v2744_v0 = vrot.slane %v2742_v55, 5 }
 0x256   : > { %v2333_v44 = vpop.f32.mrf.mxu2  ;;  %v2379_v38 = vpop.f32.mrf.mxu3 }
 0x257   : > { %v2353_v47 = vadd.f32 %v2333_v44, %v2307_v35  ;;  %v2243_v49 = vpop.f32.mrf.mxu0  ;;  %v2289_v58 = vpop.f32.mrf.mxu1  ;;  %v2750_v35 = vshll.u32 %v5283_v22, 16  ;;  %v2738_v44 = vrot.slane %v2736_v28, 5 }
 0x258   : > { %v2262_v54 = vadd.f32 %v2243_v49, %v6422_v15 }
 0x259   : > { %v6493_v1 = vadd.f32 %v2379_v38, %v2353_v47  ;;  %v2749_v38 = vrot.slane %v2747_v50, 4  ;;  %v2752_v52 = vrot.slane %v2750_v35, 5  ;;  %v2739_v51 = vor.u32 %v2738_v44, %v2735_v43 }
 0x25a   : > { %v2308_v56 = vadd.f32 %v2289_v58, %v2262_v54 }
 0x25b   : > { %v2740_v3 = vrot.slane %v2739_v51, 4 }
 0x25e   : > { %v2335_v2 = vpop.f32.mrf.mxu2  ;;  %v2381_v4 = vpop.f32.mrf.mxu3 }
 0x25f   : > { %v2354_v6 = vadd.f32 %v2335_v2, %v2308_v56  ;;  %v2246_v9 = vpop.f32.mrf.mxu0  ;;  %v2292_v15 = vpop.f32.mrf.mxu1  ;;  %v2756_v56 = vshll.u32 %v5284_v45, 16  ;;  %v5759_v2 = vld [vmem:[%s7018_s1 + $0x170] sm:$0xff] }
 0x260   : > { %v2263_v39 = vadd.f32 %v2246_v9, %v6429_v23  ;;  %v2717_v23 = vsel %vm5927_vm3, %v2712_v18, %v2716_v20  ;;  %3453 = vmatpush.bf16.msrb.mxu2 %v5759_v2 }
 0x261   : > { %v6498_v12 = vadd.f32 %v2381_v4, %v2354_v6  ;;  %v2767_v37 = vunpack.c.l.b16 %v2717_v23  ;;  %v2758_v63 = vrot.slane %v2756_v56, 5  ;;  %v5760_v4 = vld [vmem:[%s7018_s1 + $0x178] sm:$0xff]  ;;  %v5750_v56 = vld [vmem:[%s5883_s7 + $0x84] sm:$0xf0] }
 0x262   : > { %v2309_v13 = vadd.f32 %v2292_v15, %v2263_v39  ;;  %5292 = vmatmul.msk.bf16.gmra.mxu0 %vm216_vm0, %v2772_v8  ;;  %5302 = vmatmul.msk.bf16.gmra.mxu1 %vm216_vm0, %v2772_v8  ;;  %v2745_v15 = vsel %vm5927_vm3, %v2740_v3, %v2744_v0 }
 0x263   : > { %5312 = vmatmul.msk.bf16.gmra.mxu2 %vm216_vm0, %v2772_v8  ;;  %5322 = vmatmul.msk.bf16.gmra.mxu3 %vm216_vm0, %v2772_v8  ;;  %v2773_v58 = vpack.c.b16 %v2768_v42, %v2767_v37  ;;  %v2769_v20 = vunpack.c.l.b16 %v2745_v15  ;;  %v5337_v37 = vld [vmem:[%s5883_s7 + $0x28] sm:$0xf] }
 0x264   : > { %3499 = vmatpush.bf16.msrb.mxu3 %v5760_v4 }
 0x266   : > { %v2338_v7 = vpop.f32.mrf.mxu2  ;;  %v2384_v25 = vpop.f32.mrf.mxu3 }
 0x267   : > { %v2355_v30 = vadd.f32 %v2338_v7, %v2309_v13  ;;  %v2248_v33 = vpop.f32.mrf.mxu0  ;;  %v2294_v27 = vpop.f32.mrf.mxu1  ;;  %v5758_v13 = vld [vmem:[%s7018_s1 + $0x168] sm:$0xff] }
 0x268   : > { %v2264_v19 = vadd.f32 %v2248_v33, %v6434_v60  ;;  %v2753_v60 = vor.u32 %v2752_v52, %v2749_v38  ;;  %3407 = vmatpush.bf16.msrb.mxu1 %v5758_v13 }
 0x269   : > { %v6511_v24 = vadd.f32 %v2384_v25, %v2355_v30 }
 0x26a   : > { %v2310_v36 = vadd.f32 %v2294_v27, %v2264_v19  ;;  %v2754_v34 = vrot.slane %v2753_v60, 4  ;;  %v5341_v60 = vld [vmem:[%s5883_s7 + $0x68] sm:$0xf] }
 0x26b   : > { %v5342_v3 = vor.u32 %v5750_v56, %v5341_v60 }
 0x26c   : > { %v2759_v48 = vsel %vm5927_vm3, %v2754_v34, %v2758_v63 }
 0x26d   : > { %v2770_v16 = vunpack.c.l.b16 %v2759_v48  ;;  %v5345_v48 = vld [vmem:[%s5883_s7 + $0xa8] sm:$0xf] }
 0x26e   : > { %v2340_v47 = vpop.f32.mrf.mxu2  ;;  %v2386_v49 = vpop.f32.mrf.mxu3 }
 0x26f   : > { %v2356_v21 = vadd.f32 %v2340_v47, %v2310_v36  ;;  %v2251_v53 = vpop.f32.mrf.mxu0  ;;  %v2297_v54 = vpop.f32.mrf.mxu1  ;;  %v2774_v22 = vpack.c.b16 %v2770_v16, %v2769_v20  ;;  %v5749_v36 = vld [vmem:[%s5883_s7 + $0x44] sm:$0xf0] }
 0x270   : > { %v2265_v57 = vadd.f32 %v2251_v53, %v6452_v29  ;;  %v5757_v29 = vld [vmem:[%s7018_s1 + $0x160] sm:$0xff]  ;;  %v5338_v44 = vor.u32 %v5749_v36, %v5337_v37 }
 0x271   : > { %v6516_v59 = vadd.f32 %v2386_v49, %v2356_v21  ;;  %3361 = vmatpush.bf16.msrb.mxu0 %v5757_v29 }
 0x272   : > { %v2311_v61 = vadd.f32 %v2297_v54, %v2265_v57  ;;  %5293 = vmatmul.msk.bf16.gmra.mxu0 %vm216_vm0, %v2773_v58  ;;  %5303 = vmatmul.msk.bf16.gmra.mxu1 %vm216_vm0, %v2773_v58 }
 0x273   : > { %5313 = vmatmul.msk.bf16.gmra.mxu2 %vm216_vm0, %v2773_v58  ;;  %5323 = vmatmul.msk.bf16.gmra.mxu3 %vm216_vm0, %v2773_v58 }
 0x276   : > { %v2343_v8 = vpop.f32.mrf.mxu2  ;;  %v2389_v5 = vpop.f32.mrf.mxu3 }
 0x277   : > { %v2357_v14 = vadd.f32 %v2343_v8, %v2311_v61  ;;  %v2253_v6 = vpop.f32.mrf.mxu0  ;;  %v2299_v9 = vpop.f32.mrf.mxu1 }
 0x278   : > { %v2266_v10 = vadd.f32 %v2253_v6, %v6462_v31 }
 0x279   : > { %v6536_v39 = vadd.f32 %v2389_v5, %v2357_v14 }
 0x27a   : > { %v2312_v18 = vadd.f32 %v2299_v9, %v2266_v10  ;;  %v5751_v10 = vld [vmem:[%s5883_s7 + $0xc4] sm:$0xf0] }
 0x27b   : > { %v5346_v20 = vor.u32 %v5751_v10, %v5345_v48 }
 0x27e   : > { %v2345_v17 = vpop.f32.mrf.mxu2  ;;  %v2391_v41 = vpop.f32.mrf.mxu3 }
 0x27f   : > { %v2358_v7 = vadd.f32 %v2345_v17, %v2312_v18  ;;  %v2256_v25 = vpop.f32.mrf.mxu0  ;;  %v2302_v23 = vpop.f32.mrf.mxu1 }
 0x280   : > { %v2267_v26 = vadd.f32 %v2256_v25, %v6475_v11 }
 0x281   : > { %v6542_v31 = vadd.f32 %v2391_v41, %v2358_v7 }
 0x282   : > { %v2313_v28 = vadd.f32 %v2302_v23, %v2267_v26  ;;  %5294 = vmatmul.msk.bf16.gmra.mxu0 %vm216_vm0, %v2774_v22  ;;  %5304 = vmatmul.msk.bf16.gmra.mxu1 %vm216_vm0, %v2774_v22  ;;  %v5767_v23 = vld [vmem:[%s7018_s1 + $0x190] sm:$0xff]  ;;  %v5768_v26 = vld [vmem:[%s7018_s1 + $0x198] sm:$0xff] }
 0x283   : > { %5314 = vmatmul.msk.bf16.gmra.mxu2 %vm216_vm0, %v2774_v22  ;;  %5324 = vmatmul.msk.bf16.gmra.mxu3 %vm216_vm0, %v2774_v22 }
 0x286   : > { %v2348_v30 = vpop.f32.mrf.mxu2  ;;  %v2394_v33 = vpop.f32.mrf.mxu3 }
 0x287   : > { %v2359_v27 = vadd.f32 %v2348_v30, %v2313_v28  ;;  %v2258_v40 = vpop.f32.mrf.mxu0  ;;  %v2304_v50 = vpop.f32.mrf.mxu1  ;;  %v5391_v28 = vld [vmem:[%s5883_s7 + $0x48] sm:$0xf] }
 0x288   : > { %v2268_v35 = vadd.f32 %v2258_v40, %v6480_v32  ;;  %v3224_v37 = vshrl.u32 %v5391_v28, 16  ;;  %v3227_v36 = vshll.u32 %v5391_v28, 16 }
 0x289   : > { %v6549_v11 = vadd.f32 %v2394_v33, %v2359_v27 }
 0x28a   : > { %v2314_v19 = vadd.f32 %v2304_v50, %v2268_v35 }
 0x28e   : > { %v2350_v42 = vpop.f32.mrf.mxu2  ;;  %v2396_v43 = vpop.f32.mrf.mxu3 }
 0x28f   : > { %v2360_v38 = vadd.f32 %v2350_v42, %v2314_v19  ;;  %v2466_v52 = vpop.f32.mrf.mxu0  ;;  %v2512_v62 = vpop.f32.mrf.mxu1 }
 0x290   : > { %v2486_v45 = vadd.f32 %v2466_v52, %v6493_v1  ;;  %v5349_v52 = vld [vmem:[%s5883_s7 + $0xe8] sm:$0xf] }
 0x291   : > { %v6554_v47 = vadd.f32 %v2396_v43, %v2360_v38 }
 0x292   : > { %v2532_v49 = vadd.f32 %v2512_v62, %v2486_v45  ;;  %5355 = vmatmul.msk.bf16.vlgmr.msra.gmra.mxu0 %vm216_vm0, %v5338_v44  ;;  %5365 = vmatmul.msk.bf16.vlgmr.msra.gmra.mxu1 %vm216_vm0, %v5338_v44 }
 0x293   : > { %5375 = vmatmul.msk.bf16.vlgmr.msra.gmra.mxu2 %vm216_vm0, %v5338_v44  ;;  %5385 = vmatmul.msk.bf16.vlgmr.msra.gmra.mxu3 %vm216_vm0, %v5338_v44  ;;  %v5766_v44 = vld [vmem:[%s7018_s1 + $0x188] sm:$0xff] }
 0x294   : > { %3678 = vmatpush.bf16.msra.mxu2 %v5767_v23  ;;  %3724 = vmatpush.bf16.msra.mxu3 %v5768_v26 }
 0x295   : > { %3632 = vmatpush.bf16.msra.mxu1 %v5766_v44 }
 0x296   : > { %v2558_v32 = vpop.f32.mrf.mxu2  ;;  %v2604_v58 = vpop.f32.mrf.mxu3 }
 0x297   : > { %v2578_v51 = vadd.f32 %v2558_v32, %v2532_v49  ;;  %v2468_v21 = vpop.f32.mrf.mxu0  ;;  %v2514_v53 = vpop.f32.mrf.mxu1  ;;  %v5752_v49 = vld [vmem:[%s5883_s7 + $0x104] sm:$0xf0]  ;;  %v5390_v32 = vld [vmem:[%s5883_s7 + $0x2c] sm:$0x1] }
 0x298   : > { %v2487_v54 = vadd.f32 %v2468_v21, %v6498_v12  ;;  %v5392_v21 = vld [vmem:[%s5883_s7 + $0x4c] sm:$0x1]  ;;  %v3219_v60 = vshll.u32 %v5390_v32, 16 }
 0x299   : > { %v6561_v1 = vadd.f32 %v2604_v58, %v2578_v51  ;;  %v3226_v58 = vrot.slane %v3224_v37, 4  ;;  %v3229_v51 = vrot.slane %v3227_v36, 5 }
 0x29a   : > { %v2533_v55 = vadd.f32 %v2514_v53, %v2487_v54 }
 0x29e   : > { %v2560_v57 = vpop.f32.mrf.mxu2  ;;  %v2606_v61 = vpop.f32.mrf.mxu3 }
 0x29f   : > { %v2579_v0 = vadd.f32 %v2560_v57, %v2533_v55  ;;  %v2471_v34 = vpop.f32.mrf.mxu0  ;;  %v2517_v63 = vpop.f32.mrf.mxu1  ;;  %v5350_v55 = vor.u32 %v5752_v49, %v5349_v52 }
 0x2a0   : > { %v2488_v2 = vadd.f32 %v2471_v34, %v6511_v24 }
 0x2a1   : > { %v6566_v29 = vadd.f32 %v2606_v61, %v2579_v0  ;;  %v3233_v0 = vshll.u32 %v5392_v21, 16 }
 0x2a2   : > { %v2534_v4 = vadd.f32 %v2517_v63, %v2488_v2  ;;  %5356 = vmatmul.msk.bf16.gmra.mxu0 %vm216_vm0, %v5342_v3  ;;  %5366 = vmatmul.msk.bf16.gmra.mxu1 %vm216_vm0, %v5342_v3 }
 0x2a3   : > { %5376 = vmatmul.msk.bf16.gmra.mxu2 %vm216_vm0, %v5342_v3  ;;  %5386 = vmatmul.msk.bf16.gmra.mxu3 %vm216_vm0, %v5342_v3  ;;  %v3230_v3 = vor.u32 %v3229_v51, %v3226_v58 }
 0x2a6   : > { %v2563_v12 = vpop.f32.mrf.mxu2  ;;  %v2609_v8 = vpop.f32.mrf.mxu3 }
 0x2a7   : > { %v2580_v5 = vadd.f32 %v2563_v12, %v2534_v4  ;;  %v2473_v14 = vpop.f32.mrf.mxu0  ;;  %v2519_v6 = vpop.f32.mrf.mxu1  ;;  %v3221_v12 = vrot.slane %v3219_v60, 5 }
 0x2a8   : > { %v2489_v9 = vadd.f32 %v2473_v14, %v6516_v59  ;;  %v5389_v59 = vld [vmem:[%s5883_s7 + $0x28] sm:$0xf] }
 0x2a9   : > { %v6573_v24 = vadd.f32 %v2609_v8, %v2580_v5  ;;  %v3210_v27 = vshrl.u32 %v5389_v59, 16  ;;  %v3213_v40 = vshll.u32 %v5389_v59, 16  ;;  %v3231_v8 = vrot.slane %v3230_v3, 4  ;;  %v5393_v14 = vld [vmem:[%s5883_s7 + $0x68] sm:$0xf] }
 0x2aa   : > { %v2535_v15 = vadd.f32 %v2519_v6, %v2489_v9  ;;  %v3235_v5 = vrot.slane %v3233_v0, 5  ;;  %v5395_v6 = vld [vmem:[%s5883_s7 + $0x88] sm:$0xf]  ;;  %v3238_v48 = vshrl.u32 %v5393_v14, 16  ;;  %v3241_v10 = vshll.u32 %v5393_v14, 16 }
 0x2ab   : > { %v3212_v62 = vrot.slane %v3210_v27, 4  ;;  %v3215_v45 = vrot.slane %v3213_v40, 5  ;;  %v5396_v40 = vld [vmem:[%s5883_s7 + $0x8c] sm:$0x1] }
 0x2ac   : > { %v3240_v26 = vrot.slane %v3238_v48, 4  ;;  %v3243_v28 = vrot.slane %v3241_v10, 5  ;;  %v3261_v52 = vshll.u32 %v5396_v40, 16  ;;  %v5400_v10 = vld [vmem:[%s5883_s7 + $0xcc] sm:$0x1] }
 0x2ae   : > { %v2565_v13 = vpop.f32.mrf.mxu2  ;;  %v2611_v18 = vpop.f32.mrf.mxu3  ;;  %v3244_v37 = vor.u32 %v3243_v28, %v3240_v26  ;;  %v3263_v21 = vrot.slane %v3261_v52, 5 }
 0x2af   : > { %v2581_v16 = vadd.f32 %v2565_v13, %v2535_v15  ;;  %v2476_v17 = vpop.f32.mrf.mxu0  ;;  %v2522_v41 = vpop.f32.mrf.mxu1 }
 0x2b0   : > { %v2490_v22 = vadd.f32 %v2476_v17, %v6536_v39  ;;  %v5765_v39 = vld [vmem:[%s7018_s1 + $0x180] sm:$0xff]  ;;  %v3252_v17 = vshrl.u32 %v5395_v6, 16  ;;  %v3245_v32 = vrot.slane %v3244_v37, 4 }
 0x2b1   : > { %v6578_v7 = vadd.f32 %v2611_v18, %v2581_v16  ;;  %3586 = vmatpush.bf16.msra.mxu0 %v5765_v39  ;;  %v3236_v16 = vsel %vm5927_vm3, %v3231_v8, %v3235_v5 }
 0x2b2   : > { %v2536_v25 = vadd.f32 %v2522_v41, %v2490_v22  ;;  %5357 = vmatmul.msk.bf16.gmra.mxu0 %vm216_vm0, %v5346_v20  ;;  %5367 = vmatmul.msk.bf16.gmra.mxu1 %vm216_vm0, %v5346_v20  ;;  %v3255_v41 = vshll.u32 %v5395_v6, 16  ;;  %v3325_v39 = vunpack.c.l.b16 %v3236_v16 }
 0x2b3   : > { %5377 = vmatmul.msk.bf16.gmra.mxu2 %vm216_vm0, %v5346_v20  ;;  %5387 = vmatmul.msk.bf16.gmra.mxu3 %vm216_vm0, %v5346_v20 }
 0x2b4   : > { %v3257_v27 = vrot.slane %v3255_v41, 5 }
 0x2b6   : > { %v2568_v30 = vpop.f32.mrf.mxu2  ;;  %v2614_v33 = vpop.f32.mrf.mxu3 }
 0x2b7   : > { %v2582_v50 = vadd.f32 %v2568_v30, %v2536_v25  ;;  %v2478_v35 = vpop.f32.mrf.mxu0  ;;  %v2524_v19 = vpop.f32.mrf.mxu1  ;;  %v5394_v30 = vld [vmem:[%s5883_s7 + $0x6c] sm:$0x1] }
 0x2b8   : > { %v2491_v42 = vadd.f32 %v2478_v35, %v6542_v31  ;;  %v3216_v31 = vor.u32 %v3215_v45, %v3212_v62  ;;  %v3247_v36 = vshll.u32 %v5394_v30, 16 }
 0x2b9   : > { %v6596_v43 = vadd.f32 %v2614_v33, %v2582_v50  ;;  %v3254_v33 = vrot.slane %v3252_v17, 4 }
 0x2ba   : > { %v2537_v38 = vadd.f32 %v2524_v19, %v2491_v42  ;;  %v3217_v4 = vrot.slane %v3216_v31, 4  ;;  %v3249_v58 = vrot.slane %v3247_v36, 5 }
 0x2be   : > { %v2570_v53 = vpop.f32.mrf.mxu2  ;;  %v2616_v54 = vpop.f32.mrf.mxu3 }
 0x2bf   : > { %v2583_v56 = vadd.f32 %v2570_v53, %v2537_v38  ;;  %v2481_v57 = vpop.f32.mrf.mxu0  ;;  %v2527_v61 = vpop.f32.mrf.mxu1  ;;  %v3258_v38 = vor.u32 %v3257_v27, %v3254_v33  ;;  %v5397_v53 = vld [vmem:[%s5883_s7 + $0xa8] sm:$0xf] }
 0x2c0   : > { %v2492_v34 = vadd.f32 %v2481_v57, %v6549_v11  ;;  %v3222_v11 = vsel %vm5927_vm3, %v3217_v4, %v3221_v12  ;;  %v3266_v60 = vshrl.u32 %v5397_v53, 16 }
 0x2c1   : > { %v6606_v63 = vadd.f32 %v2616_v54, %v2583_v56  ;;  %v3324_v59 = vunpack.c.l.b16 %v3222_v11  ;;  %v3259_v51 = vrot.slane %v3258_v38, 4  ;;  %v5399_v54 = vld [vmem:[%s5883_s7 + $0xc8] sm:$0xf]  ;;  %v3269_v56 = vshll.u32 %v5397_v53, 16 }
 0x2c2   : > { %v2538_v2 = vadd.f32 %v2527_v61, %v2492_v34  ;;  %5358 = vmatmul.msk.bf16.gmra.mxu0 %vm216_vm0, %v5350_v55  ;;  %5368 = vmatmul.msk.bf16.gmra.mxu1 %vm216_vm0, %v5350_v55  ;;  %v3280_v34 = vshrl.u32 %v5399_v54, 16  ;;  %v3268_v6 = vrot.slane %v3266_v60, 4  ;;  %v5402_v60 = vld [vmem:[%s5883_s7 + $0xec] sm:$0x1] }
 0x2c3   : > { %5378 = vmatmul.msk.bf16.gmra.mxu2 %vm216_vm0, %v5350_v55  ;;  %5388 = vmatmul.msk.bf16.gmra.mxu3 %vm216_vm0, %v5350_v55  ;;  %v3332_v19 = vpack.c.b16 %v3325_v39, %v3324_v59  ;;  %v3264_v0 = vsel %vm5927_vm3, %v3259_v51, %v3263_v21 }
 0x2c4   : > { %v3327_v14 = vunpack.c.l.b16 %v3264_v0  ;;  %v3282_v11 = vrot.slane %v3280_v34, 4 }
 0x2c6   : > { %v2573_v9 = vpop.f32.mrf.mxu2  ;;  %v2619_v15 = vpop.f32.mrf.mxu3 }
 0x2c7   : > { %v2584_v13 = vadd.f32 %v2573_v9, %v2538_v2  ;;  %v2483_v18 = vpop.f32.mrf.mxu0  ;;  %v2529_v20 = vpop.f32.mrf.mxu1  ;;  %v3283_v2 = vshll.u32 %v5399_v54, 16  ;;  %v3271_v9 = vrot.slane %v3269_v56, 5  ;;  %v5404_v56 = vld [vmem:[%s5883_s7 + $0x10c] sm:$0x1] }
 0x2c8   : > { %v2493_v22 = vadd.f32 %v2483_v18, %v6554_v47 }
 0x2c9   : > { %v6619_v25 = vadd.f32 %v2619_v15, %v2584_v13  ;;  %v5398_v15 = vld [vmem:[%s5883_s7 + $0xac] sm:$0x1]  ;;  %v3285_v48 = vrot.slane %v3283_v2, 5  ;;  %v3272_v16 = vor.u32 %v3271_v9, %v3268_v6 }
 0x2ca   : > { %v2539_v23 = vadd.f32 %v2529_v20, %v2493_v22  ;;  %v3275_v17 = vshll.u32 %v5398_v15, 16 }
 0x2cb   : > { %v3286_v59 = vor.u32 %v3285_v48, %v3282_v11  ;;  %v3273_v30 = vrot.slane %v3272_v16, 4 }
 0x2cc   : > { %v3277_v33 = vrot.slane %v3275_v17, 5 }
 0x2cd   : > { %v3287_v27 = vrot.slane %v3286_v59, 4 }
 0x2ce   : > { %v2575_v50 = vpop.f32.mrf.mxu2  ;;  %v2621_v35 = vpop.f32.mrf.mxu3 }
 0x2cf   : > { %v2585_v42 = vadd.f32 %v2575_v50, %v2539_v23  ;;  %v2802_v44 = vpop.f32.mrf.mxu0  ;;  %v2848_v47 = vpop.f32.mrf.mxu1  ;;  %v3289_v23 = vshll.u32 %v5400_v10, 16  ;;  %v5401_v50 = vld [vmem:[%s5883_s7 + $0xe8] sm:$0xf] }
 0x2d0   : > { %v2822_v62 = vadd.f32 %v2802_v44, %v6561_v1  ;;  %v3250_v1 = vsel %vm5927_vm3, %v3245_v32, %v3249_v58  ;;  %v3294_v36 = vshrl.u32 %v5401_v50, 16 }
 0x2d1   : > { %v6624_v45 = vadd.f32 %v2621_v35, %v2585_v42  ;;  %v3326_v8 = vunpack.c.l.b16 %v3250_v1  ;;  %v3291_v40 = vrot.slane %v3289_v23, 5  ;;  %v5403_v35 = vld [vmem:[%s5883_s7 + $0x108] sm:$0xf]  ;;  %v3297_v42 = vshll.u32 %v5401_v50, 16 }
 0x2d2   : > { %v2868_v49 = vadd.f32 %v2848_v47, %v2822_v62  ;;  %5411 = vmatmul.msk.bf16.vlgmr.msrb.gmra.mxu0 %vm216_vm0, %v3332_v19  ;;  %5421 = vmatmul.msk.bf16.vlgmr.msrb.gmra.mxu1 %vm216_vm0, %v3332_v19  ;;  %v3308_v62 = vshrl.u32 %v5403_v35, 16  ;;  %v3296_v54 = vrot.slane %v3294_v36, 4 }
 0x2d3   : > { %5431 = vmatmul.msk.bf16.vlgmr.msrb.gmra.mxu2 %vm216_vm0, %v3332_v19  ;;  %5441 = vmatmul.msk.bf16.vlgmr.msrb.gmra.mxu3 %vm216_vm0, %v3332_v19  ;;  %v3333_v20 = vpack.c.b16 %v3327_v14, %v3326_v8  ;;  %v3292_v52 = vsel %vm5927_vm3, %v3287_v27, %v3291_v40  ;;  %v3303_v8 = vshll.u32 %v5402_v60, 16 }
 0x2d4   : > { %v3329_v53 = vunpack.c.l.b16 %v3292_v52 }
 0x2d5   : > { %v3305_v11 = vrot.slane %v3303_v8, 5 }
 0x2d6   : > { %v2894_v55 = vpop.f32.mrf.mxu2  ;;  %v2940_v31 = vpop.f32.mrf.mxu3 }
 0x2d7   : > { %v2914_v57 = vadd.f32 %v2894_v55, %v2868_v49  ;;  %v2804_v61 = vpop.f32.mrf.mxu0  ;;  %v2850_v3 = vpop.f32.mrf.mxu1  ;;  %v3311_v49 = vshll.u32 %v5403_v35, 16  ;;  %v3299_v55 = vrot.slane %v3297_v42, 5 }
 0x2d8   : > { %v2823_v4 = vadd.f32 %v2804_v61, %v6566_v29 }
 0x2d9   : > { %v6637_v12 = vadd.f32 %v2940_v31, %v2914_v57  ;;  %v3310_v31 = vrot.slane %v3308_v62, 4  ;;  %v3313_v1 = vrot.slane %v3311_v49, 5  ;;  %v3300_v0 = vor.u32 %v3299_v55, %v3296_v54 }
 0x2da   : > { %v2869_v5 = vadd.f32 %v2850_v3, %v2823_v4 }
 0x2db   : > { %v3301_v15 = vrot.slane %v3300_v0, 4 }
 0x2de   : > { %v2896_v13 = vpop.f32.mrf.mxu2  ;;  %v2942_v18 = vpop.f32.mrf.mxu3 }
 0x2df   : > { %v2915_v41 = vadd.f32 %v2896_v13, %v2869_v5  ;;  %v2807_v22 = vpop.f32.mrf.mxu0  ;;  %v2853_v29 = vpop.f32.mrf.mxu1  ;;  %v3317_v5 = vshll.u32 %v5404_v56, 16  ;;  %v5771_v13 = vld [vmem:[%s7018_s1 + $0x1b0] sm:$0xff] }
 0x2e0   : > { %v2824_v39 = vadd.f32 %v2807_v22, %v6573_v24  ;;  %v3278_v24 = vsel %vm5927_vm3, %v3273_v30, %v3277_v33  ;;  %4014 = vmatpush.bf16.msrb.mxu2 %v5771_v13 }
 0x2e1   : > { %v6642_v26 = vadd.f32 %v2942_v18, %v2915_v41  ;;  %v3328_v51 = vunpack.c.l.b16 %v3278_v24  ;;  %v3319_v10 = vrot.slane %v3317_v5, 5  ;;  %v5772_v18 = vld [vmem:[%s7018_s1 + $0x1b8] sm:$0xff]  ;;  %v5762_v5 = vld [vmem:[%s5883_s7 + $0x8c] sm:$0xf0] }
 0x2e2   : > { %v2870_v28 = vadd.f32 %v2853_v29, %v2824_v39  ;;  %5412 = vmatmul.msk.bf16.gmra.mxu0 %vm216_vm0, %v3333_v20  ;;  %5422 = vmatmul.msk.bf16.gmra.mxu1 %vm216_vm0, %v3333_v20  ;;  %v3306_v29 = vsel %vm5927_vm3, %v3301_v15, %v3305_v11 }
 0x2e3   : > { %5432 = vmatmul.msk.bf16.gmra.mxu2 %vm216_vm0, %v3333_v20  ;;  %5442 = vmatmul.msk.bf16.gmra.mxu3 %vm216_vm0, %v3333_v20  ;;  %v3334_v3 = vpack.c.b16 %v3329_v53, %v3328_v51  ;;  %v3330_v33 = vunpack.c.l.b16 %v3306_v29  ;;  %v5457_v51 = vld [vmem:[%s5883_s7 + $0x30] sm:$0xf] }
 0x2e4   : > { %4060 = vmatpush.bf16.msrb.mxu3 %v5772_v18 }
 0x2e6   : > { %v2899_v19 = vpop.f32.mrf.mxu2  ;;  %v2945_v37 = vpop.f32.mrf.mxu3 }
 0x2e7   : > { %v2916_v44 = vadd.f32 %v2899_v19, %v2870_v28  ;;  %v2809_v47 = vpop.f32.mrf.mxu0  ;;  %v2855_v38 = vpop.f32.mrf.mxu1  ;;  %v5770_v28 = vld [vmem:[%s7018_s1 + $0x1a8] sm:$0xff] }
 0x2e8   : > { %v2825_v32 = vadd.f32 %v2809_v47, %v6578_v7  ;;  %v3314_v7 = vor.u32 %v3313_v1, %v3310_v31  ;;  %3968 = vmatpush.bf16.msrb.mxu1 %v5770_v28 }
 0x2e9   : > { %v6655_v58 = vadd.f32 %v2945_v37, %v2916_v44 }
 0x2ea   : > { %v2871_v21 = vadd.f32 %v2855_v38, %v2825_v32  ;;  %v3315_v48 = vrot.slane %v3314_v7, 4  ;;  %v5461_v7 = vld [vmem:[%s5883_s7 + $0x70] sm:$0xf] }
 0x2eb   : > { %v5462_v15 = vor.u32 %v5762_v5, %v5461_v7 }
 0x2ec   : > { %v3320_v59 = vsel %vm5927_vm3, %v3315_v48, %v3319_v10 }
 0x2ed   : > { %v3331_v27 = vunpack.c.l.b16 %v3320_v59  ;;  %v5465_v59 = vld [vmem:[%s5883_s7 + $0xb0] sm:$0xf] }
 0x2ee   : > { %v2901_v57 = vpop.f32.mrf.mxu2  ;;  %v2947_v61 = vpop.f32.mrf.mxu3 }
 0x2ef   : > { %v2917_v34 = vadd.f32 %v2901_v57, %v2871_v21  ;;  %v2812_v2 = vpop.f32.mrf.mxu0  ;;  %v2858_v4 = vpop.f32.mrf.mxu1  ;;  %v3335_v35 = vpack.c.b16 %v3331_v27, %v3330_v33  ;;  %v5761_v21 = vld [vmem:[%s5883_s7 + $0x4c] sm:$0xf0] }
 0x2f0   : > { %v2826_v14 = vadd.f32 %v2812_v2, %v6596_v43  ;;  %v5769_v43 = vld [vmem:[%s7018_s1 + $0x1a0] sm:$0xff]  ;;  %v5458_v55 = vor.u32 %v5761_v21, %v5457_v51 }
 0x2f1   : > { %v6660_v6 = vadd.f32 %v2947_v61, %v2917_v34  ;;  %3922 = vmatpush.bf16.msrb.mxu0 %v5769_v43 }
 0x2f2   : > { %v2872_v9 = vadd.f32 %v2858_v4, %v2826_v14  ;;  %5413 = vmatmul.msk.bf16.gmra.mxu0 %vm216_vm0, %v3334_v3  ;;  %5423 = vmatmul.msk.bf16.gmra.mxu1 %vm216_vm0, %v3334_v3 }
 0x2f3   : > { %5433 = vmatmul.msk.bf16.gmra.mxu2 %vm216_vm0, %v3334_v3  ;;  %5443 = vmatmul.msk.bf16.gmra.mxu3 %vm216_vm0, %v3334_v3 }
 0x2f6   : > { %v2904_v20 = vpop.f32.mrf.mxu2  ;;  %v2950_v16 = vpop.f32.mrf.mxu3 }
 0x2f7   : > { %v2918_v17 = vadd.f32 %v2904_v20, %v2872_v9  ;;  %v2814_v41 = vpop.f32.mrf.mxu0  ;;  %v2860_v22 = vpop.f32.mrf.mxu1 }
 0x2f8   : > { %v2827_v23 = vadd.f32 %v2814_v41, %v6606_v63 }
 0x2f9   : > { %v6680_v39 = vadd.f32 %v2950_v16, %v2918_v17 }
 0x2fa   : > { %v2873_v30 = vadd.f32 %v2860_v22, %v2827_v23  ;;  %v5763_v23 = vld [vmem:[%s5883_s7 + $0xcc] sm:$0xf0] }
 0x2fb   : > { %v5466_v33 = vor.u32 %v5763_v23, %v5465_v59 }
 0x2fe   : > { %v2906_v40 = vpop.f32.mrf.mxu2  ;;  %v2952_v50 = vpop.f32.mrf.mxu3 }
 0x2ff   : > { %v2919_v19 = vadd.f32 %v2906_v40, %v2873_v30  ;;  %v2817_v37 = vpop.f32.mrf.mxu0  ;;  %v2863_v24 = vpop.f32.mrf.mxu1 }
 0x300   : > { %v2828_v36 = vadd.f32 %v2817_v37, %v6619_v25 }
 0x301   : > { %v6686_v63 = vadd.f32 %v2952_v50, %v2919_v19 }
 0x302   : > { %v2874_v42 = vadd.f32 %v2863_v24, %v2828_v36  ;;  %5414 = vmatmul.msk.bf16.gmra.mxu0 %vm216_vm0, %v3335_v35  ;;  %5424 = vmatmul.msk.bf16.gmra.mxu1 %vm216_vm0, %v3335_v35  ;;  %v5779_v24 = vld [vmem:[%s7018_s1 + $0x1d0] sm:$0xff]  ;;  %v5780_v36 = vld [vmem:[%s7018_s1 + $0x1d8] sm:$0xff] }
 0x303   : > { %5434 = vmatmul.msk.bf16.gmra.mxu2 %vm216_vm0, %v3335_v35  ;;  %5444 = vmatmul.msk.bf16.gmra.mxu3 %vm216_vm0, %v3335_v35 }
 0x306   : > { %v2909_v44 = vpop.f32.mrf.mxu2  ;;  %v2955_v47 = vpop.f32.mrf.mxu3 }
 0x307   : > { %v2920_v38 = vadd.f32 %v2909_v44, %v2874_v42  ;;  %v2819_v52 = vpop.f32.mrf.mxu0  ;;  %v2865_v62 = vpop.f32.mrf.mxu1  ;;  %v5511_v42 = vld [vmem:[%s5883_s7 + $0x50] sm:$0xf] }
 0x308   : > { %v2829_v49 = vadd.f32 %v2819_v52, %v6624_v45  ;;  %v3785_v51 = vshrl.u32 %v5511_v42, 16  ;;  %v3788_v21 = vshll.u32 %v5511_v42, 16 }
 0x309   : > { %v6693_v25 = vadd.f32 %v2955_v47, %v2920_v38 }
 0x30a   : > { %v2875_v32 = vadd.f32 %v2865_v62, %v2829_v49 }
 0x30e   : > { %v2911_v53 = vpop.f32.mrf.mxu2  ;;  %v2957_v54 = vpop.f32.mrf.mxu3 }
 0x30f   : > { %v2921_v31 = vadd.f32 %v2911_v53, %v2875_v32  ;;  %v3027_v1 = vpop.f32.mrf.mxu0  ;;  %v3073_v60 = vpop.f32.mrf.mxu1 }
 0x310   : > { %v3047_v56 = vadd.f32 %v3027_v1, %v6637_v12  ;;  %v5469_v1 = vld [vmem:[%s5883_s7 + $0xf0] sm:$0xf] }
 0x311   : > { %v6698_v57 = vadd.f32 %v2957_v54, %v2921_v31 }
 0x312   : > { %v3093_v61 = vadd.f32 %v3073_v60, %v3047_v56  ;;  %5475 = vmatmul.msk.bf16.vlgmr.msra.gmra.mxu0 %vm216_vm0, %v5458_v55  ;;  %5485 = vmatmul.msk.bf16.vlgmr.msra.gmra.mxu1 %vm216_vm0, %v5458_v55 }
 0x313   : > { %5495 = vmatmul.msk.bf16.vlgmr.msra.gmra.mxu2 %vm216_vm0, %v5458_v55  ;;  %5505 = vmatmul.msk.bf16.vlgmr.msra.gmra.mxu3 %vm216_vm0, %v5458_v55  ;;  %v5778_v55 = vld [vmem:[%s7018_s1 + $0x1c8] sm:$0xff] }
 0x314   : > { %4239 = vmatpush.bf16.msra.mxu2 %v5779_v24  ;;  %4285 = vmatpush.bf16.msra.mxu3 %v5780_v36 }
 0x315   : > { %4193 = vmatpush.bf16.msra.mxu1 %v5778_v55 }
 0x316   : > { %v3119_v45 = vpop.f32.mrf.mxu2  ;;  %v3165_v3 = vpop.f32.mrf.mxu3 }
 0x317   : > { %v3139_v0 = vadd.f32 %v3119_v45, %v3093_v61  ;;  %v3029_v34 = vpop.f32.mrf.mxu0  ;;  %v3075_v2 = vpop.f32.mrf.mxu1  ;;  %v5764_v61 = vld [vmem:[%s5883_s7 + $0x10c] sm:$0xf0]  ;;  %v5510_v45 = vld [vmem:[%s5883_s7 + $0x34] sm:$0x1] }
 0x318   : > { %v3048_v4 = vadd.f32 %v3029_v34, %v6642_v26  ;;  %v5512_v34 = vld [vmem:[%s5883_s7 + $0x54] sm:$0x1]  ;;  %v3780_v7 = vshll.u32 %v5510_v45, 16 }
 0x319   : > { %v6705_v12 = vadd.f32 %v3165_v3, %v3139_v0  ;;  %v3787_v3 = vrot.slane %v3785_v51, 4  ;;  %v3790_v0 = vrot.slane %v3788_v21, 5 }
 0x31a   : > { %v3094_v8 = vadd.f32 %v3075_v2, %v3048_v4 }
 0x31e   : > { %v3121_v14 = vpop.f32.mrf.mxu2  ;;  %v3167_v9 = vpop.f32.mrf.mxu3 }
 0x31f   : > { %v3140_v11 = vadd.f32 %v3121_v14, %v3094_v8  ;;  %v3032_v48 = vpop.f32.mrf.mxu0  ;;  %v3078_v10 = vpop.f32.mrf.mxu1  ;;  %v5470_v8 = vor.u32 %v5764_v61, %v5469_v1 }
 0x320   : > { %v3049_v13 = vadd.f32 %v3032_v48, %v6655_v58 }
 0x321   : > { %v6710_v43 = vadd.f32 %v3167_v9, %v3140_v11  ;;  %v3794_v11 = vshll.u32 %v5512_v34, 16 }
 0x322   : > { %v3095_v18 = vadd.f32 %v3078_v10, %v3049_v13  ;;  %5476 = vmatmul.msk.bf16.gmra.mxu0 %vm216_vm0, %v5462_v15  ;;  %5486 = vmatmul.msk.bf16.gmra.mxu1 %vm216_vm0, %v5462_v15 }
 0x323   : > { %5496 = vmatmul.msk.bf16.gmra.mxu2 %vm216_vm0, %v5462_v15  ;;  %5506 = vmatmul.msk.bf16.gmra.mxu3 %vm216_vm0, %v5462_v15  ;;  %v3791_v15 = vor.u32 %v3790_v0, %v3787_v3 }
 0x326   : > { %v3124_v26 = vpop.f32.mrf.mxu2  ;;  %v3170_v20 = vpop.f32.mrf.mxu3 }
 0x327   : > { %v3141_v16 = vadd.f32 %v3124_v26, %v3095_v18  ;;  %v3034_v17 = vpop.f32.mrf.mxu0  ;;  %v3080_v41 = vpop.f32.mrf.mxu1  ;;  %v3782_v26 = vrot.slane %v3780_v7, 5 }
 0x328   : > { %v3050_v22 = vadd.f32 %v3034_v17, %v6660_v6  ;;  %v5509_v6 = vld [vmem:[%s5883_s7 + $0x30] sm:$0xf] }
 0x329   : > { %v6717_v58 = vadd.f32 %v3170_v20, %v3141_v16  ;;  %v3771_v38 = vshrl.u32 %v5509_v6, 16  ;;  %v3774_v52 = vshll.u32 %v5509_v6, 16  ;;  %v3792_v20 = vrot.slane %v3791_v15, 4  ;;  %v5513_v17 = vld [vmem:[%s5883_s7 + $0x70] sm:$0xf] }
 0x32a   : > { %v3096_v29 = vadd.f32 %v3080_v41, %v3050_v22  ;;  %v3796_v16 = vrot.slane %v3794_v11, 5  ;;  %v5515_v41 = vld [vmem:[%s5883_s7 + $0x90] sm:$0xf]  ;;  %v3799_v59 = vshrl.u32 %v5513_v17, 16  ;;  %v3802_v23 = vshll.u32 %v5513_v17, 16 }
 0x32b   : > { %v3773_v60 = vrot.slane %v3771_v38, 4  ;;  %v3776_v56 = vrot.slane %v3774_v52, 5  ;;  %v5516_v52 = vld [vmem:[%s5883_s7 + $0x94] sm:$0x1] }
 0x32c   : > { %v3801_v36 = vrot.slane %v3799_v59, 4  ;;  %v3804_v42 = vrot.slane %v3802_v23, 5  ;;  %v3822_v1 = vshll.u32 %v5516_v52, 16  ;;  %v5520_v23 = vld [vmem:[%s5883_s7 + $0xd4] sm:$0x1] }
 0x32e   : > { %v3126_v28 = vpop.f32.mrf.mxu2  ;;  %v3172_v30 = vpop.f32.mrf.mxu3  ;;  %v3805_v51 = vor.u32 %v3804_v42, %v3801_v36  ;;  %v3824_v34 = vrot.slane %v3822_v1, 5 }
 0x32f   : > { %v3142_v27 = vadd.f32 %v3126_v28, %v3096_v29  ;;  %v3037_v40 = vpop.f32.mrf.mxu0  ;;  %v3083_v50 = vpop.f32.mrf.mxu1 }
 0x330   : > { %v3051_v35 = vadd.f32 %v3037_v40, %v6680_v39  ;;  %v5777_v39 = vld [vmem:[%s7018_s1 + $0x1c0] sm:$0xff]  ;;  %v3813_v40 = vshrl.u32 %v5515_v41, 16  ;;  %v3806_v45 = vrot.slane %v3805_v51, 4 }
 0x331   : > { %v6722_v19 = vadd.f32 %v3172_v30, %v3142_v27  ;;  %4147 = vmatpush.bf16.msra.mxu0 %v5777_v39  ;;  %v3797_v27 = vsel %vm5927_vm3, %v3792_v20, %v3796_v16 }
 0x332   : > { %v3097_v37 = vadd.f32 %v3083_v50, %v3051_v35  ;;  %5477 = vmatmul.msk.bf16.gmra.mxu0 %vm216_vm0, %v5466_v33  ;;  %5487 = vmatmul.msk.bf16.gmra.mxu1 %vm216_vm0, %v5466_v33  ;;  %v3816_v50 = vshll.u32 %v5515_v41, 16  ;;  %v3886_v39 = vunpack.c.l.b16 %v3797_v27 }
 0x333   : > { %5497 = vmatmul.msk.bf16.gmra.mxu2 %vm216_vm0, %v5466_v33  ;;  %5507 = vmatmul.msk.bf16.gmra.mxu3 %vm216_vm0, %v5466_v33 }
 0x334   : > { %v3818_v38 = vrot.slane %v3816_v50, 5 }
 0x336   : > { %v3129_v44 = vpop.f32.mrf.mxu2  ;;  %v3175_v47 = vpop.f32.mrf.mxu3 }
 0x337   : > { %v3143_v62 = vadd.f32 %v3129_v44, %v3097_v37  ;;  %v3039_v49 = vpop.f32.mrf.mxu0  ;;  %v3085_v32 = vpop.f32.mrf.mxu1  ;;  %v5514_v44 = vld [vmem:[%s5883_s7 + $0x74] sm:$0x1] }
 0x338   : > { %v3052_v53 = vadd.f32 %v3039_v49, %v6686_v63  ;;  %v3777_v63 = vor.u32 %v3776_v56, %v3773_v60  ;;  %v3808_v21 = vshll.u32 %v5514_v44, 16 }
 0x339   : > { %v6740_v54 = vadd.f32 %v3175_v47, %v3143_v62  ;;  %v3815_v47 = vrot.slane %v3813_v40, 4 }
 0x33a   : > { %v3098_v31 = vadd.f32 %v3085_v32, %v3052_v53  ;;  %v3778_v18 = vrot.slane %v3777_v63, 4  ;;  %v3810_v3 = vrot.slane %v3808_v21, 5 }
 0x33e   : > { %v3131_v2 = vpop.f32.mrf.mxu2  ;;  %v3177_v4 = vpop.f32.mrf.mxu3 }
 0x33f   : > { %v3144_v5 = vadd.f32 %v3131_v2, %v3098_v31  ;;  %v3042_v14 = vpop.f32.mrf.mxu0  ;;  %v3088_v9 = vpop.f32.mrf.mxu1  ;;  %v3819_v31 = vor.u32 %v3818_v38, %v3815_v47  ;;  %v5517_v2 = vld [vmem:[%s5883_s7 + $0xb0] sm:$0xf] }
 0x340   : > { %v3053_v48 = vadd.f32 %v3042_v14, %v6693_v25  ;;  %v3783_v25 = vsel %vm5927_vm3, %v3778_v18, %v3782_v26  ;;  %v3827_v7 = vshrl.u32 %v5517_v2, 16 }
 0x341   : > { %v6750_v10 = vadd.f32 %v3177_v4, %v3144_v5  ;;  %v3885_v6 = vunpack.c.l.b16 %v3783_v25  ;;  %v3820_v0 = vrot.slane %v3819_v31, 4  ;;  %v5519_v4 = vld [vmem:[%s5883_s7 + $0xd0] sm:$0xf]  ;;  %v3830_v5 = vshll.u32 %v5517_v2, 16 }
 0x342   : > { %v3099_v13 = vadd.f32 %v3088_v9, %v3053_v48  ;;  %5478 = vmatmul.msk.bf16.gmra.mxu0 %vm216_vm0, %v5470_v8  ;;  %5488 = vmatmul.msk.bf16.gmra.mxu1 %vm216_vm0, %v5470_v8  ;;  %v3841_v48 = vshrl.u32 %v5519_v4, 16  ;;  %v3829_v41 = vrot.slane %v3827_v7, 4  ;;  %v5522_v7 = vld [vmem:[%s5883_s7 + $0xf4] sm:$0x1] }
 0x343   : > { %5498 = vmatmul.msk.bf16.gmra.mxu2 %vm216_vm0, %v5470_v8  ;;  %5508 = vmatmul.msk.bf16.gmra.mxu3 %vm216_vm0, %v5470_v8  ;;  %v3893_v32 = vpack.c.b16 %v3886_v39, %v3885_v6  ;;  %v3825_v11 = vsel %vm5927_vm3, %v3820_v0, %v3824_v34 }
 0x344   : > { %v3888_v17 = vunpack.c.l.b16 %v3825_v11  ;;  %v3843_v25 = vrot.slane %v3841_v48, 4 }
 0x346   : > { %v3134_v22 = vpop.f32.mrf.mxu2  ;;  %v3180_v29 = vpop.f32.mrf.mxu3 }
 0x347   : > { %v3145_v28 = vadd.f32 %v3134_v22, %v3099_v13  ;;  %v3044_v30 = vpop.f32.mrf.mxu0  ;;  %v3090_v33 = vpop.f32.mrf.mxu1  ;;  %v3844_v13 = vshll.u32 %v5519_v4, 16  ;;  %v3832_v22 = vrot.slane %v3830_v5, 5  ;;  %v5524_v5 = vld [vmem:[%s5883_s7 + $0x114] sm:$0x1] }
 0x348   : > { %v3054_v35 = vadd.f32 %v3044_v30, %v6698_v57 }
 0x349   : > { %v6763_v37 = vadd.f32 %v3180_v29, %v3145_v28  ;;  %v5518_v29 = vld [vmem:[%s5883_s7 + $0xb4] sm:$0x1]  ;;  %v3846_v59 = vrot.slane %v3844_v13, 5  ;;  %v3833_v27 = vor.u32 %v3832_v22, %v3829_v41 }
 0x34a   : > { %v3100_v24 = vadd.f32 %v3090_v33, %v3054_v35  ;;  %v3836_v40 = vshll.u32 %v5518_v29, 16 }
 0x34b   : > { %v3847_v6 = vor.u32 %v3846_v59, %v3843_v25  ;;  %v3834_v44 = vrot.slane %v3833_v27, 4 }
 0x34c   : > { %v3838_v47 = vrot.slane %v3836_v40, 5 }
 0x34d   : > { %v3848_v38 = vrot.slane %v3847_v6, 4 }
 0x34e   : > { %v3136_v62 = vpop.f32.mrf.mxu2  ;;  %v3182_v49 = vpop.f32.mrf.mxu3 }
 0x34f   : > { %v3146_v53 = vadd.f32 %v3136_v62, %v3100_v24  ;;  %v3363_v55 = vpop.f32.mrf.mxu0  ;;  %v3409_v57 = vpop.f32.mrf.mxu1  ;;  %v3850_v24 = vshll.u32 %v5520_v23, 16  ;;  %v5521_v62 = vld [vmem:[%s5883_s7 + $0xf0] sm:$0xf] }
 0x350   : > { %v3383_v60 = vadd.f32 %v3363_v55, %v6705_v12  ;;  %v3811_v12 = vsel %vm5927_vm3, %v3806_v45, %v3810_v3  ;;  %v3855_v21 = vshrl.u32 %v5521_v62, 16 }
 0x351   : > { %v6768_v56 = vadd.f32 %v3182_v49, %v3146_v53  ;;  %v3887_v20 = vunpack.c.l.b16 %v3811_v12  ;;  %v3852_v52 = vrot.slane %v3850_v24, 5  ;;  %v5523_v49 = vld [vmem:[%s5883_s7 + $0x110] sm:$0xf]  ;;  %v3858_v53 = vshll.u32 %v5521_v62, 16 }
 0x352   : > { %v3429_v61 = vadd.f32 %v3409_v57, %v3383_v60  ;;  %5531 = vmatmul.msk.bf16.vlgmr.msrb.gmra.mxu0 %vm216_vm0, %v3893_v32  ;;  %5541 = vmatmul.msk.bf16.vlgmr.msrb.gmra.mxu1 %vm216_vm0, %v3893_v32  ;;  %v3869_v60 = vshrl.u32 %v5523_v49, 16  ;;  %v3857_v4 = vrot.slane %v3855_v21, 4 }
 0x353   : > { %5551 = vmatmul.msk.bf16.vlgmr.msrb.gmra.mxu2 %vm216_vm0, %v3893_v32  ;;  %5561 = vmatmul.msk.bf16.vlgmr.msrb.gmra.mxu3 %vm216_vm0, %v3893_v32  ;;  %v3894_v33 = vpack.c.b16 %v3888_v17, %v3887_v20  ;;  %v3853_v1 = vsel %vm5927_vm3, %v3848_v38, %v3852_v52  ;;  %v3864_v20 = vshll.u32 %v5522_v7, 16 }
 0x354   : > { %v3890_v2 = vunpack.c.l.b16 %v3853_v1 }
 0x355   : > { %v3866_v25 = vrot.slane %v3864_v20, 5 }
 0x356   : > { %v3455_v8 = vpop.f32.mrf.mxu2  ;;  %v3501_v63 = vpop.f32.mrf.mxu3 }
 0x357   : > { %v3475_v14 = vadd.f32 %v3455_v8, %v3429_v61  ;;  %v3365_v9 = vpop.f32.mrf.mxu0  ;;  %v3411_v15 = vpop.f32.mrf.mxu1  ;;  %v3872_v61 = vshll.u32 %v5523_v49, 16  ;;  %v3860_v8 = vrot.slane %v3858_v53, 5 }
 0x358   : > { %v3384_v18 = vadd.f32 %v3365_v9, %v6710_v43 }
 0x359   : > { %v6781_v26 = vadd.f32 %v3501_v63, %v3475_v14  ;;  %v3871_v63 = vrot.slane %v3869_v60, 4  ;;  %v3874_v12 = vrot.slane %v3872_v61, 5  ;;  %v3861_v11 = vor.u32 %v3860_v8, %v3857_v4 }
 0x35a   : > { %v3430_v16 = vadd.f32 %v3411_v15, %v3384_v18 }
 0x35b   : > { %v3862_v29 = vrot.slane %v3861_v11, 4 }
 0x35e   : > { %v3457_v28 = vpop.f32.mrf.mxu2  ;;  %v3503_v30 = vpop.f32.mrf.mxu3 }
 0x35f   : > { %v3476_v50 = vadd.f32 %v3457_v28, %v3430_v16  ;;  %v3368_v35 = vpop.f32.mrf.mxu0  ;;  %v3414_v43 = vpop.f32.mrf.mxu1  ;;  %v3878_v16 = vshll.u32 %v5524_v5, 16  ;;  %v5783_v28 = vld [vmem:[%s7018_s1 + $0x1f0] sm:$0xff] }
 0x360   : > { %v3385_v39 = vadd.f32 %v3368_v35, %v6717_v58  ;;  %v3839_v58 = vsel %vm5927_vm3, %v3834_v44, %v3838_v47  ;;  %4575 = vmatpush.bf16.msrb.mxu2 %v5783_v28 }
 0x361   : > { %v6786_v36 = vadd.f32 %v3503_v30, %v3476_v50  ;;  %v3889_v0 = vunpack.c.l.b16 %v3839_v58  ;;  %v3880_v23 = vrot.slane %v3878_v16, 5  ;;  %v5784_v30 = vld [vmem:[%s7018_s1 + $0x1f8] sm:$0xff] }
 0x362   : > { %v3431_v42 = vadd.f32 %v3414_v43, %v3385_v39  ;;  %5532 = vmatmul.msk.bf16.gmra.mxu0 %vm216_vm0, %v3894_v33  ;;  %5542 = vmatmul.msk.bf16.gmra.mxu1 %vm216_vm0, %v3894_v33  ;;  %v3867_v43 = vsel %vm5927_vm3, %v3862_v29, %v3866_v25  ;;  %v5774_v16 = vld [vmem:[%s5883_s7 + $0x94] sm:$0xf0] }
 0x363   : > { %5552 = vmatmul.msk.bf16.gmra.mxu2 %vm216_vm0, %v3894_v33  ;;  %5562 = vmatmul.msk.bf16.gmra.mxu3 %vm216_vm0, %v3894_v33  ;;  %v3895_v15 = vpack.c.b16 %v3890_v2, %v3889_v0  ;;  %v3891_v47 = vunpack.c.l.b16 %v3867_v43  ;;  %v5577_v0 = vld [vmem:[%s5883_s7 + $0x38] sm:$0xf] }
 0x364   : > { %4621 = vmatpush.bf16.msrb.mxu3 %v5784_v30 }
 0x366   : > { %v3460_v32 = vpop.f32.mrf.mxu2  ;;  %v3506_v51 = vpop.f32.mrf.mxu3 }
 0x367   : > { %v3477_v55 = vadd.f32 %v3460_v32, %v3431_v42  ;;  %v3370_v57 = vpop.f32.mrf.mxu0  ;;  %v3416_v31 = vpop.f32.mrf.mxu1  ;;  %v5782_v42 = vld [vmem:[%s7018_s1 + $0x1e8] sm:$0xff] }
 0x368   : > { %v3386_v45 = vadd.f32 %v3370_v57, %v6722_v19  ;;  %v3875_v19 = vor.u32 %v3874_v12, %v3871_v63  ;;  %4529 = vmatpush.bf16.msrb.mxu1 %v5782_v42 }
 0x369   : > { %v6799_v3 = vadd.f32 %v3506_v51, %v3477_v55 }
 0x36a   : > { %v3432_v34 = vadd.f32 %v3416_v31, %v3386_v45  ;;  %v3876_v59 = vrot.slane %v3875_v19, 4  ;;  %v5581_v19 = vld [vmem:[%s5883_s7 + $0x78] sm:$0xf] }
 0x36b   : > { %v5582_v29 = vor.u32 %v5774_v16, %v5581_v19 }
 0x36c   : > { %v3881_v6 = vsel %vm5927_vm3, %v3876_v59, %v3880_v23 }
 0x36d   : > { %v3892_v38 = vunpack.c.l.b16 %v3881_v6  ;;  %v5585_v6 = vld [vmem:[%s5883_s7 + $0xb8] sm:$0xf] }
 0x36e   : > { %v3462_v14 = vpop.f32.mrf.mxu2  ;;  %v3508_v9 = vpop.f32.mrf.mxu3 }
 0x36f   : > { %v3478_v48 = vadd.f32 %v3462_v14, %v3432_v34  ;;  %v3373_v13 = vpop.f32.mrf.mxu0  ;;  %v3419_v18 = vpop.f32.mrf.mxu1  ;;  %v3896_v49 = vpack.c.b16 %v3892_v38, %v3891_v47  ;;  %v5773_v34 = vld [vmem:[%s5883_s7 + $0x54] sm:$0xf0] }
 0x370   : > { %v3387_v17 = vadd.f32 %v3373_v13, %v6740_v54  ;;  %v5781_v54 = vld [vmem:[%s7018_s1 + $0x1e0] sm:$0xff]  ;;  %v5578_v8 = vor.u32 %v5773_v34, %v5577_v0 }
 0x371   : > { %v6804_v41 = vadd.f32 %v3508_v9, %v3478_v48  ;;  %4483 = vmatpush.bf16.msrb.mxu0 %v5781_v54 }
 0x372   : > { %v3433_v22 = vadd.f32 %v3419_v18, %v3387_v17  ;;  %5533 = vmatmul.msk.bf16.gmra.mxu0 %vm216_vm0, %v3895_v15  ;;  %5543 = vmatmul.msk.bf16.gmra.mxu1 %vm216_vm0, %v3895_v15 }
 0x373   : > { %5553 = vmatmul.msk.bf16.gmra.mxu2 %vm216_vm0, %v3895_v15  ;;  %5563 = vmatmul.msk.bf16.gmra.mxu3 %vm216_vm0, %v3895_v15 }
 0x376   : > { %v3465_v33 = vpop.f32.mrf.mxu2  ;;  %v3511_v27 = vpop.f32.mrf.mxu3 }
 0x377   : > { %v3479_v40 = vadd.f32 %v3465_v33, %v3433_v22  ;;  %v3375_v50 = vpop.f32.mrf.mxu0  ;;  %v3421_v35 = vpop.f32.mrf.mxu1 }
 0x378   : > { %v3388_v24 = vadd.f32 %v3375_v50, %v6750_v10 }
 0x379   : > { %v6824_v39 = vadd.f32 %v3511_v27, %v3479_v40 }
 0x37a   : > { %v3434_v44 = vadd.f32 %v3421_v35, %v3388_v24  ;;  %v5775_v24 = vld [vmem:[%s5883_s7 + $0xd4] sm:$0xf0] }
 0x37b   : > { %v5586_v47 = vor.u32 %v5775_v24, %v5585_v6 }
 0x37e   : > { %v3467_v52 = vpop.f32.mrf.mxu2  ;;  %v3513_v62 = vpop.f32.mrf.mxu3 }
 0x37f   : > { %v3480_v32 = vadd.f32 %v3467_v52, %v3434_v44  ;;  %v3378_v51 = vpop.f32.mrf.mxu0  ;;  %v3424_v58 = vpop.f32.mrf.mxu1 }
 0x380   : > { %v3389_v21 = vadd.f32 %v3378_v51, %v6763_v37 }
 0x381   : > { %v6830_v10 = vadd.f32 %v3513_v62, %v3480_v32 }
 0x382   : > { %v3435_v53 = vadd.f32 %v3424_v58, %v3389_v21  ;;  %5534 = vmatmul.msk.bf16.gmra.mxu0 %vm216_vm0, %v3896_v49  ;;  %5544 = vmatmul.msk.bf16.gmra.mxu1 %vm216_vm0, %v3896_v49  ;;  %v5631_v58 = vld [vmem:[%s5883_s7 + $0x58] sm:$0xf] }
 0x383   : > { %5554 = vmatmul.msk.bf16.gmra.mxu2 %vm216_vm0, %v3896_v49  ;;  %5564 = vmatmul.msk.bf16.gmra.mxu3 %vm216_vm0, %v3896_v49 }
 0x386   : > { %v3470_v55 = vpop.f32.mrf.mxu2  ;;  %v3516_v57 = vpop.f32.mrf.mxu3 }
 0x387   : > { %v3481_v31 = vadd.f32 %v3470_v55, %v3435_v53  ;;  %v3380_v1 = vpop.f32.mrf.mxu0  ;;  %v3426_v60 = vpop.f32.mrf.mxu1 }
 0x388   : > { %v3390_v61 = vadd.f32 %v3380_v1, %v6768_v56 }
 0x389   : > { %v6837_v37 = vadd.f32 %v3516_v57, %v3481_v31 }
 0x38a   : > { %v3436_v45 = vadd.f32 %v3426_v60, %v3390_v61  ;;  %v4346_v60 = vshrl.u32 %v5631_v58, 16  ;;  %v4349_v61 = vshll.u32 %v5631_v58, 16  ;;  %v5634_v58 = vld [vmem:[%s5883_s7 + $0x7c] sm:$0x1] }
 0x38e   : > { %v3472_v2 = vpop.f32.mrf.mxu2  ;;  %v3518_v4 = vpop.f32.mrf.mxu3 }
 0x38f   : > { %v3482_v63 = vadd.f32 %v3472_v2, %v3436_v45  ;;  %v3588_v12 = vpop.f32.mrf.mxu0  ;;  %v3634_v7 = vpop.f32.mrf.mxu1  ;;  %v5589_v2 = vld [vmem:[%s5883_s7 + $0xf8] sm:$0xf] }
 0x390   : > { %v3608_v5 = vadd.f32 %v3588_v12, %v6781_v26  ;;  %v5630_v12 = vld [vmem:[%s5883_s7 + $0x3c] sm:$0x1] }
 0x391   : > { %v6842_v14 = vadd.f32 %v3518_v4, %v3482_v63  ;;  %v5776_v63 = vld [vmem:[%s5883_s7 + $0x114] sm:$0xf0] }
 0x392   : > { %v3654_v9 = vadd.f32 %v3634_v7, %v3608_v5  ;;  %5595 = vmatmul.msk.bf16.vlgmr.msra.gmra.mxu0 %vm216_vm0, %v5578_v8  ;;  %5605 = vmatmul.msk.bf16.vlgmr.msra.gmra.mxu1 %vm216_vm0, %v5578_v8  ;;  %v4348_v7 = vrot.slane %v4346_v60, 4  ;;  %v4351_v5 = vrot.slane %v4349_v61, 5  ;;  %v4369_v60 = vshll.u32 %v5634_v58, 16 }
 0x393   : > { %5615 = vmatmul.msk.bf16.vlgmr.msra.gmra.mxu2 %vm216_vm0, %v5578_v8  ;;  %5625 = vmatmul.msk.bf16.vlgmr.msra.gmra.mxu3 %vm216_vm0, %v5578_v8 }
 0x394   : > { %v4352_v19 = vor.u32 %v4351_v5, %v4348_v7  ;;  %v4371_v7 = vrot.slane %v4369_v60, 5 }
 0x396   : > { %v3680_v56 = vpop.f32.mrf.mxu2  ;;  %v3726_v15 = vpop.f32.mrf.mxu3 }
 0x397   : > { %v3700_v11 = vadd.f32 %v3680_v56, %v3654_v9  ;;  %v3590_v48 = vpop.f32.mrf.mxu0  ;;  %v3636_v13 = vpop.f32.mrf.mxu1  ;;  %v5632_v9 = vld [vmem:[%s5883_s7 + $0x5c] sm:$0x1] }
 0x398   : > { %v3609_v18 = vadd.f32 %v3590_v48, %v6786_v36  ;;  %v4355_v16 = vshll.u32 %v5632_v9, 16 }
 0x399   : > { %v6849_v26 = vadd.f32 %v3726_v15, %v3700_v11  ;;  %v5590_v11 = vor.u32 %v5776_v63, %v5589_v2 }
 0x39a   : > { %v3655_v20 = vadd.f32 %v3636_v13, %v3609_v18  ;;  %v4341_v13 = vshll.u32 %v5630_v12, 16 }
 0x39e   : > { %v3682_v17 = vpop.f32.mrf.mxu2  ;;  %v3728_v22 = vpop.f32.mrf.mxu3 }
 0x39f   : > { %v3701_v25 = vadd.f32 %v3682_v17, %v3655_v20  ;;  %v3593_v59 = vpop.f32.mrf.mxu0  ;;  %v3639_v23 = vpop.f32.mrf.mxu1 }
 0x3a0   : > { %v3610_v28 = vadd.f32 %v3593_v59, %v6799_v3  ;;  %v4343_v59 = vrot.slane %v4341_v13, 5 }
 0x3a1   : > { %v6854_v54 = vadd.f32 %v3728_v22, %v3701_v25 }
 0x3a2   : > { %v3656_v30 = vadd.f32 %v3639_v23, %v3610_v28  ;;  %5596 = vmatmul.msk.bf16.gmra.mxu0 %vm216_vm0, %v5582_v29  ;;  %5606 = vmatmul.msk.bf16.gmra.mxu1 %vm216_vm0, %v5582_v29  ;;  %v4353_v23 = vrot.slane %v4352_v19, 4  ;;  %v4357_v28 = vrot.slane %v4355_v16, 5 }
 0x3a3   : > { %5616 = vmatmul.msk.bf16.gmra.mxu2 %vm216_vm0, %v5582_v29  ;;  %5626 = vmatmul.msk.bf16.gmra.mxu3 %vm216_vm0, %v5582_v29 }
 0x3a4   : > { %v4358_v24 = vsel %vm5927_vm3, %v4353_v23, %v4357_v28 }
 0x3a6   : > { %v3685_v36 = vpop.f32.mrf.mxu2  ;;  %v3731_v33 = vpop.f32.mrf.mxu3 }
 0x3a7   : > { %v3702_v27 = vadd.f32 %v3685_v36, %v3656_v30  ;;  %v3595_v40 = vpop.f32.mrf.mxu0  ;;  %v3641_v50 = vpop.f32.mrf.mxu1  ;;  %v5633_v30 = vld [vmem:[%s5883_s7 + $0x78] sm:$0xf] }
 0x3a8   : > { %v3611_v35 = vadd.f32 %v3595_v40, %v6804_v41  ;;  %v5629_v41 = vld [vmem:[%s5883_s7 + $0x38] sm:$0xf]  ;;  %v4360_v40 = vshrl.u32 %v5633_v30, 16 }
 0x3a9   : > { %v6861_v3 = vadd.f32 %v3731_v33, %v3702_v27  ;;  %v4332_v55 = vshrl.u32 %v5629_v41, 16  ;;  %v5635_v36 = vld [vmem:[%s5883_s7 + $0x98] sm:$0xf] }
 0x3aa   : > { %v3657_v43 = vadd.f32 %v3641_v50, %v3611_v35  ;;  %v4363_v50 = vshll.u32 %v5633_v30, 16 }
 0x3ab   : > { %v4334_v4 = vrot.slane %v4332_v55, 4  ;;  %v5636_v55 = vld [vmem:[%s5883_s7 + $0x9c] sm:$0x1] }
 0x3ac   : > { %v4383_v2 = vshll.u32 %v5636_v55, 16 }
 0x3ae   : > { %v3687_v42 = vpop.f32.mrf.mxu2  ;;  %v3733_v44 = vpop.f32.mrf.mxu3  ;;  %v4385_v9 = vrot.slane %v4383_v2, 5 }
 0x3af   : > { %v3703_v38 = vadd.f32 %v3687_v42, %v3657_v43  ;;  %v3598_v52 = vpop.f32.mrf.mxu0  ;;  %v3644_v62 = vpop.f32.mrf.mxu1  ;;  %v4374_v42 = vshrl.u32 %v5635_v36, 16 }
 0x3b0   : > { %v3612_v49 = vadd.f32 %v3598_v52, %v6824_v39  ;;  %v4335_v39 = vshll.u32 %v5629_v41, 16  ;;  %v4365_v41 = vrot.slane %v4363_v50, 5  ;;  %v5640_v50 = vld [vmem:[%s5883_s7 + $0xdc] sm:$0x1] }
 0x3b1   : > { %v6866_v32 = vadd.f32 %v3733_v44, %v3703_v38  ;;  %v4377_v44 = vshll.u32 %v5635_v36, 16 }
 0x3b2   : > { %v3658_v51 = vadd.f32 %v3644_v62, %v3612_v49  ;;  %5597 = vmatmul.msk.bf16.gmra.mxu0 %vm216_vm0, %v5586_v47  ;;  %5607 = vmatmul.msk.bf16.gmra.mxu1 %vm216_vm0, %v5586_v47  ;;  %v4337_v8 = vrot.slane %v4335_v39, 5  ;;  %v4447_v49 = vunpack.c.l.b16 %v4358_v24 }
 0x3b3   : > { %5617 = vmatmul.msk.bf16.gmra.mxu2 %vm216_vm0, %v5586_v47  ;;  %5627 = vmatmul.msk.bf16.gmra.mxu3 %vm216_vm0, %v5586_v47 }
 0x3b4   : > { %v4338_v48 = vor.u32 %v4337_v8, %v4334_v4 }
 0x3b6   : > { %v3690_v21 = vpop.f32.mrf.mxu2  ;;  %v3736_v53 = vpop.f32.mrf.mxu3  ;;  %v4339_v25 = vrot.slane %v4338_v48, 4 }
 0x3b7   : > { %v3704_v57 = vadd.f32 %v3690_v21, %v3658_v51  ;;  %v3600_v31 = vpop.f32.mrf.mxu0  ;;  %v3646_v1 = vpop.f32.mrf.mxu1  ;;  %v4362_v51 = vrot.slane %v4360_v40, 4  ;;  %v4376_v21 = vrot.slane %v4374_v42, 4 }
 0x3b8   : > { %v3613_v45 = vadd.f32 %v3600_v31, %v6830_v10 }
 0x3b9   : > { %v6875_v0 = vadd.f32 %v3736_v53, %v3704_v57  ;;  %v4379_v53 = vrot.slane %v4377_v44, 5 }
 0x3ba   : > { %v3659_v34 = vadd.f32 %v3646_v1, %v3613_v45  ;;  %v4366_v1 = vor.u32 %v4365_v41, %v4362_v51 }
 0x3bc   : > { %v4367_v12 = vrot.slane %v4366_v1, 4 }
 0x3be   : > { %v3692_v56 = vpop.f32.mrf.mxu2  ;;  %v3738_v15 = vpop.f32.mrf.mxu3 }
 0x3bf   : > { %v3705_v18 = vadd.f32 %v3692_v56, %v3659_v34  ;;  %v3603_v20 = vpop.f32.mrf.mxu0  ;;  %v3649_v10 = vpop.f32.mrf.mxu1  ;;  %v4380_v34 = vor.u32 %v4379_v53, %v4376_v21  ;;  %v5637_v56 = vld [vmem:[%s5883_s7 + $0xb8] sm:$0xf] }
 0x3c0   : > { %v3614_v17 = vadd.f32 %v3603_v20, %v6837_v37  ;;  %v4344_v37 = vsel %vm5927_vm3, %v4339_v25, %v4343_v59  ;;  %v4388_v13 = vshrl.u32 %v5637_v56, 16 }
 0x3c1   : > { %v6882_v22 = vadd.f32 %v3738_v15, %v3705_v18  ;;  %v4446_v52 = vunpack.c.l.b16 %v4344_v37  ;;  %v4381_v5 = vrot.slane %v4380_v34, 4  ;;  %v5639_v15 = vld [vmem:[%s5883_s7 + $0xd8] sm:$0xf]  ;;  %v4391_v18 = vshll.u32 %v5637_v56, 16 }
 0x3c2   : > { %v3660_v29 = vadd.f32 %v3649_v10, %v3614_v17  ;;  %5598 = vmatmul.msk.bf16.gmra.mxu0 %vm216_vm0, %v5590_v11  ;;  %5608 = vmatmul.msk.bf16.gmra.mxu1 %vm216_vm0, %v5590_v11  ;;  %v4402_v17 = vshrl.u32 %v5639_v15, 16  ;;  %v4390_v36 = vrot.slane %v4388_v13, 4  ;;  %v5642_v13 = vld [vmem:[%s5883_s7 + $0xfc] sm:$0x1] }
 0x3c3   : > { %5618 = vmatmul.msk.bf16.gmra.mxu2 %vm216_vm0, %v5590_v11  ;;  %5628 = vmatmul.msk.bf16.gmra.mxu3 %vm216_vm0, %v5590_v11  ;;  %v4454_v31 = vpack.c.b16 %v4447_v49, %v4446_v52  ;;  %v4386_v16 = vsel %vm5927_vm3, %v4381_v5, %v4385_v9 }
 0x3c4   : > { %v4449_v30 = vunpack.c.l.b16 %v4386_v16  ;;  %v4404_v37 = vrot.slane %v4402_v17, 4 }
 0x3c6   : > { %v3695_v33 = vpop.f32.mrf.mxu2  ;;  %v3741_v27 = vpop.f32.mrf.mxu3 }
 0x3c7   : > { %v3706_v35 = vadd.f32 %v3695_v33, %v3660_v29  ;;  %v3605_v43 = vpop.f32.mrf.mxu0  ;;  %v3651_v6 = vpop.f32.mrf.mxu1  ;;  %v4405_v29 = vshll.u32 %v5639_v15, 16  ;;  %v4393_v33 = vrot.slane %v4391_v18, 5  ;;  %v5644_v18 = vld [vmem:[%s5883_s7 + $0x11c] sm:$0x1] }
 0x3c8   : > { %v3615_v47 = vadd.f32 %v3605_v43, %v6842_v14 }
 0x3c9   : > { %v6895_v38 = vadd.f32 %v3741_v27, %v3706_v35  ;;  %v5638_v27 = vld [vmem:[%s5883_s7 + $0xbc] sm:$0x1]  ;;  %v4407_v40 = vrot.slane %v4405_v29, 5  ;;  %v4394_v24 = vor.u32 %v4393_v33, %v4390_v36 }
 0x3ca   : > { %v3661_v62 = vadd.f32 %v3651_v6, %v3615_v47  ;;  %v4397_v42 = vshll.u32 %v5638_v27, 16 }
 0x3cb   : > { %v4408_v52 = vor.u32 %v4407_v40, %v4404_v37  ;;  %v4395_v58 = vrot.slane %v4394_v24, 4 }
 0x3cc   : > { %v4399_v21 = vrot.slane %v4397_v42, 5 }
 0x3cd   : > { %v4409_v53 = vrot.slane %v4408_v52, 4 }
 0x3ce   : > { %v3697_v39 = vpop.f32.mrf.mxu2  ;;  %v3743_v57 = vpop.f32.mrf.mxu3 }
 0x3cf   : > { %v3707_v61 = vadd.f32 %v3697_v39, %v3661_v62  ;;  %v3924_v45 = vpop.f32.mrf.mxu0  ;;  %v3970_v14 = vpop.f32.mrf.mxu1  ;;  %v4411_v62 = vshll.u32 %v5640_v50, 16  ;;  %v5641_v39 = vld [vmem:[%s5883_s7 + $0xf8] sm:$0xf] }
 0x3d0   : > { %v3944_v4 = vadd.f32 %v3924_v45, %v6849_v26  ;;  %v4372_v26 = vsel %vm5927_vm3, %v4367_v12, %v4371_v7  ;;  %v4416_v60 = vshrl.u32 %v5641_v39, 16 }
 0x3d1   : > { %v6900_v8 = vadd.f32 %v3743_v57, %v3707_v61  ;;  %v4448_v23 = vunpack.c.l.b16 %v4372_v26  ;;  %v4413_v55 = vrot.slane %v4411_v62, 5  ;;  %v5643_v57 = vld [vmem:[%s5883_s7 + $0x118] sm:$0xf]  ;;  %v4419_v61 = vshll.u32 %v5641_v39, 16 }
 0x3d2   : > { %v3990_v63 = vadd.f32 %v3970_v14, %v3944_v4  ;;  %5651 = vmatmul.msk.bf16.vlgmr.msrb.gmra.mxu0 %vm216_vm0, %v4454_v31  ;;  %5661 = vmatmul.msk.bf16.vlgmr.msrb.gmra.mxu1 %vm216_vm0, %v4454_v31  ;;  %v4430_v4 = vshrl.u32 %v5643_v57, 16  ;;  %v4418_v15 = vrot.slane %v4416_v60, 4 }
 0x3d3   : > { %5671 = vmatmul.msk.bf16.vlgmr.msrb.gmra.mxu2 %vm216_vm0, %v4454_v31  ;;  %5681 = vmatmul.msk.bf16.vlgmr.msrb.gmra.mxu3 %vm216_vm0, %v4454_v31  ;;  %v4455_v6 = vpack.c.b16 %v4449_v30, %v4448_v23  ;;  %v4414_v2 = vsel %vm5927_vm3, %v4409_v53, %v4413_v55  ;;  %v4425_v23 = vshll.u32 %v5642_v13, 16 }
 0x3d4   : > { %v4451_v56 = vunpack.c.l.b16 %v4414_v2 }
 0x3d5   : > { %v4427_v37 = vrot.slane %v4425_v23, 5 }
 0x3d6   : > { %v4016_v11 = vpop.f32.mrf.mxu2  ;;  %v4062_v48 = vpop.f32.mrf.mxu3 }
 0x3d7   : > { %v4036_v20 = vadd.f32 %v4016_v11, %v3990_v63  ;;  %v3926_v10 = vpop.f32.mrf.mxu0  ;;  %v3972_v19 = vpop.f32.mrf.mxu1  ;;  %v4433_v63 = vshll.u32 %v5643_v57, 16  ;;  %v4421_v11 = vrot.slane %v4419_v61, 5 }
 0x3d8   : > { %v3945_v25 = vadd.f32 %v3926_v10, %v6854_v54 }
 0x3d9   : > { %v6913_v59 = vadd.f32 %v4062_v48, %v4036_v20  ;;  %v4432_v48 = vrot.slane %v4430_v4, 4  ;;  %v4435_v26 = vrot.slane %v4433_v63, 5  ;;  %v4422_v16 = vor.u32 %v4421_v11, %v4418_v15 }
 0x3da   : > { %v3991_v28 = vadd.f32 %v3972_v19, %v3945_v25 }
 0x3db   : > { %v4423_v27 = vrot.slane %v4422_v16, 4 }
 0x3dd   : > { %v4428_v42 = vsel %vm5927_vm3, %v4423_v27, %v4427_v37 }
 0x3de   : > { %v4018_v35 = vpop.f32.mrf.mxu2  ;;  %v4064_v43 = vpop.f32.mrf.mxu3  ;;  %v4452_v62 = vunpack.c.l.b16 %v4428_v42 }
 0x3df   : > { %v4037_v44 = vadd.f32 %v4018_v35, %v3991_v28  ;;  %v3929_v47 = vpop.f32.mrf.mxu0  ;;  %v3975_v54 = vpop.f32.mrf.mxu1  ;;  %v4439_v28 = vshll.u32 %v5644_v18, 16 }
 0x3e0   : > { %v3946_v49 = vadd.f32 %v3929_v47, %v6861_v3  ;;  %v4400_v3 = vsel %vm5927_vm3, %v4395_v58, %v4399_v21 }
 0x3e1   : > { %v6918_v51 = vadd.f32 %v4064_v43, %v4037_v44  ;;  %v4450_v5 = vunpack.c.l.b16 %v4400_v3  ;;  %v4441_v50 = vrot.slane %v4439_v28, 5 }
 0x3e2   : > { %v3992_v41 = vadd.f32 %v3975_v54, %v3946_v49  ;;  %5652 = vmatmul.msk.bf16.gmra.mxu0 %vm216_vm0, %v4455_v6  ;;  %5662 = vmatmul.msk.bf16.gmra.mxu1 %vm216_vm0, %v4455_v6 }
 0x3e3   : > { %5672 = vmatmul.msk.bf16.gmra.mxu2 %vm216_vm0, %v4455_v6  ;;  %5682 = vmatmul.msk.bf16.gmra.mxu3 %vm216_vm0, %v4455_v6  ;;  %v4456_v19 = vpack.c.b16 %v4451_v56, %v4450_v5 }
 0x3e6   : > { %v4021_v31 = vpop.f32.mrf.mxu2  ;;  %v4067_v1 = vpop.f32.mrf.mxu3 }
 0x3e7   : > { %v4038_v45 = vadd.f32 %v4021_v31, %v3992_v41  ;;  %v3931_v14 = vpop.f32.mrf.mxu0  ;;  %v3977_v34 = vpop.f32.mrf.mxu1 }
 0x3e8   : > { %v3947_v12 = vadd.f32 %v3931_v14, %v6866_v32  ;;  %v4436_v32 = vor.u32 %v4435_v26, %v4432_v48 }
 0x3e9   : > { %v6931_v7 = vadd.f32 %v4067_v1, %v4038_v45 }
 0x3ea   : > { %v3993_v9 = vadd.f32 %v3977_v34, %v3947_v12  ;;  %v4437_v40 = vrot.slane %v4436_v32, 4 }
 0x3ec   : > { %v4442_v44 = vsel %vm5927_vm3, %v4437_v40, %v4441_v50 }
 0x3ed   : > { %v4453_v49 = vunpack.c.l.b16 %v4442_v44 }
 0x3ee   : > { %v4023_v20 = vpop.f32.mrf.mxu2  ;;  %v4069_v10 = vpop.f32.mrf.mxu3 }
 0x3ef   : > { %v4039_v17 = vadd.f32 %v4023_v20, %v3993_v9  ;;  %v3934_v29 = vpop.f32.mrf.mxu0  ;;  %v3980_v25 = vpop.f32.mrf.mxu1  ;;  %v4457_v21 = vpack.c.b16 %v4453_v49, %v4452_v62 }
 0x3f0   : > { %v3948_v30 = vadd.f32 %v3934_v29, %v6875_v0 }
 0x3f1   : > { %v6936_v36 = vadd.f32 %v4069_v10, %v4039_v17 }
 0x3f2   : > { %v3994_v33 = vadd.f32 %v3980_v25, %v3948_v30  ;;  %5653 = vmatmul.msk.bf16.gmra.mxu0 %vm216_vm0, %v4456_v19  ;;  %5663 = vmatmul.msk.bf16.gmra.mxu1 %vm216_vm0, %v4456_v19 }
 0x3f3   : > { %5673 = vmatmul.msk.bf16.gmra.mxu2 %vm216_vm0, %v4456_v19  ;;  %5683 = vmatmul.msk.bf16.gmra.mxu3 %vm216_vm0, %v4456_v19 }
 0x3f6   : > { %v4026_v35 = vpop.f32.mrf.mxu2  ;;  %v4072_v43 = vpop.f32.mrf.mxu3 }
 0x3f7   : > { %v4040_v6 = vadd.f32 %v4026_v35, %v3994_v33  ;;  %v3936_v24 = vpop.f32.mrf.mxu0  ;;  %v3982_v0 = vpop.f32.mrf.mxu1 }
 0x3f8   : > { %v3949_v47 = vadd.f32 %v3936_v24, %v6882_v22 }
 0x3f9   : > { %v4086_v54 = vadd.f32 %v4072_v43, %v4040_v6 }
 0x3fa   : > { %v3995_v52 = vadd.f32 %v3982_v0, %v3949_v47 }
 0x3fe   : > { %v4028_v41 = vpop.f32.mrf.mxu2  ;;  %v4074_v58 = vpop.f32.mrf.mxu3 }
 0x3ff   : > { %v4041_v53 = vadd.f32 %v4028_v41, %v3995_v52  ;;  %v3939_v55 = vpop.f32.mrf.mxu0  ;;  %v3985_v39 = vpop.f32.mrf.mxu1 }
 0x400   : > { %v3950_v57 = vadd.f32 %v3939_v55, %v6895_v38 }
 0x401   : > { %v6948_v31 = vadd.f32 %v4074_v58, %v4041_v53 }
 0x402   : > { %v3996_v1 = vadd.f32 %v3985_v39, %v3950_v57  ;;  %5654 = vmatmul.msk.bf16.gmra.mxu0 %vm216_vm0, %v4457_v21  ;;  %5664 = vmatmul.msk.bf16.gmra.mxu1 %vm216_vm0, %v4457_v21 }
 0x403   : > { %5674 = vmatmul.msk.bf16.gmra.mxu2 %vm216_vm0, %v4457_v21  ;;  %5684 = vmatmul.msk.bf16.gmra.mxu3 %vm216_vm0, %v4457_v21 }
 0x406   : > { %v4031_v46 = vpop.f32.mrf.mxu2  ;;  %v4077_v22 = vpop.f32.mrf.mxu3 }
 0x407   : > { %v4042_v3 = vadd.f32 %v4031_v46, %v3996_v1  ;;  %v3941_v60 = vpop.f32.mrf.mxu0  ;;  %v3987_v61 = vpop.f32.mrf.mxu1 }
 0x408   : > { %v3951_v45 = vadd.f32 %v3941_v60, %v6900_v8 }
 0x409   : > { %v4088_v14 = vadd.f32 %v4077_v22, %v4042_v3 }
 0x40a   : > { %v3997_v38 = vadd.f32 %v3987_v61, %v3951_v45 }
 0x40e   : > { %v4033_v34 = vpop.f32.mrf.mxu2  ;;  %v4079_v2 = vpop.f32.mrf.mxu3 }
 0x40f   : > { %v4043_v4 = vadd.f32 %v4033_v34, %v3997_v38  ;;  %v4149_v63 = vpop.f32.mrf.mxu0  ;;  %v4195_v12 = vpop.f32.mrf.mxu1 }
 0x410   : > { %v4169_v5 = vadd.f32 %v4149_v63, %v6913_v59 }
 0x411   : > { %v6956_v9 = vadd.f32 %v4079_v2, %v4043_v4 }
 0x412   : > { %v4215_v56 = vadd.f32 %v4195_v12, %v4169_v5 }
 0x416   : > { %v4241_v15 = vpop.f32.mrf.mxu2  ;;  %v4287_v11 = vpop.f32.mrf.mxu3 }
 0x417   : > { %v4261_v48 = vadd.f32 %v4241_v15, %v4215_v56  ;;  %v4151_v26 = vpop.f32.mrf.mxu0  ;;  %v4197_v13 = vpop.f32.mrf.mxu1  ;;  %v6983_v56 = vld [vmem:[%s7019_s2] ss:$0 sm:$0xff] }
 0x418   : > { %v4170_v39 = vadd.f32 %v4151_v26, %v6918_v51 }
 0x419   : > { %v4307_v18 = vadd.f32 %v4287_v11, %v4261_v48 }
 0x41a   : > { %v4216_v3 = vadd.f32 %v4197_v13, %v4170_v39 }
 0x41e   : > { %v4243_v20 = vpop.f32.mrf.mxu2  ;;  %v4289_v8 = vpop.f32.mrf.mxu3 }
 0x41f   : > { %v4154_v10 = vpop.f32.mrf.mxu0  ;;  %v4200_v19 = vpop.f32.mrf.mxu1  ;;  %v4262_v60 = vadd.f32 %v4243_v20, %v4216_v3 }
 0x420   : > { %v4171_v16 = vadd.f32 %v4154_v10, %v6931_v7 }
 0x421   : > { %v4308_v38 = vadd.f32 %v4289_v8, %v4262_v60 }
 0x422   : > { %v4217_v17 = vadd.f32 %v4200_v19, %v4171_v16 }
 0x426   : > { %v4246_v29 = vpop.f32.mrf.mxu2  ;;  %v4292_v25 = vpop.f32.mrf.mxu3 }
 0x427   : > { %v4263_v23 = vadd.f32 %v4246_v29, %v4217_v17  ;;  %v4156_v59 = vpop.f32.mrf.mxu0  ;;  %v4202_v32 = vpop.f32.mrf.mxu1 }
 0x428   : > { %v4172_v51 = vadd.f32 %v4156_v59, %v6936_v36 }
 0x429   : > { %v4309_v28 = vadd.f32 %v4292_v25, %v4263_v23 }
 0x42a   : > { %v4218_v20 = vadd.f32 %v4202_v32, %v4172_v51 }
 0x42e   : > { %v4248_v30 = vpop.f32.mrf.mxu2  ;;  %v4294_v33 = vpop.f32.mrf.mxu3 }
 0x42f   : > { %v4159_v27 = vpop.f32.mrf.mxu0  ;;  %v4205_v37 = vpop.f32.mrf.mxu1  ;;  %v4264_v19 = vadd.f32 %v4248_v30, %v4218_v20 }
 0x430   : > { %v4173_v40 = vadd.f32 %v4159_v27, %v4086_v54 }
 0x431   : > { %v4310_v59 = vadd.f32 %v4294_v33, %v4264_v19 }
 0x432   : > { %v4219_v50 = vadd.f32 %v4205_v37, %v4173_v40 }
 0x436   : > { %v4251_v35 = vpop.f32.mrf.mxu2  ;;  %v4297_v43 = vpop.f32.mrf.mxu3 }
 0x437   : > { %v4265_v6 = vadd.f32 %v4251_v35, %v4219_v50  ;;  %v4161_v24 = vpop.f32.mrf.mxu0  ;;  %v6959_v0 = vpop.f32.mrf.mxu1 }
 0x439   : > { %v6961_v7 = vadd.f32 %v4297_v43, %v4265_v6 }
 0x43e   : > { %v6963_v42 = vpop.f32.mrf.mxu2  ;;  %v6965_v44 = vpop.f32.mrf.mxu3 }
 0x43f   : > { %v4164_v47 = vpop.f32.mrf.mxu0  ;;  %v4210_v52 = vpop.f32.mrf.mxu1 }
 0x440   : > { %v4175_v62 = vadd.f32 %v4164_v47, %v4088_v14 }
 0x442   : > { %v4221_v49 = vadd.f32 %v4210_v52, %v4175_v62 }
 0x446   : > { %v4256_v41 = vpop.f32.mrf.mxu2  ;;  %v4302_v58 = vpop.f32.mrf.mxu3 }
 0x447   : > { %v4267_v54 = vadd.f32 %v4256_v41, %v4221_v49  ;;  %v6967_v21 = vpop.f32.mrf.mxu0  ;;  %v6969_v53 = vpop.f32.mrf.mxu1 }
 0x449   : > { %v6971_v55 = vadd.f32 %v4302_v58, %v4267_v54 }
 0x44e   : > { %v6974_v57 = vpop.f32.mrf.mxu2  ;;  %v6976_v1 = vpop.f32.mrf.mxu3 }
 0x44f   : > { %v4485_v46 = vpop.f32.mrf.mxu0  ;;  %v4531_v22 = vpop.f32.mrf.mxu1 }
 0x450   : > { %v4505_v61 = vadd.f32 %v4485_v46, %v4307_v18 }
 0x452   : > { %v4551_v34 = vadd.f32 %v4531_v22, %v4505_v61 }
 0x456   : > { %v4577_v45 = vpop.f32.mrf.mxu2  ;;  %v4623_v14 = vpop.f32.mrf.mxu3 }
 0x457   : > { %v4487_v2 = vpop.f32.mrf.mxu0  ;;  %v4533_v4 = vpop.f32.mrf.mxu1  ;;  %v4597_v63 = vadd.f32 %v4577_v45, %v4551_v34 }
 0x458   : > { %v4506_v12 = vadd.f32 %v4487_v2, %v4308_v38 }
 0x459   : > { %v4643_v5 = vadd.f32 %v4623_v14, %v4597_v63 }
 0x45a   : > { %v4552_v15 = vadd.f32 %v4533_v4, %v4506_v12 }
 0x45b   : > { %v4655_v8 = vadd.f32 %v6983_v56, %v4643_v5 }
 0x45d   : > { %v4663_v17 = vmax.f32 %v4655_v8, 0.0 }
 0x45e   : > { %v4579_v11 = vpop.f32.mrf.mxu2  ;;  %v4625_v48 = vpop.f32.mrf.mxu3 }
 0x45f   : > { %v4598_v26 = vadd.f32 %v4579_v11, %v4552_v15  ;;  %v4490_v13 = vpop.f32.mrf.mxu0  ;;  %v4536_v18 = vpop.f32.mrf.mxu1 }
 0x460   : > { %v4507_v16 = vadd.f32 %v4490_v13, %v4309_v28  ;;  %v4174_v28 = vadd.f32 %v4161_v24, %v6948_v31 }
 0x461   : > { %v4644_v10 = vadd.f32 %v4625_v48, %v4598_v26 }
 0x462   : > { %v4553_v27 = vadd.f32 %v4536_v18, %v4507_v16  ;;  %v4220_v41 = vadd.f32 %v6959_v0, %v4174_v28 }
 0x463   : > { %v4656_v36 = vadd.f32 %v6983_v56, %v4644_v10 }
 0x464   : > { %v4266_v54 = vadd.f32 %v6963_v42, %v4220_v41  ;;  %v4176_v42 = vadd.f32 %v6967_v21, %v6956_v9 }
 0x465   : > { %v4664_v29 = vmax.f32 %v4656_v36, 0.0 }
 0x466   : > { %v4582_v25 = vpop.f32.mrf.mxu2  ;;  %v4628_v23 = vpop.f32.mrf.mxu3  ;;  %v4312_v60 = vadd.f32 %v6965_v44, %v4266_v54  ;;  %v4222_v5 = vadd.f32 %v6969_v53, %v4176_v42 }
 0x467   : > { %v5788_v32 = vpack.c.bf16 %v4664_v29, %v4663_v17  ;;  %v4492_v37 = vpop.f32.mrf.mxu0  ;;  %v4538_v40 = vpop.f32.mrf.mxu1  ;;  %v4599_v30 = vadd.f32 %v4582_v25, %v4553_v27 }
 0x468   : > { %v4508_v50 = vadd.f32 %v4492_v37, %v4310_v59  ;;  %v4268_v48 = vadd.f32 %v6974_v57, %v4222_v5 }
 0x469   : > { %5789 = vst [vmem:[%s6991_s30] sm:$0xff] %v5788_v32   ;;  %v4645_v35 = vadd.f32 %v4628_v23, %v4599_v30 }
 0x46a   : > { %v4554_v43 = vadd.f32 %v4538_v40, %v4508_v50  ;;  %v4314_v8 = vadd.f32 %v6976_v1, %v4268_v48 }
 0x46b   : > { %v4657_v33 = vadd.f32 %v6983_v56, %v4645_v35 }
 0x46d   : > { %v4665_v31 = vmax.f32 %v4657_v33, 0.0 }
 0x46e   : > { %v4584_v6 = vpop.f32.mrf.mxu2  ;;  %v4630_v47 = vpop.f32.mrf.mxu3 }
 0x46f   : > { %v4600_v52 = vadd.f32 %v4584_v6, %v4554_v43  ;;  %v4495_v62 = vpop.f32.mrf.mxu0  ;;  %v4541_v49 = vpop.f32.mrf.mxu1 }
 0x470   : > { %v4509_v46 = vadd.f32 %v4495_v62, %v6961_v7 }
 0x471   : > { %v4646_v58 = vadd.f32 %v4630_v47, %v4600_v52 }
 0x472   : > { %v4555_v45 = vadd.f32 %v4541_v49, %v4509_v46 }
 0x473   : > { %v4658_v39 = vadd.f32 %v6983_v56, %v4646_v58 }
 0x475   : > { %v4666_v24 = vmax.f32 %v4658_v39, 0.0 }
 0x476   : > { %v4587_v22 = vpop.f32.mrf.mxu2  ;;  %v4633_v3 = vpop.f32.mrf.mxu3 }
 0x477   : > { %v5793_v61 = vpack.c.bf16 %v4666_v24, %v4665_v31  ;;  %v4497_v14 = vpop.f32.mrf.mxu0  ;;  %v4543_v38 = vpop.f32.mrf.mxu1  ;;  %v4601_v0 = vadd.f32 %v4587_v22, %v4555_v45 }
 0x478   : > { %v4510_v34 = vadd.f32 %v4497_v14, %v4312_v60 }
 0x479   : > { %5805 = vst [vmem:[%s6991_s30 + $0x8] sm:$0xff] %v5793_v61   ;;  %v4647_v2 = vadd.f32 %v4633_v3, %v4601_v0 }
 0x47a   : > { %v4556_v4 = vadd.f32 %v4543_v38, %v4510_v34 }
 0x47b   : > { %v4659_v44 = vadd.f32 %v6983_v56, %v4647_v2 }
 0x47d   : > { %v4667_v9 = vmax.f32 %v4659_v44, 0.0 }
 0x47e   : > { %v4589_v63 = vpop.f32.mrf.mxu2  ;;  %v4635_v7 = vpop.f32.mrf.mxu3 }
 0x47f   : > { %v4602_v12 = vadd.f32 %v4589_v63, %v4556_v4  ;;  %v4500_v51 = vpop.f32.mrf.mxu0  ;;  %v4546_v11 = vpop.f32.mrf.mxu1 }
 0x480   : > { %v4511_v13 = vadd.f32 %v4500_v51, %v6971_v55 }
 0x481   : > { %v4648_v15 = vadd.f32 %v4635_v7, %v4602_v12 }
 0x482   : > { %v4557_v19 = vadd.f32 %v4546_v11, %v4511_v13 }
 0x483   : > { %v4660_v26 = vadd.f32 %v6983_v56, %v4648_v15 }
 0x485   : > { %v4668_v21 = vmax.f32 %v4660_v26, 0.0 }
 0x486   : > { %v4592_v18 = vpop.f32.mrf.mxu2  ;;  %v4638_v20 = vpop.f32.mrf.mxu3 }
 0x487   : > { %v5798_v10 = vpack.c.bf16 %v4668_v21, %v4667_v9  ;;  %v4502_v36 = vpop.f32.mrf.mxu0  ;;  %v4603_v53 = vadd.f32 %v4592_v18, %v4557_v19  ;;  %v4548_v17 = vpop.f32.mrf.mxu1 }
 0x488   : > { %v4512_v16 = vadd.f32 %v4502_v36, %v4314_v8 }
 0x489   : > { %5806 = vst [vmem:[%s6991_s30 + $0x10] sm:$0xff] %v5798_v10   ;;  %v4649_v29 = vadd.f32 %v4638_v20, %v4603_v53 }
 0x48a   : > { %v4558_v57 = vadd.f32 %v4548_v17, %v4512_v16 }
 0x48b   : > { %v4661_v55 = vadd.f32 %v6983_v56, %v4649_v29 }
 0x48d   : > { %v4669_v37 = vmax.f32 %v4661_v55, 0.0 }
 0x48e   : > { %v4594_v25 = vpop.f32.mrf.mxu2  ;;  %v4640_v59 = vpop.f32.mrf.mxu3 }
 0x48f   : > { %v4604_v23 = vadd.f32 %v4594_v25, %v4558_v57 }
 0x491   : > { %v4650_v32 = vadd.f32 %v4640_v59, %v4604_v23 }
 0x493   : > { %v4662_v27 = vadd.f32 %v6983_v56, %v4650_v32 }
 0x495   : > { %v4670_v1 = vmax.f32 %v4662_v27, 0.0 }
 0x497   : > { %v5803_v40 = vpack.c.bf16 %v4670_v1, %v4669_v37 }
 0x499   : > { %5807 = vst [vmem:[%s6991_s30 + $0x18] sm:$0xff] %v5803_v40  }
 0x49a PF: > { %s13_s12 = sadd.s32 1, %s5823_s12  }
 0x49b   : > { %p10_p5 = scmp.ge.s32.totalorder %s13_s12, 4  }
 0x49d   :  { %12 = sbr.rel (!%p10_p5) target bundleno = 1 (0x1), region = 132 }

// kernel: ppo_vision_forward.6
= control target key start
LH: loop header
LB: loop body
LE: loop exit
PB: predicated region body
PF: predicated region fallthrough
CT: control target
= control target key end

     0   :  { %s1514_s12 = smov 0   ;;  %s1763_s0 = inlined_call_operand.vmem [shape: bf16[6,1,3,128], index: 0, kind: input, shape index: {}]   ;;  %s1764_s1 = inlined_call_operand.vmem [shape: bf16[9,128,128], index: 1, kind: input, shape index: {}]   ;;  %s1765_s2 = inlined_call_operand.vmem [shape: f32[1,128], index: 2, kind: input, shape index: {}]   ;;  %s1766_s3 = inlined_call_operand.vmem [shape: bf16[2,1,128], index: 3, kind: output, shape index: {}]  }
   0x1 LB: > { %s1520_s13 = sadd.s32 4294967295, %s1492_s12   ;;  %p982_p0 = scmp.ge.s32.totalorder %s1492_s12, 1  ;;  %s1492_s12 = sphi %s1514_s12, %s13_s12  }
   0x2   : > { %p138_p1 = scmp.lt.s32.totalorder %s1492_s12, 3 }
   0x4   : > { %p139_p2 = pnand %p982_p0, %p138_p1 }
   0x5   : > { %s160_s20 = smul.u32 (!%p139_p2), 3, %s1520_s13  ;;  %p166_p4 = scmp.lt.s32.totalorder (!%p139_p2), %s1520_s13, 1 }
   0x6   : > { %142 = sbr.rel (%p139_p2) target bundleno = 243 (0xf3), region = 32 }
   0x7   : > { %p161_p3 = scmp.lt.s32.totalorder (!%p139_p2), %s160_s20, 5 }
   0xb   : > { %v1421_v0 = vld [vmem:[%s1764_s1 + $0x78] sm:$0xff]  ;;  %v1420_v4 = vld [vmem:[%s1764_s1 + $0x70] sm:$0xff]  ;;  %s1768_s20 = smov (!%p161_p3, %s160_s20), 5  ;;  %v1419_v8 = vld [vmem:[%s1764_s1 + $0x68] sm:$0xff]  ;;  %s1770_s13 = smov (!%p166_p4, %s1520_s13), 1  ;;  %vm925_vm0 = vcmask 1040384  }
   0xc   : > { %v1429_v1 = vld [vmem:[%s1764_s1 + $0xb8] sm:$0xff]  ;;  %257 = vmatpush.bf16.msra.mxu0 %v1421_v0  ;;  %v1428_v5 = vld [vmem:[%s1764_s1 + $0xb0] sm:$0xff]  ;;  %v1427_v9 = vld [vmem:[%s1764_s1 + $0xa8] sm:$0xff]  ;;  %s983_s14 = sshll.u32 %s1768_s20, 1  ;;  %s168_s21 = scalar_lea.vmem %s1766_s3, %s1770_s13  ;;  %vm926_vm1 = vsmask.f32 256 }
   0xd   : > { %v1437_v2 = vld [vmem:[%s1764_s1 + $0xf8] sm:$0xff]  ;;  %403 = vmatpush.bf16.msra.mxu2 %v1429_v1  ;;  %v1436_v6 = vld [vmem:[%s1764_s1 + $0xf0] sm:$0xff]  ;;  %v1435_v10 = vld [vmem:[%s1764_s1 + $0xe8] sm:$0xff]  ;;  %s1576_s25 = scalar_lea.vmem %s1763_s0, %s983_s14 }
   0xe   : > { %v1413_v3 = vld [vmem:[%s1764_s1 + $0x38] sm:$0xff]  ;;  %484 = vmatpush.bf16.msra.mxu3 %v1437_v2  ;;  %v1412_v7 = vld [vmem:[%s1764_s1 + $0x30] sm:$0xff]  ;;  %v1411_v11 = vld [vmem:[%s1764_s1 + $0x28] sm:$0xff] }
   0xf   : > { %318 = vmatpush.bf16.msra.mxu1 %v1413_v3  ;;  %v1418_v12 = vld [vmem:[%s1764_s1 + $0x60] sm:$0xff]  ;;  %v1417_v16 = vld [vmem:[%s1764_s1 + $0x58] sm:$0xff]  ;;  %v1416_v21 = vld [vmem:[%s1764_s1 + $0x50] sm:$0xff] }
  0x10   : > { %258 = vmatpush.bf16.msra.mxu0 %v1420_v4  ;;  %v1426_v13 = vld [vmem:[%s1764_s1 + $0xa0] sm:$0xff]  ;;  %v1425_v17 = vld [vmem:[%s1764_s1 + $0x98] sm:$0xff]  ;;  %v1424_v22 = vld [vmem:[%s1764_s1 + $0x90] sm:$0xff] }
  0x11   : > { %404 = vmatpush.bf16.msra.mxu2 %v1428_v5  ;;  %v1434_v14 = vld [vmem:[%s1764_s1 + $0xe0] sm:$0xff]  ;;  %v1433_v18 = vld [vmem:[%s1764_s1 + $0xd8] sm:$0xff]  ;;  %v1432_v23 = vld [vmem:[%s1764_s1 + $0xd0] sm:$0xff] }
  0x12   : > { %485 = vmatpush.bf16.msra.mxu3 %v1436_v6  ;;  %v1410_v15 = vld [vmem:[%s1764_s1 + $0x20] sm:$0xff]  ;;  %v1409_v19 = vld [vmem:[%s1764_s1 + $0x18] sm:$0xff]  ;;  %v1408_v24 = vld [vmem:[%s1764_s1 + $0x10] sm:$0xff] }
  0x13   : > { %319 = vmatpush.bf16.msra.mxu1 %v1412_v7  ;;  %v169_v20 = vld [vmem:[%s1576_s25] sm:$0x1]  ;;  %v331_v25 = vld [vmem:[%s1576_s25] sm:$0x2]  ;;  %v1415_v26 = vld [vmem:[%s1764_s1 + $0x48] sm:$0xff] }
  0x14   : > { %259 = vmatpush.bf16.msra.mxu0 %v1419_v8  ;;  %204 = vst [vmem:[#allocation1] ss:$4 sm:$0xff] %v169_v20  ;;  %v1423_v27 = vld [vmem:[%s1764_s1 + $0x88] sm:$0xff]  ;;  %v1414_v31 = vld [vmem:[%s1764_s1 + $0x40] sm:$0xff]  ;;  %v1445_v33 = vld [vmem:[%s1764_s1 + $0x138] sm:$0xff] }
  0x15   : > { %405 = vmatpush.bf16.msra.mxu2 %v1427_v9  ;;  %v1431_v28 = vld [vmem:[%s1764_s1 + $0xc8] sm:$0xff]  ;;  %v1422_v32 = vld [vmem:[%s1764_s1 + $0x80] sm:$0xff]  ;;  %v1461_v34 = vld [vmem:[%s1764_s1 + $0x1b8] sm:$0xff] }
  0x16   : > { %486 = vmatpush.bf16.msra.mxu3 %v1435_v10  ;;  %v1407_v29 = vld [vmem:[%s1764_s1 + $0x8] sm:$0xff]  ;;  %v1430_v35 = vld [vmem:[%s1764_s1 + $0xc0] sm:$0xff]  ;;  %v1469_v37 = vld [vmem:[%s1764_s1 + $0x1f8] sm:$0xff] }
  0x17   : > { %320 = vmatpush.bf16.msra.mxu1 %v1411_v11  ;;  %v1406_v36 = vld [vmem:[%s1764_s1] sm:$0xff]  ;;  %v1453_v38 = vld [vmem:[%s1764_s1 + $0x178] sm:$0xff]  ;;  %v1444_v41 = vld [vmem:[%s1764_s1 + $0x130] sm:$0xff] }
  0x18   : > { %260 = vmatpush.bf16.msra.mxu0 %v1418_v12  ;;  %v1112_v39 = vld [vmem:[%s1576_s25 + $0x2] sm:$0x1]  ;;  %v1460_v42 = vld [vmem:[%s1764_s1 + $0x1b0] sm:$0xff]  ;;  %v1443_v47 = vld [vmem:[%s1764_s1 + $0x128] sm:$0xff] }
  0x19   : > { %406 = vmatpush.bf16.msra.mxu2 %v1426_v13  ;;  %v1468_v45 = vld [vmem:[%s1764_s1 + $0x1f0] sm:$0xff]  ;;  %v1459_v48 = vld [vmem:[%s1764_s1 + $0x1a8] sm:$0xff]  ;;  %v1209_v51 = vld [vmem:[%s1576_s25 + $0x2] sm:$0x2] }
  0x1a   : > { %487 = vmatpush.bf16.msra.mxu3 %v1434_v14  ;;  %v1452_v46 = vld [vmem:[%s1764_s1 + $0x170] sm:$0xff]  ;;  %v1467_v49 = vld [vmem:[%s1764_s1 + $0x1e8] sm:$0xff]  ;;  %v1442_v52 = vld [vmem:[%s1764_s1 + $0x120] sm:$0xff] }
  0x1b   : > { %321 = vmatpush.bf16.msra.mxu1 %v1410_v15  ;;  %v205_v30 = vld.sshfl [vmem:[#allocation1] sm:$0xff pattern:$0x73625140]  ;;  %v1451_v50 = vld [vmem:[%s1764_s1 + $0x168] sm:$0xff]  ;;  %v1441_v57 = vld [vmem:[%s1764_s1 + $0x118] sm:$0xff] }
  0x1c   : > { %261 = vmatpush.bf16.msra.mxu0 %v1417_v16  ;;  %350 = vst [vmem:[#allocation1] ss:$4 sm:$0xff] %v331_v25  ;;  %v206_v40 = vshrl.u32 %v205_v30, 16  ;;  %v1458_v53 = vld [vmem:[%s1764_s1 + $0x1a0] sm:$0xff]  ;;  %v1457_v58 = vld [vmem:[%s1764_s1 + $0x198] sm:$0xff]  ;;  %v1440_v62 = vld [vmem:[%s1764_s1 + $0x110] sm:$0xff] }
  0x1d   : > { %407 = vmatpush.bf16.msra.mxu2 %v1425_v17  ;;  %v1466_v55 = vld [vmem:[%s1764_s1 + $0x1e0] sm:$0xff]  ;;  %v1465_v59 = vld [vmem:[%s1764_s1 + $0x1d8] sm:$0xff]  ;;  %v1456_v63 = vld [vmem:[%s1764_s1 + $0x190] sm:$0xff] }
  0x1e   : > { %488 = vmatpush.bf16.msra.mxu3 %v1433_v18  ;;  %v1450_v56 = vld [vmem:[%s1764_s1 + $0x160] sm:$0xff]  ;;  %v1449_v60 = vld [vmem:[%s1764_s1 + $0x158] sm:$0xff]  ;;  %v1464_v1 = vld [vmem:[%s1764_s1 + $0x1d0] sm:$0xff] }
  0x1f   : > { %322 = vmatpush.bf16.msra.mxu1 %v1409_v19  ;;  %v1258_v61 = vld [vmem:[%s1576_s25 + $0x4] sm:$0x1]  ;;  %v1448_v2 = vld [vmem:[%s1764_s1 + $0x150] sm:$0xff]  ;;  %v1439_v3 = vld [vmem:[%s1764_s1 + $0x108] sm:$0xff] }
  0x20   : > { %262 = vmatpush.bf16.msra.mxu0 %v1416_v21  ;;  %v1455_v4 = vld [vmem:[%s1764_s1 + $0x188] sm:$0xff]  ;;  %v1355_v7 = vld [vmem:[%s1576_s25 + $0x4] sm:$0x2]  ;;  %v1477_v11 = vld [vmem:[%s1764_s1 + $0x238] sm:$0xff] }
  0x21   : > { %408 = vmatpush.bf16.msra.mxu2 %v1424_v22  ;;  %v1463_v5 = vld [vmem:[%s1764_s1 + $0x1c8] sm:$0xff]  ;;  %v1438_v8 = vld [vmem:[%s1764_s1 + $0x100] sm:$0xff]  ;;  %v1476_v15 = vld [vmem:[%s1764_s1 + $0x230] sm:$0xff] }
  0x22   : > { %489 = vmatpush.bf16.msra.mxu3 %v1432_v23  ;;  %v1447_v6 = vld [vmem:[%s1764_s1 + $0x148] sm:$0xff]  ;;  %v1454_v9 = vld [vmem:[%s1764_s1 + $0x180] sm:$0xff]  ;;  %v1472_v21 = vld [vmem:[%s1764_s1 + $0x210] sm:$0xff] }
  0x23   : > { %323 = vmatpush.bf16.msra.mxu1 %v1408_v24  ;;  %v351_v43 = vld.sshfl [vmem:[#allocation1] sm:$0xff pattern:$0x73625140]  ;;  %v1475_v18 = vld [vmem:[%s1764_s1 + $0x228] sm:$0xff]  ;;  %vm927_vm2 = vmand %vm925_vm0, %vm926_vm1 }
  0x24   : > { %263 = vmatpush.bf16.msra.mxu0 %v1415_v26  ;;  %v353_v44 = vrot.slane %v351_v43, 1  ;;  %516 = vst [vmem:[#allocation1] ss:$4 sm:$0xff] %v1112_v39  ;;  %v1462_v12 = vld [vmem:[%s1764_s1 + $0x1c0] sm:$0xff]  ;;  %v1471_v22 = vld [vmem:[%s1764_s1 + $0x208] sm:$0xff] }
  0x25   : > { %409 = vmatpush.bf16.msra.mxu2 %v1423_v27  ;;  %v1446_v13 = vld [vmem:[%s1764_s1 + $0x140] sm:$0xff] }
  0x26   : > { %490 = vmatpush.bf16.msra.mxu3 %v1431_v28  ;;  %v1474_v19 = vld [vmem:[%s1764_s1 + $0x220] sm:$0xff] }
  0x27   : > { %324 = vmatpush.bf16.msra.mxu1 %v1407_v29  ;;  %v1470_v23 = vld [vmem:[%s1764_s1 + $0x200] sm:$0xff] }
  0x28   : > { %264 = vmatpush.bf16.msra.mxu0 %v1414_v31 }
  0x29   : > { %410 = vmatpush.bf16.msra.mxu2 %v1422_v32 }
  0x2a   : > { %491 = vmatpush.bf16.msra.mxu3 %v1430_v35 }
  0x2b   : > { %325 = vmatpush.bf16.msra.mxu1 %v1406_v36  ;;  %265 = vmatmul.bf16.vlgmr.msra.gmra.mxu0 %v206_v40  ;;  %v517_v54 = vld.sshfl [vmem:[#allocation1] sm:$0xff pattern:$0x73625140] }
  0x2c   : > { %569 = vmatpush.bf16.msrb.mxu0 %v1445_v33  ;;  %411 = vmatmul.bf16.vlgmr.msra.gmra.mxu2 %v353_v44  ;;  %602 = vst [vmem:[#allocation1] ss:$4 sm:$0xff] %v1209_v51  ;;  %v518_v14 = vshrl.u32 %v517_v54, 16  ;;  %v928_v54 = vld [vmem:[%s168_s21] sm:$0x1] }
  0x2d   : > { %736 = vmatpush.bf16.msrb.mxu2 %v1461_v34  ;;  %492 = vmatmul.bf16.vlgmr.msra.gmra.mxu3 %v1112_v39 }
  0x2e   : > { %821 = vmatpush.bf16.msrb.mxu3 %v1469_v37  ;;  %326 = vmatmul.bf16.vlgmr.msra.gmra.mxu1 %v169_v20  ;;  %v1473_v20 = vld [vmem:[%s1764_s1 + $0x218] sm:$0xff] }
  0x2f   : > { %655 = vmatpush.bf16.msrb.mxu1 %v1453_v38 }
  0x30   : > { %570 = vmatpush.bf16.msrb.mxu0 %v1444_v41 }
  0x31   : > { %737 = vmatpush.bf16.msrb.mxu2 %v1460_v42 }
  0x32   : > { %822 = vmatpush.bf16.msrb.mxu3 %v1468_v45 }
  0x33   : > { %656 = vmatpush.bf16.msrb.mxu1 %v1452_v46  ;;  %v603_v0 = vld.sshfl [vmem:[#allocation1] sm:$0xff pattern:$0x73625140] }
  0x34   : > { %571 = vmatpush.bf16.msrb.mxu0 %v1443_v47  ;;  %768 = vst [vmem:[#allocation1] ss:$4 sm:$0xff] %v1258_v61  ;;  %v605_v17 = vrot.slane %v603_v0, 1 }
  0x35   : > { %738 = vmatpush.bf16.msrb.mxu2 %v1459_v48 }
  0x36   : > { %823 = vmatpush.bf16.msrb.mxu3 %v1467_v49 }
  0x37   : > { %657 = vmatpush.bf16.msrb.mxu1 %v1451_v50  ;;  %v921_v50 = vld [vmem:[%s1765_s2] sm:$0x1] }
  0x38   : > { %572 = vmatpush.bf16.msrb.mxu0 %v1442_v52 }
  0x39   : > { %739 = vmatpush.bf16.msrb.mxu2 %v1458_v53 }
  0x3a   : > { %824 = vmatpush.bf16.msrb.mxu3 %v1466_v55 }
  0x3b   : > { %658 = vmatpush.bf16.msrb.mxu1 %v1450_v56  ;;  %v769_v10 = vld.sshfl [vmem:[#allocation1] sm:$0xff pattern:$0x73625140] }
  0x3c   : > { %573 = vmatpush.bf16.msrb.mxu0 %v1441_v57  ;;  %854 = vst [vmem:[#allocation1] ss:$4 sm:$0xff] %v1355_v7  ;;  %v770_v16 = vshrl.u32 %v769_v10, 16 }
  0x3d   : > { %740 = vmatpush.bf16.msrb.mxu2 %v1457_v58 }
  0x3e   : > { %825 = vmatpush.bf16.msrb.mxu3 %v1465_v59 }
  0x3f   : > { %659 = vmatpush.bf16.msrb.mxu1 %v1449_v60 }
  0x40   : > { %574 = vmatpush.bf16.msrb.mxu0 %v1440_v62 }
  0x41   : > { %741 = vmatpush.bf16.msrb.mxu2 %v1456_v63 }
  0x42   : > { %826 = vmatpush.bf16.msrb.mxu3 %v1464_v1 }
  0x43   : > { %660 = vmatpush.bf16.msrb.mxu1 %v1448_v2  ;;  %v855_v24 = vld.sshfl [vmem:[#allocation1] sm:$0xff pattern:$0x73625140] }
  0x44   : > { %575 = vmatpush.bf16.msrb.mxu0 %v1439_v3  ;;  %v857_v25 = vrot.slane %v855_v24, 1 }
  0x45   : > { %742 = vmatpush.bf16.msrb.mxu2 %v1455_v4 }
  0x46   : > { %827 = vmatpush.bf16.msrb.mxu3 %v1463_v5 }
  0x47   : > { %661 = vmatpush.bf16.msrb.mxu1 %v1447_v6 }
  0x48   : > { %576 = vmatpush.bf16.msrb.mxu0 %v1438_v8 }
  0x49   : > { %743 = vmatpush.bf16.msrb.mxu2 %v1454_v9 }
  0x4a   : > { %828 = vmatpush.bf16.msrb.mxu3 %v1462_v12 }
  0x4b   : > { %662 = vmatpush.bf16.msrb.mxu1 %v1446_v13  ;;  %577 = vmatmul.bf16.vlgmr.msrb.gmra.mxu0 %v518_v14 }
  0x4c   : > { %907 = vmatpush.bf16.msra.mxu0 %v1477_v11  ;;  %744 = vmatmul.bf16.vlgmr.msrb.gmra.mxu2 %v1258_v61 }
  0x4d   : > { %829 = vmatmul.bf16.vlgmr.msrb.gmra.mxu3 %v770_v16 }
  0x4e   : > { %663 = vmatmul.bf16.vlgmr.msrb.gmra.mxu1 %v605_v17 }
  0x50   : > { %908 = vmatpush.bf16.msra.mxu0 %v1476_v15 }
  0x54   : > { %909 = vmatpush.bf16.msra.mxu0 %v1475_v18 }
  0x58   : > { %910 = vmatpush.bf16.msra.mxu0 %v1474_v19 }
  0x5c   : > { %911 = vmatpush.bf16.msra.mxu0 %v1473_v20 }
  0x60   : > { %912 = vmatpush.bf16.msra.mxu0 %v1472_v21 }
  0x64   : > { %913 = vmatpush.bf16.msra.mxu0 %v1471_v22 }
  0x68   : > { %914 = vmatpush.bf16.msra.mxu0 %v1470_v23 }
  0x6b   : > { %915 = vmatmul.bf16.vlgmr.msra.gmra.mxu0 %v857_v25 }
  0xa8   : > { %v266_v26 = vpop.f32.mrf.mxu0 }
  0xab   : > { %v327_v27 = vpop.f32.mrf.mxu1 }
  0xac   : > { %v328_v36 = vadd.f32 %v327_v27, %v266_v26 }
  0xaf   : > { %v412_v28 = vpop.f32.mrf.mxu2 }
  0xb0   : > { %v493_v29 = vpop.f32.mrf.mxu3  ;;  %v268_v30 = vpop.f32.mrf.mxu0  ;;  %v416_v38 = vadd.f32 %v412_v28, %v328_v36 }
  0xb2   : > { %v497_v42 = vadd.f32 %v493_v29, %v416_v38 }
  0xb3   : > { %v329_v31 = vpop.f32.mrf.mxu1 }
  0xb7   : > { %v414_v32 = vpop.f32.mrf.mxu2 }
  0xb8   : > { %v495_v33 = vpop.f32.mrf.mxu3 }
  0xc8   : > { %v578_v34 = vpop.f32.mrf.mxu0 }
  0xc9   : > { %v582_v44 = vadd.f32 %v578_v34, %v497_v42 }
  0xcb   : > { %v664_v35 = vpop.f32.mrf.mxu1 }
  0xcc   : > { %v668_v46 = vadd.f32 %v664_v35, %v582_v44 }
  0xcf   : > { %v745_v37 = vpop.f32.mrf.mxu2 }
  0xd0   : > { %v830_v39 = vpop.f32.mrf.mxu3  ;;  %v580_v40 = vpop.f32.mrf.mxu0  ;;  %v749_v47 = vadd.f32 %v745_v37, %v668_v46 }
  0xd2   : > { %v834_v48 = vadd.f32 %v830_v39, %v749_v47 }
  0xd3   : > { %v666_v41 = vpop.f32.mrf.mxu1 }
  0xd7   : > { %v747_v43 = vpop.f32.mrf.mxu2 }
  0xd8   : > { %v832_v45 = vpop.f32.mrf.mxu3 }
  0xe8   : > { %v916_v49 = vpop.f32.mrf.mxu0 }
  0xe9   : > { %v920_v51 = vadd.f32 %v916_v49, %v834_v48 }
  0xeb   : > { %v922_v52 = vadd.f32 %v921_v50, %v920_v51 }
  0xed   : > { %v923_v53 = vmax.f32 %v922_v52, 0.0 }
  0xef   : > { %v924_v55 = vpack.c.bf16 %v923_v53, %v923_v53 }
  0xf0   : > { %v918_v56 = vpop.f32.mrf.mxu0 }
  0xf1   : > { %v929_v57 = vsel %vm927_vm2, %v924_v55, %v928_v54 }
  0xf2   : > { %930 = vst [vmem:[%s168_s21] sm:$0x1] %v929_v57 }
  0xf3 PF: > { %s13_s12 = sadd.s32 1, %s1492_s12  }
  0xf4   : > { %p10_p5 = scmp.ge.s32.totalorder %s13_s12, 4  }
  0xf6   :  { %12 = sbr.rel (!%p10_p5) target bundleno = 1 (0x1), region = 72 }

// kernel: ppo_vision_forward.7
= control target key start
LH: loop header
LB: loop body
LE: loop exit
PB: predicated region body
PF: predicated region fallthrough
CT: control target
= control target key end

     0   :  { %s1334_s1 = inlined_call_operand.vmem [shape: bf16[128,512], index: 1, kind: input, shape index: {}]   ;;  %s1335_s3 = inlined_call_operand.vmem [shape: bf16[512,128], index: 3, kind: input, shape index: {}]   ;;  %s1336_s0 = inlined_call_operand.vmem [shape: bf16[16,128], index: 0, kind: input, shape index: {}]   ;;  %s1337_s4 = inlined_call_operand.vmem [shape: f32[1,128], index: 4, kind: input, shape index: {}]   ;;  %s1338_s2 = inlined_call_operand.vmem [shape: f32[1,512], index: 2, kind: input, shape index: {}]   ;;  %s1339_s5 = inlined_call_operand.vmem [shape: f32[16,128], index: 5, kind: output, shape index: {}]  }
   0x1   :  { %v793_v0 = vld [vmem:[%s1334_s1 + $0xe0] sm:$0xf]  ;;  %v966_v1 = vld [vmem:[%s1334_s1 + $0xec] sm:$0xf0]  ;;  %v964_v2 = vld [vmem:[%s1334_s1 + $0xe4] sm:$0xf] }
   0x2   :  { %v794_v3 = vor.u32 %v966_v1, %v793_v0  ;;  %v795_v4 = vld [vmem:[%s1334_s1 + $0xf0] sm:$0xf0]  ;;  %v801_v5 = vld [vmem:[%s1334_s1 + $0xe8] sm:$0xf]  ;;  %v967_v6 = vld [vmem:[%s1334_s1 + $0xf4] sm:$0xf0] }
   0x3   :  { %v798_v7 = vor.u32 %v964_v2, %v795_v4  ;;  %v802_v8 = vor.u32 %v967_v6, %v801_v5  ;;  %v965_v9 = vld [vmem:[%s1334_s1 + $0xec] sm:$0xf]  ;;  %v803_v10 = vld [vmem:[%s1334_s1 + $0xf8] sm:$0xf0]  ;;  %v777_v11 = vld [vmem:[%s1334_s1 + $0xc0] sm:$0xf] }
   0x4   :  { %240 = vmatpush.bf16.msra.mxu0 %v794_v3  ;;  %v806_v12 = vor.u32 %v965_v9, %v803_v10  ;;  %v962_v13 = vld [vmem:[%s1334_s1 + $0xcc] sm:$0xf0]  ;;  %v960_v14 = vld [vmem:[%s1334_s1 + $0xc4] sm:$0xf]  ;;  %v779_v15 = vld [vmem:[%s1334_s1 + $0xd0] sm:$0xf0] }
   0x5   :  { %254 = vmatpush.bf16.msra.mxu1 %v798_v7  ;;  %268 = vmatpush.bf16.msra.mxu2 %v802_v8  ;;  %v778_v16 = vor.u32 %v962_v13, %v777_v11  ;;  %v782_v17 = vor.u32 %v960_v14, %v779_v15  ;;  %v785_v18 = vld [vmem:[%s1334_s1 + $0xc8] sm:$0xf]  ;;  %v963_v19 = vld [vmem:[%s1334_s1 + $0xd4] sm:$0xf0]  ;;  %v961_v20 = vld [vmem:[%s1334_s1 + $0xcc] sm:$0xf] }
   0x6   :  { %282 = vmatpush.bf16.msra.mxu3 %v806_v12  ;;  %v786_v21 = vor.u32 %v963_v19, %v785_v18  ;;  %v787_v22 = vld [vmem:[%s1334_s1 + $0xd8] sm:$0xf0]  ;;  %v761_v23 = vld [vmem:[%s1334_s1 + $0xa0] sm:$0xf]  ;;  %v958_v24 = vld [vmem:[%s1334_s1 + $0xac] sm:$0xf0] }
   0x7   :  { %v790_v25 = vor.u32 %v961_v20, %v787_v22  ;;  %v956_v26 = vld [vmem:[%s1334_s1 + $0xa4] sm:$0xf]  ;;  %v763_v27 = vld [vmem:[%s1334_s1 + $0xb0] sm:$0xf0]  ;;  %v769_v28 = vld [vmem:[%s1334_s1 + $0xa8] sm:$0xf]  ;;  %v762_v29 = vor.u32 %v958_v24, %v761_v23 }
   0x8   :  { %241 = vmatpush.bf16.msra.mxu0 %v778_v16  ;;  %v959_v30 = vld [vmem:[%s1334_s1 + $0xb4] sm:$0xf0]  ;;  %v957_v31 = vld [vmem:[%s1334_s1 + $0xac] sm:$0xf]  ;;  %v771_v32 = vld [vmem:[%s1334_s1 + $0xb8] sm:$0xf0]  ;;  %v766_v33 = vor.u32 %v956_v26, %v763_v27 }
   0x9   :  { %255 = vmatpush.bf16.msra.mxu1 %v782_v17  ;;  %269 = vmatpush.bf16.msra.mxu2 %v786_v21  ;;  %v770_v34 = vor.u32 %v959_v30, %v769_v28  ;;  %v745_v35 = vld [vmem:[%s1334_s1 + $0x80] sm:$0xf]  ;;  %v954_v36 = vld [vmem:[%s1334_s1 + $0x8c] sm:$0xf0]  ;;  %v952_v37 = vld [vmem:[%s1334_s1 + $0x84] sm:$0xf]  ;;  %v774_v38 = vor.u32 %v957_v31, %v771_v32 }
   0xa   :  { %283 = vmatpush.bf16.msra.mxu3 %v790_v25  ;;  %v747_v39 = vld [vmem:[%s1334_s1 + $0x90] sm:$0xf0]  ;;  %v753_v40 = vld [vmem:[%s1334_s1 + $0x88] sm:$0xf]  ;;  %v955_v41 = vld [vmem:[%s1334_s1 + $0x94] sm:$0xf0]  ;;  %v746_v44 = vor.u32 %v954_v36, %v745_v35 }
   0xb   :  { %v953_v42 = vld [vmem:[%s1334_s1 + $0x8c] sm:$0xf]  ;;  %v755_v43 = vld [vmem:[%s1334_s1 + $0x98] sm:$0xf0]  ;;  %v750_v45 = vor.u32 %v952_v37, %v747_v39  ;;  %v754_v46 = vor.u32 %v955_v41, %v753_v40  ;;  %v729_v47 = vld [vmem:[%s1334_s1 + $0x60] sm:$0xf] }
   0xc   :  { %242 = vmatpush.bf16.msra.mxu0 %v762_v29  ;;  %v950_v48 = vld [vmem:[%s1334_s1 + $0x6c] sm:$0xf0]  ;;  %v948_v49 = vld [vmem:[%s1334_s1 + $0x64] sm:$0xf]  ;;  %v758_v50 = vor.u32 %v953_v42, %v755_v43  ;;  %v731_v51 = vld [vmem:[%s1334_s1 + $0x70] sm:$0xf0] }
   0xd   :  { %256 = vmatpush.bf16.msra.mxu1 %v766_v33  ;;  %270 = vmatpush.bf16.msra.mxu2 %v770_v34  ;;  %v737_v52 = vld [vmem:[%s1334_s1 + $0x68] sm:$0xf]  ;;  %v951_v53 = vld [vmem:[%s1334_s1 + $0x74] sm:$0xf0]  ;;  %v949_v54 = vld [vmem:[%s1334_s1 + $0x6c] sm:$0xf]  ;;  %v730_v56 = vor.u32 %v950_v48, %v729_v47  ;;  %v734_v57 = vor.u32 %v948_v49, %v731_v51 }
   0xe   :  { %284 = vmatpush.bf16.msra.mxu3 %v774_v38  ;;  %v739_v55 = vld [vmem:[%s1334_s1 + $0x78] sm:$0xf0]  ;;  %v738_v58 = vor.u32 %v951_v53, %v737_v52  ;;  %v713_v59 = vld [vmem:[%s1334_s1 + $0x40] sm:$0xf]  ;;  %v946_v60 = vld [vmem:[%s1334_s1 + $0x4c] sm:$0xf0] }
   0xf   :  { %v944_v61 = vld [vmem:[%s1334_s1 + $0x44] sm:$0xf]  ;;  %v742_v62 = vor.u32 %v949_v54, %v739_v55  ;;  %v715_v63 = vld [vmem:[%s1334_s1 + $0x50] sm:$0xf0]  ;;  %v721_v0 = vld [vmem:[%s1334_s1 + $0x48] sm:$0xf]  ;;  %v714_v4 = vor.u32 %v946_v60, %v713_v59 }
  0x10   :  { %243 = vmatpush.bf16.msra.mxu0 %v746_v44  ;;  %v947_v1 = vld [vmem:[%s1334_s1 + $0x54] sm:$0xf0]  ;;  %v945_v2 = vld [vmem:[%s1334_s1 + $0x4c] sm:$0xf]  ;;  %v723_v3 = vld [vmem:[%s1334_s1 + $0x58] sm:$0xf0]  ;;  %v718_v5 = vor.u32 %v944_v61, %v715_v63 }
  0x11   :  { %257 = vmatpush.bf16.msra.mxu1 %v750_v45  ;;  %271 = vmatpush.bf16.msra.mxu2 %v754_v46  ;;  %v722_v6 = vor.u32 %v947_v1, %v721_v0  ;;  %v697_v7 = vld [vmem:[%s1334_s1 + $0x20] sm:$0xf]  ;;  %v942_v8 = vld [vmem:[%s1334_s1 + $0x2c] sm:$0xf0]  ;;  %v940_v9 = vld [vmem:[%s1334_s1 + $0x24] sm:$0xf]  ;;  %v726_v10 = vor.u32 %v945_v2, %v723_v3 }
  0x12   :  { %285 = vmatpush.bf16.msra.mxu3 %v758_v50  ;;  %v699_v11 = vld [vmem:[%s1334_s1 + $0x30] sm:$0xf0]  ;;  %v705_v12 = vld [vmem:[%s1334_s1 + $0x28] sm:$0xf]  ;;  %v943_v13 = vld [vmem:[%s1334_s1 + $0x34] sm:$0xf0]  ;;  %v698_v16 = vor.u32 %v942_v8, %v697_v7 }
  0x13   :  { %v941_v14 = vld [vmem:[%s1334_s1 + $0x2c] sm:$0xf]  ;;  %v707_v15 = vld [vmem:[%s1334_s1 + $0x38] sm:$0xf0]  ;;  %v702_v17 = vor.u32 %v940_v9, %v699_v11  ;;  %v706_v18 = vor.u32 %v943_v13, %v705_v12  ;;  %v681_v19 = vld [vmem:[%s1334_s1] sm:$0xf] }
  0x14   :  { %244 = vmatpush.bf16.msra.mxu0 %v730_v56  ;;  %v938_v20 = vld [vmem:[%s1334_s1 + $0xc] sm:$0xf0]  ;;  %v936_v21 = vld [vmem:[%s1334_s1 + $0x4] sm:$0xf]  ;;  %v710_v22 = vor.u32 %v941_v14, %v707_v15  ;;  %v683_v23 = vld [vmem:[%s1334_s1 + $0x10] sm:$0xf0] }
  0x15   :  { %258 = vmatpush.bf16.msra.mxu1 %v734_v57  ;;  %272 = vmatpush.bf16.msra.mxu2 %v738_v58  ;;  %v689_v24 = vld [vmem:[%s1334_s1 + $0x8] sm:$0xf]  ;;  %v939_v25 = vld [vmem:[%s1334_s1 + $0x14] sm:$0xf0]  ;;  %v937_v26 = vld [vmem:[%s1334_s1 + $0xc] sm:$0xf]  ;;  %v682_v28 = vor.u32 %v938_v20, %v681_v19  ;;  %v686_v29 = vor.u32 %v936_v21, %v683_v23 }
  0x16   :  { %286 = vmatpush.bf16.msra.mxu3 %v742_v62  ;;  %v691_v27 = vld [vmem:[%s1334_s1 + $0x18] sm:$0xf0]  ;;  %v690_v30 = vor.u32 %v939_v25, %v689_v24  ;;  %v935_v33 = vld [vmem:[%s1336_s0] sm:$0xff]  ;;  %v974_v36 = vld [vmem:[%s1335_s3 + $0x30] sm:$0xff] }
  0x17   :  { %v694_v31 = vor.u32 %v937_v26, %v691_v27  ;;  %v975_v32 = vld [vmem:[%s1335_s3 + $0x38] sm:$0xff]  ;;  %v982_v38 = vld [vmem:[%s1335_s3 + $0x70] sm:$0xff]  ;;  %v973_v40 = vld [vmem:[%s1335_s3 + $0x28] sm:$0xff] }
  0x18   :  { %245 = vmatpush.bf16.msra.mxu0 %v714_v4  ;;  %v983_v34 = vld [vmem:[%s1335_s3 + $0x78] sm:$0xff]  ;;  %v990_v39 = vld [vmem:[%s1335_s3 + $0xb0] sm:$0xff]  ;;  %v981_v42 = vld [vmem:[%s1335_s3 + $0x68] sm:$0xff] }
  0x19   :  { %259 = vmatpush.bf16.msra.mxu1 %v718_v5  ;;  %273 = vmatpush.bf16.msra.mxu2 %v722_v6  ;;  %v991_v35 = vld [vmem:[%s1335_s3 + $0xb8] sm:$0xff]  ;;  %v998_v41 = vld [vmem:[%s1335_s3 + $0xf0] sm:$0xff]  ;;  %v989_v43 = vld [vmem:[%s1335_s3 + $0xa8] sm:$0xff] }
  0x1a   :  { %287 = vmatpush.bf16.msra.mxu3 %v726_v10  ;;  %v999_v37 = vld [vmem:[%s1335_s3 + $0xf8] sm:$0xff]  ;;  %v972_v44 = vld [vmem:[%s1335_s3 + $0x20] sm:$0xff]  ;;  %v997_v45 = vld [vmem:[%s1335_s3 + $0xe8] sm:$0xff] }
  0x1b   :  { %v980_v46 = vld [vmem:[%s1335_s3 + $0x60] sm:$0xff]  ;;  %v971_v47 = vld [vmem:[%s1335_s3 + $0x18] sm:$0xff]  ;;  %v970_v51 = vld [vmem:[%s1335_s3 + $0x10] sm:$0xff] }
  0x1c   :  { %246 = vmatpush.bf16.msra.mxu0 %v698_v16  ;;  %v979_v48 = vld [vmem:[%s1335_s3 + $0x58] sm:$0xff]  ;;  %v988_v49 = vld [vmem:[%s1335_s3 + $0xa0] sm:$0xff]  ;;  %v978_v52 = vld [vmem:[%s1335_s3 + $0x50] sm:$0xff] }
  0x1d   :  { %260 = vmatpush.bf16.msra.mxu1 %v702_v17  ;;  %274 = vmatpush.bf16.msra.mxu2 %v706_v18  ;;  %v996_v50 = vld [vmem:[%s1335_s3 + $0xe0] sm:$0xff]  ;;  %v987_v53 = vld [vmem:[%s1335_s3 + $0x98] sm:$0xff]  ;;  %v969_v55 = vld [vmem:[%s1335_s3 + $0x8] sm:$0xff] }
  0x1e   :  { %288 = vmatpush.bf16.msra.mxu3 %v710_v22  ;;  %v995_v54 = vld [vmem:[%s1335_s3 + $0xd8] sm:$0xff]  ;;  %v977_v56 = vld [vmem:[%s1335_s3 + $0x48] sm:$0xff]  ;;  %v986_v57 = vld [vmem:[%s1335_s3 + $0x90] sm:$0xff] }
  0x1f   :  { %v994_v58 = vld [vmem:[%s1335_s3 + $0xd0] sm:$0xff]  ;;  %v968_v59 = vld [vmem:[%s1335_s3] sm:$0xff]  ;;  %v985_v61 = vld [vmem:[%s1335_s3 + $0x88] sm:$0xff] }
  0x20   :  { %247 = vmatpush.bf16.msra.mxu0 %v682_v28  ;;  %v976_v60 = vld [vmem:[%s1335_s3 + $0x40] sm:$0xff]  ;;  %v993_v62 = vld [vmem:[%s1335_s3 + $0xc8] sm:$0xff] }
  0x21   :  { %261 = vmatpush.bf16.msra.mxu1 %v686_v29  ;;  %275 = vmatpush.bf16.msra.mxu2 %v690_v30  ;;  %v984_v63 = vld [vmem:[%s1335_s3 + $0x80] sm:$0xff] }
  0x22   :  { %289 = vmatpush.bf16.msra.mxu3 %v694_v31  ;;  %v992_v0 = vld [vmem:[%s1335_s3 + $0xc0] sm:$0xff] }
  0x23   :  { %248 = vmatmul.bf16.vlgmr.msra.gmra.mxu0 %v935_v33  ;;  %v323_v2 = vld [vmem:[%s1338_s2] sm:$0xf] }
  0x24   :  { %613 = vmatpush.bf16.msrb.mxu0 %v975_v32  ;;  %262 = vmatmul.bf16.vlgmr.msra.gmra.mxu1 %v935_v33  ;;  %v325_v3 = vperm.slane %v323_v2, 0  ;;  %v326_v5 = vperm.slane %v323_v2, 1  ;;  %v327_v15 = vperm.slane %v323_v2, 2  ;;  %v328_v17 = vperm.slane %v323_v2, 3 }
  0x25   :  { %627 = vmatpush.bf16.msrb.mxu1 %v983_v34  ;;  %276 = vmatmul.bf16.vlgmr.msra.gmra.mxu2 %v935_v33 }
  0x26   :  { %290 = vmatmul.bf16.vlgmr.msra.gmra.mxu3 %v935_v33  ;;  %641 = vmatpush.bf16.msrb.mxu2 %v991_v35  ;;  %v1000_v35 = vld [vmem:[%s1337_s4] ss:$0 sm:$0xff] }
  0x27   :  { %655 = vmatpush.bf16.msrb.mxu3 %v999_v37 }
  0x28   :  { %614 = vmatpush.bf16.msrb.mxu0 %v974_v36 }
  0x29   :  { %628 = vmatpush.bf16.msrb.mxu1 %v982_v38 }
  0x2a   :  { %642 = vmatpush.bf16.msrb.mxu2 %v990_v39 }
  0x2b   :  { %656 = vmatpush.bf16.msrb.mxu3 %v998_v41 }
  0x2c   :  { %615 = vmatpush.bf16.msrb.mxu0 %v973_v40 }
  0x2d   :  { %629 = vmatpush.bf16.msrb.mxu1 %v981_v42 }
  0x2e   :  { %643 = vmatpush.bf16.msrb.mxu2 %v989_v43 }
  0x2f   :  { %657 = vmatpush.bf16.msrb.mxu3 %v997_v45 }
  0x30   :  { %616 = vmatpush.bf16.msrb.mxu0 %v972_v44 }
  0x31   :  { %630 = vmatpush.bf16.msrb.mxu1 %v980_v46 }
  0x32   :  { %644 = vmatpush.bf16.msrb.mxu2 %v988_v49 }
  0x33   :  { %658 = vmatpush.bf16.msrb.mxu3 %v996_v50 }
  0x34   :  { %617 = vmatpush.bf16.msrb.mxu0 %v971_v47 }
  0x35   :  { %631 = vmatpush.bf16.msrb.mxu1 %v979_v48 }
  0x36   :  { %645 = vmatpush.bf16.msrb.mxu2 %v987_v53 }
  0x37   :  { %659 = vmatpush.bf16.msrb.mxu3 %v995_v54 }
  0x38   :  { %618 = vmatpush.bf16.msrb.mxu0 %v970_v51 }
  0x39   :  { %632 = vmatpush.bf16.msrb.mxu1 %v978_v52 }
  0x3a   :  { %646 = vmatpush.bf16.msrb.mxu2 %v986_v57 }
  0x3b   :  { %660 = vmatpush.bf16.msrb.mxu3 %v994_v58 }
  0x3c   :  { %619 = vmatpush.bf16.msrb.mxu0 %v969_v55 }
  0x3d   :  { %633 = vmatpush.bf16.msrb.mxu1 %v977_v56 }
  0x3e   :  { %647 = vmatpush.bf16.msrb.mxu2 %v985_v61 }
  0x3f   :  { %661 = vmatpush.bf16.msrb.mxu3 %v993_v62 }
  0x40   :  { %620 = vmatpush.bf16.msrb.mxu0 %v968_v59 }
  0x41   :  { %634 = vmatpush.bf16.msrb.mxu1 %v976_v60 }
  0x42   :  { %648 = vmatpush.bf16.msrb.mxu2 %v984_v63 }
  0x43   :  { %662 = vmatpush.bf16.msrb.mxu3 %v992_v0 }
  0xa0   :  { %v249_v1 = vpop.f32.mrf.mxu0 }
  0xa1   :  { %v263_v4 = vpop.f32.mrf.mxu1  ;;  %v333_v6 = vadd.f32 %v325_v3, %v249_v1 }
  0xa2   :  { %v334_v7 = vadd.f32 %v326_v5, %v263_v4 }
  0xa3   :  { %v341_v11 = vmax.f32 %v333_v6, 0.0 }
  0xa4   :  { %v342_v14 = vmax.f32 %v334_v7, 0.0 }
  0xa8   :  { %v277_v8 = vpop.f32.mrf.mxu2  ;;  %v251_v10 = vpop.f32.mrf.mxu0 }
  0xa9   :  { %v291_v9 = vpop.f32.mrf.mxu3  ;;  %v337_v12 = vadd.f32 %v325_v3, %v251_v10  ;;  %v265_v13 = vpop.f32.mrf.mxu1  ;;  %v335_v21 = vadd.f32 %v327_v15, %v277_v8 }
  0xaa   :  { %v338_v16 = vadd.f32 %v326_v5, %v265_v13  ;;  %v336_v23 = vadd.f32 %v328_v17, %v291_v9 }
  0xab   :  { %v345_v18 = vmax.f32 %v337_v12, 0.0  ;;  %v343_v28 = vmax.f32 %v335_v21, 0.0 }
  0xac   :  { %v346_v19 = vmax.f32 %v338_v16, 0.0  ;;  %v344_v30 = vmax.f32 %v336_v23, 0.0 }
  0xad   :  { %v349_v20 = vpack.c.bf16 %v345_v18, %v341_v11 }
  0xae   :  { %v350_v22 = vpack.c.bf16 %v346_v19, %v342_v14 }
  0xaf   :  { %621 = vmatmul.bf16.vlgmr.msrb.gmra.mxu0 %v349_v20 }
  0xb0   :  { %v279_v24 = vpop.f32.mrf.mxu2  ;;  %635 = vmatmul.bf16.vlgmr.msrb.gmra.mxu1 %v350_v22 }
  0xb1   :  { %v339_v25 = vadd.f32 %v327_v15, %v279_v24  ;;  %v293_v26 = vpop.f32.mrf.mxu3 }
  0xb2   :  { %v340_v27 = vadd.f32 %v328_v17, %v293_v26 }
  0xb3   :  { %v347_v29 = vmax.f32 %v339_v25, 0.0 }
  0xb4   :  { %v348_v31 = vmax.f32 %v340_v27, 0.0 }
  0xb5   :  { %v351_v32 = vpack.c.bf16 %v347_v29, %v343_v28 }
  0xb6   :  { %v352_v33 = vpack.c.bf16 %v348_v31, %v344_v30 }
  0xb7   :  { %649 = vmatmul.bf16.vlgmr.msrb.gmra.mxu2 %v351_v32 }
  0xb8   :  { %663 = vmatmul.bf16.vlgmr.msrb.gmra.mxu3 %v352_v33 }
 0x12c   :  { %v622_v34 = vpop.f32.mrf.mxu0 }
 0x12d   :  { %v623_v36 = vadd.f32 %v1000_v35, %v622_v34  ;;  %v636_v37 = vpop.f32.mrf.mxu1 }
 0x12f   :  { %v637_v38 = vadd.f32 %v636_v37, %v623_v36 }
 0x134   :  { %v624_v39 = vpop.f32.mrf.mxu0 }
 0x135   :  { %v625_v43 = vadd.f32 %v1000_v35, %v624_v39  ;;  %v638_v45 = vpop.f32.mrf.mxu1 }
 0x137   :  { %v639_v46 = vadd.f32 %v638_v45, %v625_v43 }
 0x13a   :  { %v650_v40 = vpop.f32.mrf.mxu2 }
 0x13b   :  { %v651_v41 = vadd.f32 %v650_v40, %v637_v38  ;;  %v664_v42 = vpop.f32.mrf.mxu3 }
 0x13d   :  { %v665_v44 = vadd.f32 %v664_v42, %v651_v41 }
 0x13f   :  { %669 = vst [vmem:[%s1339_s5] sm:$0xff] %v665_v44 }
 0x142   :  { %v652_v47 = vpop.f32.mrf.mxu2 }
 0x143   :  { %v653_v48 = vadd.f32 %v652_v47, %v639_v46  ;;  %v666_v49 = vpop.f32.mrf.mxu3 }
 0x145   :  { %v667_v50 = vadd.f32 %v666_v49, %v653_v48 }
 0x147   :  { %670 = vst [vmem:[%s1339_s5 + $0x8] sm:$0xff] %v667_v50 }

</bundles_post_ra>
